<compile_context>
chip_gen: v6e
topology: v6e:2x2x1
jax: 0.10.0
libtpu: 0.0.40
codegen_flags: <defaults>
</compile_context>

<pallas_src>
import jax
import jax.numpy as jnp
from jax import lax
from jax.experimental import pallas as pl
from jax.experimental.pallas import tpu as pltpu

# ---------------- hyperparameters (args) ----------------
V = 32          # vocab size (num_embeddings)
E = 8           # embedding_dim
H = 16          # args.hs
C = 2 * H       # bidirectional hidden width (conv in-channels)
G = 4 * H       # per-direction gate width (i,f,g,o)
T = 16          # args.max_len (= every sequence length)
B = 4           # batch size
F = 8           # args.filter_number
NG = 4          # args.n_gram_num
D1 = 16         # args.dense_out
KS = (3, 5, 7, 9)
KMAX = KS[-1]


# ======================================================================
# The fused kernel: bi-LSTM recurrence + attention + conv branches + MLP.
# ======================================================================
def thu_ngn_kernel(xproj_ref, whh_ref, attn_w_ref,
                   wconv_ref, w1_ref, b1_ref, w2_ref, b2_ref,
                   out_ref, y_ref):
    f32 = jnp.float32

    # Load once; everything stays resident for the whole (single) invocation.
    xp = xproj_ref[...]      # (B, T, 2G): per-token gate pre-activations x@Wih + b, [fwd|bwd]
    whh = whh_ref[...]       # (2H, 2G): block-diagonal recurrent weights, [fwd|bwd]

    def halfcell(g4, c):     # g4: (B, G) pre-activations in PyTorch (i, f, g, o) order
        i = jax.nn.sigmoid(g4[:, 0:H])
        f = jax.nn.sigmoid(g4[:, H:2 * H])
        g = jnp.tanh(g4[:, 2 * H:3 * H])
        o = jax.nn.sigmoid(g4[:, 3 * H:4 * H])
        c_new = f * c + i * g
        h_new = o * jnp.tanh(c_new)
        return h_new, c_new

    h_f = jnp.zeros((B, H), f32)
    h_b = jnp.zeros((B, H), f32)
    c_f = jnp.zeros((B, H), f32)
    c_b = jnp.zeros((B, H), f32)

    # Statically unrolled recurrence: one fused 128-lane MXU push per step covers all
    # four gates of both directions (forward consumes time s, backward time T-1-s).
    for s in range(T):
        h_all = jnp.concatenate([h_f, h_b], axis=-1)                   # (B, 2H)
        rec = jnp.dot(h_all, whh, preferred_element_type=f32)          # (B, 2G)
        g_f = xp[:, s, 0:G] + rec[:, 0:G]
        g_b = xp[:, T - 1 - s, G:2 * G] + rec[:, G:2 * G]
        h_f, c_f = halfcell(g_f, c_f)
        h_b, c_b = halfcell(g_b, c_b)
        y_ref[:, s:s + 1, 0:H] = h_f.reshape(B, 1, H)
        y_ref[:, T - 1 - s:T - s, H:2 * H] = h_b.reshape(B, 1, H)

    # -------- attention + conv + MLP head, batched over B --------
    y = y_ref[...]                                                     # (B, T, 2H)
    hs2 = jnp.tanh(y)
    # Attention Linear bias is folded out: softmax over time is shift-invariant.
    scores = jnp.sum(hs2 * attn_w_ref[...], axis=-1, keepdims=True)    # (B, T, 1)
    e = jnp.exp(scores)
    denom = jnp.sum(e, axis=1, keepdims=True)                          # (B, 1, 1)
    ctx = e * pl.reciprocal(denom, approx=True)                        # softmax over time
    r = y * ctx                                                        # (B, T, 2H)

    # All four conv branches fused: wconv[j] holds [w3|w5|w7|w9] tap j (zero-padded past
    # each branch's kernel size), so each tap-shifted matmul feeds every branch at once.
    # Out-of-range / cross-sample contributions either hit zero weights or land in output
    # positions that the per-branch max-pool slices below never read.  Conv biases are
    # folded into fc1's bias at pack time (max(x+b) == max(x)+b).
    r2 = r.reshape(B * T, C)
    r_ext = jnp.concatenate([r2, jnp.zeros((KMAX - 1, C), f32)], axis=0)   # (B*T+8, C)
    wconv = wconv_ref[...]                                             # (KMAX, C, NG*F)
    acc = jnp.zeros((B * T, NG * F), f32)
    for j in range(KMAX):
        acc = acc + jnp.dot(r_ext[j:j + B * T, :], wconv[j],
                            preferred_element_type=f32)
    acc = acc.reshape(B, T, NG * F)

    feats = []
    for kb, k in enumerate(KS):
        # global max-pool over the k-specific valid output length T-k+1
        feats.append(jnp.max(acc[:, 0:T - k + 1, kb * F:(kb + 1) * F], axis=1))
    feat = jnp.concatenate(feats, axis=-1)                             # (B, NG*F)

    # b1 here is the pack-time fold  b_conv @ W1 + b1 .
    h1 = jnp.maximum(
        jnp.dot(feat, w1_ref[...], preferred_element_type=f32) + b1_ref[...], 0.0)
    logit = jnp.dot(h1, w2_ref[...], preferred_element_type=f32) + b2_ref[...]
    out_ref[...] = jax.nn.sigmoid(logit)                               # (B, 1)


def _full_spec(shape):
    return pl.BlockSpec(shape, lambda i: (0,) * len(shape))


def thu_ngn_pallas(xproj, w):
    in_shapes = [
        (B, T, 2 * G),        # xproj
        (2 * H, 2 * G),       # whh_all
        (1, C),               # attention weight (bias folded out)
        (KMAX, C, NG * F),    # fused conv filters (biases folded into b1)
        (NG * F, D1), (1, D1),            # fc1 (bias includes conv-bias fold)
        (D1, 1), (1, 1),                  # fc2
    ]
    grid_spec = pltpu.PrefetchScalarGridSpec(
        num_scalar_prefetch=0,
        grid=(1,),
        in_specs=[_full_spec(s) for s in in_shapes],
        out_specs=_full_spec((B, 1)),
        scratch_shapes=[pltpu.VMEM((B, T, C), jnp.float32)],
    )
    return pl.pallas_call(
        thu_ngn_kernel,
        grid_spec=grid_spec,
        out_shape=jax.ShapeDtypeStruct((B, 1), jnp.float32),
        compiler_params=pltpu.CompilerParams(dimension_semantics=("arbitrary",)),
    )(xproj, w["whh_all"], w["attn_w"],
      w["w_conv"], w["w1"], w["b1"], w["w2"], w["b2"])


# ======================================================================
# One-time weight re-layout (outside the per-inference path).
# ======================================================================
def pack_params(p):
    # Input projection columns: [i_f f_f g_f o_f | i_b f_b g_b o_b]
    wih_all = jnp.concatenate([p["wih_f"].T, p["wih_b"].T], axis=1)        # (E, 2G)
    b_all = jnp.concatenate([p["b_f"].reshape(1, G),
                             p["b_b"].reshape(1, G)], axis=1)              # (1, 2G)
    # Embedding is frozen -> fold projection + bias into the table: one gather per call.
    emb_proj = p["embedding"] @ wih_all + b_all                            # (V, 2G)

    # Block-diagonal recurrent weights: rows [h_f | h_b], cols [fwd gates | bwd gates].
    whh_all = jnp.zeros((2 * H, 2 * G), jnp.float32)
    whh_all = whh_all.at[0:H, 0:G].set(p["whh_f"].T)
    whh_all = whh_all.at[H:2 * H, G:2 * G].set(p["whh_b"].T)

    # Merge the four conv filter banks along F, zero-padding taps past each kernel size.
    w_conv = jnp.zeros((KMAX, C, NG * F), jnp.float32)
    for kb, k in enumerate(KS):
        w_conv = w_conv.at[0:k, :, kb * F:(kb + 1) * F].set(p[f"w{k}"])
    b_conv = jnp.concatenate([p[f"b{k}"] for k in KS], axis=1)             # (1, NG*F)

    # Exact folds:
    #   * attention bias cancels in the softmax -> dropped.
    #   * conv biases commute with the global max-pool and are linear into fc1:
    #     b1_eff = b_conv @ W1 + b1 .
    b1_eff = b_conv @ p["w1"] + p["b1"]                                    # (1, D1)

    return dict(emb_proj=emb_proj, whh_all=whh_all,
                attn_w=p["attn_w"].reshape(1, C),
                w_conv=w_conv,
                w1=p["w1"], b1=b1_eff, w2=p["w2"], b2=p["b2"])


@jax.jit
def thu_ngn_forward(ids, w):
    # Only XLA glue op per inference: gather on the pre-projected embedding table.
    xproj = w["emb_proj"][ids]                 # (B, T, 2G)
    return thu_ngn_pallas(xproj, w)            # (B, 1)


# ======================================================================
# Pure-JAX reference (same math, UNFOLDED weights) for correctness check.
# ======================================================================
def reference_forward(ids, p):
    emb = p["embedding"][ids]
    x = jnp.transpose(emb, (1, 0, 2))          # (T, B, E)

    def make_cell(wih, whh, b):
        bf = b.reshape(4 * H)

        def cell(carry, x_t):
            h, c = carry
            gates = x_t @ wih.T + h @ whh.T + bf
            i, f, g, o = jnp.split(gates, 4, axis=-1)
            i, f, o = jax.nn.sigmoid(i), jax.nn.sigmoid(f), jax.nn.sigmoid(o)
            g = jnp.tanh(g)
            c = f * c + i * g
            h = o * jnp.tanh(c)
            return (h, c), h
        return cell

    h0 = (jnp.zeros((B, H), jnp.float32), jnp.zeros((B, H), jnp.float32))
    _, hs_f = lax.scan(make_cell(p["wih_f"], p["whh_f"], p["b_f"]), h0, x)
    _, hs_b = lax.scan(make_cell(p["wih_b"], p["whh_b"], p["b_b"]), h0, x[::-1])
    hs_b = hs_b[::-1]
    y = jnp.transpose(jnp.concatenate([hs_f, hs_b], axis=-1), (1, 0, 2))   # (B, T, 2H)

    hs2 = jnp.tanh(y)
    un = hs2 @ p["attn_w"] + p["attn_b"]
    e = jnp.exp(un)
    ctx = e / jnp.sum(e, axis=(1, 2), keepdims=True)
    r = y * ctx

    feats = []
    for k in KS:
        w, b = p[f"w{k}"], p[f"b{k}"]
        lout = T - k + 1
        acc = jnp.zeros((B, lout, F), jnp.float32)
        for j in range(k):
            acc = acc + jnp.einsum("blc,cf->blf", r[:, j:j + lout, :], w[j])
        acc = acc + b
        feats.append(jnp.max(acc, axis=1))
    feat = jnp.concatenate(feats, axis=1)
    h1 = jnp.maximum(feat @ p["w1"] + p["b1"], 0.0)
    logit = h1 @ p["w2"] + p["b2"]
    return jax.nn.sigmoid(logit)


# ======================================================================
# Deterministic parameter init (PyTorch layouts, pre-transposed where noted).
# ======================================================================
def init_params(key):
    ks = jax.random.split(key, 24)

    def nrm(k, shape, scale=0.2):
        return scale * jax.random.normal(k, shape, jnp.float32)

    p = {}
    p["embedding"] = nrm(ks[0], (V, E), 0.5)
    # LSTM gate order (i, f, g, o) as in PyTorch; bias is b_ih + b_hh combined.
    p["wih_f"] = nrm(ks[1], (4 * H, E))
    p["whh_f"] = nrm(ks[2], (4 * H, H))
    p["b_f"] = nrm(ks[3], (4, 1, H), 0.1)
    p["wih_b"] = nrm(ks[4], (4 * H, E))
    p["whh_b"] = nrm(ks[5], (4 * H, H))
    p["b_b"] = nrm(ks[6], (4, 1, H), 0.1)
    p["attn_w"] = nrm(ks[7], (C, 1))
    p["attn_b"] = nrm(ks[8], (1, 1), 0.1)
    for i, k in enumerate(KS):
        p[f"w{k}"] = nrm(ks[9 + i], (k, C, F))   # (k, C_in, F) == PyTorch (F, C_in, k).T
        p[f"b{k}"] = nrm(ks[13 + i], (1, F), 0.1)
    p["w1"] = nrm(ks[17], (NG * F, D1))
    p["b1"] = nrm(ks[18], (1, D1), 0.1)
    p["w2"] = nrm(ks[19], (D1, 1))
    p["b2"] = nrm(ks[20], (1, 1), 0.1)
    return p


if __name__ == "__main__":
    key = jax.random.PRNGKey(0)
    pkey, ikey = jax.random.split(key)
    params = init_params(pkey)
    packed = pack_params(params)
    ids = jax.random.randint(ikey, (B, T), 0, V)       # (B, T) token ids, all length==max_len

    out = jax.block_until_ready(thu_ngn_forward(ids, packed))

    # f32 ("highest") gold reference with UNFOLDED biases; kernel matmuls run at default
    # single-pass MXU precision and use an approx reciprocal, so allow a small tolerance.
    with jax.default_matmul_precision("highest"):
        ref = jax.block_until_ready(reference_forward(ids, params))

    assert out.shape == (B, 1), out.shape
    max_diff = float(jnp.max(jnp.abs(out - ref)))
    assert max_diff < 2e-2, f"mismatch vs reference: {max_diff}"
    print("KERNEL_OK")
</pallas_src>

<mosaic_0001>
module attributes {stable_mosaic.version = 11 : i64} {
  func.func @thu_ngn_kernel(%arg0: i32, %arg1: memref<4x16x128xf32, #tpu.memory_space<vmem>>, %arg2: memref<32x128xf32, #tpu.memory_space<vmem>>, %arg3: memref<1x32xf32, #tpu.memory_space<vmem>>, %arg4: memref<9x32x32xf32, #tpu.memory_space<vmem>>, %arg5: memref<32x16xf32, #tpu.memory_space<vmem>>, %arg6: memref<1x16xf32, #tpu.memory_space<vmem>>, %arg7: memref<16x1xf32, #tpu.memory_space<vmem>>, %arg8: memref<1x1xf32, #tpu.memory_space<vmem>>, %arg9: memref<4x1xf32, #tpu.memory_space<vmem>>, %arg10: memref<4x16x32xf32, #tpu.memory_space<vmem>>) attributes {dimension_semantics = [#tpu.dimension_semantics<arbitrary>], iteration_bounds = array<i64: 1>, scalar_prefetch = 0 : i64, scratch_operands = 1 : i64, tpu.core_type = #tpu.core_type<tc>, window_params = [{pipeline_mode = #tpu.pipeline_mode<synchronous>, transform_indices = @transform_0, window_bounds = array<i64: 4, 16, 128>}, {pipeline_mode = #tpu.pipeline_mode<synchronous>, transform_indices = @transform_1, window_bounds = array<i64: 32, 128>}, {pipeline_mode = #tpu.pipeline_mode<synchronous>, transform_indices = @transform_2, window_bounds = array<i64: 1, 32>}, {pipeline_mode = #tpu.pipeline_mode<synchronous>, transform_indices = @transform_3, window_bounds = array<i64: 9, 32, 32>}, {pipeline_mode = #tpu.pipeline_mode<synchronous>, transform_indices = @transform_4, window_bounds = array<i64: 32, 16>}, {pipeline_mode = #tpu.pipeline_mode<synchronous>, transform_indices = @transform_5, window_bounds = array<i64: 1, 16>}, {pipeline_mode = #tpu.pipeline_mode<synchronous>, transform_indices = @transform_6, window_bounds = array<i64: 16, 1>}, {pipeline_mode = #tpu.pipeline_mode<synchronous>, transform_indices = @transform_7, window_bounds = array<i64: 1, 1>}, {pipeline_mode = #tpu.pipeline_mode<synchronous>, transform_indices = @transform_8, window_bounds = array<i64: 4, 1>}]} {
    %c0 = arith.constant 0 : index
    %c0_0 = arith.constant 0 : index
    %c0_1 = arith.constant 0 : index
    %0 = vector.load %arg1[%c0, %c0_0, %c0_1] : memref<4x16x128xf32, #tpu.memory_space<vmem>>, vector<4x16x128xf32>
    %c0_2 = arith.constant 0 : index
    %c0_3 = arith.constant 0 : index
    %1 = vector.load %arg2[%c0_2, %c0_3] : memref<32x128xf32, #tpu.memory_space<vmem>>, vector<32x128xf32>
    %cst = arith.constant 0.000000e+00 : f32
    %2 = vector.broadcast %cst : f32 to vector<4x16xf32>
    %cst_4 = arith.constant 0.000000e+00 : f32
    %3 = vector.broadcast %cst_4 : f32 to vector<4x16xf32>
    %cst_5 = arith.constant 0.000000e+00 : f32
    %4 = vector.broadcast %cst_5 : f32 to vector<4x16xf32>
    %cst_6 = arith.constant 0.000000e+00 : f32
    %5 = vector.broadcast %cst_6 : f32 to vector<4x16xf32>
    %6 = tpu.concatenate %2, %3 in 1 : vector<4x16xf32>, vector<4x16xf32> -> vector<4x32xf32>
    %cst_7 = arith.constant dense<0.000000e+00> : vector<4x128xf32>
    %7 = tpu.matmul %6, %1, %cst_7 {dimension_numbers = #tpu.dot_dimension_numbers<[1], [0], [0], [1], [0, 0, 1, 1], [], []>} : vector<4x32xf32>, vector<32x128xf32>, vector<4x128xf32> -> vector<4x128xf32>
    %8 = vector.extract_strided_slice %0 {offsets = [0, 0, 0], sizes = [4, 1, 64], strides = [1, 1, 1]} : vector<4x16x128xf32> to vector<4x1x64xf32>
    %9 = vector.shape_cast %8 : vector<4x1x64xf32> to vector<4x64xf32>
    %10 = vector.extract_strided_slice %7 {offsets = [0, 0], sizes = [4, 64], strides = [1, 1]} : vector<4x128xf32> to vector<4x64xf32>
    %11 = arith.addf %9, %10 : vector<4x64xf32>
    %12 = vector.extract_strided_slice %0 {offsets = [0, 15, 64], sizes = [4, 1, 64], strides = [1, 1, 1]} : vector<4x16x128xf32> to vector<4x1x64xf32>
    %13 = vector.shape_cast %12 : vector<4x1x64xf32> to vector<4x64xf32>
    %14 = vector.extract_strided_slice %7 {offsets = [0, 64], sizes = [4, 64], strides = [1, 1]} : vector<4x128xf32> to vector<4x64xf32>
    %15 = arith.addf %13, %14 : vector<4x64xf32>
    %16 = vector.extract_strided_slice %11 {offsets = [0, 0], sizes = [4, 16], strides = [1, 1]} : vector<4x64xf32> to vector<4x16xf32>
    %17 = arith.negf %16 : vector<4x16xf32>
    %18 = math.exp %17 : vector<4x16xf32>
    %cst_8 = arith.constant 1.000000e+00 : f32
    %19 = vector.broadcast %cst_8 : f32 to vector<4x16xf32>
    %20 = arith.addf %19, %18 : vector<4x16xf32>
    %21 = arith.divf %19, %20 : vector<4x16xf32>
    %22 = vector.extract_strided_slice %11 {offsets = [0, 16], sizes = [4, 16], strides = [1, 1]} : vector<4x64xf32> to vector<4x16xf32>
    %23 = arith.negf %22 : vector<4x16xf32>
    %24 = math.exp %23 : vector<4x16xf32>
    %cst_9 = arith.constant 1.000000e+00 : f32
    %25 = vector.broadcast %cst_9 : f32 to vector<4x16xf32>
    %26 = arith.addf %25, %24 : vector<4x16xf32>
    %27 = arith.divf %25, %26 : vector<4x16xf32>
    %28 = vector.extract_strided_slice %11 {offsets = [0, 32], sizes = [4, 16], strides = [1, 1]} : vector<4x64xf32> to vector<4x16xf32>
    %29 = math.tanh %28 : vector<4x16xf32>
    %30 = vector.extract_strided_slice %11 {offsets = [0, 48], sizes = [4, 16], strides = [1, 1]} : vector<4x64xf32> to vector<4x16xf32>
    %31 = arith.negf %30 : vector<4x16xf32>
    %32 = math.exp %31 : vector<4x16xf32>
    %cst_10 = arith.constant 1.000000e+00 : f32
    %33 = vector.broadcast %cst_10 : f32 to vector<4x16xf32>
    %34 = arith.addf %33, %32 : vector<4x16xf32>
    %35 = arith.divf %33, %34 : vector<4x16xf32>
    %36 = arith.mulf %27, %4 : vector<4x16xf32>
    %37 = arith.mulf %21, %29 : vector<4x16xf32>
    %38 = arith.addf %36, %37 : vector<4x16xf32>
    %39 = math.tanh %38 : vector<4x16xf32>
    %40 = arith.mulf %35, %39 : vector<4x16xf32>
    %41 = vector.extract_strided_slice %15 {offsets = [0, 0], sizes = [4, 16], strides = [1, 1]} : vector<4x64xf32> to vector<4x16xf32>
    %42 = arith.negf %41 : vector<4x16xf32>
    %43 = math.exp %42 : vector<4x16xf32>
    %cst_11 = arith.constant 1.000000e+00 : f32
    %44 = vector.broadcast %cst_11 : f32 to vector<4x16xf32>
    %45 = arith.addf %44, %43 : vector<4x16xf32>
    %46 = arith.divf %44, %45 : vector<4x16xf32>
    %47 = vector.extract_strided_slice %15 {offsets = [0, 16], sizes = [4, 16], strides = [1, 1]} : vector<4x64xf32> to vector<4x16xf32>
    %48 = arith.negf %47 : vector<4x16xf32>
    %49 = math.exp %48 : vector<4x16xf32>
    %cst_12 = arith.constant 1.000000e+00 : f32
    %50 = vector.broadcast %cst_12 : f32 to vector<4x16xf32>
    %51 = arith.addf %50, %49 : vector<4x16xf32>
    %52 = arith.divf %50, %51 : vector<4x16xf32>
    %53 = vector.extract_strided_slice %15 {offsets = [0, 32], sizes = [4, 16], strides = [1, 1]} : vector<4x64xf32> to vector<4x16xf32>
    %54 = math.tanh %53 : vector<4x16xf32>
    %55 = vector.extract_strided_slice %15 {offsets = [0, 48], sizes = [4, 16], strides = [1, 1]} : vector<4x64xf32> to vector<4x16xf32>
    %56 = arith.negf %55 : vector<4x16xf32>
    %57 = math.exp %56 : vector<4x16xf32>
    %cst_13 = arith.constant 1.000000e+00 : f32
    %58 = vector.broadcast %cst_13 : f32 to vector<4x16xf32>
    %59 = arith.addf %58, %57 : vector<4x16xf32>
    %60 = arith.divf %58, %59 : vector<4x16xf32>
    %61 = arith.mulf %52, %5 : vector<4x16xf32>
    %62 = arith.mulf %46, %54 : vector<4x16xf32>
    %63 = arith.addf %61, %62 : vector<4x16xf32>
    %64 = math.tanh %63 : vector<4x16xf32>
    %65 = arith.mulf %60, %64 : vector<4x16xf32>
    %66 = vector.shape_cast %40 : vector<4x16xf32> to vector<4x1x16xf32>
    %c0_14 = arith.constant 0 : index
    %c0_15 = arith.constant 0 : index
    %c0_16 = arith.constant 0 : index
    %67 = vector.load %arg10[%c0_14, %c0_15, %c0_16] : memref<4x16x32xf32, #tpu.memory_space<vmem>>, vector<4x1x16xf32>
    tpu.vector_store %arg10[%c0_14, %c0_15, %c0_16], %66 {strides = array<i32>} : memref<4x16x32xf32, #tpu.memory_space<vmem>>, vector<4x1x16xf32>,
    %68 = vector.shape_cast %65 : vector<4x16xf32> to vector<4x1x16xf32>
    %c0_17 = arith.constant 0 : index
    %c15 = arith.constant 15 : index
    %c16 = arith.constant 16 : index
    %69 = vector.load %arg10[%c0_17, %c15, %c16] : memref<4x16x32xf32, #tpu.memory_space<vmem>>, vector<4x1x16xf32>
    tpu.vector_store %arg10[%c0_17, %c15, %c16], %68 {strides = array<i32>} : memref<4x16x32xf32, #tpu.memory_space<vmem>>, vector<4x1x16xf32>,
    %70 = tpu.concatenate %40, %65 in 1 : vector<4x16xf32>, vector<4x16xf32> -> vector<4x32xf32>
    %cst_18 = arith.constant dense<0.000000e+00> : vector<4x128xf32>
    %71 = tpu.matmul %70, %1, %cst_18 {dimension_numbers = #tpu.dot_dimension_numbers<[1], [0], [0], [1], [0, 0, 1, 1], [], []>} : vector<4x32xf32>, vector<32x128xf32>, vector<4x128xf32> -> vector<4x128xf32>
    %72 = vector.extract_strided_slice %0 {offsets = [0, 1, 0], sizes = [4, 1, 64], strides = [1, 1, 1]} : vector<4x16x128xf32> to vector<4x1x64xf32>
    %73 = vector.shape_cast %72 : vector<4x1x64xf32> to vector<4x64xf32>
    %74 = vector.extract_strided_slice %71 {offsets = [0, 0], sizes = [4, 64], strides = [1, 1]} : vector<4x128xf32> to vector<4x64xf32>
    %75 = arith.addf %73, %74 : vector<4x64xf32>
    %76 = vector.extract_strided_slice %0 {offsets = [0, 14, 64], sizes = [4, 1, 64], strides = [1, 1, 1]} : vector<4x16x128xf32> to vector<4x1x64xf32>
    %77 = vector.shape_cast %76 : vector<4x1x64xf32> to vector<4x64xf32>
    %78 = vector.extract_strided_slice %71 {offsets = [0, 64], sizes = [4, 64], strides = [1, 1]} : vector<4x128xf32> to vector<4x64xf32>
    %79 = arith.addf %77, %78 : vector<4x64xf32>
    %80 = vector.extract_strided_slice %75 {offsets = [0, 0], sizes = [4, 16], strides = [1, 1]} : vector<4x64xf32> to vector<4x16xf32>
    %81 = arith.negf %80 : vector<4x16xf32>
    %82 = math.exp %81 : vector<4x16xf32>
    %cst_19 = arith.constant 1.000000e+00 : f32
    %83 = vector.broadcast %cst_19 : f32 to vector<4x16xf32>
    %84 = arith.addf %83, %82 : vector<4x16xf32>
    %85 = arith.divf %83, %84 : vector<4x16xf32>
    %86 = vector.extract_strided_slice %75 {offsets = [0, 16], sizes = [4, 16], strides = [1, 1]} : vector<4x64xf32> to vector<4x16xf32>
    %87 = arith.negf %86 : vector<4x16xf32>
    %88 = math.exp %87 : vector<4x16xf32>
    %cst_20 = arith.constant 1.000000e+00 : f32
    %89 = vector.broadcast %cst_20 : f32 to vector<4x16xf32>
    %90 = arith.addf %89, %88 : vector<4x16xf32>
    %91 = arith.divf %89, %90 : vector<4x16xf32>
    %92 = vector.extract_strided_slice %75 {offsets = [0, 32], sizes = [4, 16], strides = [1, 1]} : vector<4x64xf32> to vector<4x16xf32>
    %93 = math.tanh %92 : vector<4x16xf32>
    %94 = vector.extract_strided_slice %75 {offsets = [0, 48], sizes = [4, 16], strides = [1, 1]} : vector<4x64xf32> to vector<4x16xf32>
    %95 = arith.negf %94 : vector<4x16xf32>
    %96 = math.exp %95 : vector<4x16xf32>
    %cst_21 = arith.constant 1.000000e+00 : f32
    %97 = vector.broadcast %cst_21 : f32 to vector<4x16xf32>
    %98 = arith.addf %97, %96 : vector<4x16xf32>
    %99 = arith.divf %97, %98 : vector<4x16xf32>
    %100 = arith.mulf %91, %38 : vector<4x16xf32>
    %101 = arith.mulf %85, %93 : vector<4x16xf32>
    %102 = arith.addf %100, %101 : vector<4x16xf32>
    %103 = math.tanh %102 : vector<4x16xf32>
    %104 = arith.mulf %99, %103 : vector<4x16xf32>
    %105 = vector.extract_strided_slice %79 {offsets = [0, 0], sizes = [4, 16], strides = [1, 1]} : vector<4x64xf32> to vector<4x16xf32>
    %106 = arith.negf %105 : vector<4x16xf32>
    %107 = math.exp %106 : vector<4x16xf32>
    %cst_22 = arith.constant 1.000000e+00 : f32
    %108 = vector.broadcast %cst_22 : f32 to vector<4x16xf32>
    %109 = arith.addf %108, %107 : vector<4x16xf32>
    %110 = arith.divf %108, %109 : vector<4x16xf32>
    %111 = vector.extract_strided_slice %79 {offsets = [0, 16], sizes = [4, 16], strides = [1, 1]} : vector<4x64xf32> to vector<4x16xf32>
    %112 = arith.negf %111 : vector<4x16xf32>
    %113 = math.exp %112 : vector<4x16xf32>
    %cst_23 = arith.constant 1.000000e+00 : f32
    %114 = vector.broadcast %cst_23 : f32 to vector<4x16xf32>
    %115 = arith.addf %114, %113 : vector<4x16xf32>
    %116 = arith.divf %114, %115 : vector<4x16xf32>
    %117 = vector.extract_strided_slice %79 {offsets = [0, 32], sizes = [4, 16], strides = [1, 1]} : vector<4x64xf32> to vector<4x16xf32>
    %118 = math.tanh %117 : vector<4x16xf32>
    %119 = vector.extract_strided_slice %79 {offsets = [0, 48], sizes = [4, 16], strides = [1, 1]} : vector<4x64xf32> to vector<4x16xf32>
    %120 = arith.negf %119 : vector<4x16xf32>
    %121 = math.exp %120 : vector<4x16xf32>
    %cst_24 = arith.constant 1.000000e+00 : f32
    %122 = vector.broadcast %cst_24 : f32 to vector<4x16xf32>
    %123 = arith.addf %122, %121 : vector<4x16xf32>
    %124 = arith.divf %122, %123 : vector<4x16xf32>
    %125 = arith.mulf %116, %63 : vector<4x16xf32>
    %126 = arith.mulf %110, %118 : vector<4x16xf32>
    %127 = arith.addf %125, %126 : vector<4x16xf32>
    %128 = math.tanh %127 : vector<4x16xf32>
    %129 = arith.mulf %124, %128 : vector<4x16xf32>
    %130 = vector.shape_cast %104 : vector<4x16xf32> to vector<4x1x16xf32>
    %c0_25 = arith.constant 0 : index
    %c1 = arith.constant 1 : index
    %c0_26 = arith.constant 0 : index
    %131 = vector.load %arg10[%c0_25, %c1, %c0_26] : memref<4x16x32xf32, #tpu.memory_space<vmem>>, vector<4x1x16xf32>
    tpu.vector_store %arg10[%c0_25, %c1, %c0_26], %130 {strides = array<i32>} : memref<4x16x32xf32, #tpu.memory_space<vmem>>, vector<4x1x16xf32>,
    %132 = vector.shape_cast %129 : vector<4x16xf32> to vector<4x1x16xf32>
    %c0_27 = arith.constant 0 : index
    %c14 = arith.constant 14 : index
    %c16_28 = arith.constant 16 : index
    %133 = vector.load %arg10[%c0_27, %c14, %c16_28] : memref<4x16x32xf32, #tpu.memory_space<vmem>>, vector<4x1x16xf32>
    tpu.vector_store %arg10[%c0_27, %c14, %c16_28], %132 {strides = array<i32>} : memref<4x16x32xf32, #tpu.memory_space<vmem>>, vector<4x1x16xf32>,
    %134 = tpu.concatenate %104, %129 in 1 : vector<4x16xf32>, vector<4x16xf32> -> vector<4x32xf32>
    %cst_29 = arith.constant dense<0.000000e+00> : vector<4x128xf32>
    %135 = tpu.matmul %134, %1, %cst_29 {dimension_numbers = #tpu.dot_dimension_numbers<[1], [0], [0], [1], [0, 0, 1, 1], [], []>} : vector<4x32xf32>, vector<32x128xf32>, vector<4x128xf32> -> vector<4x128xf32>
    %136 = vector.extract_strided_slice %0 {offsets = [0, 2, 0], sizes = [4, 1, 64], strides = [1, 1, 1]} : vector<4x16x128xf32> to vector<4x1x64xf32>
    %137 = vector.shape_cast %136 : vector<4x1x64xf32> to vector<4x64xf32>
    %138 = vector.extract_strided_slice %135 {offsets = [0, 0], sizes = [4, 64], strides = [1, 1]} : vector<4x128xf32> to vector<4x64xf32>
    %139 = arith.addf %137, %138 : vector<4x64xf32>
    %140 = vector.extract_strided_slice %0 {offsets = [0, 13, 64], sizes = [4, 1, 64], strides = [1, 1, 1]} : vector<4x16x128xf32> to vector<4x1x64xf32>
    %141 = vector.shape_cast %140 : vector<4x1x64xf32> to vector<4x64xf32>
    %142 = vector.extract_strided_slice %135 {offsets = [0, 64], sizes = [4, 64], strides = [1, 1]} : vector<4x128xf32> to vector<4x64xf32>
    %143 = arith.addf %141, %142 : vector<4x64xf32>
    %144 = vector.extract_strided_slice %139 {offsets = [0, 0], sizes = [4, 16], strides = [1, 1]} : vector<4x64xf32> to vector<4x16xf32>
    %145 = arith.negf %144 : vector<4x16xf32>
    %146 = math.exp %145 : vector<4x16xf32>
    %cst_30 = arith.constant 1.000000e+00 : f32
    %147 = vector.broadcast %cst_30 : f32 to vector<4x16xf32>
    %148 = arith.addf %147, %146 : vector<4x16xf32>
    %149 = arith.divf %147, %148 : vector<4x16xf32>
    %150 = vector.extract_strided_slice %139 {offsets = [0, 16], sizes = [4, 16], strides = [1, 1]} : vector<4x64xf32> to vector<4x16xf32>
    %151 = arith.negf %150 : vector<4x16xf32>
    %152 = math.exp %151 : vector<4x16xf32>
    %cst_31 = arith.constant 1.000000e+00 : f32
    %153 = vector.broadcast %cst_31 : f32 to vector<4x16xf32>
    %154 = arith.addf %153, %152 : vector<4x16xf32>
    %155 = arith.divf %153, %154 : vector<4x16xf32>
    %156 = vector.extract_strided_slice %139 {offsets = [0, 32], sizes = [4, 16], strides = [1, 1]} : vector<4x64xf32> to vector<4x16xf32>
    %157 = math.tanh %156 : vector<4x16xf32>
    %158 = vector.extract_strided_slice %139 {offsets = [0, 48], sizes = [4, 16], strides = [1, 1]} : vector<4x64xf32> to vector<4x16xf32>
    %159 = arith.negf %158 : vector<4x16xf32>
    %160 = math.exp %159 : vector<4x16xf32>
    %cst_32 = arith.constant 1.000000e+00 : f32
    %161 = vector.broadcast %cst_32 : f32 to vector<4x16xf32>
    %162 = arith.addf %161, %160 : vector<4x16xf32>
    %163 = arith.divf %161, %162 : vector<4x16xf32>
    %164 = arith.mulf %155, %102 : vector<4x16xf32>
    %165 = arith.mulf %149, %157 : vector<4x16xf32>
    %166 = arith.addf %164, %165 : vector<4x16xf32>
    %167 = math.tanh %166 : vector<4x16xf32>
    %168 = arith.mulf %163, %167 : vector<4x16xf32>
    %169 = vector.extract_strided_slice %143 {offsets = [0, 0], sizes = [4, 16], strides = [1, 1]} : vector<4x64xf32> to vector<4x16xf32>
    %170 = arith.negf %169 : vector<4x16xf32>
    %171 = math.exp %170 : vector<4x16xf32>
    %cst_33 = arith.constant 1.000000e+00 : f32
    %172 = vector.broadcast %cst_33 : f32 to vector<4x16xf32>
    %173 = arith.addf %172, %171 : vector<4x16xf32>
    %174 = arith.divf %172, %173 : vector<4x16xf32>
    %175 = vector.extract_strided_slice %143 {offsets = [0, 16], sizes = [4, 16], strides = [1, 1]} : vector<4x64xf32> to vector<4x16xf32>
    %176 = arith.negf %175 : vector<4x16xf32>
    %177 = math.exp %176 : vector<4x16xf32>
    %cst_34 = arith.constant 1.000000e+00 : f32
    %178 = vector.broadcast %cst_34 : f32 to vector<4x16xf32>
    %179 = arith.addf %178, %177 : vector<4x16xf32>
    %180 = arith.divf %178, %179 : vector<4x16xf32>
    %181 = vector.extract_strided_slice %143 {offsets = [0, 32], sizes = [4, 16], strides = [1, 1]} : vector<4x64xf32> to vector<4x16xf32>
    %182 = math.tanh %181 : vector<4x16xf32>
    %183 = vector.extract_strided_slice %143 {offsets = [0, 48], sizes = [4, 16], strides = [1, 1]} : vector<4x64xf32> to vector<4x16xf32>
    %184 = arith.negf %183 : vector<4x16xf32>
    %185 = math.exp %184 : vector<4x16xf32>
    %cst_35 = arith.constant 1.000000e+00 : f32
    %186 = vector.broadcast %cst_35 : f32 to vector<4x16xf32>
    %187 = arith.addf %186, %185 : vector<4x16xf32>
    %188 = arith.divf %186, %187 : vector<4x16xf32>
    %189 = arith.mulf %180, %127 : vector<4x16xf32>
    %190 = arith.mulf %174, %182 : vector<4x16xf32>
    %191 = arith.addf %189, %190 : vector<4x16xf32>
    %192 = math.tanh %191 : vector<4x16xf32>
    %193 = arith.mulf %188, %192 : vector<4x16xf32>
    %194 = vector.shape_cast %168 : vector<4x16xf32> to vector<4x1x16xf32>
    %c0_36 = arith.constant 0 : index
    %c2 = arith.constant 2 : index
    %c0_37 = arith.constant 0 : index
    %195 = vector.load %arg10[%c0_36, %c2, %c0_37] : memref<4x16x32xf32, #tpu.memory_space<vmem>>, vector<4x1x16xf32>
    tpu.vector_store %arg10[%c0_36, %c2, %c0_37], %194 {strides = array<i32>} : memref<4x16x32xf32, #tpu.memory_space<vmem>>, vector<4x1x16xf32>,
    %196 = vector.shape_cast %193 : vector<4x16xf32> to vector<4x1x16xf32>
    %c0_38 = arith.constant 0 : index
    %c13 = arith.constant 13 : index
    %c16_39 = arith.constant 16 : index
    %197 = vector.load %arg10[%c0_38, %c13, %c16_39] : memref<4x16x32xf32, #tpu.memory_space<vmem>>, vector<4x1x16xf32>
    tpu.vector_store %arg10[%c0_38, %c13, %c16_39], %196 {strides = array<i32>} : memref<4x16x32xf32, #tpu.memory_space<vmem>>, vector<4x1x16xf32>,
    %198 = tpu.concatenate %168, %193 in 1 : vector<4x16xf32>, vector<4x16xf32> -> vector<4x32xf32>
    %cst_40 = arith.constant dense<0.000000e+00> : vector<4x128xf32>
    %199 = tpu.matmul %198, %1, %cst_40 {dimension_numbers = #tpu.dot_dimension_numbers<[1], [0], [0], [1], [0, 0, 1, 1], [], []>} : vector<4x32xf32>, vector<32x128xf32>, vector<4x128xf32> -> vector<4x128xf32>
    %200 = vector.extract_strided_slice %0 {offsets = [0, 3, 0], sizes = [4, 1, 64], strides = [1, 1, 1]} : vector<4x16x128xf32> to vector<4x1x64xf32>
    %201 = vector.shape_cast %200 : vector<4x1x64xf32> to vector<4x64xf32>
    %202 = vector.extract_strided_slice %199 {offsets = [0, 0], sizes = [4, 64], strides = [1, 1]} : vector<4x128xf32> to vector<4x64xf32>
    %203 = arith.addf %201, %202 : vector<4x64xf32>
    %204 = vector.extract_strided_slice %0 {offsets = [0, 12, 64], sizes = [4, 1, 64], strides = [1, 1, 1]} : vector<4x16x128xf32> to vector<4x1x64xf32>
    %205 = vector.shape_cast %204 : vector<4x1x64xf32> to vector<4x64xf32>
    %206 = vector.extract_strided_slice %199 {offsets = [0, 64], sizes = [4, 64], strides = [1, 1]} : vector<4x128xf32> to vector<4x64xf32>
    %207 = arith.addf %205, %206 : vector<4x64xf32>
    %208 = vector.extract_strided_slice %203 {offsets = [0, 0], sizes = [4, 16], strides = [1, 1]} : vector<4x64xf32> to vector<4x16xf32>
    %209 = arith.negf %208 : vector<4x16xf32>
    %210 = math.exp %209 : vector<4x16xf32>
    %cst_41 = arith.constant 1.000000e+00 : f32
    %211 = vector.broadcast %cst_41 : f32 to vector<4x16xf32>
    %212 = arith.addf %211, %210 : vector<4x16xf32>
    %213 = arith.divf %211, %212 : vector<4x16xf32>
    %214 = vector.extract_strided_slice %203 {offsets = [0, 16], sizes = [4, 16], strides = [1, 1]} : vector<4x64xf32> to vector<4x16xf32>
    %215 = arith.negf %214 : vector<4x16xf32>
    %216 = math.exp %215 : vector<4x16xf32>
    %cst_42 = arith.constant 1.000000e+00 : f32
    %217 = vector.broadcast %cst_42 : f32 to vector<4x16xf32>
    %218 = arith.addf %217, %216 : vector<4x16xf32>
    %219 = arith.divf %217, %218 : vector<4x16xf32>
    %220 = vector.extract_strided_slice %203 {offsets = [0, 32], sizes = [4, 16], strides = [1, 1]} : vector<4x64xf32> to vector<4x16xf32>
    %221 = math.tanh %220 : vector<4x16xf32>
    %222 = vector.extract_strided_slice %203 {offsets = [0, 48], sizes = [4, 16], strides = [1, 1]} : vector<4x64xf32> to vector<4x16xf32>
    %223 = arith.negf %222 : vector<4x16xf32>
    %224 = math.exp %223 : vector<4x16xf32>
    %cst_43 = arith.constant 1.000000e+00 : f32
    %225 = vector.broadcast %cst_43 : f32 to vector<4x16xf32>
    %226 = arith.addf %225, %224 : vector<4x16xf32>
    %227 = arith.divf %225, %226 : vector<4x16xf32>
    %228 = arith.mulf %219, %166 : vector<4x16xf32>
    %229 = arith.mulf %213, %221 : vector<4x16xf32>
    %230 = arith.addf %228, %229 : vector<4x16xf32>
    %231 = math.tanh %230 : vector<4x16xf32>
    %232 = arith.mulf %227, %231 : vector<4x16xf32>
    %233 = vector.extract_strided_slice %207 {offsets = [0, 0], sizes = [4, 16], strides = [1, 1]} : vector<4x64xf32> to vector<4x16xf32>
    %234 = arith.negf %233 : vector<4x16xf32>
    %235 = math.exp %234 : vector<4x16xf32>
    %cst_44 = arith.constant 1.000000e+00 : f32
    %236 = vector.broadcast %cst_44 : f32 to vector<4x16xf32>
    %237 = arith.addf %236, %235 : vector<4x16xf32>
    %238 = arith.divf %236, %237 : vector<4x16xf32>
    %239 = vector.extract_strided_slice %207 {offsets = [0, 16], sizes = [4, 16], strides = [1, 1]} : vector<4x64xf32> to vector<4x16xf32>
    %240 = arith.negf %239 : vector<4x16xf32>
    %241 = math.exp %240 : vector<4x16xf32>
    %cst_45 = arith.constant 1.000000e+00 : f32
    %242 = vector.broadcast %cst_45 : f32 to vector<4x16xf32>
    %243 = arith.addf %242, %241 : vector<4x16xf32>
    %244 = arith.divf %242, %243 : vector<4x16xf32>
    %245 = vector.extract_strided_slice %207 {offsets = [0, 32], sizes = [4, 16], strides = [1, 1]} : vector<4x64xf32> to vector<4x16xf32>
    %246 = math.tanh %245 : vector<4x16xf32>
    %247 = vector.extract_strided_slice %207 {offsets = [0, 48], sizes = [4, 16], strides = [1, 1]} : vector<4x64xf32> to vector<4x16xf32>
    %248 = arith.negf %247 : vector<4x16xf32>
    %249 = math.exp %248 : vector<4x16xf32>
    %cst_46 = arith.constant 1.000000e+00 : f32
    %250 = vector.broadcast %cst_46 : f32 to vector<4x16xf32>
    %251 = arith.addf %250, %249 : vector<4x16xf32>
    %252 = arith.divf %250, %251 : vector<4x16xf32>
    %253 = arith.mulf %244, %191 : vector<4x16xf32>
    %254 = arith.mulf %238, %246 : vector<4x16xf32>
    %255 = arith.addf %253, %254 : vector<4x16xf32>
    %256 = math.tanh %255 : vector<4x16xf32>
    %257 = arith.mulf %252, %256 : vector<4x16xf32>
    %258 = vector.shape_cast %232 : vector<4x16xf32> to vector<4x1x16xf32>
    %c0_47 = arith.constant 0 : index
    %c3 = arith.constant 3 : index
    %c0_48 = arith.constant 0 : index
    %259 = vector.load %arg10[%c0_47, %c3, %c0_48] : memref<4x16x32xf32, #tpu.memory_space<vmem>>, vector<4x1x16xf32>
    tpu.vector_store %arg10[%c0_47, %c3, %c0_48], %258 {strides = array<i32>} : memref<4x16x32xf32, #tpu.memory_space<vmem>>, vector<4x1x16xf32>,
    %260 = vector.shape_cast %257 : vector<4x16xf32> to vector<4x1x16xf32>
    %c0_49 = arith.constant 0 : index
    %c12 = arith.constant 12 : index
    %c16_50 = arith.constant 16 : index
    %261 = vector.load %arg10[%c0_49, %c12, %c16_50] : memref<4x16x32xf32, #tpu.memory_space<vmem>>, vector<4x1x16xf32>
    tpu.vector_store %arg10[%c0_49, %c12, %c16_50], %260 {strides = array<i32>} : memref<4x16x32xf32, #tpu.memory_space<vmem>>, vector<4x1x16xf32>,
    %262 = tpu.concatenate %232, %257 in 1 : vector<4x16xf32>, vector<4x16xf32> -> vector<4x32xf32>
    %cst_51 = arith.constant dense<0.000000e+00> : vector<4x128xf32>
    %263 = tpu.matmul %262, %1, %cst_51 {dimension_numbers = #tpu.dot_dimension_numbers<[1], [0], [0], [1], [0, 0, 1, 1], [], []>} : vector<4x32xf32>, vector<32x128xf32>, vector<4x128xf32> -> vector<4x128xf32>
    %264 = vector.extract_strided_slice %0 {offsets = [0, 4, 0], sizes = [4, 1, 64], strides = [1, 1, 1]} : vector<4x16x128xf32> to vector<4x1x64xf32>
    %265 = vector.shape_cast %264 : vector<4x1x64xf32> to vector<4x64xf32>
    %266 = vector.extract_strided_slice %263 {offsets = [0, 0], sizes = [4, 64], strides = [1, 1]} : vector<4x128xf32> to vector<4x64xf32>
    %267 = arith.addf %265, %266 : vector<4x64xf32>
    %268 = vector.extract_strided_slice %0 {offsets = [0, 11, 64], sizes = [4, 1, 64], strides = [1, 1, 1]} : vector<4x16x128xf32> to vector<4x1x64xf32>
    %269 = vector.shape_cast %268 : vector<4x1x64xf32> to vector<4x64xf32>
    %270 = vector.extract_strided_slice %263 {offsets = [0, 64], sizes = [4, 64], strides = [1, 1]} : vector<4x128xf32> to vector<4x64xf32>
    %271 = arith.addf %269, %270 : vector<4x64xf32>
    %272 = vector.extract_strided_slice %267 {offsets = [0, 0], sizes = [4, 16], strides = [1, 1]} : vector<4x64xf32> to vector<4x16xf32>
    %273 = arith.negf %272 : vector<4x16xf32>
    %274 = math.exp %273 : vector<4x16xf32>
    %cst_52 = arith.constant 1.000000e+00 : f32
    %275 = vector.broadcast %cst_52 : f32 to vector<4x16xf32>
    %276 = arith.addf %275, %274 : vector<4x16xf32>
    %277 = arith.divf %275, %276 : vector<4x16xf32>
    %278 = vector.extract_strided_slice %267 {offsets = [0, 16], sizes = [4, 16], strides = [1, 1]} : vector<4x64xf32> to vector<4x16xf32>
    %279 = arith.negf %278 : vector<4x16xf32>
    %280 = math.exp %279 : vector<4x16xf32>
    %cst_53 = arith.constant 1.000000e+00 : f32
    %281 = vector.broadcast %cst_53 : f32 to vector<4x16xf32>
    %282 = arith.addf %281, %280 : vector<4x16xf32>
    %283 = arith.divf %281, %282 : vector<4x16xf32>
    %284 = vector.extract_strided_slice %267 {offsets = [0, 32], sizes = [4, 16], strides = [1, 1]} : vector<4x64xf32> to vector<4x16xf32>
    %285 = math.tanh %284 : vector<4x16xf32>
    %286 = vector.extract_strided_slice %267 {offsets = [0, 48], sizes = [4, 16], strides = [1, 1]} : vector<4x64xf32> to vector<4x16xf32>
    %287 = arith.negf %286 : vector<4x16xf32>
    %288 = math.exp %287 : vector<4x16xf32>
    %cst_54 = arith.constant 1.000000e+00 : f32
    %289 = vector.broadcast %cst_54 : f32 to vector<4x16xf32>
    %290 = arith.addf %289, %288 : vector<4x16xf32>
    %291 = arith.divf %289, %290 : vector<4x16xf32>
    %292 = arith.mulf %283, %230 : vector<4x16xf32>
    %293 = arith.mulf %277, %285 : vector<4x16xf32>
    %294 = arith.addf %292, %293 : vector<4x16xf32>
    %295 = math.tanh %294 : vector<4x16xf32>
    %296 = arith.mulf %291, %295 : vector<4x16xf32>
    %297 = vector.extract_strided_slice %271 {offsets = [0, 0], sizes = [4, 16], strides = [1, 1]} : vector<4x64xf32> to vector<4x16xf32>
    %298 = arith.negf %297 : vector<4x16xf32>
    %299 = math.exp %298 : vector<4x16xf32>
    %cst_55 = arith.constant 1.000000e+00 : f32
    %300 = vector.broadcast %cst_55 : f32 to vector<4x16xf32>
    %301 = arith.addf %300, %299 : vector<4x16xf32>
    %302 = arith.divf %300, %301 : vector<4x16xf32>
    %303 = vector.extract_strided_slice %271 {offsets = [0, 16], sizes = [4, 16], strides = [1, 1]} : vector<4x64xf32> to vector<4x16xf32>
    %304 = arith.negf %303 : vector<4x16xf32>
    %305 = math.exp %304 : vector<4x16xf32>
    %cst_56 = arith.constant 1.000000e+00 : f32
    %306 = vector.broadcast %cst_56 : f32 to vector<4x16xf32>
    %307 = arith.addf %306, %305 : vector<4x16xf32>
    %308 = arith.divf %306, %307 : vector<4x16xf32>
    %309 = vector.extract_strided_slice %271 {offsets = [0, 32], sizes = [4, 16], strides = [1, 1]} : vector<4x64xf32> to vector<4x16xf32>
    %310 = math.tanh %309 : vector<4x16xf32>
    %311 = vector.extract_strided_slice %271 {offsets = [0, 48], sizes = [4, 16], strides = [1, 1]} : vector<4x64xf32> to vector<4x16xf32>
    %312 = arith.negf %311 : vector<4x16xf32>
    %313 = math.exp %312 : vector<4x16xf32>
    %cst_57 = arith.constant 1.000000e+00 : f32
    %314 = vector.broadcast %cst_57 : f32 to vector<4x16xf32>
    %315 = arith.addf %314, %313 : vector<4x16xf32>
    %316 = arith.divf %314, %315 : vector<4x16xf32>
    %317 = arith.mulf %308, %255 : vector<4x16xf32>
    %318 = arith.mulf %302, %310 : vector<4x16xf32>
    %319 = arith.addf %317, %318 : vector<4x16xf32>
    %320 = math.tanh %319 : vector<4x16xf32>
    %321 = arith.mulf %316, %320 : vector<4x16xf32>
    %322 = vector.shape_cast %296 : vector<4x16xf32> to vector<4x1x16xf32>
    %c0_58 = arith.constant 0 : index
    %c4 = arith.constant 4 : index
    %c0_59 = arith.constant 0 : index
    %323 = vector.load %arg10[%c0_58, %c4, %c0_59] : memref<4x16x32xf32, #tpu.memory_space<vmem>>, vector<4x1x16xf32>
    tpu.vector_store %arg10[%c0_58, %c4, %c0_59], %322 {strides = array<i32>} : memref<4x16x32xf32, #tpu.memory_space<vmem>>, vector<4x1x16xf32>,
    %324 = vector.shape_cast %321 : vector<4x16xf32> to vector<4x1x16xf32>
    %c0_60 = arith.constant 0 : index
    %c11 = arith.constant 11 : index
    %c16_61 = arith.constant 16 : index
    %325 = vector.load %arg10[%c0_60, %c11, %c16_61] : memref<4x16x32xf32, #tpu.memory_space<vmem>>, vector<4x1x16xf32>
    tpu.vector_store %arg10[%c0_60, %c11, %c16_61], %324 {strides = array<i32>} : memref<4x16x32xf32, #tpu.memory_space<vmem>>, vector<4x1x16xf32>,
    %326 = tpu.concatenate %296, %321 in 1 : vector<4x16xf32>, vector<4x16xf32> -> vector<4x32xf32>
    %cst_62 = arith.constant dense<0.000000e+00> : vector<4x128xf32>
    %327 = tpu.matmul %326, %1, %cst_62 {dimension_numbers = #tpu.dot_dimension_numbers<[1], [0], [0], [1], [0, 0, 1, 1], [], []>} : vector<4x32xf32>, vector<32x128xf32>, vector<4x128xf32> -> vector<4x128xf32>
    %328 = vector.extract_strided_slice %0 {offsets = [0, 5, 0], sizes = [4, 1, 64], strides = [1, 1, 1]} : vector<4x16x128xf32> to vector<4x1x64xf32>
    %329 = vector.shape_cast %328 : vector<4x1x64xf32> to vector<4x64xf32>
    %330 = vector.extract_strided_slice %327 {offsets = [0, 0], sizes = [4, 64], strides = [1, 1]} : vector<4x128xf32> to vector<4x64xf32>
    %331 = arith.addf %329, %330 : vector<4x64xf32>
    %332 = vector.extract_strided_slice %0 {offsets = [0, 10, 64], sizes = [4, 1, 64], strides = [1, 1, 1]} : vector<4x16x128xf32> to vector<4x1x64xf32>
    %333 = vector.shape_cast %332 : vector<4x1x64xf32> to vector<4x64xf32>
    %334 = vector.extract_strided_slice %327 {offsets = [0, 64], sizes = [4, 64], strides = [1, 1]} : vector<4x128xf32> to vector<4x64xf32>
    %335 = arith.addf %333, %334 : vector<4x64xf32>
    %336 = vector.extract_strided_slice %331 {offsets = [0, 0], sizes = [4, 16], strides = [1, 1]} : vector<4x64xf32> to vector<4x16xf32>
    %337 = arith.negf %336 : vector<4x16xf32>
    %338 = math.exp %337 : vector<4x16xf32>
    %cst_63 = arith.constant 1.000000e+00 : f32
    %339 = vector.broadcast %cst_63 : f32 to vector<4x16xf32>
    %340 = arith.addf %339, %338 : vector<4x16xf32>
    %341 = arith.divf %339, %340 : vector<4x16xf32>
    %342 = vector.extract_strided_slice %331 {offsets = [0, 16], sizes = [4, 16], strides = [1, 1]} : vector<4x64xf32> to vector<4x16xf32>
    %343 = arith.negf %342 : vector<4x16xf32>
    %344 = math.exp %343 : vector<4x16xf32>
    %cst_64 = arith.constant 1.000000e+00 : f32
    %345 = vector.broadcast %cst_64 : f32 to vector<4x16xf32>
    %346 = arith.addf %345, %344 : vector<4x16xf32>
    %347 = arith.divf %345, %346 : vector<4x16xf32>
    %348 = vector.extract_strided_slice %331 {offsets = [0, 32], sizes = [4, 16], strides = [1, 1]} : vector<4x64xf32> to vector<4x16xf32>
    %349 = math.tanh %348 : vector<4x16xf32>
    %350 = vector.extract_strided_slice %331 {offsets = [0, 48], sizes = [4, 16], strides = [1, 1]} : vector<4x64xf32> to vector<4x16xf32>
    %351 = arith.negf %350 : vector<4x16xf32>
    %352 = math.exp %351 : vector<4x16xf32>
    %cst_65 = arith.constant 1.000000e+00 : f32
    %353 = vector.broadcast %cst_65 : f32 to vector<4x16xf32>
    %354 = arith.addf %353, %352 : vector<4x16xf32>
    %355 = arith.divf %353, %354 : vector<4x16xf32>
    %356 = arith.mulf %347, %294 : vector<4x16xf32>
    %357 = arith.mulf %341, %349 : vector<4x16xf32>
    %358 = arith.addf %356, %357 : vector<4x16xf32>
    %359 = math.tanh %358 : vector<4x16xf32>
    %360 = arith.mulf %355, %359 : vector<4x16xf32>
    %361 = vector.extract_strided_slice %335 {offsets = [0, 0], sizes = [4, 16], strides = [1, 1]} : vector<4x64xf32> to vector<4x16xf32>
    %362 = arith.negf %361 : vector<4x16xf32>
    %363 = math.exp %362 : vector<4x16xf32>
    %cst_66 = arith.constant 1.000000e+00 : f32
    %364 = vector.broadcast %cst_66 : f32 to vector<4x16xf32>
    %365 = arith.addf %364, %363 : vector<4x16xf32>
    %366 = arith.divf %364, %365 : vector<4x16xf32>
    %367 = vector.extract_strided_slice %335 {offsets = [0, 16], sizes = [4, 16], strides = [1, 1]} : vector<4x64xf32> to vector<4x16xf32>
    %368 = arith.negf %367 : vector<4x16xf32>
    %369 = math.exp %368 : vector<4x16xf32>
    %cst_67 = arith.constant 1.000000e+00 : f32
    %370 = vector.broadcast %cst_67 : f32 to vector<4x16xf32>
    %371 = arith.addf %370, %369 : vector<4x16xf32>
    %372 = arith.divf %370, %371 : vector<4x16xf32>
    %373 = vector.extract_strided_slice %335 {offsets = [0, 32], sizes = [4, 16], strides = [1, 1]} : vector<4x64xf32> to vector<4x16xf32>
    %374 = math.tanh %373 : vector<4x16xf32>
    %375 = vector.extract_strided_slice %335 {offsets = [0, 48], sizes = [4, 16], strides = [1, 1]} : vector<4x64xf32> to vector<4x16xf32>
    %376 = arith.negf %375 : vector<4x16xf32>
    %377 = math.exp %376 : vector<4x16xf32>
    %cst_68 = arith.constant 1.000000e+00 : f32
    %378 = vector.broadcast %cst_68 : f32 to vector<4x16xf32>
    %379 = arith.addf %378, %377 : vector<4x16xf32>
    %380 = arith.divf %378, %379 : vector<4x16xf32>
    %381 = arith.mulf %372, %319 : vector<4x16xf32>
    %382 = arith.mulf %366, %374 : vector<4x16xf32>
    %383 = arith.addf %381, %382 : vector<4x16xf32>
    %384 = math.tanh %383 : vector<4x16xf32>
    %385 = arith.mulf %380, %384 : vector<4x16xf32>
    %386 = vector.shape_cast %360 : vector<4x16xf32> to vector<4x1x16xf32>
    %c0_69 = arith.constant 0 : index
    %c5 = arith.constant 5 : index
    %c0_70 = arith.constant 0 : index
    %387 = vector.load %arg10[%c0_69, %c5, %c0_70] : memref<4x16x32xf32, #tpu.memory_space<vmem>>, vector<4x1x16xf32>
    tpu.vector_store %arg10[%c0_69, %c5, %c0_70], %386 {strides = array<i32>} : memref<4x16x32xf32, #tpu.memory_space<vmem>>, vector<4x1x16xf32>,
    %388 = vector.shape_cast %385 : vector<4x16xf32> to vector<4x1x16xf32>
    %c0_71 = arith.constant 0 : index
    %c10 = arith.constant 10 : index
    %c16_72 = arith.constant 16 : index
    %389 = vector.load %arg10[%c0_71, %c10, %c16_72] : memref<4x16x32xf32, #tpu.memory_space<vmem>>, vector<4x1x16xf32>
    tpu.vector_store %arg10[%c0_71, %c10, %c16_72], %388 {strides = array<i32>} : memref<4x16x32xf32, #tpu.memory_space<vmem>>, vector<4x1x16xf32>,
    %390 = tpu.concatenate %360, %385 in 1 : vector<4x16xf32>, vector<4x16xf32> -> vector<4x32xf32>
    %cst_73 = arith.constant dense<0.000000e+00> : vector<4x128xf32>
    %391 = tpu.matmul %390, %1, %cst_73 {dimension_numbers = #tpu.dot_dimension_numbers<[1], [0], [0], [1], [0, 0, 1, 1], [], []>} : vector<4x32xf32>, vector<32x128xf32>, vector<4x128xf32> -> vector<4x128xf32>
    %392 = vector.extract_strided_slice %0 {offsets = [0, 6, 0], sizes = [4, 1, 64], strides = [1, 1, 1]} : vector<4x16x128xf32> to vector<4x1x64xf32>
    %393 = vector.shape_cast %392 : vector<4x1x64xf32> to vector<4x64xf32>
    %394 = vector.extract_strided_slice %391 {offsets = [0, 0], sizes = [4, 64], strides = [1, 1]} : vector<4x128xf32> to vector<4x64xf32>
    %395 = arith.addf %393, %394 : vector<4x64xf32>
    %396 = vector.extract_strided_slice %0 {offsets = [0, 9, 64], sizes = [4, 1, 64], strides = [1, 1, 1]} : vector<4x16x128xf32> to vector<4x1x64xf32>
    %397 = vector.shape_cast %396 : vector<4x1x64xf32> to vector<4x64xf32>
    %398 = vector.extract_strided_slice %391 {offsets = [0, 64], sizes = [4, 64], strides = [1, 1]} : vector<4x128xf32> to vector<4x64xf32>
    %399 = arith.addf %397, %398 : vector<4x64xf32>
    %400 = vector.extract_strided_slice %395 {offsets = [0, 0], sizes = [4, 16], strides = [1, 1]} : vector<4x64xf32> to vector<4x16xf32>
    %401 = arith.negf %400 : vector<4x16xf32>
    %402 = math.exp %401 : vector<4x16xf32>
    %cst_74 = arith.constant 1.000000e+00 : f32
    %403 = vector.broadcast %cst_74 : f32 to vector<4x16xf32>
    %404 = arith.addf %403, %402 : vector<4x16xf32>
    %405 = arith.divf %403, %404 : vector<4x16xf32>
    %406 = vector.extract_strided_slice %395 {offsets = [0, 16], sizes = [4, 16], strides = [1, 1]} : vector<4x64xf32> to vector<4x16xf32>
    %407 = arith.negf %406 : vector<4x16xf32>
    %408 = math.exp %407 : vector<4x16xf32>
    %cst_75 = arith.constant 1.000000e+00 : f32
    %409 = vector.broadcast %cst_75 : f32 to vector<4x16xf32>
    %410 = arith.addf %409, %408 : vector<4x16xf32>
    %411 = arith.divf %409, %410 : vector<4x16xf32>
    %412 = vector.extract_strided_slice %395 {offsets = [0, 32], sizes = [4, 16], strides = [1, 1]} : vector<4x64xf32> to vector<4x16xf32>
    %413 = math.tanh %412 : vector<4x16xf32>
    %414 = vector.extract_strided_slice %395 {offsets = [0, 48], sizes = [4, 16], strides = [1, 1]} : vector<4x64xf32> to vector<4x16xf32>
    %415 = arith.negf %414 : vector<4x16xf32>
    %416 = math.exp %415 : vector<4x16xf32>
    %cst_76 = arith.constant 1.000000e+00 : f32
    %417 = vector.broadcast %cst_76 : f32 to vector<4x16xf32>
    %418 = arith.addf %417, %416 : vector<4x16xf32>
    %419 = arith.divf %417, %418 : vector<4x16xf32>
    %420 = arith.mulf %411, %358 : vector<4x16xf32>
    %421 = arith.mulf %405, %413 : vector<4x16xf32>
    %422 = arith.addf %420, %421 : vector<4x16xf32>
    %423 = math.tanh %422 : vector<4x16xf32>
    %424 = arith.mulf %419, %423 : vector<4x16xf32>
    %425 = vector.extract_strided_slice %399 {offsets = [0, 0], sizes = [4, 16], strides = [1, 1]} : vector<4x64xf32> to vector<4x16xf32>
    %426 = arith.negf %425 : vector<4x16xf32>
    %427 = math.exp %426 : vector<4x16xf32>
    %cst_77 = arith.constant 1.000000e+00 : f32
    %428 = vector.broadcast %cst_77 : f32 to vector<4x16xf32>
    %429 = arith.addf %428, %427 : vector<4x16xf32>
    %430 = arith.divf %428, %429 : vector<4x16xf32>
    %431 = vector.extract_strided_slice %399 {offsets = [0, 16], sizes = [4, 16], strides = [1, 1]} : vector<4x64xf32> to vector<4x16xf32>
    %432 = arith.negf %431 : vector<4x16xf32>
    %433 = math.exp %432 : vector<4x16xf32>
    %cst_78 = arith.constant 1.000000e+00 : f32
    %434 = vector.broadcast %cst_78 : f32 to vector<4x16xf32>
    %435 = arith.addf %434, %433 : vector<4x16xf32>
    %436 = arith.divf %434, %435 : vector<4x16xf32>
    %437 = vector.extract_strided_slice %399 {offsets = [0, 32], sizes = [4, 16], strides = [1, 1]} : vector<4x64xf32> to vector<4x16xf32>
    %438 = math.tanh %437 : vector<4x16xf32>
    %439 = vector.extract_strided_slice %399 {offsets = [0, 48], sizes = [4, 16], strides = [1, 1]} : vector<4x64xf32> to vector<4x16xf32>
    %440 = arith.negf %439 : vector<4x16xf32>
    %441 = math.exp %440 : vector<4x16xf32>
    %cst_79 = arith.constant 1.000000e+00 : f32
    %442 = vector.broadcast %cst_79 : f32 to vector<4x16xf32>
    %443 = arith.addf %442, %441 : vector<4x16xf32>
    %444 = arith.divf %442, %443 : vector<4x16xf32>
    %445 = arith.mulf %436, %383 : vector<4x16xf32>
    %446 = arith.mulf %430, %438 : vector<4x16xf32>
    %447 = arith.addf %445, %446 : vector<4x16xf32>
    %448 = math.tanh %447 : vector<4x16xf32>
    %449 = arith.mulf %444, %448 : vector<4x16xf32>
    %450 = vector.shape_cast %424 : vector<4x16xf32> to vector<4x1x16xf32>
    %c0_80 = arith.constant 0 : index
    %c6 = arith.constant 6 : index
    %c0_81 = arith.constant 0 : index
    %451 = vector.load %arg10[%c0_80, %c6, %c0_81] : memref<4x16x32xf32, #tpu.memory_space<vmem>>, vector<4x1x16xf32>
    tpu.vector_store %arg10[%c0_80, %c6, %c0_81], %450 {strides = array<i32>} : memref<4x16x32xf32, #tpu.memory_space<vmem>>, vector<4x1x16xf32>,
    %452 = vector.shape_cast %449 : vector<4x16xf32> to vector<4x1x16xf32>
    %c0_82 = arith.constant 0 : index
    %c9 = arith.constant 9 : index
    %c16_83 = arith.constant 16 : index
    %453 = vector.load %arg10[%c0_82, %c9, %c16_83] : memref<4x16x32xf32, #tpu.memory_space<vmem>>, vector<4x1x16xf32>
    tpu.vector_store %arg10[%c0_82, %c9, %c16_83], %452 {strides = array<i32>} : memref<4x16x32xf32, #tpu.memory_space<vmem>>, vector<4x1x16xf32>,
    %454 = tpu.concatenate %424, %449 in 1 : vector<4x16xf32>, vector<4x16xf32> -> vector<4x32xf32>
    %cst_84 = arith.constant dense<0.000000e+00> : vector<4x128xf32>
    %455 = tpu.matmul %454, %1, %cst_84 {dimension_numbers = #tpu.dot_dimension_numbers<[1], [0], [0], [1], [0, 0, 1, 1], [], []>} : vector<4x32xf32>, vector<32x128xf32>, vector<4x128xf32> -> vector<4x128xf32>
    %456 = vector.extract_strided_slice %0 {offsets = [0, 7, 0], sizes = [4, 1, 64], strides = [1, 1, 1]} : vector<4x16x128xf32> to vector<4x1x64xf32>
    %457 = vector.shape_cast %456 : vector<4x1x64xf32> to vector<4x64xf32>
    %458 = vector.extract_strided_slice %455 {offsets = [0, 0], sizes = [4, 64], strides = [1, 1]} : vector<4x128xf32> to vector<4x64xf32>
    %459 = arith.addf %457, %458 : vector<4x64xf32>
    %460 = vector.extract_strided_slice %0 {offsets = [0, 8, 64], sizes = [4, 1, 64], strides = [1, 1, 1]} : vector<4x16x128xf32> to vector<4x1x64xf32>
    %461 = vector.shape_cast %460 : vector<4x1x64xf32> to vector<4x64xf32>
    %462 = vector.extract_strided_slice %455 {offsets = [0, 64], sizes = [4, 64], strides = [1, 1]} : vector<4x128xf32> to vector<4x64xf32>
    %463 = arith.addf %461, %462 : vector<4x64xf32>
    %464 = vector.extract_strided_slice %459 {offsets = [0, 0], sizes = [4, 16], strides = [1, 1]} : vector<4x64xf32> to vector<4x16xf32>
    %465 = arith.negf %464 : vector<4x16xf32>
    %466 = math.exp %465 : vector<4x16xf32>
    %cst_85 = arith.constant 1.000000e+00 : f32
    %467 = vector.broadcast %cst_85 : f32 to vector<4x16xf32>
    %468 = arith.addf %467, %466 : vector<4x16xf32>
    %469 = arith.divf %467, %468 : vector<4x16xf32>
    %470 = vector.extract_strided_slice %459 {offsets = [0, 16], sizes = [4, 16], strides = [1, 1]} : vector<4x64xf32> to vector<4x16xf32>
    %471 = arith.negf %470 : vector<4x16xf32>
    %472 = math.exp %471 : vector<4x16xf32>
    %cst_86 = arith.constant 1.000000e+00 : f32
    %473 = vector.broadcast %cst_86 : f32 to vector<4x16xf32>
    %474 = arith.addf %473, %472 : vector<4x16xf32>
    %475 = arith.divf %473, %474 : vector<4x16xf32>
    %476 = vector.extract_strided_slice %459 {offsets = [0, 32], sizes = [4, 16], strides = [1, 1]} : vector<4x64xf32> to vector<4x16xf32>
    %477 = math.tanh %476 : vector<4x16xf32>
    %478 = vector.extract_strided_slice %459 {offsets = [0, 48], sizes = [4, 16], strides = [1, 1]} : vector<4x64xf32> to vector<4x16xf32>
    %479 = arith.negf %478 : vector<4x16xf32>
    %480 = math.exp %479 : vector<4x16xf32>
    %cst_87 = arith.constant 1.000000e+00 : f32
    %481 = vector.broadcast %cst_87 : f32 to vector<4x16xf32>
    %482 = arith.addf %481, %480 : vector<4x16xf32>
    %483 = arith.divf %481, %482 : vector<4x16xf32>
    %484 = arith.mulf %475, %422 : vector<4x16xf32>
    %485 = arith.mulf %469, %477 : vector<4x16xf32>
    %486 = arith.addf %484, %485 : vector<4x16xf32>
    %487 = math.tanh %486 : vector<4x16xf32>
    %488 = arith.mulf %483, %487 : vector<4x16xf32>
    %489 = vector.extract_strided_slice %463 {offsets = [0, 0], sizes = [4, 16], strides = [1, 1]} : vector<4x64xf32> to vector<4x16xf32>
    %490 = arith.negf %489 : vector<4x16xf32>
    %491 = math.exp %490 : vector<4x16xf32>
    %cst_88 = arith.constant 1.000000e+00 : f32
    %492 = vector.broadcast %cst_88 : f32 to vector<4x16xf32>
    %493 = arith.addf %492, %491 : vector<4x16xf32>
    %494 = arith.divf %492, %493 : vector<4x16xf32>
    %495 = vector.extract_strided_slice %463 {offsets = [0, 16], sizes = [4, 16], strides = [1, 1]} : vector<4x64xf32> to vector<4x16xf32>
    %496 = arith.negf %495 : vector<4x16xf32>
    %497 = math.exp %496 : vector<4x16xf32>
    %cst_89 = arith.constant 1.000000e+00 : f32
    %498 = vector.broadcast %cst_89 : f32 to vector<4x16xf32>
    %499 = arith.addf %498, %497 : vector<4x16xf32>
    %500 = arith.divf %498, %499 : vector<4x16xf32>
    %501 = vector.extract_strided_slice %463 {offsets = [0, 32], sizes = [4, 16], strides = [1, 1]} : vector<4x64xf32> to vector<4x16xf32>
    %502 = math.tanh %501 : vector<4x16xf32>
    %503 = vector.extract_strided_slice %463 {offsets = [0, 48], sizes = [4, 16], strides = [1, 1]} : vector<4x64xf32> to vector<4x16xf32>
    %504 = arith.negf %503 : vector<4x16xf32>
    %505 = math.exp %504 : vector<4x16xf32>
    %cst_90 = arith.constant 1.000000e+00 : f32
    %506 = vector.broadcast %cst_90 : f32 to vector<4x16xf32>
    %507 = arith.addf %506, %505 : vector<4x16xf32>
    %508 = arith.divf %506, %507 : vector<4x16xf32>
    %509 = arith.mulf %500, %447 : vector<4x16xf32>
    %510 = arith.mulf %494, %502 : vector<4x16xf32>
    %511 = arith.addf %509, %510 : vector<4x16xf32>
    %512 = math.tanh %511 : vector<4x16xf32>
    %513 = arith.mulf %508, %512 : vector<4x16xf32>
    %514 = vector.shape_cast %488 : vector<4x16xf32> to vector<4x1x16xf32>
    %c0_91 = arith.constant 0 : index
    %c7 = arith.constant 7 : index
    %c0_92 = arith.constant 0 : index
    %515 = vector.load %arg10[%c0_91, %c7, %c0_92] : memref<4x16x32xf32, #tpu.memory_space<vmem>>, vector<4x1x16xf32>
    tpu.vector_store %arg10[%c0_91, %c7, %c0_92], %514 {strides = array<i32>} : memref<4x16x32xf32, #tpu.memory_space<vmem>>, vector<4x1x16xf32>,
    %516 = vector.shape_cast %513 : vector<4x16xf32> to vector<4x1x16xf32>
    %c0_93 = arith.constant 0 : index
    %c8 = arith.constant 8 : index
    %c16_94 = arith.constant 16 : index
    %517 = vector.load %arg10[%c0_93, %c8, %c16_94] : memref<4x16x32xf32, #tpu.memory_space<vmem>>, vector<4x1x16xf32>
    tpu.vector_store %arg10[%c0_93, %c8, %c16_94], %516 {strides = array<i32>} : memref<4x16x32xf32, #tpu.memory_space<vmem>>, vector<4x1x16xf32>,
    %518 = tpu.concatenate %488, %513 in 1 : vector<4x16xf32>, vector<4x16xf32> -> vector<4x32xf32>
    %cst_95 = arith.constant dense<0.000000e+00> : vector<4x128xf32>
    %519 = tpu.matmul %518, %1, %cst_95 {dimension_numbers = #tpu.dot_dimension_numbers<[1], [0], [0], [1], [0, 0, 1, 1], [], []>} : vector<4x32xf32>, vector<32x128xf32>, vector<4x128xf32> -> vector<4x128xf32>
    %520 = vector.extract_strided_slice %0 {offsets = [0, 8, 0], sizes = [4, 1, 64], strides = [1, 1, 1]} : vector<4x16x128xf32> to vector<4x1x64xf32>
    %521 = vector.shape_cast %520 : vector<4x1x64xf32> to vector<4x64xf32>
    %522 = vector.extract_strided_slice %519 {offsets = [0, 0], sizes = [4, 64], strides = [1, 1]} : vector<4x128xf32> to vector<4x64xf32>
    %523 = arith.addf %521, %522 : vector<4x64xf32>
    %524 = vector.extract_strided_slice %0 {offsets = [0, 7, 64], sizes = [4, 1, 64], strides = [1, 1, 1]} : vector<4x16x128xf32> to vector<4x1x64xf32>
    %525 = vector.shape_cast %524 : vector<4x1x64xf32> to vector<4x64xf32>
    %526 = vector.extract_strided_slice %519 {offsets = [0, 64], sizes = [4, 64], strides = [1, 1]} : vector<4x128xf32> to vector<4x64xf32>
    %527 = arith.addf %525, %526 : vector<4x64xf32>
    %528 = vector.extract_strided_slice %523 {offsets = [0, 0], sizes = [4, 16], strides = [1, 1]} : vector<4x64xf32> to vector<4x16xf32>
    %529 = arith.negf %528 : vector<4x16xf32>
    %530 = math.exp %529 : vector<4x16xf32>
    %cst_96 = arith.constant 1.000000e+00 : f32
    %531 = vector.broadcast %cst_96 : f32 to vector<4x16xf32>
    %532 = arith.addf %531, %530 : vector<4x16xf32>
    %533 = arith.divf %531, %532 : vector<4x16xf32>
    %534 = vector.extract_strided_slice %523 {offsets = [0, 16], sizes = [4, 16], strides = [1, 1]} : vector<4x64xf32> to vector<4x16xf32>
    %535 = arith.negf %534 : vector<4x16xf32>
    %536 = math.exp %535 : vector<4x16xf32>
    %cst_97 = arith.constant 1.000000e+00 : f32
    %537 = vector.broadcast %cst_97 : f32 to vector<4x16xf32>
    %538 = arith.addf %537, %536 : vector<4x16xf32>
    %539 = arith.divf %537, %538 : vector<4x16xf32>
    %540 = vector.extract_strided_slice %523 {offsets = [0, 32], sizes = [4, 16], strides = [1, 1]} : vector<4x64xf32> to vector<4x16xf32>
    %541 = math.tanh %540 : vector<4x16xf32>
    %542 = vector.extract_strided_slice %523 {offsets = [0, 48], sizes = [4, 16], strides = [1, 1]} : vector<4x64xf32> to vector<4x16xf32>
    %543 = arith.negf %542 : vector<4x16xf32>
    %544 = math.exp %543 : vector<4x16xf32>
    %cst_98 = arith.constant 1.000000e+00 : f32
    %545 = vector.broadcast %cst_98 : f32 to vector<4x16xf32>
    %546 = arith.addf %545, %544 : vector<4x16xf32>
    %547 = arith.divf %545, %546 : vector<4x16xf32>
    %548 = arith.mulf %539, %486 : vector<4x16xf32>
    %549 = arith.mulf %533, %541 : vector<4x16xf32>
    %550 = arith.addf %548, %549 : vector<4x16xf32>
    %551 = math.tanh %550 : vector<4x16xf32>
    %552 = arith.mulf %547, %551 : vector<4x16xf32>
    %553 = vector.extract_strided_slice %527 {offsets = [0, 0], sizes = [4, 16], strides = [1, 1]} : vector<4x64xf32> to vector<4x16xf32>
    %554 = arith.negf %553 : vector<4x16xf32>
    %555 = math.exp %554 : vector<4x16xf32>
    %cst_99 = arith.constant 1.000000e+00 : f32
    %556 = vector.broadcast %cst_99 : f32 to vector<4x16xf32>
    %557 = arith.addf %556, %555 : vector<4x16xf32>
    %558 = arith.divf %556, %557 : vector<4x16xf32>
    %559 = vector.extract_strided_slice %527 {offsets = [0, 16], sizes = [4, 16], strides = [1, 1]} : vector<4x64xf32> to vector<4x16xf32>
    %560 = arith.negf %559 : vector<4x16xf32>
    %561 = math.exp %560 : vector<4x16xf32>
    %cst_100 = arith.constant 1.000000e+00 : f32
    %562 = vector.broadcast %cst_100 : f32 to vector<4x16xf32>
    %563 = arith.addf %562, %561 : vector<4x16xf32>
    %564 = arith.divf %562, %563 : vector<4x16xf32>
    %565 = vector.extract_strided_slice %527 {offsets = [0, 32], sizes = [4, 16], strides = [1, 1]} : vector<4x64xf32> to vector<4x16xf32>
    %566 = math.tanh %565 : vector<4x16xf32>
    %567 = vector.extract_strided_slice %527 {offsets = [0, 48], sizes = [4, 16], strides = [1, 1]} : vector<4x64xf32> to vector<4x16xf32>
    %568 = arith.negf %567 : vector<4x16xf32>
    %569 = math.exp %568 : vector<4x16xf32>
    %cst_101 = arith.constant 1.000000e+00 : f32
    %570 = vector.broadcast %cst_101 : f32 to vector<4x16xf32>
    %571 = arith.addf %570, %569 : vector<4x16xf32>
    %572 = arith.divf %570, %571 : vector<4x16xf32>
    %573 = arith.mulf %564, %511 : vector<4x16xf32>
    %574 = arith.mulf %558, %566 : vector<4x16xf32>
    %575 = arith.addf %573, %574 : vector<4x16xf32>
    %576 = math.tanh %575 : vector<4x16xf32>
    %577 = arith.mulf %572, %576 : vector<4x16xf32>
    %578 = vector.shape_cast %552 : vector<4x16xf32> to vector<4x1x16xf32>
    %c0_102 = arith.constant 0 : index
    %c8_103 = arith.constant 8 : index
    %c0_104 = arith.constant 0 : index
    %579 = vector.load %arg10[%c0_102, %c8_103, %c0_104] : memref<4x16x32xf32, #tpu.memory_space<vmem>>, vector<4x1x16xf32>
    tpu.vector_store %arg10[%c0_102, %c8_103, %c0_104], %578 {strides = array<i32>} : memref<4x16x32xf32, #tpu.memory_space<vmem>>, vector<4x1x16xf32>,
    %580 = vector.shape_cast %577 : vector<4x16xf32> to vector<4x1x16xf32>
    %c0_105 = arith.constant 0 : index
    %c7_106 = arith.constant 7 : index
    %c16_107 = arith.constant 16 : index
    %581 = vector.load %arg10[%c0_105, %c7_106, %c16_107] : memref<4x16x32xf32, #tpu.memory_space<vmem>>, vector<4x1x16xf32>
    tpu.vector_store %arg10[%c0_105, %c7_106, %c16_107], %580 {strides = array<i32>} : memref<4x16x32xf32, #tpu.memory_space<vmem>>, vector<4x1x16xf32>,
    %582 = tpu.concatenate %552, %577 in 1 : vector<4x16xf32>, vector<4x16xf32> -> vector<4x32xf32>
    %cst_108 = arith.constant dense<0.000000e+00> : vector<4x128xf32>
    %583 = tpu.matmul %582, %1, %cst_108 {dimension_numbers = #tpu.dot_dimension_numbers<[1], [0], [0], [1], [0, 0, 1, 1], [], []>} : vector<4x32xf32>, vector<32x128xf32>, vector<4x128xf32> -> vector<4x128xf32>
    %584 = vector.extract_strided_slice %0 {offsets = [0, 9, 0], sizes = [4, 1, 64], strides = [1, 1, 1]} : vector<4x16x128xf32> to vector<4x1x64xf32>
    %585 = vector.shape_cast %584 : vector<4x1x64xf32> to vector<4x64xf32>
    %586 = vector.extract_strided_slice %583 {offsets = [0, 0], sizes = [4, 64], strides = [1, 1]} : vector<4x128xf32> to vector<4x64xf32>
    %587 = arith.addf %585, %586 : vector<4x64xf32>
    %588 = vector.extract_strided_slice %0 {offsets = [0, 6, 64], sizes = [4, 1, 64], strides = [1, 1, 1]} : vector<4x16x128xf32> to vector<4x1x64xf32>
    %589 = vector.shape_cast %588 : vector<4x1x64xf32> to vector<4x64xf32>
    %590 = vector.extract_strided_slice %583 {offsets = [0, 64], sizes = [4, 64], strides = [1, 1]} : vector<4x128xf32> to vector<4x64xf32>
    %591 = arith.addf %589, %590 : vector<4x64xf32>
    %592 = vector.extract_strided_slice %587 {offsets = [0, 0], sizes = [4, 16], strides = [1, 1]} : vector<4x64xf32> to vector<4x16xf32>
    %593 = arith.negf %592 : vector<4x16xf32>
    %594 = math.exp %593 : vector<4x16xf32>
    %cst_109 = arith.constant 1.000000e+00 : f32
    %595 = vector.broadcast %cst_109 : f32 to vector<4x16xf32>
    %596 = arith.addf %595, %594 : vector<4x16xf32>
    %597 = arith.divf %595, %596 : vector<4x16xf32>
    %598 = vector.extract_strided_slice %587 {offsets = [0, 16], sizes = [4, 16], strides = [1, 1]} : vector<4x64xf32> to vector<4x16xf32>
    %599 = arith.negf %598 : vector<4x16xf32>
    %600 = math.exp %599 : vector<4x16xf32>
    %cst_110 = arith.constant 1.000000e+00 : f32
    %601 = vector.broadcast %cst_110 : f32 to vector<4x16xf32>
    %602 = arith.addf %601, %600 : vector<4x16xf32>
    %603 = arith.divf %601, %602 : vector<4x16xf32>
    %604 = vector.extract_strided_slice %587 {offsets = [0, 32], sizes = [4, 16], strides = [1, 1]} : vector<4x64xf32> to vector<4x16xf32>
    %605 = math.tanh %604 : vector<4x16xf32>
    %606 = vector.extract_strided_slice %587 {offsets = [0, 48], sizes = [4, 16], strides = [1, 1]} : vector<4x64xf32> to vector<4x16xf32>
    %607 = arith.negf %606 : vector<4x16xf32>
    %608 = math.exp %607 : vector<4x16xf32>
    %cst_111 = arith.constant 1.000000e+00 : f32
    %609 = vector.broadcast %cst_111 : f32 to vector<4x16xf32>
    %610 = arith.addf %609, %608 : vector<4x16xf32>
    %611 = arith.divf %609, %610 : vector<4x16xf32>
    %612 = arith.mulf %603, %550 : vector<4x16xf32>
    %613 = arith.mulf %597, %605 : vector<4x16xf32>
    %614 = arith.addf %612, %613 : vector<4x16xf32>
    %615 = math.tanh %614 : vector<4x16xf32>
    %616 = arith.mulf %611, %615 : vector<4x16xf32>
    %617 = vector.extract_strided_slice %591 {offsets = [0, 0], sizes = [4, 16], strides = [1, 1]} : vector<4x64xf32> to vector<4x16xf32>
    %618 = arith.negf %617 : vector<4x16xf32>
    %619 = math.exp %618 : vector<4x16xf32>
    %cst_112 = arith.constant 1.000000e+00 : f32
    %620 = vector.broadcast %cst_112 : f32 to vector<4x16xf32>
    %621 = arith.addf %620, %619 : vector<4x16xf32>
    %622 = arith.divf %620, %621 : vector<4x16xf32>
    %623 = vector.extract_strided_slice %591 {offsets = [0, 16], sizes = [4, 16], strides = [1, 1]} : vector<4x64xf32> to vector<4x16xf32>
    %624 = arith.negf %623 : vector<4x16xf32>
    %625 = math.exp %624 : vector<4x16xf32>
    %cst_113 = arith.constant 1.000000e+00 : f32
    %626 = vector.broadcast %cst_113 : f32 to vector<4x16xf32>
    %627 = arith.addf %626, %625 : vector<4x16xf32>
    %628 = arith.divf %626, %627 : vector<4x16xf32>
    %629 = vector.extract_strided_slice %591 {offsets = [0, 32], sizes = [4, 16], strides = [1, 1]} : vector<4x64xf32> to vector<4x16xf32>
    %630 = math.tanh %629 : vector<4x16xf32>
    %631 = vector.extract_strided_slice %591 {offsets = [0, 48], sizes = [4, 16], strides = [1, 1]} : vector<4x64xf32> to vector<4x16xf32>
    %632 = arith.negf %631 : vector<4x16xf32>
    %633 = math.exp %632 : vector<4x16xf32>
    %cst_114 = arith.constant 1.000000e+00 : f32
    %634 = vector.broadcast %cst_114 : f32 to vector<4x16xf32>
    %635 = arith.addf %634, %633 : vector<4x16xf32>
    %636 = arith.divf %634, %635 : vector<4x16xf32>
    %637 = arith.mulf %628, %575 : vector<4x16xf32>
    %638 = arith.mulf %622, %630 : vector<4x16xf32>
    %639 = arith.addf %637, %638 : vector<4x16xf32>
    %640 = math.tanh %639 : vector<4x16xf32>
    %641 = arith.mulf %636, %640 : vector<4x16xf32>
    %642 = vector.shape_cast %616 : vector<4x16xf32> to vector<4x1x16xf32>
    %c0_115 = arith.constant 0 : index
    %c9_116 = arith.constant 9 : index
    %c0_117 = arith.constant 0 : index
    %643 = vector.load %arg10[%c0_115, %c9_116, %c0_117] : memref<4x16x32xf32, #tpu.memory_space<vmem>>, vector<4x1x16xf32>
    tpu.vector_store %arg10[%c0_115, %c9_116, %c0_117], %642 {strides = array<i32>} : memref<4x16x32xf32, #tpu.memory_space<vmem>>, vector<4x1x16xf32>,
    %644 = vector.shape_cast %641 : vector<4x16xf32> to vector<4x1x16xf32>
    %c0_118 = arith.constant 0 : index
    %c6_119 = arith.constant 6 : index
    %c16_120 = arith.constant 16 : index
    %645 = vector.load %arg10[%c0_118, %c6_119, %c16_120] : memref<4x16x32xf32, #tpu.memory_space<vmem>>, vector<4x1x16xf32>
    tpu.vector_store %arg10[%c0_118, %c6_119, %c16_120], %644 {strides = array<i32>} : memref<4x16x32xf32, #tpu.memory_space<vmem>>, vector<4x1x16xf32>,
    %646 = tpu.concatenate %616, %641 in 1 : vector<4x16xf32>, vector<4x16xf32> -> vector<4x32xf32>
    %cst_121 = arith.constant dense<0.000000e+00> : vector<4x128xf32>
    %647 = tpu.matmul %646, %1, %cst_121 {dimension_numbers = #tpu.dot_dimension_numbers<[1], [0], [0], [1], [0, 0, 1, 1], [], []>} : vector<4x32xf32>, vector<32x128xf32>, vector<4x128xf32> -> vector<4x128xf32>
    %648 = vector.extract_strided_slice %0 {offsets = [0, 10, 0], sizes = [4, 1, 64], strides = [1, 1, 1]} : vector<4x16x128xf32> to vector<4x1x64xf32>
    %649 = vector.shape_cast %648 : vector<4x1x64xf32> to vector<4x64xf32>
    %650 = vector.extract_strided_slice %647 {offsets = [0, 0], sizes = [4, 64], strides = [1, 1]} : vector<4x128xf32> to vector<4x64xf32>
    %651 = arith.addf %649, %650 : vector<4x64xf32>
    %652 = vector.extract_strided_slice %0 {offsets = [0, 5, 64], sizes = [4, 1, 64], strides = [1, 1, 1]} : vector<4x16x128xf32> to vector<4x1x64xf32>
    %653 = vector.shape_cast %652 : vector<4x1x64xf32> to vector<4x64xf32>
    %654 = vector.extract_strided_slice %647 {offsets = [0, 64], sizes = [4, 64], strides = [1, 1]} : vector<4x128xf32> to vector<4x64xf32>
    %655 = arith.addf %653, %654 : vector<4x64xf32>
    %656 = vector.extract_strided_slice %651 {offsets = [0, 0], sizes = [4, 16], strides = [1, 1]} : vector<4x64xf32> to vector<4x16xf32>
    %657 = arith.negf %656 : vector<4x16xf32>
    %658 = math.exp %657 : vector<4x16xf32>
    %cst_122 = arith.constant 1.000000e+00 : f32
    %659 = vector.broadcast %cst_122 : f32 to vector<4x16xf32>
    %660 = arith.addf %659, %658 : vector<4x16xf32>
    %661 = arith.divf %659, %660 : vector<4x16xf32>
    %662 = vector.extract_strided_slice %651 {offsets = [0, 16], sizes = [4, 16], strides = [1, 1]} : vector<4x64xf32> to vector<4x16xf32>
    %663 = arith.negf %662 : vector<4x16xf32>
    %664 = math.exp %663 : vector<4x16xf32>
    %cst_123 = arith.constant 1.000000e+00 : f32
    %665 = vector.broadcast %cst_123 : f32 to vector<4x16xf32>
    %666 = arith.addf %665, %664 : vector<4x16xf32>
    %667 = arith.divf %665, %666 : vector<4x16xf32>
    %668 = vector.extract_strided_slice %651 {offsets = [0, 32], sizes = [4, 16], strides = [1, 1]} : vector<4x64xf32> to vector<4x16xf32>
    %669 = math.tanh %668 : vector<4x16xf32>
    %670 = vector.extract_strided_slice %651 {offsets = [0, 48], sizes = [4, 16], strides = [1, 1]} : vector<4x64xf32> to vector<4x16xf32>
    %671 = arith.negf %670 : vector<4x16xf32>
    %672 = math.exp %671 : vector<4x16xf32>
    %cst_124 = arith.constant 1.000000e+00 : f32
    %673 = vector.broadcast %cst_124 : f32 to vector<4x16xf32>
    %674 = arith.addf %673, %672 : vector<4x16xf32>
    %675 = arith.divf %673, %674 : vector<4x16xf32>
    %676 = arith.mulf %667, %614 : vector<4x16xf32>
    %677 = arith.mulf %661, %669 : vector<4x16xf32>
    %678 = arith.addf %676, %677 : vector<4x16xf32>
    %679 = math.tanh %678 : vector<4x16xf32>
    %680 = arith.mulf %675, %679 : vector<4x16xf32>
    %681 = vector.extract_strided_slice %655 {offsets = [0, 0], sizes = [4, 16], strides = [1, 1]} : vector<4x64xf32> to vector<4x16xf32>
    %682 = arith.negf %681 : vector<4x16xf32>
    %683 = math.exp %682 : vector<4x16xf32>
    %cst_125 = arith.constant 1.000000e+00 : f32
    %684 = vector.broadcast %cst_125 : f32 to vector<4x16xf32>
    %685 = arith.addf %684, %683 : vector<4x16xf32>
    %686 = arith.divf %684, %685 : vector<4x16xf32>
    %687 = vector.extract_strided_slice %655 {offsets = [0, 16], sizes = [4, 16], strides = [1, 1]} : vector<4x64xf32> to vector<4x16xf32>
    %688 = arith.negf %687 : vector<4x16xf32>
    %689 = math.exp %688 : vector<4x16xf32>
    %cst_126 = arith.constant 1.000000e+00 : f32
    %690 = vector.broadcast %cst_126 : f32 to vector<4x16xf32>
    %691 = arith.addf %690, %689 : vector<4x16xf32>
    %692 = arith.divf %690, %691 : vector<4x16xf32>
    %693 = vector.extract_strided_slice %655 {offsets = [0, 32], sizes = [4, 16], strides = [1, 1]} : vector<4x64xf32> to vector<4x16xf32>
    %694 = math.tanh %693 : vector<4x16xf32>
    %695 = vector.extract_strided_slice %655 {offsets = [0, 48], sizes = [4, 16], strides = [1, 1]} : vector<4x64xf32> to vector<4x16xf32>
    %696 = arith.negf %695 : vector<4x16xf32>
    %697 = math.exp %696 : vector<4x16xf32>
    %cst_127 = arith.constant 1.000000e+00 : f32
    %698 = vector.broadcast %cst_127 : f32 to vector<4x16xf32>
    %699 = arith.addf %698, %697 : vector<4x16xf32>
    %700 = arith.divf %698, %699 : vector<4x16xf32>
    %701 = arith.mulf %692, %639 : vector<4x16xf32>
    %702 = arith.mulf %686, %694 : vector<4x16xf32>
    %703 = arith.addf %701, %702 : vector<4x16xf32>
    %704 = math.tanh %703 : vector<4x16xf32>
    %705 = arith.mulf %700, %704 : vector<4x16xf32>
    %706 = vector.shape_cast %680 : vector<4x16xf32> to vector<4x1x16xf32>
    %c0_128 = arith.constant 0 : index
    %c10_129 = arith.constant 10 : index
    %c0_130 = arith.constant 0 : index
    %707 = vector.load %arg10[%c0_128, %c10_129, %c0_130] : memref<4x16x32xf32, #tpu.memory_space<vmem>>, vector<4x1x16xf32>
    tpu.vector_store %arg10[%c0_128, %c10_129, %c0_130], %706 {strides = array<i32>} : memref<4x16x32xf32, #tpu.memory_space<vmem>>, vector<4x1x16xf32>,
    %708 = vector.shape_cast %705 : vector<4x16xf32> to vector<4x1x16xf32>
    %c0_131 = arith.constant 0 : index
    %c5_132 = arith.constant 5 : index
    %c16_133 = arith.constant 16 : index
    %709 = vector.load %arg10[%c0_131, %c5_132, %c16_133] : memref<4x16x32xf32, #tpu.memory_space<vmem>>, vector<4x1x16xf32>
    tpu.vector_store %arg10[%c0_131, %c5_132, %c16_133], %708 {strides = array<i32>} : memref<4x16x32xf32, #tpu.memory_space<vmem>>, vector<4x1x16xf32>,
    %710 = tpu.concatenate %680, %705 in 1 : vector<4x16xf32>, vector<4x16xf32> -> vector<4x32xf32>
    %cst_134 = arith.constant dense<0.000000e+00> : vector<4x128xf32>
    %711 = tpu.matmul %710, %1, %cst_134 {dimension_numbers = #tpu.dot_dimension_numbers<[1], [0], [0], [1], [0, 0, 1, 1], [], []>} : vector<4x32xf32>, vector<32x128xf32>, vector<4x128xf32> -> vector<4x128xf32>
    %712 = vector.extract_strided_slice %0 {offsets = [0, 11, 0], sizes = [4, 1, 64], strides = [1, 1, 1]} : vector<4x16x128xf32> to vector<4x1x64xf32>
    %713 = vector.shape_cast %712 : vector<4x1x64xf32> to vector<4x64xf32>
    %714 = vector.extract_strided_slice %711 {offsets = [0, 0], sizes = [4, 64], strides = [1, 1]} : vector<4x128xf32> to vector<4x64xf32>
    %715 = arith.addf %713, %714 : vector<4x64xf32>
    %716 = vector.extract_strided_slice %0 {offsets = [0, 4, 64], sizes = [4, 1, 64], strides = [1, 1, 1]} : vector<4x16x128xf32> to vector<4x1x64xf32>
    %717 = vector.shape_cast %716 : vector<4x1x64xf32> to vector<4x64xf32>
    %718 = vector.extract_strided_slice %711 {offsets = [0, 64], sizes = [4, 64], strides = [1, 1]} : vector<4x128xf32> to vector<4x64xf32>
    %719 = arith.addf %717, %718 : vector<4x64xf32>
    %720 = vector.extract_strided_slice %715 {offsets = [0, 0], sizes = [4, 16], strides = [1, 1]} : vector<4x64xf32> to vector<4x16xf32>
    %721 = arith.negf %720 : vector<4x16xf32>
    %722 = math.exp %721 : vector<4x16xf32>
    %cst_135 = arith.constant 1.000000e+00 : f32
    %723 = vector.broadcast %cst_135 : f32 to vector<4x16xf32>
    %724 = arith.addf %723, %722 : vector<4x16xf32>
    %725 = arith.divf %723, %724 : vector<4x16xf32>
    %726 = vector.extract_strided_slice %715 {offsets = [0, 16], sizes = [4, 16], strides = [1, 1]} : vector<4x64xf32> to vector<4x16xf32>
    %727 = arith.negf %726 : vector<4x16xf32>
    %728 = math.exp %727 : vector<4x16xf32>
    %cst_136 = arith.constant 1.000000e+00 : f32
    %729 = vector.broadcast %cst_136 : f32 to vector<4x16xf32>
    %730 = arith.addf %729, %728 : vector<4x16xf32>
    %731 = arith.divf %729, %730 : vector<4x16xf32>
    %732 = vector.extract_strided_slice %715 {offsets = [0, 32], sizes = [4, 16], strides = [1, 1]} : vector<4x64xf32> to vector<4x16xf32>
    %733 = math.tanh %732 : vector<4x16xf32>
    %734 = vector.extract_strided_slice %715 {offsets = [0, 48], sizes = [4, 16], strides = [1, 1]} : vector<4x64xf32> to vector<4x16xf32>
    %735 = arith.negf %734 : vector<4x16xf32>
    %736 = math.exp %735 : vector<4x16xf32>
    %cst_137 = arith.constant 1.000000e+00 : f32
    %737 = vector.broadcast %cst_137 : f32 to vector<4x16xf32>
    %738 = arith.addf %737, %736 : vector<4x16xf32>
    %739 = arith.divf %737, %738 : vector<4x16xf32>
    %740 = arith.mulf %731, %678 : vector<4x16xf32>
    %741 = arith.mulf %725, %733 : vector<4x16xf32>
    %742 = arith.addf %740, %741 : vector<4x16xf32>
    %743 = math.tanh %742 : vector<4x16xf32>
    %744 = arith.mulf %739, %743 : vector<4x16xf32>
    %745 = vector.extract_strided_slice %719 {offsets = [0, 0], sizes = [4, 16], strides = [1, 1]} : vector<4x64xf32> to vector<4x16xf32>
    %746 = arith.negf %745 : vector<4x16xf32>
    %747 = math.exp %746 : vector<4x16xf32>
    %cst_138 = arith.constant 1.000000e+00 : f32
    %748 = vector.broadcast %cst_138 : f32 to vector<4x16xf32>
    %749 = arith.addf %748, %747 : vector<4x16xf32>
    %750 = arith.divf %748, %749 : vector<4x16xf32>
    %751 = vector.extract_strided_slice %719 {offsets = [0, 16], sizes = [4, 16], strides = [1, 1]} : vector<4x64xf32> to vector<4x16xf32>
    %752 = arith.negf %751 : vector<4x16xf32>
    %753 = math.exp %752 : vector<4x16xf32>
    %cst_139 = arith.constant 1.000000e+00 : f32
    %754 = vector.broadcast %cst_139 : f32 to vector<4x16xf32>
    %755 = arith.addf %754, %753 : vector<4x16xf32>
    %756 = arith.divf %754, %755 : vector<4x16xf32>
    %757 = vector.extract_strided_slice %719 {offsets = [0, 32], sizes = [4, 16], strides = [1, 1]} : vector<4x64xf32> to vector<4x16xf32>
    %758 = math.tanh %757 : vector<4x16xf32>
    %759 = vector.extract_strided_slice %719 {offsets = [0, 48], sizes = [4, 16], strides = [1, 1]} : vector<4x64xf32> to vector<4x16xf32>
    %760 = arith.negf %759 : vector<4x16xf32>
    %761 = math.exp %760 : vector<4x16xf32>
    %cst_140 = arith.constant 1.000000e+00 : f32
    %762 = vector.broadcast %cst_140 : f32 to vector<4x16xf32>
    %763 = arith.addf %762, %761 : vector<4x16xf32>
    %764 = arith.divf %762, %763 : vector<4x16xf32>
    %765 = arith.mulf %756, %703 : vector<4x16xf32>
    %766 = arith.mulf %750, %758 : vector<4x16xf32>
    %767 = arith.addf %765, %766 : vector<4x16xf32>
    %768 = math.tanh %767 : vector<4x16xf32>
    %769 = arith.mulf %764, %768 : vector<4x16xf32>
    %770 = vector.shape_cast %744 : vector<4x16xf32> to vector<4x1x16xf32>
    %c0_141 = arith.constant 0 : index
    %c11_142 = arith.constant 11 : index
    %c0_143 = arith.constant 0 : index
    %771 = vector.load %arg10[%c0_141, %c11_142, %c0_143] : memref<4x16x32xf32, #tpu.memory_space<vmem>>, vector<4x1x16xf32>
    tpu.vector_store %arg10[%c0_141, %c11_142, %c0_143], %770 {strides = array<i32>} : memref<4x16x32xf32, #tpu.memory_space<vmem>>, vector<4x1x16xf32>,
    %772 = vector.shape_cast %769 : vector<4x16xf32> to vector<4x1x16xf32>
    %c0_144 = arith.constant 0 : index
    %c4_145 = arith.constant 4 : index
    %c16_146 = arith.constant 16 : index
    %773 = vector.load %arg10[%c0_144, %c4_145, %c16_146] : memref<4x16x32xf32, #tpu.memory_space<vmem>>, vector<4x1x16xf32>
    tpu.vector_store %arg10[%c0_144, %c4_145, %c16_146], %772 {strides = array<i32>} : memref<4x16x32xf32, #tpu.memory_space<vmem>>, vector<4x1x16xf32>,
    %774 = tpu.concatenate %744, %769 in 1 : vector<4x16xf32>, vector<4x16xf32> -> vector<4x32xf32>
    %cst_147 = arith.constant dense<0.000000e+00> : vector<4x128xf32>
    %775 = tpu.matmul %774, %1, %cst_147 {dimension_numbers = #tpu.dot_dimension_numbers<[1], [0], [0], [1], [0, 0, 1, 1], [], []>} : vector<4x32xf32>, vector<32x128xf32>, vector<4x128xf32> -> vector<4x128xf32>
    %776 = vector.extract_strided_slice %0 {offsets = [0, 12, 0], sizes = [4, 1, 64], strides = [1, 1, 1]} : vector<4x16x128xf32> to vector<4x1x64xf32>
    %777 = vector.shape_cast %776 : vector<4x1x64xf32> to vector<4x64xf32>
    %778 = vector.extract_strided_slice %775 {offsets = [0, 0], sizes = [4, 64], strides = [1, 1]} : vector<4x128xf32> to vector<4x64xf32>
    %779 = arith.addf %777, %778 : vector<4x64xf32>
    %780 = vector.extract_strided_slice %0 {offsets = [0, 3, 64], sizes = [4, 1, 64], strides = [1, 1, 1]} : vector<4x16x128xf32> to vector<4x1x64xf32>
    %781 = vector.shape_cast %780 : vector<4x1x64xf32> to vector<4x64xf32>
    %782 = vector.extract_strided_slice %775 {offsets = [0, 64], sizes = [4, 64], strides = [1, 1]} : vector<4x128xf32> to vector<4x64xf32>
    %783 = arith.addf %781, %782 : vector<4x64xf32>
    %784 = vector.extract_strided_slice %779 {offsets = [0, 0], sizes = [4, 16], strides = [1, 1]} : vector<4x64xf32> to vector<4x16xf32>
    %785 = arith.negf %784 : vector<4x16xf32>
    %786 = math.exp %785 : vector<4x16xf32>
    %cst_148 = arith.constant 1.000000e+00 : f32
    %787 = vector.broadcast %cst_148 : f32 to vector<4x16xf32>
    %788 = arith.addf %787, %786 : vector<4x16xf32>
    %789 = arith.divf %787, %788 : vector<4x16xf32>
    %790 = vector.extract_strided_slice %779 {offsets = [0, 16], sizes = [4, 16], strides = [1, 1]} : vector<4x64xf32> to vector<4x16xf32>
    %791 = arith.negf %790 : vector<4x16xf32>
    %792 = math.exp %791 : vector<4x16xf32>
    %cst_149 = arith.constant 1.000000e+00 : f32
    %793 = vector.broadcast %cst_149 : f32 to vector<4x16xf32>
    %794 = arith.addf %793, %792 : vector<4x16xf32>
    %795 = arith.divf %793, %794 : vector<4x16xf32>
    %796 = vector.extract_strided_slice %779 {offsets = [0, 32], sizes = [4, 16], strides = [1, 1]} : vector<4x64xf32> to vector<4x16xf32>
    %797 = math.tanh %796 : vector<4x16xf32>
    %798 = vector.extract_strided_slice %779 {offsets = [0, 48], sizes = [4, 16], strides = [1, 1]} : vector<4x64xf32> to vector<4x16xf32>
    %799 = arith.negf %798 : vector<4x16xf32>
    %800 = math.exp %799 : vector<4x16xf32>
    %cst_150 = arith.constant 1.000000e+00 : f32
    %801 = vector.broadcast %cst_150 : f32 to vector<4x16xf32>
    %802 = arith.addf %801, %800 : vector<4x16xf32>
    %803 = arith.divf %801, %802 : vector<4x16xf32>
    %804 = arith.mulf %795, %742 : vector<4x16xf32>
    %805 = arith.mulf %789, %797 : vector<4x16xf32>
    %806 = arith.addf %804, %805 : vector<4x16xf32>
    %807 = math.tanh %806 : vector<4x16xf32>
    %808 = arith.mulf %803, %807 : vector<4x16xf32>
    %809 = vector.extract_strided_slice %783 {offsets = [0, 0], sizes = [4, 16], strides = [1, 1]} : vector<4x64xf32> to vector<4x16xf32>
    %810 = arith.negf %809 : vector<4x16xf32>
    %811 = math.exp %810 : vector<4x16xf32>
    %cst_151 = arith.constant 1.000000e+00 : f32
    %812 = vector.broadcast %cst_151 : f32 to vector<4x16xf32>
    %813 = arith.addf %812, %811 : vector<4x16xf32>
    %814 = arith.divf %812, %813 : vector<4x16xf32>
    %815 = vector.extract_strided_slice %783 {offsets = [0, 16], sizes = [4, 16], strides = [1, 1]} : vector<4x64xf32> to vector<4x16xf32>
    %816 = arith.negf %815 : vector<4x16xf32>
    %817 = math.exp %816 : vector<4x16xf32>
    %cst_152 = arith.constant 1.000000e+00 : f32
    %818 = vector.broadcast %cst_152 : f32 to vector<4x16xf32>
    %819 = arith.addf %818, %817 : vector<4x16xf32>
    %820 = arith.divf %818, %819 : vector<4x16xf32>
    %821 = vector.extract_strided_slice %783 {offsets = [0, 32], sizes = [4, 16], strides = [1, 1]} : vector<4x64xf32> to vector<4x16xf32>
    %822 = math.tanh %821 : vector<4x16xf32>
    %823 = vector.extract_strided_slice %783 {offsets = [0, 48], sizes = [4, 16], strides = [1, 1]} : vector<4x64xf32> to vector<4x16xf32>
    %824 = arith.negf %823 : vector<4x16xf32>
    %825 = math.exp %824 : vector<4x16xf32>
    %cst_153 = arith.constant 1.000000e+00 : f32
    %826 = vector.broadcast %cst_153 : f32 to vector<4x16xf32>
    %827 = arith.addf %826, %825 : vector<4x16xf32>
    %828 = arith.divf %826, %827 : vector<4x16xf32>
    %829 = arith.mulf %820, %767 : vector<4x16xf32>
    %830 = arith.mulf %814, %822 : vector<4x16xf32>
    %831 = arith.addf %829, %830 : vector<4x16xf32>
    %832 = math.tanh %831 : vector<4x16xf32>
    %833 = arith.mulf %828, %832 : vector<4x16xf32>
    %834 = vector.shape_cast %808 : vector<4x16xf32> to vector<4x1x16xf32>
    %c0_154 = arith.constant 0 : index
    %c12_155 = arith.constant 12 : index
    %c0_156 = arith.constant 0 : index
    %835 = vector.load %arg10[%c0_154, %c12_155, %c0_156] : memref<4x16x32xf32, #tpu.memory_space<vmem>>, vector<4x1x16xf32>
    tpu.vector_store %arg10[%c0_154, %c12_155, %c0_156], %834 {strides = array<i32>} : memref<4x16x32xf32, #tpu.memory_space<vmem>>, vector<4x1x16xf32>,
    %836 = vector.shape_cast %833 : vector<4x16xf32> to vector<4x1x16xf32>
    %c0_157 = arith.constant 0 : index
    %c3_158 = arith.constant 3 : index
    %c16_159 = arith.constant 16 : index
    %837 = vector.load %arg10[%c0_157, %c3_158, %c16_159] : memref<4x16x32xf32, #tpu.memory_space<vmem>>, vector<4x1x16xf32>
    tpu.vector_store %arg10[%c0_157, %c3_158, %c16_159], %836 {strides = array<i32>} : memref<4x16x32xf32, #tpu.memory_space<vmem>>, vector<4x1x16xf32>,
    %838 = tpu.concatenate %808, %833 in 1 : vector<4x16xf32>, vector<4x16xf32> -> vector<4x32xf32>
    %cst_160 = arith.constant dense<0.000000e+00> : vector<4x128xf32>
    %839 = tpu.matmul %838, %1, %cst_160 {dimension_numbers = #tpu.dot_dimension_numbers<[1], [0], [0], [1], [0, 0, 1, 1], [], []>} : vector<4x32xf32>, vector<32x128xf32>, vector<4x128xf32> -> vector<4x128xf32>
    %840 = vector.extract_strided_slice %0 {offsets = [0, 13, 0], sizes = [4, 1, 64], strides = [1, 1, 1]} : vector<4x16x128xf32> to vector<4x1x64xf32>
    %841 = vector.shape_cast %840 : vector<4x1x64xf32> to vector<4x64xf32>
    %842 = vector.extract_strided_slice %839 {offsets = [0, 0], sizes = [4, 64], strides = [1, 1]} : vector<4x128xf32> to vector<4x64xf32>
    %843 = arith.addf %841, %842 : vector<4x64xf32>
    %844 = vector.extract_strided_slice %0 {offsets = [0, 2, 64], sizes = [4, 1, 64], strides = [1, 1, 1]} : vector<4x16x128xf32> to vector<4x1x64xf32>
    %845 = vector.shape_cast %844 : vector<4x1x64xf32> to vector<4x64xf32>
    %846 = vector.extract_strided_slice %839 {offsets = [0, 64], sizes = [4, 64], strides = [1, 1]} : vector<4x128xf32> to vector<4x64xf32>
    %847 = arith.addf %845, %846 : vector<4x64xf32>
    %848 = vector.extract_strided_slice %843 {offsets = [0, 0], sizes = [4, 16], strides = [1, 1]} : vector<4x64xf32> to vector<4x16xf32>
    %849 = arith.negf %848 : vector<4x16xf32>
    %850 = math.exp %849 : vector<4x16xf32>
    %cst_161 = arith.constant 1.000000e+00 : f32
    %851 = vector.broadcast %cst_161 : f32 to vector<4x16xf32>
    %852 = arith.addf %851, %850 : vector<4x16xf32>
    %853 = arith.divf %851, %852 : vector<4x16xf32>
    %854 = vector.extract_strided_slice %843 {offsets = [0, 16], sizes = [4, 16], strides = [1, 1]} : vector<4x64xf32> to vector<4x16xf32>
    %855 = arith.negf %854 : vector<4x16xf32>
    %856 = math.exp %855 : vector<4x16xf32>
    %cst_162 = arith.constant 1.000000e+00 : f32
    %857 = vector.broadcast %cst_162 : f32 to vector<4x16xf32>
    %858 = arith.addf %857, %856 : vector<4x16xf32>
    %859 = arith.divf %857, %858 : vector<4x16xf32>
    %860 = vector.extract_strided_slice %843 {offsets = [0, 32], sizes = [4, 16], strides = [1, 1]} : vector<4x64xf32> to vector<4x16xf32>
    %861 = math.tanh %860 : vector<4x16xf32>
    %862 = vector.extract_strided_slice %843 {offsets = [0, 48], sizes = [4, 16], strides = [1, 1]} : vector<4x64xf32> to vector<4x16xf32>
    %863 = arith.negf %862 : vector<4x16xf32>
    %864 = math.exp %863 : vector<4x16xf32>
    %cst_163 = arith.constant 1.000000e+00 : f32
    %865 = vector.broadcast %cst_163 : f32 to vector<4x16xf32>
    %866 = arith.addf %865, %864 : vector<4x16xf32>
    %867 = arith.divf %865, %866 : vector<4x16xf32>
    %868 = arith.mulf %859, %806 : vector<4x16xf32>
    %869 = arith.mulf %853, %861 : vector<4x16xf32>
    %870 = arith.addf %868, %869 : vector<4x16xf32>
    %871 = math.tanh %870 : vector<4x16xf32>
    %872 = arith.mulf %867, %871 : vector<4x16xf32>
    %873 = vector.extract_strided_slice %847 {offsets = [0, 0], sizes = [4, 16], strides = [1, 1]} : vector<4x64xf32> to vector<4x16xf32>
    %874 = arith.negf %873 : vector<4x16xf32>
    %875 = math.exp %874 : vector<4x16xf32>
    %cst_164 = arith.constant 1.000000e+00 : f32
    %876 = vector.broadcast %cst_164 : f32 to vector<4x16xf32>
    %877 = arith.addf %876, %875 : vector<4x16xf32>
    %878 = arith.divf %876, %877 : vector<4x16xf32>
    %879 = vector.extract_strided_slice %847 {offsets = [0, 16], sizes = [4, 16], strides = [1, 1]} : vector<4x64xf32> to vector<4x16xf32>
    %880 = arith.negf %879 : vector<4x16xf32>
    %881 = math.exp %880 : vector<4x16xf32>
    %cst_165 = arith.constant 1.000000e+00 : f32
    %882 = vector.broadcast %cst_165 : f32 to vector<4x16xf32>
    %883 = arith.addf %882, %881 : vector<4x16xf32>
    %884 = arith.divf %882, %883 : vector<4x16xf32>
    %885 = vector.extract_strided_slice %847 {offsets = [0, 32], sizes = [4, 16], strides = [1, 1]} : vector<4x64xf32> to vector<4x16xf32>
    %886 = math.tanh %885 : vector<4x16xf32>
    %887 = vector.extract_strided_slice %847 {offsets = [0, 48], sizes = [4, 16], strides = [1, 1]} : vector<4x64xf32> to vector<4x16xf32>
    %888 = arith.negf %887 : vector<4x16xf32>
    %889 = math.exp %888 : vector<4x16xf32>
    %cst_166 = arith.constant 1.000000e+00 : f32
    %890 = vector.broadcast %cst_166 : f32 to vector<4x16xf32>
    %891 = arith.addf %890, %889 : vector<4x16xf32>
    %892 = arith.divf %890, %891 : vector<4x16xf32>
    %893 = arith.mulf %884, %831 : vector<4x16xf32>
    %894 = arith.mulf %878, %886 : vector<4x16xf32>
    %895 = arith.addf %893, %894 : vector<4x16xf32>
    %896 = math.tanh %895 : vector<4x16xf32>
    %897 = arith.mulf %892, %896 : vector<4x16xf32>
    %898 = vector.shape_cast %872 : vector<4x16xf32> to vector<4x1x16xf32>
    %c0_167 = arith.constant 0 : index
    %c13_168 = arith.constant 13 : index
    %c0_169 = arith.constant 0 : index
    %899 = vector.load %arg10[%c0_167, %c13_168, %c0_169] : memref<4x16x32xf32, #tpu.memory_space<vmem>>, vector<4x1x16xf32>
    tpu.vector_store %arg10[%c0_167, %c13_168, %c0_169], %898 {strides = array<i32>} : memref<4x16x32xf32, #tpu.memory_space<vmem>>, vector<4x1x16xf32>,
    %900 = vector.shape_cast %897 : vector<4x16xf32> to vector<4x1x16xf32>
    %c0_170 = arith.constant 0 : index
    %c2_171 = arith.constant 2 : index
    %c16_172 = arith.constant 16 : index
    %901 = vector.load %arg10[%c0_170, %c2_171, %c16_172] : memref<4x16x32xf32, #tpu.memory_space<vmem>>, vector<4x1x16xf32>
    tpu.vector_store %arg10[%c0_170, %c2_171, %c16_172], %900 {strides = array<i32>} : memref<4x16x32xf32, #tpu.memory_space<vmem>>, vector<4x1x16xf32>,
    %902 = tpu.concatenate %872, %897 in 1 : vector<4x16xf32>, vector<4x16xf32> -> vector<4x32xf32>
    %cst_173 = arith.constant dense<0.000000e+00> : vector<4x128xf32>
    %903 = tpu.matmul %902, %1, %cst_173 {dimension_numbers = #tpu.dot_dimension_numbers<[1], [0], [0], [1], [0, 0, 1, 1], [], []>} : vector<4x32xf32>, vector<32x128xf32>, vector<4x128xf32> -> vector<4x128xf32>
    %904 = vector.extract_strided_slice %0 {offsets = [0, 14, 0], sizes = [4, 1, 64], strides = [1, 1, 1]} : vector<4x16x128xf32> to vector<4x1x64xf32>
    %905 = vector.shape_cast %904 : vector<4x1x64xf32> to vector<4x64xf32>
    %906 = vector.extract_strided_slice %903 {offsets = [0, 0], sizes = [4, 64], strides = [1, 1]} : vector<4x128xf32> to vector<4x64xf32>
    %907 = arith.addf %905, %906 : vector<4x64xf32>
    %908 = vector.extract_strided_slice %0 {offsets = [0, 1, 64], sizes = [4, 1, 64], strides = [1, 1, 1]} : vector<4x16x128xf32> to vector<4x1x64xf32>
    %909 = vector.shape_cast %908 : vector<4x1x64xf32> to vector<4x64xf32>
    %910 = vector.extract_strided_slice %903 {offsets = [0, 64], sizes = [4, 64], strides = [1, 1]} : vector<4x128xf32> to vector<4x64xf32>
    %911 = arith.addf %909, %910 : vector<4x64xf32>
    %912 = vector.extract_strided_slice %907 {offsets = [0, 0], sizes = [4, 16], strides = [1, 1]} : vector<4x64xf32> to vector<4x16xf32>
    %913 = arith.negf %912 : vector<4x16xf32>
    %914 = math.exp %913 : vector<4x16xf32>
    %cst_174 = arith.constant 1.000000e+00 : f32
    %915 = vector.broadcast %cst_174 : f32 to vector<4x16xf32>
    %916 = arith.addf %915, %914 : vector<4x16xf32>
    %917 = arith.divf %915, %916 : vector<4x16xf32>
    %918 = vector.extract_strided_slice %907 {offsets = [0, 16], sizes = [4, 16], strides = [1, 1]} : vector<4x64xf32> to vector<4x16xf32>
    %919 = arith.negf %918 : vector<4x16xf32>
    %920 = math.exp %919 : vector<4x16xf32>
    %cst_175 = arith.constant 1.000000e+00 : f32
    %921 = vector.broadcast %cst_175 : f32 to vector<4x16xf32>
    %922 = arith.addf %921, %920 : vector<4x16xf32>
    %923 = arith.divf %921, %922 : vector<4x16xf32>
    %924 = vector.extract_strided_slice %907 {offsets = [0, 32], sizes = [4, 16], strides = [1, 1]} : vector<4x64xf32> to vector<4x16xf32>
    %925 = math.tanh %924 : vector<4x16xf32>
    %926 = vector.extract_strided_slice %907 {offsets = [0, 48], sizes = [4, 16], strides = [1, 1]} : vector<4x64xf32> to vector<4x16xf32>
    %927 = arith.negf %926 : vector<4x16xf32>
    %928 = math.exp %927 : vector<4x16xf32>
    %cst_176 = arith.constant 1.000000e+00 : f32
    %929 = vector.broadcast %cst_176 : f32 to vector<4x16xf32>
    %930 = arith.addf %929, %928 : vector<4x16xf32>
    %931 = arith.divf %929, %930 : vector<4x16xf32>
    %932 = arith.mulf %923, %870 : vector<4x16xf32>
    %933 = arith.mulf %917, %925 : vector<4x16xf32>
    %934 = arith.addf %932, %933 : vector<4x16xf32>
    %935 = math.tanh %934 : vector<4x16xf32>
    %936 = arith.mulf %931, %935 : vector<4x16xf32>
    %937 = vector.extract_strided_slice %911 {offsets = [0, 0], sizes = [4, 16], strides = [1, 1]} : vector<4x64xf32> to vector<4x16xf32>
    %938 = arith.negf %937 : vector<4x16xf32>
    %939 = math.exp %938 : vector<4x16xf32>
    %cst_177 = arith.constant 1.000000e+00 : f32
    %940 = vector.broadcast %cst_177 : f32 to vector<4x16xf32>
    %941 = arith.addf %940, %939 : vector<4x16xf32>
    %942 = arith.divf %940, %941 : vector<4x16xf32>
    %943 = vector.extract_strided_slice %911 {offsets = [0, 16], sizes = [4, 16], strides = [1, 1]} : vector<4x64xf32> to vector<4x16xf32>
    %944 = arith.negf %943 : vector<4x16xf32>
    %945 = math.exp %944 : vector<4x16xf32>
    %cst_178 = arith.constant 1.000000e+00 : f32
    %946 = vector.broadcast %cst_178 : f32 to vector<4x16xf32>
    %947 = arith.addf %946, %945 : vector<4x16xf32>
    %948 = arith.divf %946, %947 : vector<4x16xf32>
    %949 = vector.extract_strided_slice %911 {offsets = [0, 32], sizes = [4, 16], strides = [1, 1]} : vector<4x64xf32> to vector<4x16xf32>
    %950 = math.tanh %949 : vector<4x16xf32>
    %951 = vector.extract_strided_slice %911 {offsets = [0, 48], sizes = [4, 16], strides = [1, 1]} : vector<4x64xf32> to vector<4x16xf32>
    %952 = arith.negf %951 : vector<4x16xf32>
    %953 = math.exp %952 : vector<4x16xf32>
    %cst_179 = arith.constant 1.000000e+00 : f32
    %954 = vector.broadcast %cst_179 : f32 to vector<4x16xf32>
    %955 = arith.addf %954, %953 : vector<4x16xf32>
    %956 = arith.divf %954, %955 : vector<4x16xf32>
    %957 = arith.mulf %948, %895 : vector<4x16xf32>
    %958 = arith.mulf %942, %950 : vector<4x16xf32>
    %959 = arith.addf %957, %958 : vector<4x16xf32>
    %960 = math.tanh %959 : vector<4x16xf32>
    %961 = arith.mulf %956, %960 : vector<4x16xf32>
    %962 = vector.shape_cast %936 : vector<4x16xf32> to vector<4x1x16xf32>
    %c0_180 = arith.constant 0 : index
    %c14_181 = arith.constant 14 : index
    %c0_182 = arith.constant 0 : index
    %963 = vector.load %arg10[%c0_180, %c14_181, %c0_182] : memref<4x16x32xf32, #tpu.memory_space<vmem>>, vector<4x1x16xf32>
    tpu.vector_store %arg10[%c0_180, %c14_181, %c0_182], %962 {strides = array<i32>} : memref<4x16x32xf32, #tpu.memory_space<vmem>>, vector<4x1x16xf32>,
    %964 = vector.shape_cast %961 : vector<4x16xf32> to vector<4x1x16xf32>
    %c0_183 = arith.constant 0 : index
    %c1_184 = arith.constant 1 : index
    %c16_185 = arith.constant 16 : index
    %965 = vector.load %arg10[%c0_183, %c1_184, %c16_185] : memref<4x16x32xf32, #tpu.memory_space<vmem>>, vector<4x1x16xf32>
    tpu.vector_store %arg10[%c0_183, %c1_184, %c16_185], %964 {strides = array<i32>} : memref<4x16x32xf32, #tpu.memory_space<vmem>>, vector<4x1x16xf32>,
    %966 = tpu.concatenate %936, %961 in 1 : vector<4x16xf32>, vector<4x16xf32> -> vector<4x32xf32>
    %cst_186 = arith.constant dense<0.000000e+00> : vector<4x128xf32>
    %967 = tpu.matmul %966, %1, %cst_186 {dimension_numbers = #tpu.dot_dimension_numbers<[1], [0], [0], [1], [0, 0, 1, 1], [], []>} : vector<4x32xf32>, vector<32x128xf32>, vector<4x128xf32> -> vector<4x128xf32>
    %968 = vector.extract_strided_slice %0 {offsets = [0, 15, 0], sizes = [4, 1, 64], strides = [1, 1, 1]} : vector<4x16x128xf32> to vector<4x1x64xf32>
    %969 = vector.shape_cast %968 : vector<4x1x64xf32> to vector<4x64xf32>
    %970 = vector.extract_strided_slice %967 {offsets = [0, 0], sizes = [4, 64], strides = [1, 1]} : vector<4x128xf32> to vector<4x64xf32>
    %971 = arith.addf %969, %970 : vector<4x64xf32>
    %972 = vector.extract_strided_slice %0 {offsets = [0, 0, 64], sizes = [4, 1, 64], strides = [1, 1, 1]} : vector<4x16x128xf32> to vector<4x1x64xf32>
    %973 = vector.shape_cast %972 : vector<4x1x64xf32> to vector<4x64xf32>
    %974 = vector.extract_strided_slice %967 {offsets = [0, 64], sizes = [4, 64], strides = [1, 1]} : vector<4x128xf32> to vector<4x64xf32>
    %975 = arith.addf %973, %974 : vector<4x64xf32>
    %976 = vector.extract_strided_slice %971 {offsets = [0, 0], sizes = [4, 16], strides = [1, 1]} : vector<4x64xf32> to vector<4x16xf32>
    %977 = arith.negf %976 : vector<4x16xf32>
    %978 = math.exp %977 : vector<4x16xf32>
    %cst_187 = arith.constant 1.000000e+00 : f32
    %979 = vector.broadcast %cst_187 : f32 to vector<4x16xf32>
    %980 = arith.addf %979, %978 : vector<4x16xf32>
    %981 = arith.divf %979, %980 : vector<4x16xf32>
    %982 = vector.extract_strided_slice %971 {offsets = [0, 16], sizes = [4, 16], strides = [1, 1]} : vector<4x64xf32> to vector<4x16xf32>
    %983 = arith.negf %982 : vector<4x16xf32>
    %984 = math.exp %983 : vector<4x16xf32>
    %cst_188 = arith.constant 1.000000e+00 : f32
    %985 = vector.broadcast %cst_188 : f32 to vector<4x16xf32>
    %986 = arith.addf %985, %984 : vector<4x16xf32>
    %987 = arith.divf %985, %986 : vector<4x16xf32>
    %988 = vector.extract_strided_slice %971 {offsets = [0, 32], sizes = [4, 16], strides = [1, 1]} : vector<4x64xf32> to vector<4x16xf32>
    %989 = math.tanh %988 : vector<4x16xf32>
    %990 = vector.extract_strided_slice %971 {offsets = [0, 48], sizes = [4, 16], strides = [1, 1]} : vector<4x64xf32> to vector<4x16xf32>
    %991 = arith.negf %990 : vector<4x16xf32>
    %992 = math.exp %991 : vector<4x16xf32>
    %cst_189 = arith.constant 1.000000e+00 : f32
    %993 = vector.broadcast %cst_189 : f32 to vector<4x16xf32>
    %994 = arith.addf %993, %992 : vector<4x16xf32>
    %995 = arith.divf %993, %994 : vector<4x16xf32>
    %996 = arith.mulf %987, %934 : vector<4x16xf32>
    %997 = arith.mulf %981, %989 : vector<4x16xf32>
    %998 = arith.addf %996, %997 : vector<4x16xf32>
    %999 = math.tanh %998 : vector<4x16xf32>
    %1000 = arith.mulf %995, %999 : vector<4x16xf32>
    %1001 = vector.extract_strided_slice %975 {offsets = [0, 0], sizes = [4, 16], strides = [1, 1]} : vector<4x64xf32> to vector<4x16xf32>
    %1002 = arith.negf %1001 : vector<4x16xf32>
    %1003 = math.exp %1002 : vector<4x16xf32>
    %cst_190 = arith.constant 1.000000e+00 : f32
    %1004 = vector.broadcast %cst_190 : f32 to vector<4x16xf32>
    %1005 = arith.addf %1004, %1003 : vector<4x16xf32>
    %1006 = arith.divf %1004, %1005 : vector<4x16xf32>
    %1007 = vector.extract_strided_slice %975 {offsets = [0, 16], sizes = [4, 16], strides = [1, 1]} : vector<4x64xf32> to vector<4x16xf32>
    %1008 = arith.negf %1007 : vector<4x16xf32>
    %1009 = math.exp %1008 : vector<4x16xf32>
    %cst_191 = arith.constant 1.000000e+00 : f32
    %1010 = vector.broadcast %cst_191 : f32 to vector<4x16xf32>
    %1011 = arith.addf %1010, %1009 : vector<4x16xf32>
    %1012 = arith.divf %1010, %1011 : vector<4x16xf32>
    %1013 = vector.extract_strided_slice %975 {offsets = [0, 32], sizes = [4, 16], strides = [1, 1]} : vector<4x64xf32> to vector<4x16xf32>
    %1014 = math.tanh %1013 : vector<4x16xf32>
    %1015 = vector.extract_strided_slice %975 {offsets = [0, 48], sizes = [4, 16], strides = [1, 1]} : vector<4x64xf32> to vector<4x16xf32>
    %1016 = arith.negf %1015 : vector<4x16xf32>
    %1017 = math.exp %1016 : vector<4x16xf32>
    %cst_192 = arith.constant 1.000000e+00 : f32
    %1018 = vector.broadcast %cst_192 : f32 to vector<4x16xf32>
    %1019 = arith.addf %1018, %1017 : vector<4x16xf32>
    %1020 = arith.divf %1018, %1019 : vector<4x16xf32>
    %1021 = arith.mulf %1012, %959 : vector<4x16xf32>
    %1022 = arith.mulf %1006, %1014 : vector<4x16xf32>
    %1023 = arith.addf %1021, %1022 : vector<4x16xf32>
    %1024 = math.tanh %1023 : vector<4x16xf32>
    %1025 = arith.mulf %1020, %1024 : vector<4x16xf32>
    %1026 = vector.shape_cast %1000 : vector<4x16xf32> to vector<4x1x16xf32>
    %c0_193 = arith.constant 0 : index
    %c15_194 = arith.constant 15 : index
    %c0_195 = arith.constant 0 : index
    %1027 = vector.load %arg10[%c0_193, %c15_194, %c0_195] : memref<4x16x32xf32, #tpu.memory_space<vmem>>, vector<4x1x16xf32>
    tpu.vector_store %arg10[%c0_193, %c15_194, %c0_195], %1026 {strides = array<i32>} : memref<4x16x32xf32, #tpu.memory_space<vmem>>, vector<4x1x16xf32>,
    %1028 = vector.shape_cast %1025 : vector<4x16xf32> to vector<4x1x16xf32>
    %c0_196 = arith.constant 0 : index
    %c0_197 = arith.constant 0 : index
    %c16_198 = arith.constant 16 : index
    %1029 = vector.load %arg10[%c0_196, %c0_197, %c16_198] : memref<4x16x32xf32, #tpu.memory_space<vmem>>, vector<4x1x16xf32>
    tpu.vector_store %arg10[%c0_196, %c0_197, %c16_198], %1028 {strides = array<i32>} : memref<4x16x32xf32, #tpu.memory_space<vmem>>, vector<4x1x16xf32>,
    %c0_199 = arith.constant 0 : index
    %c0_200 = arith.constant 0 : index
    %c0_201 = arith.constant 0 : index
    %1030 = vector.load %arg10[%c0_199, %c0_200, %c0_201] : memref<4x16x32xf32, #tpu.memory_space<vmem>>, vector<4x16x32xf32>
    %1031 = math.tanh %1030 : vector<4x16x32xf32>
    %c0_202 = arith.constant 0 : index
    %c0_203 = arith.constant 0 : index
    %1032 = vector.load %arg3[%c0_202, %c0_203] : memref<1x32xf32, #tpu.memory_space<vmem>>, vector<1x32xf32>
    %1033 = vector.shape_cast %1032 : vector<1x32xf32> to vector<1x1x32xf32>
    %1034 = vector.broadcast %1033 : vector<1x1x32xf32> to vector<4x16x32xf32>
    %1035 = arith.mulf %1031, %1034 : vector<4x16x32xf32>
    %cst_204 = arith.constant dense<0.000000e+00> : vector<4x16xf32>
    %1036 = vector.multi_reduction <add>, %1035, %cst_204 [2] : vector<4x16x32xf32> to vector<4x16xf32>
    %1037 = vector.shape_cast %1036 : vector<4x16xf32> to vector<4x16x1xf32>
    %1038 = math.exp %1037 : vector<4x16x1xf32>
    %cst_205 = arith.constant dense<0.000000e+00> : vector<4x1xf32>
    %1039 = vector.multi_reduction <add>, %1038, %cst_205 [1] : vector<4x16x1xf32> to vector<4x1xf32>
    %1040 = vector.shape_cast %1039 : vector<4x1xf32> to vector<4x1x1xf32>
    %1041 = tpu.reciprocal %1040 {approx = true} : vector<4x1x1xf32> -> vector<4x1x1xf32>
    %1042 = vector.broadcast %1041 : vector<4x1x1xf32> to vector<4x16x1xf32>
    %1043 = arith.mulf %1038, %1042 : vector<4x16x1xf32>
    %1044 = vector.broadcast %1043 : vector<4x16x1xf32> to vector<4x16x32xf32>
    %1045 = arith.mulf %1030, %1044 : vector<4x16x32xf32>
    %1046 = vector.shape_cast %1045 : vector<4x16x32xf32> to vector<64x32xf32>
    %cst_206 = arith.constant 0.000000e+00 : f32
    %1047 = vector.broadcast %cst_206 : f32 to vector<8x32xf32>
    %1048 = tpu.concatenate %1046, %1047 in 0 : vector<64x32xf32>, vector<8x32xf32> -> vector<72x32xf32>
    %c0_207 = arith.constant 0 : index
    %c0_208 = arith.constant 0 : index
    %c0_209 = arith.constant 0 : index
    %1049 = vector.load %arg4[%c0_207, %c0_208, %c0_209] : memref<9x32x32xf32, #tpu.memory_space<vmem>>, vector<9x32x32xf32>
    %cst_210 = arith.constant 0.000000e+00 : f32
    %1050 = vector.broadcast %cst_210 : f32 to vector<64x32xf32>
    %1051 = vector.extract_strided_slice %1048 {offsets = [0, 0], sizes = [64, 32], strides = [1, 1]} : vector<72x32xf32> to vector<64x32xf32>
    %1052 = vector.extract_strided_slice %1049 {offsets = [0, 0, 0], sizes = [1, 32, 32], strides = [1, 1, 1]} : vector<9x32x32xf32> to vector<1x32x32xf32>
    %1053 = vector.shape_cast %1052 : vector<1x32x32xf32> to vector<32x32xf32>
    %cst_211 = arith.constant dense<0.000000e+00> : vector<64x32xf32>
    %1054 = tpu.matmul %1051, %1053, %cst_211 {dimension_numbers = #tpu.dot_dimension_numbers<[1], [0], [0], [1], [0, 0, 1, 1], [], []>} : vector<64x32xf32>, vector<32x32xf32>, vector<64x32xf32> -> vector<64x32xf32>
    %1055 = arith.addf %1050, %1054 : vector<64x32xf32>
    %1056 = vector.extract_strided_slice %1048 {offsets = [1, 0], sizes = [64, 32], strides = [1, 1]} : vector<72x32xf32> to vector<64x32xf32>
    %1057 = vector.extract_strided_slice %1049 {offsets = [1, 0, 0], sizes = [1, 32, 32], strides = [1, 1, 1]} : vector<9x32x32xf32> to vector<1x32x32xf32>
    %1058 = vector.shape_cast %1057 : vector<1x32x32xf32> to vector<32x32xf32>
    %cst_212 = arith.constant dense<0.000000e+00> : vector<64x32xf32>
    %1059 = tpu.matmul %1056, %1058, %cst_212 {dimension_numbers = #tpu.dot_dimension_numbers<[1], [0], [0], [1], [0, 0, 1, 1], [], []>} : vector<64x32xf32>, vector<32x32xf32>, vector<64x32xf32> -> vector<64x32xf32>
    %1060 = arith.addf %1055, %1059 : vector<64x32xf32>
    %1061 = vector.extract_strided_slice %1048 {offsets = [2, 0], sizes = [64, 32], strides = [1, 1]} : vector<72x32xf32> to vector<64x32xf32>
    %1062 = vector.extract_strided_slice %1049 {offsets = [2, 0, 0], sizes = [1, 32, 32], strides = [1, 1, 1]} : vector<9x32x32xf32> to vector<1x32x32xf32>
    %1063 = vector.shape_cast %1062 : vector<1x32x32xf32> to vector<32x32xf32>
    %cst_213 = arith.constant dense<0.000000e+00> : vector<64x32xf32>
    %1064 = tpu.matmul %1061, %1063, %cst_213 {dimension_numbers = #tpu.dot_dimension_numbers<[1], [0], [0], [1], [0, 0, 1, 1], [], []>} : vector<64x32xf32>, vector<32x32xf32>, vector<64x32xf32> -> vector<64x32xf32>
    %1065 = arith.addf %1060, %1064 : vector<64x32xf32>
    %1066 = vector.extract_strided_slice %1048 {offsets = [3, 0], sizes = [64, 32], strides = [1, 1]} : vector<72x32xf32> to vector<64x32xf32>
    %1067 = vector.extract_strided_slice %1049 {offsets = [3, 0, 0], sizes = [1, 32, 32], strides = [1, 1, 1]} : vector<9x32x32xf32> to vector<1x32x32xf32>
    %1068 = vector.shape_cast %1067 : vector<1x32x32xf32> to vector<32x32xf32>
    %cst_214 = arith.constant dense<0.000000e+00> : vector<64x32xf32>
    %1069 = tpu.matmul %1066, %1068, %cst_214 {dimension_numbers = #tpu.dot_dimension_numbers<[1], [0], [0], [1], [0, 0, 1, 1], [], []>} : vector<64x32xf32>, vector<32x32xf32>, vector<64x32xf32> -> vector<64x32xf32>
    %1070 = arith.addf %1065, %1069 : vector<64x32xf32>
    %1071 = vector.extract_strided_slice %1048 {offsets = [4, 0], sizes = [64, 32], strides = [1, 1]} : vector<72x32xf32> to vector<64x32xf32>
    %1072 = vector.extract_strided_slice %1049 {offsets = [4, 0, 0], sizes = [1, 32, 32], strides = [1, 1, 1]} : vector<9x32x32xf32> to vector<1x32x32xf32>
    %1073 = vector.shape_cast %1072 : vector<1x32x32xf32> to vector<32x32xf32>
    %cst_215 = arith.constant dense<0.000000e+00> : vector<64x32xf32>
    %1074 = tpu.matmul %1071, %1073, %cst_215 {dimension_numbers = #tpu.dot_dimension_numbers<[1], [0], [0], [1], [0, 0, 1, 1], [], []>} : vector<64x32xf32>, vector<32x32xf32>, vector<64x32xf32> -> vector<64x32xf32>
    %1075 = arith.addf %1070, %1074 : vector<64x32xf32>
    %1076 = vector.extract_strided_slice %1048 {offsets = [5, 0], sizes = [64, 32], strides = [1, 1]} : vector<72x32xf32> to vector<64x32xf32>
    %1077 = vector.extract_strided_slice %1049 {offsets = [5, 0, 0], sizes = [1, 32, 32], strides = [1, 1, 1]} : vector<9x32x32xf32> to vector<1x32x32xf32>
    %1078 = vector.shape_cast %1077 : vector<1x32x32xf32> to vector<32x32xf32>
    %cst_216 = arith.constant dense<0.000000e+00> : vector<64x32xf32>
    %1079 = tpu.matmul %1076, %1078, %cst_216 {dimension_numbers = #tpu.dot_dimension_numbers<[1], [0], [0], [1], [0, 0, 1, 1], [], []>} : vector<64x32xf32>, vector<32x32xf32>, vector<64x32xf32> -> vector<64x32xf32>
    %1080 = arith.addf %1075, %1079 : vector<64x32xf32>
    %1081 = vector.extract_strided_slice %1048 {offsets = [6, 0], sizes = [64, 32], strides = [1, 1]} : vector<72x32xf32> to vector<64x32xf32>
    %1082 = vector.extract_strided_slice %1049 {offsets = [6, 0, 0], sizes = [1, 32, 32], strides = [1, 1, 1]} : vector<9x32x32xf32> to vector<1x32x32xf32>
    %1083 = vector.shape_cast %1082 : vector<1x32x32xf32> to vector<32x32xf32>
    %cst_217 = arith.constant dense<0.000000e+00> : vector<64x32xf32>
    %1084 = tpu.matmul %1081, %1083, %cst_217 {dimension_numbers = #tpu.dot_dimension_numbers<[1], [0], [0], [1], [0, 0, 1, 1], [], []>} : vector<64x32xf32>, vector<32x32xf32>, vector<64x32xf32> -> vector<64x32xf32>
    %1085 = arith.addf %1080, %1084 : vector<64x32xf32>
    %1086 = vector.extract_strided_slice %1048 {offsets = [7, 0], sizes = [64, 32], strides = [1, 1]} : vector<72x32xf32> to vector<64x32xf32>
    %1087 = vector.extract_strided_slice %1049 {offsets = [7, 0, 0], sizes = [1, 32, 32], strides = [1, 1, 1]} : vector<9x32x32xf32> to vector<1x32x32xf32>
    %1088 = vector.shape_cast %1087 : vector<1x32x32xf32> to vector<32x32xf32>
    %cst_218 = arith.constant dense<0.000000e+00> : vector<64x32xf32>
    %1089 = tpu.matmul %1086, %1088, %cst_218 {dimension_numbers = #tpu.dot_dimension_numbers<[1], [0], [0], [1], [0, 0, 1, 1], [], []>} : vector<64x32xf32>, vector<32x32xf32>, vector<64x32xf32> -> vector<64x32xf32>
    %1090 = arith.addf %1085, %1089 : vector<64x32xf32>
    %1091 = vector.extract_strided_slice %1048 {offsets = [8, 0], sizes = [64, 32], strides = [1, 1]} : vector<72x32xf32> to vector<64x32xf32>
    %1092 = vector.extract_strided_slice %1049 {offsets = [8, 0, 0], sizes = [1, 32, 32], strides = [1, 1, 1]} : vector<9x32x32xf32> to vector<1x32x32xf32>
    %1093 = vector.shape_cast %1092 : vector<1x32x32xf32> to vector<32x32xf32>
    %cst_219 = arith.constant dense<0.000000e+00> : vector<64x32xf32>
    %1094 = tpu.matmul %1091, %1093, %cst_219 {dimension_numbers = #tpu.dot_dimension_numbers<[1], [0], [0], [1], [0, 0, 1, 1], [], []>} : vector<64x32xf32>, vector<32x32xf32>, vector<64x32xf32> -> vector<64x32xf32>
    %1095 = arith.addf %1090, %1094 : vector<64x32xf32>
    %1096 = vector.shape_cast %1095 : vector<64x32xf32> to vector<4x16x32xf32>
    %1097 = vector.extract_strided_slice %1096 {offsets = [0, 0, 0], sizes = [4, 14, 8], strides = [1, 1, 1]} : vector<4x16x32xf32> to vector<4x14x8xf32>
    %cst_220 = arith.constant dense<0xFF800000> : vector<4x8xf32>
    %1098 = vector.multi_reduction <maximumf>, %1097, %cst_220 [1] : vector<4x14x8xf32> to vector<4x8xf32>
    %1099 = vector.extract_strided_slice %1096 {offsets = [0, 0, 8], sizes = [4, 12, 8], strides = [1, 1, 1]} : vector<4x16x32xf32> to vector<4x12x8xf32>
    %cst_221 = arith.constant dense<0xFF800000> : vector<4x8xf32>
    %1100 = vector.multi_reduction <maximumf>, %1099, %cst_221 [1] : vector<4x12x8xf32> to vector<4x8xf32>
    %1101 = vector.extract_strided_slice %1096 {offsets = [0, 0, 16], sizes = [4, 10, 8], strides = [1, 1, 1]} : vector<4x16x32xf32> to vector<4x10x8xf32>
    %cst_222 = arith.constant dense<0xFF800000> : vector<4x8xf32>
    %1102 = vector.multi_reduction <maximumf>, %1101, %cst_222 [1] : vector<4x10x8xf32> to vector<4x8xf32>
    %1103 = vector.extract_strided_slice %1096 {offsets = [0, 0, 24], sizes = [4, 8, 8], strides = [1, 1, 1]} : vector<4x16x32xf32> to vector<4x8x8xf32>
    %cst_223 = arith.constant dense<0xFF800000> : vector<4x8xf32>
    %1104 = vector.multi_reduction <maximumf>, %1103, %cst_223 [1] : vector<4x8x8xf32> to vector<4x8xf32>
    %1105 = tpu.concatenate %1098, %1100, %1102, %1104 in 1 : vector<4x8xf32>, vector<4x8xf32>, vector<4x8xf32>, vector<4x8xf32> -> vector<4x32xf32>
    %c0_224 = arith.constant 0 : index
    %c0_225 = arith.constant 0 : index
    %1106 = vector.load %arg5[%c0_224, %c0_225] : memref<32x16xf32, #tpu.memory_space<vmem>>, vector<32x16xf32>
    %cst_226 = arith.constant dense<0.000000e+00> : vector<4x16xf32>
    %1107 = tpu.matmul %1105, %1106, %cst_226 {dimension_numbers = #tpu.dot_dimension_numbers<[1], [0], [0], [1], [0, 0, 1, 1], [], []>} : vector<4x32xf32>, vector<32x16xf32>, vector<4x16xf32> -> vector<4x16xf32>
    %c0_227 = arith.constant 0 : index
    %c0_228 = arith.constant 0 : index
    %1108 = vector.load %arg6[%c0_227, %c0_228] : memref<1x16xf32, #tpu.memory_space<vmem>>, vector<1x16xf32>
    %1109 = vector.broadcast %1108 : vector<1x16xf32> to vector<4x16xf32>
    %1110 = arith.addf %1107, %1109 : vector<4x16xf32>
    %cst_229 = arith.constant 0.000000e+00 : f32
    %1111 = vector.broadcast %cst_229 : f32 to vector<4x16xf32>
    %1112 = arith.maximumf %1110, %1111 : vector<4x16xf32>
    %c0_230 = arith.constant 0 : index
    %c0_231 = arith.constant 0 : index
    %1113 = vector.load %arg7[%c0_230, %c0_231] : memref<16x1xf32, #tpu.memory_space<vmem>>, vector<16x1xf32>
    %cst_232 = arith.constant dense<0.000000e+00> : vector<4x1xf32>
    %1114 = tpu.matmul %1112, %1113, %cst_232 {dimension_numbers = #tpu.dot_dimension_numbers<[1], [0], [0], [1], [0, 0, 1, 1], [], []>} : vector<4x16xf32>, vector<16x1xf32>, vector<4x1xf32> -> vector<4x1xf32>
    %c0_233 = arith.constant 0 : index
    %c0_234 = arith.constant 0 : index
    %1115 = vector.load %arg8[%c0_233, %c0_234] : memref<1x1xf32, #tpu.memory_space<vmem>>, vector<1x1xf32>
    %1116 = vector.broadcast %1115 : vector<1x1xf32> to vector<4x1xf32>
    %1117 = arith.addf %1114, %1116 : vector<4x1xf32>
    %1118 = arith.negf %1117 : vector<4x1xf32>
    %1119 = math.exp %1118 : vector<4x1xf32>
    %cst_235 = arith.constant 1.000000e+00 : f32
    %1120 = vector.broadcast %cst_235 : f32 to vector<4x1xf32>
    %1121 = arith.addf %1120, %1119 : vector<4x1xf32>
    %1122 = arith.divf %1120, %1121 : vector<4x1xf32>
    %c0_236 = arith.constant 0 : index
    %c0_237 = arith.constant 0 : index
    %1123 = vector.load %arg9[%c0_236, %c0_237] : memref<4x1xf32, #tpu.memory_space<vmem>>, vector<4x1xf32>
    tpu.vector_store %arg9[%c0_236, %c0_237], %1122 {strides = array<i32>} : memref<4x1xf32, #tpu.memory_space<vmem>>, vector<4x1xf32>,
    return
  }
  func.func @transform_0(%arg0: i32) -> (i32, i32, i32) {
    %c0_i32 = arith.constant 0 : i32
    %c0_i32_0 = arith.constant 0 : i32
    %c0_i32_1 = arith.constant 0 : i32
    %c0_i32_2 = arith.constant 0 : i32
    return %c0_i32, %c0_i32_0, %c0_i32_1 : i32, i32, i32
  }
  func.func @transform_1(%arg0: i32) -> (i32, i32) {
    %c0_i32 = arith.constant 0 : i32
    %c0_i32_0 = arith.constant 0 : i32
    %c0_i32_1 = arith.constant 0 : i32
    return %c0_i32, %c0_i32_0 : i32, i32
  }
  func.func @transform_2(%arg0: i32) -> (i32, i32) {
    %c0_i32 = arith.constant 0 : i32
    %c0_i32_0 = arith.constant 0 : i32
    %c0_i32_1 = arith.constant 0 : i32
    return %c0_i32, %c0_i32_0 : i32, i32
  }
  func.func @transform_3(%arg0: i32) -> (i32, i32, i32) {
    %c0_i32 = arith.constant 0 : i32
    %c0_i32_0 = arith.constant 0 : i32
    %c0_i32_1 = arith.constant 0 : i32
    %c0_i32_2 = arith.constant 0 : i32
    return %c0_i32, %c0_i32_0, %c0_i32_1 : i32, i32, i32
  }
  func.func @transform_4(%arg0: i32) -> (i32, i32) {
    %c0_i32 = arith.constant 0 : i32
    %c0_i32_0 = arith.constant 0 : i32
    %c0_i32_1 = arith.constant 0 : i32
    return %c0_i32, %c0_i32_0 : i32, i32
  }
  func.func @transform_5(%arg0: i32) -> (i32, i32) {
    %c0_i32 = arith.constant 0 : i32
    %c0_i32_0 = arith.constant 0 : i32
    %c0_i32_1 = arith.constant 0 : i32
    return %c0_i32, %c0_i32_0 : i32, i32
  }
  func.func @transform_6(%arg0: i32) -> (i32, i32) {
    %c0_i32 = arith.constant 0 : i32
    %c0_i32_0 = arith.constant 0 : i32
    %c0_i32_1 = arith.constant 0 : i32
    return %c0_i32, %c0_i32_0 : i32, i32
  }
  func.func @transform_7(%arg0: i32) -> (i32, i32) {
    %c0_i32 = arith.constant 0 : i32
    %c0_i32_0 = arith.constant 0 : i32
    %c0_i32_1 = arith.constant 0 : i32
    return %c0_i32, %c0_i32_0 : i32, i32
  }
  func.func @transform_8(%arg0: i32) -> (i32, i32) {
    %c0_i32 = arith.constant 0 : i32
    %c0_i32_0 = arith.constant 0 : i32
    %c0_i32_1 = arith.constant 0 : i32
    return %c0_i32, %c0_i32_0 : i32, i32
  }
}

</mosaic_0001>

<bundles_post_ra>
// kernel: thu_ngn_forward.1
= control target key start
LH: loop header
LB: loop body
LE: loop exit
PB: predicated region body
PF: predicated region fallthrough
CT: control target
= control target key end

     0   :  { %v13230_v0 = vmov 0.0   ;;  %vm13316_vm0 = vmmov 0   ;;  %s9669_s29 = smov 96   ;;  %s9670_s30 = smov 16   ;;  %vm13315_vm1 = vcmask 1041409   ;;  %vm13314_vm2 = vcmask 1042434   ;;  %s13221_s1 = inlined_call_operand.vmem [shape: f32[32,128], index: 1, kind: input, shape index: {}]   ;;  %s13222_s0 = inlined_call_operand.vmem [shape: f32[4,16,128], index: 0, kind: input, shape index: {}]   ;;  %s13223_s2 = inlined_call_operand.vmem [shape: f32[1,32], index: 2, kind: input, shape index: {}]   ;;  %s13224_s3 = inlined_call_operand.vmem [shape: f32[9,32,32], index: 3, kind: input, shape index: {}]   ;;  %s13225_s4 = inlined_call_operand.vmem [shape: f32[32,16], index: 4, kind: input, shape index: {}]   ;;  %s13226_s6 = inlined_call_operand.vmem [shape: f32[16,1], index: 6, kind: input, shape index: {}]   ;;  %s13227_s7 = inlined_call_operand.<no memory space> [shape: f32[1,1], index: 7, kind: input, shape index: {}]   ;;  %s13228_s5 = inlined_call_operand.vmem [shape: f32[1,16], index: 5, kind: input, shape index: {}]   ;;  %s13229_s8 = inlined_call_operand.vmem [shape: f32[4,1], index: 8, kind: output, shape index: {}]  }
   0x1   :  { %8163 = vmatprep.subr.mxu0 %v13230_v0  ;;  %v9722_v1 = vld [vmem:[%s13221_s1 + $0x18] sm:$0xff]  ;;  %v9727_v2 = vld [vmem:[%s13221_s1 + $0x10] sm:$0xff]  ;;  %8171 = vmatprep.mubr.msk.f32.mxu0 %vm13316_vm0, %v13230_v0  ;;  %v9737_v3 = vld [vmem:[%s13221_s1 + $0x8] sm:$0xff]  ;;  %s9671_s9 = smov 32   ;;  %vm13313_vm3 = vcmask 1043459   ;;  %s9672_s10 = smov 80  }
   0x2   :  { %8164 = vmatpush3.msra.mxu0 %v9722_v1  ;;  %8174 = vmatprep.subr.mxu1 %v13230_v0  ;;  %v9746_v4 = vld [vmem:[%s13221_s1] sm:$0xff]  ;;  %v9780_v10 = vld [vmem:[%s13222_s0 + $0x10] sm:$0xff]  ;;  %v9786_v12 = vld [vmem:[%s13222_s0 + $0x8] sm:$0xff]  ;;  %vm13312_vm4 = vcmask 130048   ;;  %vm13321_vm5 = vcmask 261120   ;;  %vm751_vm6 = vcmask 1044484  }
   0x3   :  { %8165 = vmatprep.subr.mxu0 %v13230_v0  ;;  %8175 = vmatpush3.msra.mxu1 %v9722_v1  ;;  %v9774_v5 = vld [vmem:[%s13222_s0] sm:$0xff]  ;;  %v9791_v14 = vld [vmem:[%s13222_s0 + $0x18] sm:$0xff]  ;;  %v9797_v17 = vld [vmem:[%s13222_s0 + $0x28] sm:$0xff]  ;;  %vm1126_vm7 = vcmask 1045509   ;;  %vm1496_vm8 = vcmask 1046534   ;;  %vm1866_vm9 = vcmask 1047559  }
   0x4   :  { %8166 = vmatpush3.msra.mxu0 %v9727_v2  ;;  %8176 = vmatprep.subr.mxu1 %v13230_v0  ;;  %v9803_v19 = vld [vmem:[%s13222_s0 + $0x20] sm:$0xff]  ;;  %v9809_v22 = vld [vmem:[%s13222_s0 + $0x30] sm:$0xff]  ;;  %v9815_v25 = vld [vmem:[%s13222_s0 + $0x38] sm:$0xff]  ;;  %vm13320_vm10 = vcmask 1042432   ;;  %vm13318_vm11 = vcmask 1041408   ;;  %vm2971_vm12 = vcmask 130055  }
   0x5   :  { %8167 = vmatprep.subr.mxu0 %v13230_v0  ;;  %8177 = vmatpush3.msra.mxu1 %v9727_v2  ;;  %vm13319_vm13 = vcmask 1040384   ;;  %vm364_vm14 = vcmask 261255   ;;  %vm343_vm15 = vcmask 122880  }
   0x6   :  { %8168 = vmatpush3.msra.mxu0 %v9737_v3  ;;  %8178 = vmatprep.subr.mxu1 %v13230_v0 }
   0x7   :  { %8169 = vmatprep.subr.mxu0 %v13230_v0  ;;  %8179 = vmatpush3.msra.mxu1 %v9737_v3 }
   0x8   :  { %8170 = vmatpush3.msra.mxu0 %v9746_v4  ;;  %8180 = vmatprep.subr.mxu1 %v13230_v0 }
   0x9   :  { %8172 = vmatmul.mubr.f32.vlgmr.msra.gmra.mxu0 %v13230_v0  ;;  %8181 = vmatpush3.msra.mxu1 %v9746_v4 }
   0xa   :  { %8182 = vmatprep.mubr.msk.f32.mxu1 %vm13316_vm0, %v13230_v0  ;;  %8185 = vmatprep.subr.mxu0 %v13230_v0 }
   0xb   :  { %8186 = vmatpush3.msra.mxu0 %v9722_v1  ;;  %8193 = vmatprep.mubr.msk.f32.mxu0 %vm13316_vm0, %v13230_v0 }
   0xc   :  { %8187 = vmatprep.subr.mxu0 %v13230_v0  ;;  %8196 = vmatprep.subr.mxu1 %v13230_v0 }
   0xd   :  { %8188 = vmatpush3.msra.mxu0 %v9727_v2 }
   0xe   :  { %8189 = vmatprep.subr.mxu0 %v13230_v0 }
   0xf   :  { %8190 = vmatpush3.msra.mxu0 %v9737_v3 }
  0x10   :  { %8191 = vmatprep.subr.mxu0 %v13230_v0 }
  0x11   :  { %8192 = vmatpush3.msra.mxu0 %v9746_v4 }
  0x12   :  { %8207 = vmatprep.subr.mxu0 %v13230_v0 }
  0xc9   :  { %v113_v6 = vpop.f32.mrf.mxu0 }
  0xca   :  { %v125_v7 = vadd.f32 %v113_v6, %v9774_v5  ;;  %v118_v8 = vrot.slane %v113_v6, 1  ;;  %v119_v13 = vrot.slane %v113_v6, 2  ;;  %v120_v15 = vrot.slane %v113_v6, 3 }
  0xcb   :  { %v8173_v9 = vpop.f32.mrf.mxu0  ;;  %v129_v24 = vrot.slane %v113_v6, 4 }
  0xcc   :  { %8543 = vtanh.f32 %v125_v7  ;;  %v126_v11 = vadd.f32 %v118_v8, %v9780_v10  ;;  %v131_v16 = vadd.f32 %v118_v8, %v9786_v12  ;;  %v132_v18 = vadd.f32 %v119_v13, %v9791_v14 }
  0xcd   :  { %v133_v20 = vadd.f32 %v120_v15, %v9797_v17  ;;  %v127_v23 = vadd.f32 %v119_v13, %v9803_v19  ;;  %v128_v26 = vadd.f32 %v120_v15, %v9809_v22  ;;  %v134_v27 = vadd.f32 %v129_v24, %v9815_v25 }
  0xce   :  { %8545 = vtanh.f32 %v126_v11  ;;  %v7747_v35 = vmul.f32 -1.442695, %v125_v7  ;;  %v7748_v36 = vmul.f32 -1.442695, %v126_v11  ;;  %v7751_v37 = vmul.f32 -1.442695, %v131_v16 }
  0xcf   :  { %8547 = vtanh.f32 %v131_v16  ;;  %v7752_v38 = vmul.f32 -1.442695, %v132_v18  ;;  %v7753_v39 = vmul.f32 -1.442695, %v133_v20  ;;  %v7749_v41 = vmul.f32 -1.442695, %v127_v23 }
  0xd0   :  { %8549 = vtanh.f32 %v132_v18  ;;  %v7750_v42 = vmul.f32 -1.442695, %v128_v26  ;;  %v7754_v44 = vmul.f32 -1.442695, %v134_v27 }
  0xd1   :  { %8551 = vtanh.f32 %v133_v20 }
  0xd2   :  { %8553 = vtanh.f32 %v127_v23 }
  0xd3   :  { %8555 = vtanh.f32 %v128_v26 }
  0xd4   :  { %8557 = vtanh.f32 %v134_v27 }
  0xd5   :  { %8559 = vpow2.f32 %v7747_v35 }
  0xd6   :  { %8561 = vpow2.f32 %v7748_v36 }
  0xd7   :  { %8563 = vpow2.f32 %v7751_v37 }
  0xd8   :  { %8565 = vpow2.f32 %v7752_v38 }
  0xd9   :  { %v8544_v21 = vpop.eup %8543  ;;  %8567 = vpow2.f32 %v7753_v39 }
  0xda   :  { %171 = vrot.lane.b32.xlu1 %v8544_v21, %s9669_s29  ;;  %8569 = vpow2.f32 %v7749_v41 }
  0xdb   :  { %v8546_v28 = vpop.eup %8545  ;;  %8571 = vpow2.f32 %v7750_v42 }
  0xdc   :  { %173 = vrot.lane.b32.xlu0 %v8546_v28, %s9669_s29  ;;  %v8548_v29 = vpop.eup %8547 }
  0xdd   :  { %v8550_v30 = vpop.eup %8549 }
  0xde   :  { %269 = vrot.lane.b32.xlu1 %v8550_v30, %s9669_s29  ;;  %v8552_v31 = vpop.eup %8551 }
  0xdf   :  { %v8554_v32 = vpop.eup %8553 }
  0xe0   :  { %267 = vrot.lane.b32.xlu0 %v8548_v29, %s9669_s29  ;;  %v8556_v33 = vpop.eup %8555 }
  0xe1   :  { %v8558_v34 = vpop.eup %8557 }
  0xe2   :  { %175 = vrot.lane.b32.xlu1 %v8554_v32, %s9669_s29  ;;  %v8560_v40 = vpop.eup %8559 }
  0xe3   :  { %v147_v43 = vadd.f32 1.0, %v8560_v40  ;;  %v8562_v45 = vpop.eup %8561 }
  0xe4   :  { %271 = vrot.lane.b32.xlu0 %v8552_v31, %s9669_s29  ;;  %v148_v46 = vadd.f32 1.0, %v8562_v45  ;;  %v8564_v47 = vpop.eup %8563 }
  0xe5   :  { %8573 = vrcp.f32 %v147_v43  ;;  %v8566_v48 = vpop.eup %8565  ;;  %v243_v49 = vadd.f32 1.0, %v8564_v47 }
  0xe6   :  { %273 = vrot.lane.b32.xlu1 %v8558_v34, %s9669_s29  ;;  %8575 = vpow2.f32 %v7754_v44  ;;  %v8568_v50 = vpop.eup %8567  ;;  %v244_v51 = vadd.f32 1.0, %v8566_v48 }
  0xe7   :  { %8577 = vrcp.f32 %v148_v46  ;;  %v8570_v52 = vpop.eup %8569  ;;  %v245_v54 = vadd.f32 1.0, %v8568_v50 }
  0xe8   :  { %177 = vrot.lane.b32.xlu0 %v8556_v33, %s9669_s29  ;;  %v8572_v53 = vpop.eup %8571  ;;  %8579 = vrcp.f32 %v243_v49  ;;  %v149_v56 = vadd.f32 1.0, %v8570_v52 }
  0xe9   :  { %8581 = vrcp.f32 %v244_v51  ;;  %v150_v60 = vadd.f32 1.0, %v8572_v53 }
  0xea   :  { %8583 = vrcp.f32 %v245_v54 }
  0xeb   :  { %8585 = vrcp.f32 %v149_v56 }
  0xec   :  { %8587 = vrcp.f32 %v150_v60 }
  0xf2   :  { %v9827_v55 = vpop.eup %8573 }
  0xf3   :  { %v8576_v58 = vpop.eup %8575  ;;  %v163_v32 = vmul.f32 0.0, %v9827_v55 }
  0xf4   :  { %v246_v61 = vadd.f32 1.0, %v8576_v58  ;;  %v9831_v62 = vpop.eup %8577 }
  0xf5   :  { %v9835_v7 = vpop.eup %8579  ;;  %v164_v35 = vmul.f32 0.0, %v9831_v62 }
  0xf6   :  { %8589 = vrcp.f32 %v246_v61  ;;  %v9837_v9 = vpop.eup %8581  ;;  %v259_v38 = vmul.f32 0.0, %v9835_v7 }
  0xf7   :  { %v9842_v16 = vpop.eup %8583  ;;  %v260_v39 = vmul.f32 0.0, %v9837_v9 }
  0xf8   :  { %v9845_v20 = vpop.eup %8585  ;;  %v261_v45 = vmul.f32 0.0, %v9842_v16 }
  0xf9   :  { %v9849_v26 = vpop.eup %8587  ;;  %v165_v46 = vmul.f32 0.0, %v9845_v20 }
  0xfa   :  { %v166_v51 = vmul.f32 0.0, %v9849_v26 }
 0x103   :  { %v9853_v28 = vpop.eup %8589 }
 0x104   :  { %v262_v52 = vmul.f32 0.0, %v9853_v28 }
 0x14c   :  { %v172_v57 = vpop.permute.xlu1 %171 }
 0x14d   :  { %v183_v59 = vmul.f32 %v9827_v55, %v172_v57 }
 0x14e   :  { %v174_v63 = vpop.permute.xlu0 %173 }
 0x14f   :  { %191 = vrot.lane.b32.xlu1 %v183_v59, %s9670_s30  ;;  %v184_v6 = vmul.f32 %v9831_v62, %v174_v63 }
 0x150   :  { %v270_v11 = vpop.permute.xlu1 %269 }
 0x151   :  { %193 = vrot.lane.b32.xlu0 %v184_v6, %s9670_s30  ;;  %v280_v15 = vmul.f32 %v9837_v9, %v270_v11 }
 0x152   :  { %v268_v8 = vpop.permute.xlu0 %267 }
 0x153   :  { %v279_v13 = vmul.f32 %v9835_v7, %v268_v8 }
 0x154   :  { %v176_v21 = vpop.permute.xlu1 %175 }
 0x155   :  { %287 = vrot.lane.b32.xlu1 %v279_v13, %s9670_s30  ;;  %289 = vrot.lane.b32.xlu0 %v280_v15, %s9670_s30  ;;  %v185_v24 = vmul.f32 %v9845_v20, %v176_v21 }
 0x156   :  { %v272_v18 = vpop.permute.xlu0 %271 }
 0x157   :  { %v281_v23 = vmul.f32 %v9842_v16, %v272_v18 }
 0x158   :  { %v274_v29 = vpop.permute.xlu1 %273 }
 0x159   :  { %291 = vrot.lane.b32.xlu0 %v281_v23, %s9670_s30  ;;  %195 = vrot.lane.b32.xlu1 %v185_v24, %s9670_s30  ;;  %v282_v31 = vmul.f32 %v9853_v28, %v274_v29 }
 0x15a   :  { %v178_v27 = vpop.permute.xlu0 %177 }
 0x15b   :  { %v186_v30 = vmul.f32 %v9849_v26, %v178_v27 }
 0x15d   :  { %197 = vrot.lane.b32.xlu0 %v186_v30, %s9670_s30  ;;  %293 = vrot.lane.b32.xlu1 %v282_v31, %s9670_s30 }
 0x1c1   :  { %v192_v33 = vpop.permute.xlu1 %191 }
 0x1c2   :  { %v9860_v34 = vadd.f32 %v192_v33, %v163_v32 }
 0x1c3   :  { %v194_v36 = vpop.permute.xlu0 %193 }
 0x1c4   :  { %8591 = vtanh.f32 %v9860_v34  ;;  %v9864_v37 = vadd.f32 %v194_v36, %v164_v35 }
 0x1c6   :  { %8593 = vtanh.f32 %v9864_v37 }
 0x1c7   :  { %v288_v40 = vpop.permute.xlu1 %287  ;;  %v290_v41 = vpop.permute.xlu0 %289 }
 0x1c8   :  { %v9869_v42 = vadd.f32 %v288_v40, %v259_v38  ;;  %v9871_v43 = vadd.f32 %v290_v41, %v260_v39 }
 0x1ca   :  { %8595 = vtanh.f32 %v9869_v42 }
 0x1cb   :  { %8597 = vtanh.f32 %v9871_v43  ;;  %v292_v47 = vpop.permute.xlu0 %291  ;;  %v196_v48 = vpop.permute.xlu1 %195 }
 0x1cc   :  { %v9878_v49 = vadd.f32 %v292_v47, %v261_v45  ;;  %v9880_v50 = vadd.f32 %v196_v48, %v165_v46 }
 0x1ce   :  { %8599 = vtanh.f32 %v9878_v49 }
 0x1cf   :  { %8601 = vtanh.f32 %v9880_v50  ;;  %v198_v54 = vpop.permute.xlu0 %197  ;;  %v294_v56 = vpop.permute.xlu1 %293 }
 0x1d0   :  { %v9886_v57 = vadd.f32 %v198_v54, %v166_v51  ;;  %v9888_v58 = vadd.f32 %v294_v56, %v262_v52 }
 0x1d1   :  { %v8592_v44 = vpop.eup %8591 }
 0x1d2   :  { %215 = vrot.lane.b32.xlu1 %v8592_v44, %s9671_s9  ;;  %8603 = vtanh.f32 %v9886_v57 }
 0x1d3   :  { %v8594_v53 = vpop.eup %8593  ;;  %8605 = vtanh.f32 %v9888_v58 }
 0x1d4   :  { %217 = vrot.lane.b32.xlu0 %v8594_v53, %s9671_s9 }
 0x1d7   :  { %v8596_v59 = vpop.eup %8595 }
 0x1d8   :  { %v8598_v60 = vpop.eup %8597  ;;  %311 = vrot.lane.b32.xlu1 %v8596_v59, %s9671_s9 }
 0x1d9   :  { %313 = vrot.lane.b32.xlu0 %v8598_v60, %s9671_s9 }
 0x1db   :  { %v8600_v61 = vpop.eup %8599 }
 0x1dc   :  { %v8602_v63 = vpop.eup %8601 }
 0x1dd   :  { %315 = vrot.lane.b32.xlu0 %v8600_v61, %s9671_s9  ;;  %219 = vrot.lane.b32.xlu1 %v8602_v63, %s9671_s9 }
 0x1df   :  { %v8604_v6 = vpop.eup %8603 }
 0x1e0   :  { %v8606_v8 = vpop.eup %8605 }
 0x1e1   :  { %221 = vrot.lane.b32.xlu0 %v8604_v6, %s9671_s9  ;;  %317 = vrot.lane.b32.xlu1 %v8606_v8, %s9671_s9 }
 0x244   :  { %v216_v13 = vpop.permute.xlu1 %215 }
 0x246   :  { %v218_v11 = vpop.permute.xlu0 %217 }
 0x247   :  { %v9900_v21 = vmul.f32 %v9831_v62, %v218_v11 }
 0x249   :  { %v369_v32 = vrot.slane %v9900_v21, 7 }
 0x24a   :  { %v312_v15 = vpop.permute.xlu1 %311 }
 0x24b   :  { %v314_v18 = vpop.permute.xlu0 %313  ;;  %v9906_v24 = vmul.f32 %v9835_v7, %v312_v15  ;;  %v9919_v7 = vmul.f32 %v9827_v55, %v216_v13 }
 0x24c   :  { %v9903_v23 = vmul.f32 %v9837_v9, %v314_v18 }
 0x24d   :  { %v381_v62 = vrot.slane %v9906_v24, 7  ;;  %v371_v40 = vsel %vm13315_vm1, %v369_v32, %v9919_v7 }
 0x24e   :  { %v382_v33 = vrot.slane %v9903_v23, 6 }
 0x24f   :  { %v316_v27 = vpop.permute.xlu0 %315  ;;  %v220_v30 = vpop.permute.xlu1 %219 }
 0x250   :  { %v9909_v29 = vmul.f32 %v9842_v16, %v316_v27  ;;  %v9912_v31 = vmul.f32 %v9845_v20, %v220_v30  ;;  %v383_v44 = vsel %vm13315_vm1, %v382_v33, %v381_v62 }
 0x252   :  { %13323 = vst [vmem:[#allocation4_spill] sm:$0xff] %v9909_v29  ;;  %13324 = vst [vmem:[#allocation5_spill] sm:$0xff] %v9912_v31  ;;  %v372_v9 = vrot.slane %v9912_v31, 6  ;;  %v384_v16 = vrot.slane %v9909_v29, 5 }
 0x253   :  { %v222_v35 = vpop.permute.xlu0 %221  ;;  %v318_v20 = vpop.permute.xlu1 %317 }
 0x254   :  { %v9923_v36 = vmul.f32 %v9849_v26, %v222_v35  ;;  %v9926_v38 = vmul.f32 %v9853_v28, %v318_v20  ;;  %v374_v55 = vsel %vm13314_vm2, %v372_v9, %v371_v40  ;;  %v385_v45 = vsel %vm13314_vm2, %v384_v16, %v383_v44 }
 0x256   :  { %13325 = vst [vmem:[#allocation6_spill] sm:$0xff] %v9923_v36  ;;  %13326 = vst [vmem:[#allocation7_spill] sm:$0xff] %v9926_v38  ;;  %v375_v39 = vrot.slane %v9923_v36, 5  ;;  %v386_v41 = vrot.slane %v9926_v38, 4 }
 0x258   :  { %v377_v26 = vsel %vm13313_vm3, %v375_v39, %v374_v55  ;;  %v387_v28 = vsel %vm13313_vm3, %v386_v41, %v385_v45 }
 0x259   :  { %378 = vrot.lane.b32.xlu0 %v377_v26, %s9672_s10  ;;  %388 = vrot.lane.b32.xlu1 %v387_v28, %s9671_s9 }
 0x2cb   :  { %v379_v46 = vpop.permute.xlu0 %378  ;;  %v389_v47 = vpop.permute.xlu1 %388 }
 0x2cc   :  { %v392_v48 = vsel %vm13312_vm4, %v379_v46, %v389_v47 }
 0x2cd   :  { %8183 = vmatmul.mubr.msk.f32.vlgmr.msra.gmra.mxu1 %vm13321_vm5, %v392_v48 }
 0x2ce   :  { %8197 = vmatpush3.msra.mxu1 %v9722_v1  ;;  %8204 = vmatprep.mubr.msk.f32.mxu1 %vm13316_vm0, %v13230_v0 }
 0x2cf   :  { %8198 = vmatprep.subr.mxu1 %v13230_v0 }
 0x2d0   :  { %8199 = vmatpush3.msra.mxu1 %v9727_v2 }
 0x2d1   :  { %8200 = vmatprep.subr.mxu1 %v13230_v0 }
 0x2d2   :  { %8201 = vmatpush3.msra.mxu1 %v9737_v3 }
 0x2d3   :  { %8202 = vmatprep.subr.mxu1 %v13230_v0 }
 0x2d4   :  { %8203 = vmatpush3.msra.mxu1 %v9746_v4 }
 0x2d5   :  { %8218 = vmatprep.subr.mxu1 %v13230_v0 }
 0x38d   :  { %v462_v51 = vpop.f32.mrf.mxu1 }
 0x38e   :  { %v475_v53 = vadd.f32 %v462_v51, %v9780_v10  ;;  %v469_v54 = vrot.slane %v462_v51, 2  ;;  %v478_v56 = vrot.slane %v462_v51, 3  ;;  %v468_v59 = vrot.slane %v462_v51, 1 }
 0x38f   :  { %v8184_v52 = vpop.f32.mrf.mxu1  ;;  %v479_v61 = vrot.slane %v462_v51, 4  ;;  %v467_v6 = vrot.slane %v462_v51, 7  ;;  %v480_v15 = vrot.slane %v462_v51, 5 }
 0x390   :  { %8607 = vtanh.f32 %v475_v53  ;;  %v484_v60 = vadd.f32 %v469_v54, %v9786_v12  ;;  %v485_v63 = vadd.f32 %v478_v56, %v9791_v14  ;;  %v476_v8 = vadd.f32 %v468_v59, %v9803_v19 }
 0x391   :  { %v486_v11 = vadd.f32 %v479_v61, %v9797_v17  ;;  %v474_v13 = vadd.f32 %v467_v6, %v9774_v5  ;;  %v477_v18 = vadd.f32 %v469_v54, %v9809_v22  ;;  %v487_v30 = vadd.f32 %v480_v15, %v9815_v25 }
 0x392   :  { %8609 = vtanh.f32 %v484_v60  ;;  %v7757_v39 = vmul.f32 -1.442695, %v475_v53  ;;  %v7760_v40 = vmul.f32 -1.442695, %v484_v60  ;;  %v7761_v41 = vmul.f32 -1.442695, %v485_v63 }
 0x393   :  { %8611 = vtanh.f32 %v485_v63  ;;  %v7758_v55 = vmul.f32 -1.442695, %v476_v8  ;;  %v7762_v44 = vmul.f32 -1.442695, %v486_v11  ;;  %v7756_v26 = vmul.f32 -1.442695, %v474_v13 }
 0x394   :  { %8613 = vtanh.f32 %v476_v8  ;;  %v7759_v45 = vmul.f32 -1.442695, %v477_v18  ;;  %v7763_v46 = vmul.f32 -1.442695, %v487_v30 }
 0x395   :  { %8615 = vtanh.f32 %v486_v11 }
 0x396   :  { %8617 = vtanh.f32 %v474_v13 }
 0x397   :  { %8619 = vtanh.f32 %v477_v18 }
 0x398   :  { %8621 = vtanh.f32 %v487_v30 }
 0x399   :  { %8623 = vpow2.f32 %v7757_v39 }
 0x39a   :  { %8625 = vpow2.f32 %v7760_v40 }
 0x39b   :  { %8627 = vpow2.f32 %v7761_v41 }
 0x39c   :  { %8629 = vpow2.f32 %v7758_v55 }
 0x39d   :  { %v8608_v27 = vpop.eup %8607  ;;  %8631 = vpow2.f32 %v7762_v44 }
 0x39e   :  { %538 = vrot.lane.b32.xlu0 %v8608_v27, %s9669_s29  ;;  %8633 = vpow2.f32 %v7756_v26 }
 0x39f   :  { %v8610_v32 = vpop.eup %8609  ;;  %8635 = vpow2.f32 %v7759_v45 }
 0x3a0   :  { %v8612_v33 = vpop.eup %8611  ;;  %644 = vrot.lane.b32.xlu1 %v8610_v32, %s9669_s29  ;;  %8637 = vpow2.f32 %v7763_v46 }
 0x3a1   :  { %v8614_v62 = vpop.eup %8613 }
 0x3a2   :  { %646 = vrot.lane.b32.xlu0 %v8612_v33, %s9669_s29  ;;  %v8616_v9 = vpop.eup %8615 }
 0x3a3   :  { %v8618_v35 = vpop.eup %8617 }
 0x3a4   :  { %540 = vrot.lane.b32.xlu1 %v8614_v62, %s9669_s29  ;;  %v8620_v16 = vpop.eup %8619 }
 0x3a5   :  { %v8622_v20 = vpop.eup %8621 }
 0x3a6   :  { %648 = vrot.lane.b32.xlu0 %v8616_v9, %s9669_s29  ;;  %v8624_v28 = vpop.eup %8623 }
 0x3a7   :  { %v501_v47 = vadd.f32 1.0, %v8624_v28  ;;  %v8626_v48 = vpop.eup %8625 }
 0x3a8   :  { %536 = vrot.lane.b32.xlu1 %v8618_v35, %s9669_s29  ;;  %v8628_v51 = vpop.eup %8627  ;;  %v608_v52 = vadd.f32 1.0, %v8626_v48 }
 0x3a9   :  { %8639 = vrcp.f32 %v501_v47  ;;  %v8630_v53 = vpop.eup %8629  ;;  %v609_v54 = vadd.f32 1.0, %v8628_v51 }
 0x3aa   :  { %542 = vrot.lane.b32.xlu0 %v8620_v16, %s9669_s29  ;;  %v8632_v56 = vpop.eup %8631  ;;  %v502_v59 = vadd.f32 1.0, %v8630_v53  ;;  %8641 = vrcp.f32 %v608_v52  ;;  %v521_v53 = vrot.slane %v9864_v37, 7 }
 0x3ab   :  { %v8634_v60 = vpop.eup %8633  ;;  %v610_v61 = vadd.f32 1.0, %v8632_v56  ;;  %8643 = vrcp.f32 %v609_v54 }
 0x3ac   :  { %650 = vrot.lane.b32.xlu1 %v8622_v20, %s9669_s29  ;;  %v8636_v63 = vpop.eup %8635  ;;  %v500_v6 = vadd.f32 1.0, %v8634_v60  ;;  %8645 = vrcp.f32 %v502_v59  ;;  %v628_v60 = vrot.slane %v9869_v42, 1 }
 0x3ad   :  { %v8638_v8 = vpop.eup %8637  ;;  %v503_v11 = vadd.f32 1.0, %v8636_v63  ;;  %8647 = vrcp.f32 %v610_v61  ;;  %v629_v61 = vrot.slane %v9871_v43, 1 }
 0x3ae   :  { %8649 = vrcp.f32 %v500_v6  ;;  %v611_v27 = vadd.f32 1.0, %v8638_v8 }
 0x3af   :  { %8651 = vrcp.f32 %v503_v11  ;;  %v522_v11 = vrot.slane %v9880_v50, 7 }
 0x3b0   :  { %8653 = vrcp.f32 %v611_v27 }
 0x3b6   :  { %v9967_v13 = vpop.eup %8639 }
 0x3b7   :  { %v9971_v30 = vpop.eup %8641  ;;  %v529_v54 = vmul.f32 %v9967_v13, %v521_v53 }
 0x3b8   :  { %v9973_v33 = vpop.eup %8643  ;;  %v636_v63 = vmul.f32 %v9971_v30, %v628_v60 }
 0x3b9   :  { %v9978_v16 = vpop.eup %8645  ;;  %v637_v8 = vmul.f32 %v9973_v33, %v629_v61 }
 0x3ba   :  { %v9981_v39 = vpop.eup %8647  ;;  %v530_v42 = vmul.f32 %v9978_v16, %v522_v11 }
 0x3bb   :  { %v9986_v44 = vpop.eup %8649 }
 0x3bc   :  { %v9989_v45 = vpop.eup %8651 }
 0x3bd   :  { %v9994_v48 = vpop.eup %8653 }
 0x410   :  { %v539_v15 = vpop.permute.xlu0 %538 }
 0x411   :  { %v549_v18 = vmul.f32 %v9967_v13, %v539_v15 }
 0x412   :  { %v645_v32 = vpop.permute.xlu1 %644 }
 0x413   :  { %558 = vrot.lane.b32.xlu0 %v549_v18, %s9670_s30  ;;  %v656_v62 = vmul.f32 %v9971_v30, %v645_v32  ;;  %v630_v18 = vrot.slane %v9878_v49, 1 }
 0x414   :  { %v647_v9 = vpop.permute.xlu0 %646 }
 0x415   :  { %v657_v35 = vmul.f32 %v9973_v33, %v647_v9  ;;  %664 = vrot.lane.b32.xlu1 %v656_v62, %s9670_s30  ;;  %v638_v32 = vmul.f32 %v9981_v39, %v630_v18  ;;  %v520_v62 = vrot.slane %v9860_v34, 7 }
 0x416   :  { %v541_v20 = vpop.permute.xlu1 %540 }
 0x417   :  { %666 = vrot.lane.b32.xlu0 %v657_v35, %s9670_s30  ;;  %v550_v40 = vmul.f32 %v9978_v16, %v541_v20  ;;  %v523_v35 = vrot.slane %v9886_v57, 7  ;;  %v528_v49 = vmul.f32 %v9986_v44, %v520_v62 }
 0x418   :  { %v649_v41 = vpop.permute.xlu0 %648 }
 0x419   :  { %v658_v55 = vmul.f32 %v9981_v39, %v649_v41  ;;  %560 = vrot.lane.b32.xlu1 %v550_v40, %s9670_s30  ;;  %v531_v41 = vmul.f32 %v9989_v45, %v523_v35 }
 0x41a   :  { %v537_v26 = vpop.permute.xlu1 %536 }
 0x41b   :  { %668 = vrot.lane.b32.xlu0 %v658_v55, %s9670_s30  ;;  %v548_v28 = vmul.f32 %v9986_v44, %v537_v26  ;;  %v631_v26 = vrot.slane %v9888_v58, 1 }
 0x41c   :  { %v543_v46 = vpop.permute.xlu0 %542 }
 0x41d   :  { %v551_v47 = vmul.f32 %v9989_v45, %v543_v46  ;;  %556 = vrot.lane.b32.xlu1 %v548_v28, %s9670_s30  ;;  %v639_v57 = vmul.f32 %v9994_v48, %v631_v26 }
 0x41e   :  { %v651_v51 = vpop.permute.xlu1 %650 }
 0x41f   :  { %562 = vrot.lane.b32.xlu0 %v551_v47, %s9670_s30  ;;  %v659_v52 = vmul.f32 %v9994_v48, %v651_v51 }
 0x421   :  { %670 = vrot.lane.b32.xlu1 %v659_v52, %s9670_s30 }
 0x485   :  { %v559_v56 = vpop.permute.xlu0 %558 }
 0x486   :  { %v10001_v59 = vadd.f32 %v559_v56, %v529_v54 }
 0x487   :  { %v665_v6 = vpop.permute.xlu1 %664 }
 0x488   :  { %8655 = vtanh.f32 %v10001_v59  ;;  %v10009_v15 = vadd.f32 %v665_v6, %v636_v63 }
 0x489   :  { %v667_v37 = vpop.permute.xlu0 %666 }
 0x48a   :  { %v10012_v27 = vadd.f32 %v667_v37, %v637_v8  ;;  %8657 = vtanh.f32 %v10009_v15 }
 0x48b   :  { %v561_v43 = vpop.permute.xlu1 %560 }
 0x48c   :  { %8659 = vtanh.f32 %v10012_v27  ;;  %v10019_v9 = vadd.f32 %v561_v43, %v530_v42 }
 0x48d   :  { %v669_v50 = vpop.permute.xlu0 %668 }
 0x48e   :  { %v10022_v20 = vadd.f32 %v669_v50, %v638_v32  ;;  %8661 = vtanh.f32 %v10019_v9 }
 0x48f   :  { %v557_v40 = vpop.permute.xlu1 %556 }
 0x490   :  { %8663 = vtanh.f32 %v10022_v20  ;;  %v10029_v34 = vadd.f32 %v557_v40, %v528_v49 }
 0x491   :  { %v563_v28 = vpop.permute.xlu0 %562 }
 0x492   :  { %v10031_v46 = vadd.f32 %v563_v28, %v531_v41  ;;  %8665 = vtanh.f32 %v10029_v34 }
 0x493   :  { %v671_v47 = vpop.permute.xlu1 %670 }
 0x494   :  { %8667 = vtanh.f32 %v10031_v46  ;;  %v10037_v51 = vadd.f32 %v671_v47, %v639_v57 }
 0x495   :  { %v8656_v55 = vpop.eup %8655 }
 0x496   :  { %582 = vrot.lane.b32.xlu0 %v8656_v55, %s9671_s9  ;;  %8669 = vtanh.f32 %v10037_v51 }
 0x497   :  { %v8658_v52 = vpop.eup %8657 }
 0x498   :  { %688 = vrot.lane.b32.xlu1 %v8658_v52, %s9671_s9 }
 0x499   :  { %v8660_v58 = vpop.eup %8659 }
 0x49a   :  { %690 = vrot.lane.b32.xlu0 %v8660_v58, %s9671_s9 }
 0x49b   :  { %v8662_v53 = vpop.eup %8661 }
 0x49c   :  { %584 = vrot.lane.b32.xlu1 %v8662_v53, %s9671_s9 }
 0x49d   :  { %v8664_v54 = vpop.eup %8663 }
 0x49e   :  { %692 = vrot.lane.b32.xlu0 %v8664_v54, %s9671_s9 }
 0x49f   :  { %v8666_v56 = vpop.eup %8665 }
 0x4a0   :  { %580 = vrot.lane.b32.xlu1 %v8666_v56, %s9671_s9 }
 0x4a1   :  { %v8668_v60 = vpop.eup %8667 }
 0x4a2   :  { %586 = vrot.lane.b32.xlu0 %v8668_v60, %s9671_s9 }
 0x4a3   :  { %v8670_v61 = vpop.eup %8669 }
 0x4a4   :  { %694 = vrot.lane.b32.xlu1 %v8670_v61, %s9671_s9 }
 0x508   :  { %v583_v63 = vpop.permute.xlu0 %582 }
 0x509   :  { %v10048_v37 = vmul.f32 %v9967_v13, %v583_v63 }
 0x50a   :  { %v689_v6 = vpop.permute.xlu1 %688 }
 0x50b   :  { %v746_v50 = vrot.slane %v10048_v37, 7  ;;  %v10061_v35 = vmul.f32 %v9971_v30, %v689_v6 }
 0x50c   :  { %v691_v8 = vpop.permute.xlu0 %690 }
 0x50d   :  { %v10051_v42 = vmul.f32 %v9973_v33, %v691_v8 }
 0x50e   :  { %v585_v11 = vpop.permute.xlu1 %584 }
 0x50f   :  { %v10054_v43 = vmul.f32 %v9978_v16, %v585_v11  ;;  %v757_v33 = vrot.slane %v10051_v42, 4 }
 0x510   :  { %v693_v18 = vpop.permute.xlu0 %692 }
 0x511   :  { %13327 = vst [vmem:[#allocation8_spill] sm:$0xff] %v10054_v43  ;;  %v10057_v32 = vmul.f32 %v9981_v39, %v693_v18  ;;  %v748_v16 = vrot.slane %v10054_v43, 6 }
 0x512   :  { %v581_v62 = vpop.permute.xlu1 %580 }
 0x513   :  { %13328 = vst [vmem:[#allocation9_spill] sm:$0xff] %v10057_v32  ;;  %v10064_v49 = vmul.f32 %v9986_v44, %v581_v62  ;;  %v759_v41 = vrot.slane %v10057_v32, 3  ;;  %v756_v44 = vrot.slane %v10061_v35, 5 }
 0x514   :  { %v587_v13 = vpop.permute.xlu0 %586 }
 0x515   :  { %v10067_v40 = vmul.f32 %v9989_v45, %v587_v13  ;;  %v747_v39 = vsel %vm13314_vm2, %v746_v50, %v10064_v49  ;;  %v758_v47 = vsel %vm13314_vm2, %v757_v33, %v756_v44 }
 0x516   :  { %v695_v55 = vpop.permute.xlu1 %694  ;;  %v749_v45 = vsel %vm13313_vm3, %v748_v16, %v747_v39  ;;  %v760_v52 = vsel %vm13313_vm3, %v759_v41, %v758_v47 }
 0x517   :  { %13329 = vst [vmem:[#allocation10_spill] sm:$0xff] %v10067_v40  ;;  %v750_v30 = vrot.slane %v10067_v40, 5  ;;  %v10077_v26 = vmul.f32 %v9994_v48, %v695_v55 }
 0x519   :  { %13330 = vst [vmem:[#allocation11_spill] sm:$0xff] %v10077_v26  ;;  %v752_v28 = vsel %vm751_vm6, %v750_v30, %v749_v45  ;;  %v761_v57 = vrot.slane %v10077_v26, 2 }
 0x51a   :  { %753 = vrot.lane.b32.xlu0 %v752_v28, %s9672_s10 }
 0x51b   :  { %v762_v58 = vsel %vm751_vm6, %v761_v57, %v760_v52 }
 0x51c   :  { %763 = vrot.lane.b32.xlu1 %v762_v58, %s9671_s9 }
 0x58c   :  { %v754_v53 = vpop.permute.xlu0 %753 }
 0x58e   :  { %v764_v54 = vpop.permute.xlu1 %763 }
 0x58f   :  { %v766_v48 = vsel %vm13312_vm4, %v754_v53, %v764_v54 }
 0x590   :  { %v768_v56 = vrot.slane %v766_v48, 1 }
 0x592   :  { %8194 = vmatmul.mubr.msk.f32.vlgmr.msra.gmra.mxu0 %vm13321_vm5, %v768_v56 }
 0x593   :  { %8208 = vmatpush3.msra.mxu0 %v9722_v1  ;;  %8215 = vmatprep.mubr.msk.f32.mxu0 %vm13316_vm0, %v13230_v0 }
 0x594   :  { %8209 = vmatprep.subr.mxu0 %v13230_v0 }
 0x595   :  { %8210 = vmatpush3.msra.mxu0 %v9727_v2 }
 0x596   :  { %8211 = vmatprep.subr.mxu0 %v13230_v0 }
 0x597   :  { %8212 = vmatpush3.msra.mxu0 %v9737_v3 }
 0x598   :  { %8213 = vmatprep.subr.mxu0 %v13230_v0 }
 0x599   :  { %8214 = vmatpush3.msra.mxu0 %v9746_v4 }
 0x59a   :  { %8229 = vmatprep.subr.mxu0 %v13230_v0 }
 0x652   :  { %v837_v60 = vpop.f32.mrf.mxu0 }
 0x653   :  { %v843_v61 = vrot.slane %v837_v60, 7  ;;  %v851_v6 = vadd.f32 %v837_v60, %v9803_v19  ;;  %v853_v8 = vrot.slane %v837_v60, 3  ;;  %v854_v11 = vrot.slane %v837_v60, 4 }
 0x654   :  { %v8195_v1 = vpop.f32.mrf.mxu0  ;;  %v842_v2 = vrot.slane %v837_v60, 6  ;;  %v855_v18 = vrot.slane %v837_v60, 5  ;;  %v844_v50 = vrot.slane %v837_v60, 1 }
 0x655   :  { %v850_v63 = vadd.f32 %v843_v61, %v9780_v10  ;;  %v859_v3 = vadd.f32 %v853_v8, %v9786_v12  ;;  %v860_v62 = vadd.f32 %v854_v11, %v9791_v14  ;;  %v7767_v41 = vmul.f32 -1.442695, %v851_v6 }
 0x656   :  { %v849_v4 = vadd.f32 %v842_v2, %v9774_v5  ;;  %v861_v13 = vadd.f32 %v855_v18, %v9797_v17  ;;  %v862_v10 = vadd.f32 %v842_v2, %v9815_v25  ;;  %v852_v19 = vadd.f32 %v844_v50, %v9809_v22 }
 0x657   :  { %8671 = vtanh.f32 %v850_v63  ;;  %v7766_v39 = vmul.f32 -1.442695, %v850_v63  ;;  %v7769_v30 = vmul.f32 -1.442695, %v859_v3  ;;  %v7770_v55 = vmul.f32 -1.442695, %v860_v62 }
 0x658   :  { %8673 = vtanh.f32 %v851_v6  ;;  %v7765_v44 = vmul.f32 -1.442695, %v849_v4  ;;  %v7771_v45 = vmul.f32 -1.442695, %v861_v13  ;;  %v7772_v28 = vmul.f32 -1.442695, %v862_v10 }
 0x659   :  { %8675 = vtanh.f32 %v859_v3  ;;  %v7768_v57 = vmul.f32 -1.442695, %v852_v19 }
 0x65a   :  { %8677 = vtanh.f32 %v860_v62 }
 0x65b   :  { %8679 = vtanh.f32 %v849_v4 }
 0x65c   :  { %8681 = vtanh.f32 %v861_v13 }
 0x65d   :  { %8683 = vtanh.f32 %v862_v10 }
 0x65e   :  { %8685 = vtanh.f32 %v852_v19 }
 0x65f   :  { %8687 = vpow2.f32 %v7766_v39 }
 0x660   :  { %8689 = vpow2.f32 %v7767_v41 }
 0x661   :  { %8691 = vpow2.f32 %v7769_v30 }
 0x662   :  { %8693 = vpow2.f32 %v7770_v55 }
 0x663   :  { %8695 = vpow2.f32 %v7765_v44 }
 0x664   :  { %v8672_v33 = vpop.eup %8671  ;;  %8697 = vpow2.f32 %v7771_v45 }
 0x665   :  { %v8674_v16 = vpop.eup %8673  ;;  %913 = vrot.lane.b32.xlu0 %v8672_v33, %s9669_s29  ;;  %8699 = vpow2.f32 %v7772_v28 }
 0x666   :  { %915 = vrot.lane.b32.xlu1 %v8674_v16, %s9669_s29  ;;  %v8676_v5 = vpop.eup %8675  ;;  %8701 = vpow2.f32 %v7768_v57 }
 0x667   :  { %v8678_v12 = vpop.eup %8677 }
 0x668   :  { %v8680_v14 = vpop.eup %8679 }
 0x669   :  { %1021 = vrot.lane.b32.xlu0 %v8678_v12, %s9669_s29  ;;  %v8682_v17 = vpop.eup %8681 }
 0x66a   :  { %1019 = vrot.lane.b32.xlu1 %v8676_v5, %s9669_s29  ;;  %v8684_v22 = vpop.eup %8683 }
 0x66b   :  { %v8686_v25 = vpop.eup %8685 }
 0x66c   :  { %v8688_v47 = vpop.eup %8687 }
 0x66d   :  { %1023 = vrot.lane.b32.xlu0 %v8682_v17, %s9669_s29  ;;  %v8690_v52 = vpop.eup %8689  ;;  %v876_v58 = vadd.f32 1.0, %v8688_v47 }
 0x66e   :  { %911 = vrot.lane.b32.xlu1 %v8680_v14, %s9669_s29  ;;  %v877_v53 = vadd.f32 1.0, %v8690_v52  ;;  %v8692_v54 = vpop.eup %8691  ;;  %v896_v52 = vrot.slane %v10001_v59, 7  ;;  %v1004_v59 = vrot.slane %v10012_v27, 1 }
 0x66f   :  { %8703 = vrcp.f32 %v876_v58  ;;  %v8694_v48 = vpop.eup %8693  ;;  %v983_v56 = vadd.f32 1.0, %v8692_v54  ;;  %v897_v58 = vrot.slane %v10019_v9, 7 }
 0x670   :  { %8705 = vrcp.f32 %v877_v53  ;;  %v8696_v60 = vpop.eup %8695  ;;  %v984_v61 = vadd.f32 1.0, %v8694_v48 }
 0x671   :  { %917 = vrot.lane.b32.xlu0 %v8686_v25, %s9669_s29  ;;  %v8698_v1 = vpop.eup %8697  ;;  %v875_v63 = vadd.f32 1.0, %v8696_v60  ;;  %8707 = vrcp.f32 %v983_v56 }
 0x672   :  { %1025 = vrot.lane.b32.xlu1 %v8684_v22, %s9669_s29  ;;  %v8700_v6 = vpop.eup %8699  ;;  %v985_v8 = vadd.f32 1.0, %v8698_v1  ;;  %8709 = vrcp.f32 %v984_v61  ;;  %v1003_v1 = vrot.slane %v10009_v15, 1 }
 0x673   :  { %v8702_v11 = vpop.eup %8701  ;;  %8711 = vrcp.f32 %v875_v63  ;;  %v986_v2 = vadd.f32 1.0, %v8700_v6 }
 0x674   :  { %v878_v3 = vadd.f32 1.0, %v8702_v11  ;;  %8713 = vrcp.f32 %v985_v8  ;;  %v895_v8 = vrot.slane %v10029_v34, 7 }
 0x675   :  { %8715 = vrcp.f32 %v986_v2 }
 0x676   :  { %8717 = vrcp.f32 %v878_v3  ;;  %v1005_v3 = vrot.slane %v10022_v20, 1 }
 0x67c   :  { %v10115_v18 = vpop.eup %8703 }
 0x67d   :  { %v10117_v4 = vpop.eup %8705  ;;  %v904_v53 = vmul.f32 %v10115_v18, %v896_v52 }
 0x67e   :  { %v10123_v19 = vpop.eup %8707  ;;  %v905_v54 = vmul.f32 %v10117_v4, %v897_v58 }
 0x67f   :  { %v10125_v16 = vpop.eup %8709  ;;  %v1011_v9 = vmul.f32 %v10123_v19, %v1003_v1 }
 0x680   :  { %v10130_v17 = vpop.eup %8711  ;;  %v1012_v6 = vmul.f32 %v10125_v16, %v1004_v59 }
 0x681   :  { %v10133_v25 = vpop.eup %8713  ;;  %v903_v15 = vmul.f32 %v10130_v17, %v895_v8 }
 0x682   :  { %v10138_v55 = vpop.eup %8715 }
 0x683   :  { %v10141_v45 = vpop.eup %8717 }
 0x6d7   :  { %v914_v62 = vpop.permute.xlu0 %913 }
 0x6d8   :  { %v916_v50 = vpop.permute.xlu1 %915  ;;  %v924_v13 = vmul.f32 %v10115_v18, %v914_v62 }
 0x6d9   :  { %v925_v10 = vmul.f32 %v10117_v4, %v916_v50  ;;  %v1013_v50 = vmul.f32 %v10133_v25, %v1005_v3 }
 0x6da   :  { %933 = vrot.lane.b32.xlu0 %v924_v13, %s9670_s30  ;;  %v1006_v13 = vrot.slane %v10037_v51, 1 }
 0x6db   :  { %935 = vrot.lane.b32.xlu1 %v925_v10, %s9670_s30  ;;  %v1022_v12 = vpop.permute.xlu0 %1021 }
 0x6dc   :  { %v1020_v33 = vpop.permute.xlu1 %1019  ;;  %v1032_v14 = vmul.f32 %v10125_v16, %v1022_v12  ;;  %v1014_v20 = vmul.f32 %v10138_v55, %v1006_v13 }
 0x6dd   :  { %v1031_v5 = vmul.f32 %v10123_v19, %v1020_v33  ;;  %v898_v33 = vrot.slane %v10031_v46, 7 }
 0x6de   :  { %1041 = vrot.lane.b32.xlu0 %v1032_v14, %s9670_s30 }
 0x6df   :  { %1039 = vrot.lane.b32.xlu1 %v1031_v5, %s9670_s30  ;;  %v1024_v41 = vpop.permute.xlu0 %1023  ;;  %v906_v14 = vmul.f32 %v10141_v45, %v898_v33 }
 0x6e0   :  { %v912_v22 = vpop.permute.xlu1 %911  ;;  %v1033_v30 = vmul.f32 %v10133_v25, %v1024_v41 }
 0x6e1   :  { %v923_v39 = vmul.f32 %v10130_v17, %v912_v22 }
 0x6e2   :  { %1043 = vrot.lane.b32.xlu0 %v1033_v30, %s9670_s30 }
 0x6e3   :  { %931 = vrot.lane.b32.xlu1 %v923_v39, %s9670_s30  ;;  %v918_v57 = vpop.permute.xlu0 %917 }
 0x6e4   :  { %v1026_v44 = vpop.permute.xlu1 %1025  ;;  %v926_v47 = vmul.f32 %v10141_v45, %v918_v57 }
 0x6e5   :  { %v1034_v28 = vmul.f32 %v10138_v55, %v1026_v44 }
 0x6e6   :  { %937 = vrot.lane.b32.xlu0 %v926_v47, %s9670_s30 }
 0x6e7   :  { %1045 = vrot.lane.b32.xlu1 %v1034_v28, %s9670_s30 }
 0x74c   :  { %v934_v48 = vpop.permute.xlu0 %933 }
 0x74d   :  { %v936_v56 = vpop.permute.xlu1 %935  ;;  %v10151_v60 = vadd.f32 %v934_v48, %v904_v53 }
 0x74e   :  { %v10153_v61 = vadd.f32 %v936_v56, %v905_v54 }
 0x74f   :  { %8719 = vtanh.f32 %v10151_v60 }
 0x750   :  { %8721 = vtanh.f32 %v10153_v61  ;;  %v1042_v2 = vpop.permute.xlu0 %1041 }
 0x751   :  { %v1040_v63 = vpop.permute.xlu1 %1039  ;;  %v10165_v62 = vadd.f32 %v1042_v2, %v1012_v6 }
 0x752   :  { %v10162_v11 = vadd.f32 %v1040_v63, %v1011_v9 }
 0x754   :  { %8723 = vtanh.f32 %v10162_v11  ;;  %v1044_v34 = vpop.permute.xlu0 %1043 }
 0x755   :  { %8725 = vtanh.f32 %v10165_v62  ;;  %v932_v27 = vpop.permute.xlu1 %931  ;;  %v10175_v5 = vadd.f32 %v1044_v34, %v1013_v50 }
 0x756   :  { %v10172_v10 = vadd.f32 %v932_v27, %v903_v15 }
 0x758   :  { %8727 = vtanh.f32 %v10172_v10  ;;  %v938_v51 = vpop.permute.xlu0 %937 }
 0x759   :  { %8729 = vtanh.f32 %v10175_v5  ;;  %v1046_v12 = vpop.permute.xlu1 %1045  ;;  %v10183_v30 = vadd.f32 %v938_v51, %v906_v14 }
 0x75a   :  { %v10181_v39 = vadd.f32 %v1046_v12, %v1014_v20 }
 0x75c   :  { %v8720_v22 = vpop.eup %8719  ;;  %8731 = vtanh.f32 %v10181_v39 }
 0x75d   :  { %v8722_v41 = vpop.eup %8721  ;;  %957 = vrot.lane.b32.xlu0 %v8720_v22, %s9671_s9  ;;  %8733 = vtanh.f32 %v10183_v30 }
 0x75e   :  { %959 = vrot.lane.b32.xlu1 %v8722_v41, %s9671_s9  ;;  %v10240_v41 = vld [vmem:[%s13221_s1 + $0x18] sm:$0xff] }
 0x761   :  { %v8724_v46 = vpop.eup %8723 }
 0x762   :  { %v8726_v44 = vpop.eup %8725  ;;  %1063 = vrot.lane.b32.xlu1 %v8724_v46, %s9671_s9  ;;  %v10249_v46 = vld [vmem:[%s13221_s1 + $0x10] sm:$0xff] }
 0x763   :  { %1065 = vrot.lane.b32.xlu0 %v8726_v44, %s9671_s9  ;;  %v10256_v44 = vld [vmem:[%s13221_s1 + $0x8] sm:$0xff] }
 0x765   :  { %v8728_v28 = vpop.eup %8727 }
 0x766   :  { %v8730_v57 = vpop.eup %8729  ;;  %955 = vrot.lane.b32.xlu1 %v8728_v28, %s9671_s9  ;;  %v10263_v28 = vld [vmem:[%s13221_s1] sm:$0xff] }
 0x767   :  { %1067 = vrot.lane.b32.xlu0 %v8730_v57, %s9671_s9 }
 0x769   :  { %v8732_v47 = vpop.eup %8731 }
 0x76a   :  { %v8734_v52 = vpop.eup %8733  ;;  %1069 = vrot.lane.b32.xlu1 %v8732_v47, %s9671_s9 }
 0x76b   :  { %961 = vrot.lane.b32.xlu0 %v8734_v52, %s9671_s9 }
 0x7cf   :  { %v958_v53 = vpop.permute.xlu0 %957 }
 0x7d0   :  { %v960_v58 = vpop.permute.xlu1 %959  ;;  %v10202_v59 = vmul.f32 %v10115_v18, %v958_v53  ;;  %v10270_v53 = vld [vmem:[%s13222_s0 + $0x10] sm:$0xff] }
 0x7d1   :  { %v10212_v3 = vmul.f32 %v10117_v4, %v960_v58 }
 0x7d3   :  { %13332 = vst [vmem:[#allocation13_spill] sm:$0xff] %v10212_v3  ;;  %v1123_v34 = vrot.slane %v10212_v3, 6 }
 0x7d4   :  { %v1064_v54 = vpop.permute.xlu1 %1063 }
 0x7d5   :  { %v1066_v48 = vpop.permute.xlu0 %1065  ;;  %v10199_v1 = vmul.f32 %v10123_v19, %v1064_v54  ;;  %v1121_v19 = vrot.slane %v10202_v59, 7 }
 0x7d6   :  { %v10196_v56 = vmul.f32 %v10125_v16, %v1066_v48  ;;  %v10276_v48 = vld [vmem:[%s13222_s0 + $0x30] sm:$0xff] }
 0x7d7   :  { %v1131_v16 = vrot.slane %v10199_v1, 3 }
 0x7d8   :  { %v956_v9 = vpop.permute.xlu1 %955  ;;  %v1132_v63 = vrot.slane %v10196_v56, 2 }
 0x7d9   :  { %v1068_v6 = vpop.permute.xlu0 %1067  ;;  %v10206_v8 = vmul.f32 %v10130_v17, %v956_v9 }
 0x7da   :  { %v10209_v2 = vmul.f32 %v10133_v25, %v1068_v6  ;;  %v1133_v17 = vsel %vm13313_vm3, %v1132_v63, %v1131_v16  ;;  %v10282_v16 = vld [vmem:[%s13222_s0 + $0x20] sm:$0xff] }
 0x7db   :  { %v1122_v13 = vsel %vm13313_vm3, %v1121_v19, %v10206_v8 }
 0x7dc   :  { %13331 = vst [vmem:[#allocation12_spill] sm:$0xff] %v10209_v2  ;;  %v1134_v18 = vrot.slane %v10209_v2, 1  ;;  %v1070_v15 = vpop.permute.xlu1 %1069 }
 0x7dd   :  { %v10218_v27 = vmul.f32 %v10138_v55, %v1070_v15  ;;  %v962_v50 = vpop.permute.xlu0 %961  ;;  %v1124_v55 = vsel %vm751_vm6, %v1123_v34, %v1122_v13  ;;  %v10306_v34 = vld [vmem:[%s13222_s0 + $0x18] sm:$0xff] }
 0x7de   :  { %v10222_v25 = vmul.f32 %v10141_v45, %v962_v50  ;;  %v1135_v4 = vsel %vm751_vm6, %v1134_v18, %v1133_v17  ;;  %v10288_v18 = vld [vmem:[%s13222_s0 + $0x8] sm:$0xff]  ;;  %v10294_v50 = vld [vmem:[%s13222_s0] sm:$0xff] }
 0x7df   :  { %13333 = vst [vmem:[#allocation14_spill] sm:$0xff] %v10218_v27  ;;  %v1136_v33 = vsel %vm1126_vm7, %v10218_v27, %v1135_v4  ;;  %v10300_v4 = vld [vmem:[%s13222_s0 + $0x28] sm:$0xff] }
 0x7e0   :  { %13334 = vst [vmem:[#allocation15_spill] sm:$0xff] %v10222_v25  ;;  %v1125_v20 = vrot.slane %v10222_v25, 5  ;;  %1137 = vrot.lane.b32.xlu1 %v1136_v33, %s9671_s9 }
 0x7e2   :  { %v1127_v12 = vsel %vm1126_vm7, %v1125_v20, %v1124_v55  ;;  %v10312_v20 = vld [vmem:[%s13222_s0 + $0x38] sm:$0xff] }
 0x7e3   :  { %1128 = vrot.lane.b32.xlu0 %v1127_v12, %s9672_s10 }
 0x852   :  { %v1138_v45 = vpop.permute.xlu1 %1137 }
 0x855   :  { %v1129_v14 = vpop.permute.xlu0 %1128 }
 0x856   :  { %v1140_v22 = vsel %vm13312_vm4, %v1129_v14, %v1138_v45 }
 0x857   :  { %v1142_v51 = vrot.slane %v1140_v22, 2 }
 0x859   :  { %8205 = vmatmul.mubr.msk.f32.vlgmr.msra.gmra.mxu1 %vm13321_vm5, %v1142_v51 }
 0x85a   :  { %8219 = vmatpush3.msra.mxu1 %v10240_v41  ;;  %8226 = vmatprep.mubr.msk.f32.mxu1 %vm13316_vm0, %v13230_v0 }
 0x85b   :  { %8220 = vmatprep.subr.mxu1 %v13230_v0 }
 0x85c   :  { %8221 = vmatpush3.msra.mxu1 %v10249_v46 }
 0x85d   :  { %8222 = vmatprep.subr.mxu1 %v13230_v0 }
 0x85e   :  { %8223 = vmatpush3.msra.mxu1 %v10256_v44 }
 0x85f   :  { %8224 = vmatprep.subr.mxu1 %v13230_v0 }
 0x860   :  { %8225 = vmatpush3.msra.mxu1 %v10263_v28 }
 0x861   :  { %8240 = vmatprep.subr.mxu1 %v13230_v0 }
 0x919   :  { %v1211_v57 = vpop.f32.mrf.mxu1 }
 0x91a   :  { %v1217_v47 = vrot.slane %v1211_v57, 6  ;;  %v1218_v58 = vrot.slane %v1211_v57, 7  ;;  %v1226_v9 = vadd.f32 %v10276_v48, %v1211_v57  ;;  %v1227_v63 = vrot.slane %v1211_v57, 4 }
 0x91b   :  { %v8206_v52 = vpop.f32.mrf.mxu1  ;;  %v1216_v6 = vrot.slane %v1211_v57, 5 }
 0x91c   :  { %v1224_v54 = vadd.f32 %v10270_v53, %v1217_v47  ;;  %v1225_v19 = vadd.f32 %v10282_v16, %v1218_v58  ;;  %v1229_v15 = vadd.f32 %v10288_v18, %v1227_v63  ;;  %v1231_v13 = vadd.f32 %v10300_v4, %v1217_v47 }
 0x91d   :  { %v1223_v17 = vadd.f32 %v10294_v50, %v1216_v6  ;;  %v1230_v33 = vadd.f32 %v10306_v34, %v1216_v6  ;;  %v1232_v55 = vadd.f32 %v10312_v20, %v1218_v58  ;;  %v7777_v63 = vmul.f32 -1.442695, %v1226_v9 }
 0x91e   :  { %8735 = vtanh.f32 %v1224_v54  ;;  %v7775_v58 = vmul.f32 -1.442695, %v1224_v54  ;;  %v7776_v6 = vmul.f32 -1.442695, %v1225_v19 }
 0x91f   :  { %8737 = vtanh.f32 %v1226_v9 }
 0x920   :  { %8739 = vtanh.f32 %v1225_v19 }
 0x921   :  { %8741 = vtanh.f32 %v1229_v15 }
 0x922   :  { %8743 = vtanh.f32 %v1223_v17 }
 0x923   :  { %8745 = vtanh.f32 %v1231_v13 }
 0x924   :  { %8747 = vtanh.f32 %v1230_v33 }
 0x925   :  { %8749 = vtanh.f32 %v1232_v55 }
 0x926   :  { %8751 = vpow2.f32 %v7775_v58 }
 0x927   :  { %8753 = vpow2.f32 %v7777_v63 }
 0x928   :  { %8755 = vpow2.f32 %v7776_v6 }
 0x92b   :  { %v8736_v12 = vpop.eup %8735 }
 0x92c   :  { %1283 = vrot.lane.b32.xlu0 %v8736_v12, %s9669_s29  ;;  %v8738_v45 = vpop.eup %8737  ;;  %v7778_v12 = vmul.f32 -1.442695, %v1229_v15 }
 0x92d   :  { %1287 = vrot.lane.b32.xlu1 %v8738_v45, %s9669_s29  ;;  %v8740_v14 = vpop.eup %8739  ;;  %v7774_v45 = vmul.f32 -1.442695, %v1223_v17 }
 0x92e   :  { %v8742_v22 = vpop.eup %8741  ;;  %8757 = vpow2.f32 %v7778_v12 }
 0x92f   :  { %v8744_v51 = vpop.eup %8743  ;;  %8759 = vpow2.f32 %v7774_v45 }
 0x930   :  { %1285 = vrot.lane.b32.xlu0 %v8740_v14, %s9669_s29  ;;  %v8746_v57 = vpop.eup %8745  ;;  %v7780_v14 = vmul.f32 -1.442695, %v1231_v13 }
 0x931   :  { %1389 = vrot.lane.b32.xlu1 %v8742_v22, %s9669_s29  ;;  %v8748_v47 = vpop.eup %8747  ;;  %v7779_v22 = vmul.f32 -1.442695, %v1230_v33 }
 0x932   :  { %v8750_v52 = vpop.eup %8749  ;;  %8761 = vpow2.f32 %v7780_v14 }
 0x933   :  { %8763 = vpow2.f32 %v7779_v22 }
 0x934   :  { %1281 = vrot.lane.b32.xlu0 %v8744_v51, %s9669_s29  ;;  %v7781_v51 = vmul.f32 -1.442695, %v1232_v55 }
 0x935   :  { %1393 = vrot.lane.b32.xlu1 %v8746_v57, %s9669_s29  ;;  %v8752_v57 = vpop.eup %8751 }
 0x936   :  { %8765 = vpow2.f32 %v7781_v51  ;;  %v1246_v0 = vadd.f32 1.0, %v8752_v57 }
 0x938   :  { %1391 = vrot.lane.b32.xlu0 %v8748_v47, %s9669_s29  ;;  %v8754_v47 = vpop.eup %8753  ;;  %8767 = vrcp.f32 %v1246_v0 }
 0x939   :  { %1395 = vrot.lane.b32.xlu1 %v8750_v52, %s9669_s29  ;;  %v8756_v52 = vpop.eup %8755  ;;  %v1248_v54 = vadd.f32 1.0, %v8754_v47 }
 0x93a   :  { %v1247_v58 = vadd.f32 1.0, %v8756_v52 }
 0x93b   :  { %v8758_v9 = vpop.eup %8757  ;;  %8769 = vrcp.f32 %v1248_v54 }
 0x93c   :  { %v8760_v19 = vpop.eup %8759  ;;  %v1353_v15 = vadd.f32 1.0, %v8758_v9  ;;  %8771 = vrcp.f32 %v1247_v58 }
 0x93d   :  { %v1245_v63 = vadd.f32 1.0, %v8760_v19 }
 0x93e   :  { %8773 = vrcp.f32 %v1353_v15 }
 0x93f   :  { %v8762_v17 = vpop.eup %8761  ;;  %8775 = vrcp.f32 %v1245_v63 }
 0x940   :  { %v8764_v13 = vpop.eup %8763  ;;  %v1355_v33 = vadd.f32 1.0, %v8762_v17 }
 0x941   :  { %v1354_v6 = vadd.f32 1.0, %v8764_v13 }
 0x942   :  { %8777 = vrcp.f32 %v1355_v33 }
 0x943   :  { %v8766_v55 = vpop.eup %8765  ;;  %8779 = vrcp.f32 %v1354_v6 }
 0x944   :  { %v1356_v12 = vadd.f32 1.0, %v8766_v55 }
 0x945   :  { %v10323_v45 = vpop.eup %8767 }
 0x946   :  { %8781 = vrcp.f32 %v1356_v12 }
 0x948   :  { %v10326_v22 = vpop.eup %8769 }
 0x949   :  { %v10330_v47 = vpop.eup %8771 }
 0x94b   :  { %v10334_v9 = vpop.eup %8773 }
 0x94c   :  { %v10337_v19 = vpop.eup %8775 }
 0x94f   :  { %v10342_v13 = vpop.eup %8777 }
 0x950   :  { %v10345_v55 = vpop.eup %8779 }
 0x99e   :  { %v1284_v14 = vpop.permute.xlu0 %1283 }
 0x99f   :  { %v1294_v0 = vmul.f32 %v10323_v45, %v1284_v14  ;;  %v1288_v51 = vpop.permute.xlu1 %1287 }
 0x9a0   :  { %v1296_v57 = vmul.f32 %v10326_v22, %v1288_v51 }
 0x9a1   :  { %1303 = vrot.lane.b32.xlu0 %v1294_v0, %s9670_s30  ;;  %v10350_v0 = vpop.eup %8781 }
 0x9a2   :  { %v1286_v52 = vpop.permute.xlu0 %1285  ;;  %1307 = vrot.lane.b32.xlu1 %v1296_v57, %s9670_s30 }
 0x9a3   :  { %v1295_v54 = vmul.f32 %v10330_v47, %v1286_v52  ;;  %v1390_v58 = vpop.permute.xlu1 %1389  ;;  %v1266_v52 = vrot.slane %v10151_v60, 7  ;;  %v1373_v60 = vrot.slane %v10162_v11, 1  ;;  %v1374_v11 = vrot.slane %v10165_v62, 1 }
 0x9a4   :  { %v1401_v15 = vmul.f32 %v10334_v9, %v1390_v58 }
 0x9a5   :  { %1305 = vrot.lane.b32.xlu0 %v1295_v54, %s9670_s30  ;;  %v1268_v54 = vrot.slane %v10183_v30, 7  ;;  %v1274_v58 = vmul.f32 %v10323_v45, %v1266_v52  ;;  %v1265_v30 = vrot.slane %v10172_v10, 7 }
 0x9a6   :  { %v1282_v17 = vpop.permute.xlu0 %1281  ;;  %1409 = vrot.lane.b32.xlu1 %v1401_v15, %s9670_s30 }
 0x9a7   :  { %v1293_v63 = vmul.f32 %v10337_v19, %v1282_v17  ;;  %v1394_v33 = vpop.permute.xlu1 %1393  ;;  %v1267_v17 = vrot.slane %v10153_v61, 7  ;;  %v1381_v61 = vmul.f32 %v10334_v9, %v1373_v60  ;;  %v1376_v60 = vrot.slane %v10181_v39, 1 }
 0x9a8   :  { %v1403_v6 = vmul.f32 %v10342_v13, %v1394_v33 }
 0x9a9   :  { %1301 = vrot.lane.b32.xlu0 %v1293_v63, %s9670_s30  ;;  %v1276_v63 = vmul.f32 %v10326_v22, %v1268_v54  ;;  %v1273_v54 = vmul.f32 %v10337_v19, %v1265_v30  ;;  %v1384_v62 = vmul.f32 %v10350_v0, %v1376_v60 }
 0x9aa   :  { %v1392_v12 = vpop.permute.xlu0 %1391  ;;  %1413 = vrot.lane.b32.xlu1 %v1403_v6, %s9670_s30 }
 0x9ab   :  { %v1402_v14 = vmul.f32 %v10345_v55, %v1392_v12  ;;  %v1396_v51 = vpop.permute.xlu1 %1395 }
 0x9ac   :  { %v1404_v57 = vmul.f32 %v10350_v0, %v1396_v51 }
 0x9ad   :  { %1411 = vrot.lane.b32.xlu0 %v1402_v14, %s9670_s30  ;;  %v1275_v14 = vmul.f32 %v10330_v47, %v1267_v17 }
 0x9ae   :  { %1415 = vrot.lane.b32.xlu1 %v1404_v57, %s9670_s30 }
 0xa13   :  { %v1304_v15 = vpop.permute.xlu0 %1303 }
 0xa14   :  { %v10360_v33 = vadd.f32 %v1304_v15, %v1274_v58  ;;  %v1308_v6 = vpop.permute.xlu1 %1307  ;;  %v1375_v58 = vrot.slane %v10175_v5, 1 }
 0xa15   :  { %v10362_v12 = vadd.f32 %v1308_v6, %v1276_v63 }
 0xa16   :  { %8783 = vtanh.f32 %v10360_v33  ;;  %v1383_v10 = vmul.f32 %v10342_v13, %v1375_v58 }
 0xa17   :  { %v1306_v51 = vpop.permute.xlu0 %1305  ;;  %8785 = vtanh.f32 %v10362_v12 }
 0xa18   :  { %v10369_v57 = vadd.f32 %v1306_v51, %v1275_v14  ;;  %v1410_v52 = vpop.permute.xlu1 %1409  ;;  %v1382_v14 = vmul.f32 %v10345_v55, %v1374_v11 }
 0xa19   :  { %v10375_v15 = vadd.f32 %v1410_v52, %v1381_v61 }
 0xa1a   :  { %8787 = vtanh.f32 %v10369_v57 }
 0xa1b   :  { %v1302_v17 = vpop.permute.xlu0 %1301  ;;  %8789 = vtanh.f32 %v10375_v15 }
 0xa1c   :  { %v10378_v63 = vadd.f32 %v1302_v17, %v1273_v54  ;;  %v1414_v6 = vpop.permute.xlu1 %1413 }
 0xa1d   :  { %v10385_v51 = vadd.f32 %v1414_v6, %v1383_v10 }
 0xa1e   :  { %8791 = vtanh.f32 %v10378_v63 }
 0xa1f   :  { %v1412_v5 = vpop.permute.xlu0 %1411  ;;  %8793 = vtanh.f32 %v10385_v51 }
 0xa20   :  { %v10387_v30 = vadd.f32 %v1412_v5, %v1382_v14  ;;  %v1416_v61 = vpop.permute.xlu1 %1415 }
 0xa21   :  { %v10392_v54 = vadd.f32 %v1416_v61, %v1384_v62 }
 0xa22   :  { %8795 = vtanh.f32 %v10387_v30 }
 0xa23   :  { %v8784_v52 = vpop.eup %8783  ;;  %8797 = vtanh.f32 %v10392_v54 }
 0xa24   :  { %1327 = vrot.lane.b32.xlu0 %v8784_v52, %s9671_s9  ;;  %v8786_v58 = vpop.eup %8785 }
 0xa25   :  { %1331 = vrot.lane.b32.xlu1 %v8786_v58, %s9671_s9 }
 0xa27   :  { %v8788_v39 = vpop.eup %8787 }
 0xa28   :  { %1329 = vrot.lane.b32.xlu0 %v8788_v39, %s9671_s9  ;;  %v8790_v17 = vpop.eup %8789 }
 0xa29   :  { %1433 = vrot.lane.b32.xlu1 %v8790_v17, %s9671_s9 }
 0xa2b   :  { %v8792_v11 = vpop.eup %8791 }
 0xa2c   :  { %1325 = vrot.lane.b32.xlu0 %v8792_v11, %s9671_s9  ;;  %v8794_v10 = vpop.eup %8793 }
 0xa2d   :  { %1437 = vrot.lane.b32.xlu1 %v8794_v10, %s9671_s9 }
 0xa2f   :  { %v8796_v6 = vpop.eup %8795 }
 0xa30   :  { %1435 = vrot.lane.b32.xlu0 %v8796_v6, %s9671_s9  ;;  %v8798_v14 = vpop.eup %8797 }
 0xa31   :  { %1439 = vrot.lane.b32.xlu1 %v8798_v14, %s9671_s9 }
 0xa96   :  { %v1328_v60 = vpop.permute.xlu0 %1327 }
 0xa97   :  { %v1332_v5 = vpop.permute.xlu1 %1331  ;;  %v10404_v61 = vmul.f32 %v10323_v45, %v1328_v60 }
 0xa98   :  { %v10410_v58 = vmul.f32 %v10326_v22, %v1332_v5 }
 0xa99   :  { %v1491_v11 = vrot.slane %v10404_v61, 7 }
 0xa9a   :  { %v1330_v62 = vpop.permute.xlu0 %1329  ;;  %13336 = vst [vmem:[#allocation17_spill] sm:$0xff] %v10410_v58  ;;  %v1495_v45 = vrot.slane %v10410_v58, 5 }
 0xa9b   :  { %v10407_v52 = vmul.f32 %v10330_v47, %v1330_v62  ;;  %v1434_v39 = vpop.permute.xlu1 %1433 }
 0xa9c   :  { %v10414_v10 = vmul.f32 %v10334_v9, %v1434_v39 }
 0xa9d   :  { %13335 = vst [vmem:[#allocation16_spill] sm:$0xff] %v10407_v52  ;;  %v1493_v14 = vrot.slane %v10407_v52, 6 }
 0xa9e   :  { %v1326_v17 = vpop.permute.xlu0 %1325  ;;  %v1501_v9 = vrot.slane %v10414_v10, 1 }
 0xa9f   :  { %v10417_v6 = vmul.f32 %v10337_v19, %v1326_v17  ;;  %v1438_v47 = vpop.permute.xlu1 %1437 }
 0xaa0   :  { %v10424_v60 = vmul.f32 %v10342_v13, %v1438_v47 }
 0xaa1   :  { %v1492_v22 = vsel %vm751_vm6, %v1491_v11, %v10417_v6 }
 0xaa2   :  { %13337 = vst [vmem:[#allocation18_spill] sm:$0xff] %v10424_v60  ;;  %v1436_v5 = vpop.permute.xlu0 %1435  ;;  %v1494_v62 = vsel %vm1126_vm7, %v1493_v14, %v1492_v22  ;;  %v1503_v17 = vrot.slane %v10424_v60, 7 }
 0xaa3   :  { %v10429_v19 = vmul.f32 %v10345_v55, %v1436_v5  ;;  %v1497_v39 = vsel %vm1496_vm8, %v1495_v45, %v1494_v62  ;;  %v1440_v58 = vpop.permute.xlu1 %1439 }
 0xaa4   :  { %1498 = vrot.lane.b32.xlu0 %v1497_v39, %s9672_s10  ;;  %v10437_v13 = vmul.f32 %v10350_v0, %v1440_v58 }
 0xaa5   :  { %13338 = vst [vmem:[#allocation19_spill] sm:$0xff] %v10429_v19  ;;  %v1502_v11 = vsel %vm751_vm6, %v10429_v19, %v1501_v9  ;;  %v13340_v9 = vmov 0.0  }
 0xaa6   :  { %13339 = vst [vmem:[#allocation20_spill] sm:$0xff] %v10437_v13  ;;  %v1504_v14 = vsel %vm1126_vm7, %v1503_v17, %v1502_v11  ;;  %v1505_v47 = vrot.slane %v10437_v13, 6 }
 0xaa8   :  { %v1506_v55 = vsel %vm1496_vm8, %v1505_v47, %v1504_v14 }
 0xaa9   :  { %1507 = vrot.lane.b32.xlu1 %v1506_v55, %s9671_s9 }
 0xb16   :  { %v1499_v45 = vpop.permute.xlu0 %1498 }
 0xb1b   :  { %v1508_v22 = vpop.permute.xlu1 %1507 }
 0xb1c   :  { %v1510_v5 = vsel %vm13312_vm4, %v1499_v45, %v1508_v22 }
 0xb1d   :  { %v1512_v62 = vrot.slane %v1510_v5, 3 }
 0xb1f   :  { %8216 = vmatmul.mubr.msk.f32.vlgmr.msra.gmra.mxu0 %vm13321_vm5, %v1512_v62 }
 0xb20   :  { %8230 = vmatpush3.msra.mxu0 %v10240_v41  ;;  %8237 = vmatprep.mubr.msk.f32.mxu0 %vm13316_vm0, %v13340_v9 }
 0xb21   :  { %8231 = vmatprep.subr.mxu0 %v13340_v9 }
 0xb22   :  { %8232 = vmatpush3.msra.mxu0 %v10249_v46 }
 0xb23   :  { %8233 = vmatprep.subr.mxu0 %v13340_v9 }
 0xb24   :  { %8234 = vmatpush3.msra.mxu0 %v10256_v44 }
 0xb25   :  { %8235 = vmatprep.subr.mxu0 %v13340_v9 }
 0xb26   :  { %8236 = vmatpush3.msra.mxu0 %v10263_v28 }
 0xb27   :  { %8251 = vmatprep.subr.mxu0 %v13340_v9 }
 0xbdf   :  { %v1581_v0 = vpop.f32.mrf.mxu0 }
 0xbe0   :  { %v1587_v58 = vrot.slane %v1581_v0, 5  ;;  %v1588_v11 = vrot.slane %v1581_v0, 6  ;;  %v1589_v47 = vrot.slane %v1581_v0, 7  ;;  %v1586_v45 = vrot.slane %v1581_v0, 4 }
 0xbe1   :  { %v8217_v39 = vpop.f32.mrf.mxu0 }
 0xbe2   :  { %v1595_v17 = vadd.f32 %v10270_v53, %v1587_v58  ;;  %v1599_v14 = vadd.f32 %v10288_v18, %v1587_v58  ;;  %v1600_v55 = vadd.f32 %v10306_v34, %v1588_v11  ;;  %v1596_v22 = vadd.f32 %v10282_v16, %v1588_v11 }
 0xbe3   :  { %v1601_v5 = vadd.f32 %v10300_v4, %v1589_v47  ;;  %v1594_v39 = vadd.f32 %v10294_v50, %v1586_v45  ;;  %v1597_v25 = vadd.f32 %v10276_v48, %v1589_v47  ;;  %v1602_v58 = vadd.f32 %v10312_v20, %v1581_v0 }
 0xbe4   :  { %8799 = vtanh.f32 %v1595_v17  ;;  %v7788_v27 = vmul.f32 -1.442695, %v1600_v55 }
 0xbe5   :  { %8801 = vtanh.f32 %v1599_v14  ;;  %v7789_v26 = vmul.f32 -1.442695, %v1601_v5  ;;  %v7783_v38 = vmul.f32 -1.442695, %v1594_v39 }
 0xbe6   :  { %8803 = vtanh.f32 %v1600_v55 }
 0xbe7   :  { %8805 = vtanh.f32 %v1596_v22 }
 0xbe8   :  { %8807 = vtanh.f32 %v1601_v5 }
 0xbe9   :  { %8809 = vtanh.f32 %v1594_v39 }
 0xbea   :  { %8811 = vtanh.f32 %v1597_v25 }
 0xbeb   :  { %8813 = vtanh.f32 %v1602_v58 }
 0xbf1   :  { %v8800_v62 = vpop.eup %8799 }
 0xbf2   :  { %1653 = vrot.lane.b32.xlu0 %v8800_v62, %s9669_s29  ;;  %v8802_v40 = vpop.eup %8801  ;;  %v7784_v62 = vmul.f32 -1.442695, %v1595_v17 }
 0xbf3   :  { %v8804_v11 = vpop.eup %8803  ;;  %1759 = vrot.lane.b32.xlu1 %v8802_v40, %s9669_s29  ;;  %v7787_v40 = vmul.f32 -1.442695, %v1599_v14 }
 0xbf4   :  { %v8806_v13 = vpop.eup %8805  ;;  %8815 = vpow2.f32 %v7784_v62 }
 0xbf5   :  { %v8808_v36 = vpop.eup %8807  ;;  %8817 = vpow2.f32 %v7787_v40 }
 0xbf6   :  { %1761 = vrot.lane.b32.xlu0 %v8804_v11, %s9669_s29  ;;  %v8810_v45 = vpop.eup %8809  ;;  %v7785_v11 = vmul.f32 -1.442695, %v1596_v22  ;;  %8819 = vpow2.f32 %v7788_v27 }
 0xbf7   :  { %1655 = vrot.lane.b32.xlu1 %v8806_v13, %s9669_s29  ;;  %v8812_v47 = vpop.eup %8811 }
 0xbf8   :  { %v8814_v0 = vpop.eup %8813  ;;  %8821 = vpow2.f32 %v7785_v11 }
 0xbf9   :  { %8823 = vpow2.f32 %v7789_v26 }
 0xbfa   :  { %1763 = vrot.lane.b32.xlu0 %v8808_v36, %s9669_s29  ;;  %v7786_v36 = vmul.f32 -1.442695, %v1597_v25  ;;  %8825 = vpow2.f32 %v7783_v38 }
 0xbfb   :  { %1651 = vrot.lane.b32.xlu1 %v8810_v45, %s9669_s29  ;;  %v7790_v45 = vmul.f32 -1.442695, %v1602_v58 }
 0xbfc   :  { %8827 = vpow2.f32 %v7786_v36 }
 0xbfe   :  { %1657 = vrot.lane.b32.xlu0 %v8812_v47, %s9669_s29 }
 0xbff   :  { %1765 = vrot.lane.b32.xlu1 %v8814_v0, %s9669_s29 }
 0xc01   :  { %v8816_v13 = vpop.eup %8815 }
 0xc02   :  { %v1616_v52 = vadd.f32 1.0, %v8816_v13  ;;  %v8818_v47 = vpop.eup %8817 }
 0xc03   :  { %v8820_v17 = vpop.eup %8819  ;;  %v1723_v0 = vadd.f32 1.0, %v8818_v47 }
 0xc04   :  { %8829 = vrcp.f32 %v1616_v52  ;;  %v1724_v55 = vadd.f32 1.0, %v8820_v17 }
 0xc05   :  { %8831 = vpow2.f32 %v7790_v45  ;;  %v8822_v14 = vpop.eup %8821 }
 0xc06   :  { %v8824_v22 = vpop.eup %8823  ;;  %v1617_v27 = vadd.f32 1.0, %v8822_v14  ;;  %8833 = vrcp.f32 %v1723_v0 }
 0xc07   :  { %v8826_v62 = vpop.eup %8825  ;;  %v1725_v39 = vadd.f32 1.0, %v8824_v22  ;;  %8835 = vrcp.f32 %v1724_v55 }
 0xc08   :  { %v1615_v58 = vadd.f32 1.0, %v8826_v62  ;;  %8837 = vrcp.f32 %v1617_v27 }
 0xc09   :  { %v8828_v5 = vpop.eup %8827  ;;  %8839 = vrcp.f32 %v1725_v39 }
 0xc0a   :  { %v1618_v40 = vadd.f32 1.0, %v8828_v5  ;;  %8841 = vrcp.f32 %v1615_v58 }
 0xc0c   :  { %8843 = vrcp.f32 %v1618_v40 }
 0xc11   :  { %v10471_v25 = vpop.eup %8829 }
 0xc12   :  { %v8832_v52 = vpop.eup %8831 }
 0xc13   :  { %v1726_v11 = vadd.f32 1.0, %v8832_v52  ;;  %v10475_v13 = vpop.eup %8833 }
 0xc14   :  { %v10477_v45 = vpop.eup %8835 }
 0xc15   :  { %8845 = vrcp.f32 %v1726_v11  ;;  %v10482_v14 = vpop.eup %8837 }
 0xc16   :  { %v10485_v22 = vpop.eup %8839 }
 0xc17   :  { %v10490_v39 = vpop.eup %8841 }
 0xc64   :  { %v1654_v26 = vpop.permute.xlu0 %1653 }
 0xc65   :  { %v1664_v38 = vmul.f32 %v10471_v25, %v1654_v26  ;;  %v1760_v36 = vpop.permute.xlu1 %1759 }
 0xc66   :  { %v1771_v47 = vmul.f32 %v10475_v13, %v1760_v36 }
 0xc67   :  { %1673 = vrot.lane.b32.xlu0 %v1664_v38, %s9670_s30  ;;  %v10493_v38 = vpop.eup %8843 }
 0xc68   :  { %v1762_v17 = vpop.permute.xlu0 %1761  ;;  %1779 = vrot.lane.b32.xlu1 %v1771_v47, %s9670_s30  ;;  %v10498_v11 = vpop.eup %8845 }
 0xc69   :  { %v1772_v0 = vmul.f32 %v10477_v45, %v1762_v17  ;;  %v1656_v55 = vpop.permute.xlu1 %1655  ;;  %v1636_v17 = vrot.slane %v10360_v33, 7 }
 0xc6a   :  { %v1665_v62 = vmul.f32 %v10482_v14, %v1656_v55 }
 0xc6b   :  { %1781 = vrot.lane.b32.xlu0 %v1772_v0, %s9670_s30  ;;  %v1644_v0 = vmul.f32 %v10471_v25, %v1636_v17 }
 0xc6c   :  { %v1764_v27 = vpop.permute.xlu0 %1763  ;;  %1675 = vrot.lane.b32.xlu1 %v1665_v62, %s9670_s30 }
 0xc6d   :  { %v1773_v5 = vmul.f32 %v10485_v22, %v1764_v27  ;;  %v1652_v26 = vpop.permute.xlu1 %1651  ;;  %v1743_v27 = vrot.slane %v10375_v15, 1 }
 0xc6e   :  { %v1663_v58 = vmul.f32 %v10490_v39, %v1652_v26 }
 0xc6f   :  { %1783 = vrot.lane.b32.xlu0 %v1773_v5, %s9670_s30  ;;  %v1744_v5 = vrot.slane %v10387_v30, 1  ;;  %v1751_v26 = vmul.f32 %v10475_v13, %v1743_v27  ;;  %v1635_v27 = vrot.slane %v10378_v63, 7  ;;  %v1746_v63 = vrot.slane %v10392_v54, 1 }
 0xc70   :  { %v1658_v52 = vpop.permute.xlu0 %1657  ;;  %1671 = vrot.lane.b32.xlu1 %v1663_v58, %s9670_s30 }
 0xc71   :  { %v1666_v40 = vmul.f32 %v10493_v38, %v1658_v52  ;;  %v1766_v36 = vpop.permute.xlu1 %1765  ;;  %v1752_v52 = vmul.f32 %v10477_v45, %v1744_v5 }
 0xc72   :  { %v1774_v47 = vmul.f32 %v10498_v11, %v1766_v36 }
 0xc73   :  { %1677 = vrot.lane.b32.xlu0 %v1666_v40, %s9670_s30  ;;  %v1637_v40 = vrot.slane %v10369_v57, 7 }
 0xc74   :  { %1785 = vrot.lane.b32.xlu1 %v1774_v47, %s9670_s30  ;;  %v1745_v47 = vrot.slane %v10385_v51, 1 }
 0xc75   :  { %v1645_v15 = vmul.f32 %v10482_v14, %v1637_v40 }
 0xcd9   :  { %v1674_v55 = vpop.permute.xlu0 %1673 }
 0xcda   :  { %v10505_v62 = vadd.f32 %v1674_v55, %v1644_v0  ;;  %v1780_v58 = vpop.permute.xlu1 %1779  ;;  %v1753_v0 = vmul.f32 %v10485_v22, %v1745_v47 }
 0xcdb   :  { %v10513_v36 = vadd.f32 %v1780_v58, %v1751_v26  ;;  %v1638_v26 = vrot.slane %v10362_v12, 7  ;;  %v1643_v58 = vmul.f32 %v10490_v39, %v1635_v27  ;;  %v1754_v12 = vmul.f32 %v10498_v11, %v1746_v63 }
 0xcdc   :  { %8847 = vtanh.f32 %v10505_v62 }
 0xcdd   :  { %v1782_v33 = vpop.permute.xlu0 %1781  ;;  %8849 = vtanh.f32 %v10513_v36  ;;  %v1646_v40 = vmul.f32 %v10493_v38, %v1638_v26 }
 0xcde   :  { %v10516_v17 = vadd.f32 %v1782_v33, %v1752_v52  ;;  %v1676_v30 = vpop.permute.xlu1 %1675 }
 0xcdf   :  { %v10523_v57 = vadd.f32 %v1676_v30, %v1645_v15 }
 0xce0   :  { %8851 = vtanh.f32 %v10516_v17 }
 0xce1   :  { %v1784_v5 = vpop.permute.xlu0 %1783  ;;  %8853 = vtanh.f32 %v10523_v57 }
 0xce2   :  { %v10526_v51 = vadd.f32 %v1784_v5, %v1753_v0  ;;  %v1672_v52 = vpop.permute.xlu1 %1671 }
 0xce3   :  { %v10534_v33 = vadd.f32 %v1672_v52, %v1643_v58 }
 0xce4   :  { %8855 = vtanh.f32 %v10526_v51 }
 0xce5   :  { %v1678_v47 = vpop.permute.xlu0 %1677  ;;  %8857 = vtanh.f32 %v10534_v33 }
 0xce6   :  { %v10536_v15 = vadd.f32 %v1678_v47, %v1646_v40  ;;  %v1786_v30 = vpop.permute.xlu1 %1785 }
 0xce7   :  { %v10541_v0 = vadd.f32 %v1786_v30, %v1754_v12 }
 0xce8   :  { %8859 = vtanh.f32 %v10536_v15 }
 0xce9   :  { %v8848_v55 = vpop.eup %8847  ;;  %8861 = vtanh.f32 %v10541_v0 }
 0xcea   :  { %1697 = vrot.lane.b32.xlu0 %v8848_v55, %s9671_s9  ;;  %v8850_v55 = vpop.eup %8849 }
 0xceb   :  { %1803 = vrot.lane.b32.xlu1 %v8850_v55, %s9671_s9 }
 0xced   :  { %v8852_v27 = vpop.eup %8851 }
 0xcee   :  { %1805 = vrot.lane.b32.xlu0 %v8852_v27, %s9671_s9  ;;  %v8854_v54 = vpop.eup %8853 }
 0xcef   :  { %1699 = vrot.lane.b32.xlu1 %v8854_v54, %s9671_s9 }
 0xcf1   :  { %v8856_v5 = vpop.eup %8855 }
 0xcf2   :  { %1807 = vrot.lane.b32.xlu0 %v8856_v5, %s9671_s9  ;;  %v8858_v26 = vpop.eup %8857 }
 0xcf3   :  { %1695 = vrot.lane.b32.xlu1 %v8858_v26, %s9671_s9 }
 0xcf5   :  { %v8860_v58 = vpop.eup %8859 }
 0xcf6   :  { %1701 = vrot.lane.b32.xlu0 %v8860_v58, %s9671_s9  ;;  %v8862_v52 = vpop.eup %8861 }
 0xcf7   :  { %1809 = vrot.lane.b32.xlu1 %v8862_v52, %s9671_s9 }
 0xd5c   :  { %v1698_v40 = vpop.permute.xlu0 %1697 }
 0xd5d   :  { %v1804_v63 = vpop.permute.xlu1 %1803  ;;  %v10552_v30 = vmul.f32 %v10471_v25, %v1698_v40 }
 0xd5e   :  { %v10565_v52 = vmul.f32 %v10475_v13, %v1804_v63 }
 0xd5f   :  { %13341 = vst [vmem:[#allocation21_spill] sm:$0xff] %v10552_v30  ;;  %v1861_v58 = vrot.slane %v10552_v30, 7 }
 0xd60   :  { %v1806_v47 = vpop.permute.xlu0 %1805 }
 0xd61   :  { %v1700_v12 = vpop.permute.xlu1 %1699  ;;  %v10555_v27 = vmul.f32 %v10477_v45, %v1806_v47 }
 0xd62   :  { %v10558_v54 = vmul.f32 %v10482_v14, %v1700_v12 }
 0xd63   :  { %13342 = vst [vmem:[#allocation22_spill] sm:$0xff] %v10555_v27  ;;  %v1872_v45 = vrot.slane %v10555_v27, 6 }
 0xd64   :  { %v1808_v55 = vpop.permute.xlu0 %1807  ;;  %13343 = vst [vmem:[#allocation23_spill] sm:$0xff] %v10558_v54  ;;  %v1863_v14 = vrot.slane %v10558_v54, 6 }
 0xd65   :  { %v10561_v5 = vmul.f32 %v10485_v22, %v1808_v55  ;;  %v1696_v26 = vpop.permute.xlu1 %1695 }
 0xd66   :  { %v10568_v3 = vmul.f32 %v10490_v39, %v1696_v26  ;;  %v1871_v39 = vrot.slane %v10565_v52, 7 }
 0xd67   :  { %13344 = vst [vmem:[#allocation24_spill] sm:$0xff] %v10561_v5  ;;  %v1874_v47 = vrot.slane %v10561_v5, 5 }
 0xd68   :  { %v1702_v25 = vpop.permute.xlu0 %1701  ;;  %v1862_v22 = vsel %vm1126_vm7, %v1861_v58, %v10568_v3  ;;  %v1873_v58 = vsel %vm1126_vm7, %v1872_v45, %v1871_v39 }
 0xd69   :  { %v10571_v40 = vmul.f32 %v10493_v38, %v1702_v25  ;;  %v1810_v63 = vpop.permute.xlu1 %1809  ;;  %v1864_v38 = vsel %vm1496_vm8, %v1863_v14, %v1862_v22  ;;  %v1875_v25 = vsel %vm1496_vm8, %v1874_v47, %v1873_v58 }
 0xd6a   :  { %v10581_v12 = vmul.f32 %v10498_v11, %v1810_v63 }
 0xd6b   :  { %13345 = vst [vmem:[#allocation25_spill] sm:$0xff] %v10571_v40  ;;  %v1865_v13 = vrot.slane %v10571_v40, 5 }
 0xd6c   :  { %13346 = vst [vmem:[#allocation26_spill] sm:$0xff] %v10581_v12  ;;  %v1876_v26 = vrot.slane %v10581_v12, 4 }
 0xd6d   :  { %v1867_v55 = vsel %vm1866_vm9, %v1865_v13, %v1864_v38 }
 0xd6e   :  { %1868 = vrot.lane.b32.xlu0 %v1867_v55, %s9672_s10  ;;  %v1877_v40 = vsel %vm1866_vm9, %v1876_v26, %v1875_v25 }
 0xd6f   :  { %1878 = vrot.lane.b32.xlu1 %v1877_v40, %s9671_s9 }
 0xde0   :  { %v1869_v54 = vpop.permute.xlu0 %1868 }
 0xde1   :  { %v1879_v5 = vpop.permute.xlu1 %1878 }
 0xde2   :  { %v1881_v11 = vsel %vm13312_vm4, %v1869_v54, %v1879_v5 }
 0xde3   :  { %v1883_v63 = vrot.slane %v1881_v11, 4 }
 0xde5   :  { %8227 = vmatmul.mubr.msk.f32.vlgmr.msra.gmra.mxu1 %vm13321_vm5, %v1883_v63 }
 0xde6   :  { %8241 = vmatpush3.msra.mxu1 %v10240_v41  ;;  %8248 = vmatprep.mubr.msk.f32.mxu1 %vm13316_vm0, %v13340_v9 }
 0xde7   :  { %8242 = vmatprep.subr.mxu1 %v13340_v9 }
 0xde8   :  { %8243 = vmatpush3.msra.mxu1 %v10249_v46 }
 0xde9   :  { %8244 = vmatprep.subr.mxu1 %v13340_v9 }
 0xdea   :  { %8245 = vmatpush3.msra.mxu1 %v10256_v44 }
 0xdeb   :  { %8246 = vmatprep.subr.mxu1 %v13340_v9 }
 0xdec   :  { %8247 = vmatpush3.msra.mxu1 %v10263_v28 }
 0xded   :  { %8262 = vmatprep.subr.mxu1 %v13340_v9 }
 0xea5   :  { %v1952_v54 = vpop.f32.mrf.mxu1 }
 0xea6   :  { %v1960_v41 = vrot.slane %v1952_v54, 6  ;;  %v1959_v40 = vrot.slane %v1952_v54, 5  ;;  %v1958_v14 = vrot.slane %v1952_v54, 4  ;;  %v1976_v22 = vadd.f32 %v10300_v4, %v1952_v54 }
 0xea7   :  { %v8228_v5 = vpop.f32.mrf.mxu1  ;;  %v1957_v46 = vrot.slane %v1952_v54, 3  ;;  %v1969_v13 = vrot.slane %v1952_v54, 7  ;;  %v1970_v39 = vrot.slane %v1952_v54, 1 }
 0xea8   :  { %v1974_v45 = vadd.f32 %v10288_v18, %v1960_v41  ;;  %v1967_v47 = vadd.f32 %v10282_v16, %v1959_v40  ;;  %v1966_v44 = vadd.f32 %v10270_v53, %v1958_v14  ;;  %v1968_v4 = vadd.f32 %v10276_v48, %v1960_v41 }
 0xea9   :  { %v1965_v28 = vadd.f32 %v10294_v50, %v1957_v46  ;;  %v1975_v38 = vadd.f32 %v10306_v34, %v1969_v13  ;;  %v1977_v18 = vadd.f32 %v10312_v20, %v1970_v39  ;;  %v7798_v25 = vmul.f32 -1.442695, %v1976_v22 }
 0xeaa   :  { %8863 = vtanh.f32 %v1974_v45  ;;  %v7796_v58 = vmul.f32 -1.442695, %v1974_v45  ;;  %v7794_v11 = vmul.f32 -1.442695, %v1967_v47  ;;  %v7793_v63 = vmul.f32 -1.442695, %v1966_v44 }
 0xeab   :  { %8865 = vtanh.f32 %v1976_v22  ;;  %v7792_v54 = vmul.f32 -1.442695, %v1965_v28  ;;  %v7797_v5 = vmul.f32 -1.442695, %v1975_v38  ;;  %v7799_v41 = vmul.f32 -1.442695, %v1977_v18 }
 0xeac   :  { %8867 = vtanh.f32 %v1967_v47  ;;  %v7795_v40 = vmul.f32 -1.442695, %v1968_v4 }
 0xead   :  { %8869 = vtanh.f32 %v1966_v44 }
 0xeae   :  { %8871 = vtanh.f32 %v1965_v28 }
 0xeaf   :  { %8873 = vtanh.f32 %v1975_v38 }
 0xeb0   :  { %8875 = vtanh.f32 %v1977_v18 }
 0xeb1   :  { %8877 = vtanh.f32 %v1968_v4 }
 0xeb2   :  { %8879 = vpow2.f32 %v7796_v58 }
 0xeb3   :  { %8881 = vpow2.f32 %v7798_v25 }
 0xeb4   :  { %8883 = vpow2.f32 %v7794_v11 }
 0xeb5   :  { %8885 = vpow2.f32 %v7793_v63 }
 0xeb6   :  { %8887 = vpow2.f32 %v7792_v54 }
 0xeb7   :  { %v8864_v16 = vpop.eup %8863  ;;  %8889 = vpow2.f32 %v7797_v5 }
 0xeb8   :  { %2134 = vrot.lane.b32.xlu1 %v8864_v16, %s9669_s29  ;;  %v8866_v53 = vpop.eup %8865  ;;  %8891 = vpow2.f32 %v7799_v41 }
 0xeb9   :  { %2138 = vrot.lane.b32.xlu0 %v8866_v53, %s9669_s29  ;;  %v8868_v50 = vpop.eup %8867  ;;  %8893 = vpow2.f32 %v7795_v40 }
 0xeba   :  { %v8870_v55 = vpop.eup %8869 }
 0xebb   :  { %v8872_v34 = vpop.eup %8871 }
 0xebc   :  { %2030 = vrot.lane.b32.xlu1 %v8868_v50, %s9669_s29  ;;  %v8874_v20 = vpop.eup %8873 }
 0xebd   :  { %2028 = vrot.lane.b32.xlu0 %v8870_v55, %s9669_s29  ;;  %v8876_v48 = vpop.eup %8875 }
 0xebe   :  { %v8878_v26 = vpop.eup %8877 }
 0xebf   :  { %v8880_v14 = vpop.eup %8879 }
 0xec0   :  { %2026 = vrot.lane.b32.xlu1 %v8872_v34, %s9669_s29  ;;  %v8882_v46 = vpop.eup %8881  ;;  %v2098_v13 = vadd.f32 1.0, %v8880_v14 }
 0xec1   :  { %2136 = vrot.lane.b32.xlu0 %v8874_v20, %s9669_s29  ;;  %v8884_v39 = vpop.eup %8883  ;;  %v2100_v45 = vadd.f32 1.0, %v8882_v46 }
 0xec2   :  { %v8886_v22 = vpop.eup %8885  ;;  %v1992_v47 = vadd.f32 1.0, %v8884_v39  ;;  %8895 = vrcp.f32 %v2098_v13 }
 0xec3   :  { %v8888_v44 = vpop.eup %8887  ;;  %v1991_v16 = vadd.f32 1.0, %v8886_v22  ;;  %8897 = vrcp.f32 %v2100_v45 }
 0xec4   :  { %2140 = vrot.lane.b32.xlu1 %v8876_v48, %s9669_s29  ;;  %v8890_v28 = vpop.eup %8889  ;;  %v1990_v53 = vadd.f32 1.0, %v8888_v44  ;;  %8899 = vrcp.f32 %v1992_v47 }
 0xec5   :  { %2032 = vrot.lane.b32.xlu0 %v8878_v26, %s9669_s29  ;;  %v8892_v38 = vpop.eup %8891  ;;  %8901 = vrcp.f32 %v1991_v16  ;;  %v2099_v18 = vadd.f32 1.0, %v8890_v28 }
 0xec6   :  { %v8894_v4 = vpop.eup %8893  ;;  %8903 = vrcp.f32 %v1990_v53  ;;  %v2101_v50 = vadd.f32 1.0, %v8892_v38 }
 0xec7   :  { %v1993_v55 = vadd.f32 1.0, %v8894_v4  ;;  %8905 = vrcp.f32 %v2099_v18  ;;  %v2118_v18 = vrot.slane %v10513_v36, 1  ;;  %v2120_v4 = vrot.slane %v10526_v51, 1 }
 0xec8   :  { %8907 = vrcp.f32 %v2101_v50  ;;  %v2010_v51 = vrot.slane %v10534_v33, 7 }
 0xec9   :  { %8909 = vrcp.f32 %v1993_v55 }
 0xecf   :  { %v10619_v34 = vpop.eup %8895 }
 0xed0   :  { %v10622_v26 = vpop.eup %8897  ;;  %v2126_v50 = vmul.f32 %v10619_v34, %v2118_v18 }
 0xed1   :  { %v10626_v11 = vpop.eup %8899 }
 0xed2   :  { %v10630_v5 = vpop.eup %8901 }
 0xed3   :  { %v10634_v14 = vpop.eup %8903 }
 0xed4   :  { %v10638_v39 = vpop.eup %8905 }
 0xed5   :  { %v10642_v47 = vpop.eup %8907 }
 0xed6   :  { %v10646_v28 = vpop.eup %8909 }
 0xf2a   :  { %v2135_v20 = vpop.permute.xlu1 %2134 }
 0xf2b   :  { %v2146_v48 = vmul.f32 %v10619_v34, %v2135_v20  ;;  %v2139_v58 = vpop.permute.xlu0 %2138  ;;  %v2012_v20 = vrot.slane %v10523_v57, 7 }
 0xf2c   :  { %v2148_v25 = vmul.f32 %v10622_v26, %v2139_v58 }
 0xf2d   :  { %2154 = vrot.lane.b32.xlu1 %v2146_v48, %s9670_s30  ;;  %v2128_v48 = vmul.f32 %v10622_v26, %v2120_v4  ;;  %v2020_v36 = vmul.f32 %v10626_v11, %v2012_v20 }
 0xf2e   :  { %v2031_v63 = vpop.permute.xlu1 %2030  ;;  %2158 = vrot.lane.b32.xlu0 %v2148_v25, %s9670_s30 }
 0xf2f   :  { %v2040_v54 = vmul.f32 %v10626_v11, %v2031_v63  ;;  %v2029_v41 = vpop.permute.xlu0 %2028  ;;  %v2011_v63 = vrot.slane %v10505_v62, 7  ;;  %v2018_v62 = vmul.f32 %v10634_v14, %v2010_v51 }
 0xf30   :  { %v2039_v40 = vmul.f32 %v10630_v5, %v2029_v41 }
 0xf31   :  { %2050 = vrot.lane.b32.xlu1 %v2040_v54, %s9670_s30  ;;  %v2019_v57 = vmul.f32 %v10630_v5, %v2011_v63 }
 0xf32   :  { %v2027_v46 = vpop.permute.xlu1 %2026  ;;  %2048 = vrot.lane.b32.xlu0 %v2039_v40, %s9670_s30 }
 0xf33   :  { %v2038_v13 = vmul.f32 %v10634_v14, %v2027_v46  ;;  %v2137_v45 = vpop.permute.xlu0 %2136 }
 0xf34   :  { %v2147_v22 = vmul.f32 %v10638_v39, %v2137_v45 }
 0xf35   :  { %2046 = vrot.lane.b32.xlu1 %v2038_v13, %s9670_s30  ;;  %v2119_v13 = vrot.slane %v10516_v17, 1 }
 0xf36   :  { %v2141_v44 = vpop.permute.xlu1 %2140  ;;  %2156 = vrot.lane.b32.xlu0 %v2147_v22, %s9670_s30 }
 0xf37   :  { %v2149_v16 = vmul.f32 %v10642_v47, %v2141_v44  ;;  %v2033_v53 = vpop.permute.xlu0 %2032  ;;  %v2121_v44 = vrot.slane %v10541_v0, 1  ;;  %v2127_v33 = vmul.f32 %v10638_v39, %v2119_v13 }
 0xf38   :  { %v2041_v38 = vmul.f32 %v10646_v28, %v2033_v53 }
 0xf39   :  { %2160 = vrot.lane.b32.xlu1 %v2149_v16, %s9670_s30  ;;  %v2129_v17 = vmul.f32 %v10642_v47, %v2121_v44 }
 0xf3a   :  { %2052 = vrot.lane.b32.xlu0 %v2041_v38, %s9670_s30  ;;  %v2013_v38 = vrot.slane %v10536_v15, 7 }
 0xf3c   :  { %v2021_v0 = vmul.f32 %v10646_v28, %v2013_v38 }
 0xf9f   :  { %v2155_v55 = vpop.permute.xlu1 %2154 }
 0xfa0   :  { %v10656_v58 = vadd.f32 %v2155_v55, %v2126_v50  ;;  %v2159_v25 = vpop.permute.xlu0 %2158 }
 0xfa1   :  { %v10659_v54 = vadd.f32 %v2159_v25, %v2128_v48 }
 0xfa2   :  { %8911 = vtanh.f32 %v10656_v58 }
 0xfa3   :  { %v2051_v41 = vpop.permute.xlu1 %2050  ;;  %8913 = vtanh.f32 %v10659_v54 }
 0xfa4   :  { %v10666_v40 = vadd.f32 %v2051_v41, %v2020_v36  ;;  %v2049_v46 = vpop.permute.xlu0 %2048 }
 0xfa5   :  { %v10669_v45 = vadd.f32 %v2049_v46, %v2019_v57 }
 0xfa6   :  { %8915 = vtanh.f32 %v10666_v40 }
 0xfa7   :  { %v2047_v22 = vpop.permute.xlu1 %2046  ;;  %8917 = vtanh.f32 %v10669_v45 }
 0xfa8   :  { %v10676_v16 = vadd.f32 %v2047_v22, %v2018_v62  ;;  %v2157_v53 = vpop.permute.xlu0 %2156 }
 0xfa9   :  { %v10679_v18 = vadd.f32 %v2157_v53, %v2127_v33 }
 0xfaa   :  { %8919 = vtanh.f32 %v10676_v16 }
 0xfab   :  { %v2161_v4 = vpop.permute.xlu1 %2160  ;;  %8921 = vtanh.f32 %v10679_v18 }
 0xfac   :  { %v10685_v50 = vadd.f32 %v2161_v4, %v2129_v17  ;;  %v2053_v55 = vpop.permute.xlu0 %2052 }
 0xfad   :  { %v10687_v20 = vadd.f32 %v2053_v55, %v2021_v0 }
 0xfae   :  { %8923 = vtanh.f32 %v10685_v50 }
 0xfaf   :  { %v8912_v48 = vpop.eup %8911  ;;  %8925 = vtanh.f32 %v10687_v20 }
 0xfb0   :  { %2178 = vrot.lane.b32.xlu1 %v8912_v48, %s9671_s9  ;;  %v8914_v15 = vpop.eup %8913 }
 0xfb1   :  { %2182 = vrot.lane.b32.xlu0 %v8914_v15, %s9671_s9 }
 0xfb3   :  { %v8916_v25 = vpop.eup %8915 }
 0xfb4   :  { %2074 = vrot.lane.b32.xlu1 %v8916_v25, %s9671_s9  ;;  %v8918_v63 = vpop.eup %8917 }
 0xfb5   :  { %2072 = vrot.lane.b32.xlu0 %v8918_v63, %s9671_s9 }
 0xfb7   :  { %v8920_v36 = vpop.eup %8919 }
 0xfb8   :  { %2070 = vrot.lane.b32.xlu1 %v8920_v36, %s9671_s9  ;;  %v8922_v41 = vpop.eup %8921 }
 0xfb9   :  { %2180 = vrot.lane.b32.xlu0 %v8922_v41, %s9671_s9 }
 0xfbb   :  { %v8924_v51 = vpop.eup %8923 }
 0xfbc   :  { %2184 = vrot.lane.b32.xlu1 %v8924_v51, %s9671_s9  ;;  %v8926_v57 = vpop.eup %8925 }
 0xfbd   :  { %2076 = vrot.lane.b32.xlu0 %v8926_v57, %s9671_s9 }
0x1022   :  { %v2179_v46 = vpop.permute.xlu1 %2178 }
0x1023   :  { %v2183_v13 = vpop.permute.xlu0 %2182  ;;  %v10706_v38 = vmul.f32 %v10619_v34, %v2179_v46 }
0x1024   :  { %v10713_v0 = vmul.f32 %v10622_v26, %v2183_v13 }
0x1025   :  { %v2247_v15 = vrot.slane %v10706_v38, 5 }
0x1026   :  { %v2075_v62 = vpop.permute.xlu1 %2074  ;;  %13349 = vst [vmem:[#allocation29_spill] sm:$0xff] %v10713_v0  ;;  %v2250_v26 = vrot.slane %v10713_v0, 3 }
0x1027   :  { %v2073_v22 = vpop.permute.xlu0 %2072  ;;  %v10700_v44 = vmul.f32 %v10626_v11, %v2075_v62 }
0x1028   :  { %v10703_v33 = vmul.f32 %v10630_v5, %v2073_v22 }
0x1029   :  { %13347 = vst [vmem:[#allocation27_spill] sm:$0xff] %v10700_v44  ;;  %v2238_v55 = vrot.slane %v10700_v44, 6 }
0x102a   :  { %13348 = vst [vmem:[#allocation28_spill] sm:$0xff] %v10703_v33  ;;  %v2071_v53 = vpop.permute.xlu1 %2070  ;;  %v2236_v17 = vrot.slane %v10703_v33, 7 }
0x102b   :  { %v10710_v4 = vmul.f32 %v10634_v14, %v2071_v53  ;;  %v2181_v48 = vpop.permute.xlu0 %2180 }
0x102c   :  { %v10717_v11 = vmul.f32 %v10638_v39, %v2181_v48 }
0x102d   :  { %v2237_v5 = vsel %vm1496_vm8, %v2236_v17, %v10710_v4 }
0x102e   :  { %13350 = vst [vmem:[#allocation30_spill] sm:$0xff] %v10717_v11  ;;  %v2239_v34 = vsel %vm1866_vm9, %v2238_v55, %v2237_v5  ;;  %v2248_v25 = vrot.slane %v10717_v11, 4  ;;  %v2185_v63 = vpop.permute.xlu1 %2184  ;;  %v10746_v5 = vld [vmem:[%s13221_s1 + $0x18] sm:$0xff] }
0x102f   :  { %2241 = vrot.lane.b32.xlu0 %v2239_v34, %s9672_s10  ;;  %v2077_v14 = vpop.permute.xlu0 %2076  ;;  %v10733_v57 = vmul.f32 %v10642_v47, %v2185_v63  ;;  %v10755_v34 = vld [vmem:[%s13221_s1 + $0x10] sm:$0xff] }
0x1030   :  { %v10727_v36 = vmul.f32 %v10646_v28, %v2077_v14  ;;  %v2249_v39 = vsel %vm1496_vm8, %v2248_v25, %v2247_v15  ;;  %v10762_v15 = vld [vmem:[%s13221_s1 + $0x8] sm:$0xff]  ;;  %v10769_v25 = vld [vmem:[%s13221_s1] sm:$0xff] }
0x1031   :  { %v2251_v41 = vsel %vm1866_vm9, %v2250_v26, %v2249_v39  ;;  %13352 = vst [vmem:[#allocation32_spill] sm:$0xff] %v10733_v57  ;;  %v2252_v46 = vrot.slane %v10733_v57, 2  ;;  %v10776_v39 = vld [vmem:[%s13222_s0 + $0x20] sm:$0xff] }
0x1032   :  { %13351 = vst [vmem:[#allocation31_spill] sm:$0xff] %v10727_v36  ;;  %v2240_v51 = vrot.slane %v10727_v36, 5 }
0x1033   :  { %2253 = vrot.lane.b32.xlu0 %v2251_v41, %s9671_s9 }
0x1034   :  { %2243 = vrot.lane.b32.xlu1 %v2240_v51, %s9672_s10 }
0x1038   :  { %2255 = vrot.lane.b32.xlu1 %v2252_v46, %s9671_s9 }
0x10a1   :  { %v2242_v13 = vpop.permute.xlu0 %2241 }
0x10a5   :  { %v2254_v62 = vpop.permute.xlu0 %2253 }
0x10a6   :  { %v2244_v28 = vpop.permute.xlu1 %2243  ;;  %v2259_v22 = vsel %vm13312_vm4, %v2242_v13, %v2254_v62  ;;  %v10782_v13 = vld [vmem:[%s13222_s0 + $0x8] sm:$0xff] }
0x10a7   :  { %v2264_v55 = vrot.slane %v2259_v22, 5  ;;  %v10788_v22 = vld [vmem:[%s13222_s0 + $0x18] sm:$0xff] }
0x10aa   :  { %v2256_v53 = vpop.permute.xlu1 %2255 }
0x10ab   :  { %v2260_v17 = vsel %vm13312_vm4, %v2244_v28, %v2256_v53 }
0x10ac   :  { %v2265_v47 = vrot.slane %v2260_v17, 5 }
0x10ae   :  { %v2266_v48 = vsel %vm13320_vm10, %v2264_v55, %v2265_v47  ;;  %v10794_v55 = vld [vmem:[%s13222_s0 + $0x28] sm:$0xff] }
0x10af   :  { %8238 = vmatmul.mubr.msk.f32.vlgmr.msra.gmra.mxu0 %vm13321_vm5, %v2266_v48 }
0x10b0   :  { %8252 = vmatpush3.msra.mxu0 %v10746_v5  ;;  %8259 = vmatprep.mubr.msk.f32.mxu0 %vm13316_vm0, %v13340_v9 }
0x10b1   :  { %8253 = vmatprep.subr.mxu0 %v13340_v9 }
0x10b2   :  { %8254 = vmatpush3.msra.mxu0 %v10755_v34 }
0x10b3   :  { %8255 = vmatprep.subr.mxu0 %v13340_v9 }
0x10b4   :  { %8256 = vmatpush3.msra.mxu0 %v10762_v15 }
0x10b5   :  { %8257 = vmatprep.subr.mxu0 %v13340_v9 }
0x10b6   :  { %8258 = vmatpush3.msra.mxu0 %v10769_v25 }
0x10b7   :  { %8273 = vmatprep.subr.mxu0 %v13340_v9 }
0x116f   :  { %v2335_v26 = vpop.f32.mrf.mxu0 }
0x1170   :  { %v2342_v63 = vrot.slane %v2335_v26, 4  ;;  %v2352_v51 = vrot.slane %v2335_v26, 7  ;;  %v2353_v46 = vrot.slane %v2335_v26, 1  ;;  %v2341_v62 = vrot.slane %v2335_v26, 3 }
0x1171   :  { %v8239_v14 = vpop.f32.mrf.mxu0  ;;  %v2358_v53 = vadd.f32 %v10788_v22, %v2335_v26  ;;  %v2340_v17 = vrot.slane %v2335_v26, 2  ;;  %v2343_v48 = vrot.slane %v2335_v26, 5  ;;  %v10812_v26 = vld [vmem:[%s13222_s0 + $0x30] sm:$0xff] }
0x1172   :  { %v2350_v41 = vadd.f32 %v10776_v39, %v2342_v63  ;;  %v2357_v28 = vadd.f32 %v10782_v13, %v2352_v51  ;;  %v2359_v47 = vadd.f32 %v10794_v55, %v2353_v46  ;;  %v10800_v14 = vld [vmem:[%s13222_s0 + $0x10] sm:$0xff]  ;;  %v10806_v51 = vld [vmem:[%s13222_s0 + $0x38] sm:$0xff] }
0x1173   :  { %v2349_v63 = vadd.f32 %v10800_v14, %v2341_v62  ;;  %v2360_v36 = vadd.f32 %v10806_v51, %v2340_v17  ;;  %v2351_v46 = vadd.f32 %v10812_v26, %v2343_v48  ;;  %v10819_v62 = vld [vmem:[%s13222_s0] sm:$0xff]  ;;  %v7806_v2 = vmul.f32 -1.442695, %v2358_v53 }
0x1174   :  { %8927 = vtanh.f32 %v2350_v41  ;;  %v2348_v12 = vadd.f32 %v10819_v62, %v2340_v17  ;;  %v7803_v31 = vmul.f32 -1.442695, %v2350_v41 }
0x1175   :  { %8929 = vtanh.f32 %v2357_v28  ;;  %v7802_v32 = vmul.f32 -1.442695, %v2349_v63 }
0x1176   :  { %8931 = vtanh.f32 %v2358_v53 }
0x1177   :  { %8933 = vtanh.f32 %v2359_v47 }
0x1178   :  { %8935 = vtanh.f32 %v2349_v63 }
0x1179   :  { %8937 = vtanh.f32 %v2360_v36 }
0x117a   :  { %8939 = vtanh.f32 %v2351_v46 }
0x117b   :  { %8941 = vtanh.f32 %v2348_v12 }
0x117c   :  { %8943 = vpow2.f32 %v7803_v31 }
0x1181   :  { %v8928_v57 = vpop.eup %8927 }
0x1182   :  { %2413 = vrot.lane.b32.xlu1 %v8928_v57, %s9669_s29  ;;  %v8930_v44 = vpop.eup %8929 }
0x1183   :  { %v8932_v0 = vpop.eup %8931 }
0x1184   :  { %2519 = vrot.lane.b32.xlu0 %v8932_v0, %s9669_s29  ;;  %v8934_v48 = vpop.eup %8933  ;;  %v7807_v0 = vmul.f32 -1.442695, %v2359_v47 }
0x1185   :  { %v8936_v43 = vpop.eup %8935 }
0x1186   :  { %2517 = vrot.lane.b32.xlu1 %v8930_v44, %s9669_s29  ;;  %v8938_v57 = vpop.eup %8937  ;;  %v7805_v44 = vmul.f32 -1.442695, %v2357_v28 }
0x1187   :  { %v8940_v60 = vpop.eup %8939 }
0x1188   :  { %2411 = vrot.lane.b32.xlu0 %v8936_v43, %s9669_s29  ;;  %v8942_v17 = vpop.eup %8941  ;;  %8945 = vpow2.f32 %v7805_v44  ;;  %v7804_v43 = vmul.f32 -1.442695, %v2351_v46 }
0x1189   :  { %8947 = vpow2.f32 %v7806_v2  ;;  %v8944_v29 = vpop.eup %8943 }
0x118a   :  { %2521 = vrot.lane.b32.xlu1 %v8934_v48, %s9669_s29  ;;  %8949 = vpow2.f32 %v7807_v0  ;;  %v7808_v48 = vmul.f32 -1.442695, %v2360_v36 }
0x118b   :  { %8951 = vpow2.f32 %v7802_v32 }
0x118c   :  { %2415 = vrot.lane.b32.xlu0 %v8940_v60, %s9669_s29  ;;  %8953 = vpow2.f32 %v7808_v48  ;;  %v2375_v60 = vadd.f32 1.0, %v8944_v29 }
0x118d   :  { %8955 = vpow2.f32 %v7804_v43 }
0x118e   :  { %2523 = vrot.lane.b32.xlu1 %v8938_v57, %s9669_s29  ;;  %v7801_v57 = vmul.f32 -1.442695, %v2348_v12 }
0x1190   :  { %2409 = vrot.lane.b32.xlu0 %v8942_v17, %s9669_s29  ;;  %8957 = vpow2.f32 %v7801_v57 }
0x1191   :  { %8959 = vrcp.f32 %v2375_v60 }
0x1195   :  { %v8946_v11 = vpop.eup %8945 }
0x1196   :  { %v8948_v17 = vpop.eup %8947  ;;  %v2481_v31 = vadd.f32 1.0, %v8946_v11 }
0x1197   :  { %v8950_v41 = vpop.eup %8949  ;;  %v2482_v28 = vadd.f32 1.0, %v8948_v17 }
0x1198   :  { %v8952_v53 = vpop.eup %8951  ;;  %v2483_v47 = vadd.f32 1.0, %v8950_v41  ;;  %8961 = vrcp.f32 %v2481_v31 }
0x1199   :  { %v8954_v2 = vpop.eup %8953  ;;  %v2374_v63 = vadd.f32 1.0, %v8952_v53  ;;  %8963 = vrcp.f32 %v2482_v28 }
0x119a   :  { %v8956_v32 = vpop.eup %8955  ;;  %v2484_v36 = vadd.f32 1.0, %v8954_v2  ;;  %8965 = vrcp.f32 %v2483_v47 }
0x119b   :  { %v2376_v46 = vadd.f32 1.0, %v8956_v32  ;;  %8967 = vrcp.f32 %v2374_v63 }
0x119c   :  { %8969 = vrcp.f32 %v2484_v36 }
0x119d   :  { %v8958_v12 = vpop.eup %8957  ;;  %8971 = vrcp.f32 %v2376_v46 }
0x119e   :  { %v10829_v29 = vpop.eup %8959  ;;  %v2373_v0 = vadd.f32 1.0, %v8958_v12 }
0x11a0   :  { %8973 = vrcp.f32 %v2373_v0 }
0x11a5   :  { %v10833_v48 = vpop.eup %8961 }
0x11a6   :  { %v10835_v57 = vpop.eup %8963 }
0x11a7   :  { %v10840_v41 = vpop.eup %8965 }
0x11a8   :  { %v10843_v53 = vpop.eup %8967 }
0x11a9   :  { %v10848_v32 = vpop.eup %8969 }
0x11aa   :  { %v10851_v46 = vpop.eup %8971 }
0x11ad   :  { %v10857_v0 = vpop.eup %8973 }
0x11f4   :  { %v2414_v44 = vpop.permute.xlu1 %2413 }
0x11f5   :  { %v2423_v11 = vmul.f32 %v10829_v29, %v2414_v44 }
0x11f6   :  { %v2520_v60 = vpop.permute.xlu0 %2519 }
0x11f7   :  { %2433 = vrot.lane.b32.xlu1 %v2423_v11, %s9670_s30  ;;  %v2530_v31 = vmul.f32 %v10835_v57, %v2520_v60 }
0x11f8   :  { %v2518_v43 = vpop.permute.xlu1 %2517 }
0x11f9   :  { %v2529_v17 = vmul.f32 %v10833_v48, %v2518_v43  ;;  %2539 = vrot.lane.b32.xlu0 %v2530_v31, %s9670_s30 }
0x11fa   :  { %v2412_v47 = vpop.permute.xlu0 %2411 }
0x11fb   :  { %2537 = vrot.lane.b32.xlu1 %v2529_v17, %s9670_s30  ;;  %v2422_v63 = vmul.f32 %v10843_v53, %v2412_v47  ;;  %v2395_v17 = vrot.slane %v10666_v40, 7 }
0x11fc   :  { %v2522_v28 = vpop.permute.xlu1 %2521 }
0x11fd   :  { %v2531_v2 = vmul.f32 %v10840_v41, %v2522_v28  ;;  %2431 = vrot.lane.b32.xlu0 %v2422_v63, %s9670_s30  ;;  %v2403_v31 = vmul.f32 %v10829_v29, %v2395_v17  ;;  %v2502_v63 = vrot.slane %v10679_v18, 1 }
0x11fe   :  { %v2416_v12 = vpop.permute.xlu0 %2415 }
0x11ff   :  { %2541 = vrot.lane.b32.xlu1 %v2531_v2, %s9670_s30  ;;  %v2424_v11 = vmul.f32 %v10851_v46, %v2416_v12  ;;  %v2501_v2 = vrot.slane %v10656_v58, 1  ;;  %v2510_v12 = vmul.f32 %v10835_v57, %v2502_v63  ;;  %v2396_v63 = vrot.slane %v10687_v20, 7 }
0x1200   :  { %v2524_v36 = vpop.permute.xlu1 %2523 }
0x1201   :  { %v2532_v44 = vmul.f32 %v10848_v32, %v2524_v36  ;;  %2435 = vrot.lane.b32.xlu0 %v2424_v11, %s9670_s30  ;;  %v2509_v36 = vmul.f32 %v10833_v48, %v2501_v2  ;;  %v2503_v11 = vrot.slane %v10659_v54, 1 }
0x1202   :  { %v2410_v43 = vpop.permute.xlu0 %2409 }
0x1203   :  { %2543 = vrot.lane.b32.xlu1 %v2532_v44, %s9670_s30  ;;  %v2421_v60 = vmul.f32 %v10857_v0, %v2410_v43  ;;  %v2511_v58 = vmul.f32 %v10840_v41, %v2503_v11 }
0x1205   :  { %2429 = vrot.lane.b32.xlu0 %v2421_v60, %s9670_s30  ;;  %v2394_v60 = vrot.slane %v10669_v45, 7 }
0x1207   :  { %v2402_v18 = vmul.f32 %v10843_v53, %v2394_v60  ;;  %v2393_v60 = vrot.slane %v10676_v16, 7 }
0x1209   :  { %v2401_v20 = vmul.f32 %v10857_v0, %v2393_v60 }
0x1269   :  { %v2434_v28 = vpop.permute.xlu1 %2433 }
0x126a   :  { %v10863_v47 = vadd.f32 %v2434_v28, %v2403_v31  ;;  %v2504_v28 = vrot.slane %v10685_v50, 1 }
0x126b   :  { %v2540_v43 = vpop.permute.xlu0 %2539 }
0x126c   :  { %8975 = vtanh.f32 %v10863_v47  ;;  %v10874_v17 = vadd.f32 %v2540_v43, %v2510_v12  ;;  %v2512_v45 = vmul.f32 %v10848_v32, %v2504_v28  ;;  %v2404_v12 = vmul.f32 %v10851_v46, %v2396_v63 }
0x126d   :  { %v2538_v44 = vpop.permute.xlu1 %2537 }
0x126e   :  { %v10871_v40 = vadd.f32 %v2538_v44, %v2509_v36 }
0x126f   :  { %v2432_v2 = vpop.permute.xlu0 %2431 }
0x1270   :  { %8977 = vtanh.f32 %v10871_v40  ;;  %v10884_v36 = vadd.f32 %v2432_v2, %v2402_v18 }
0x1271   :  { %8979 = vtanh.f32 %v10874_v17  ;;  %v2542_v31 = vpop.permute.xlu1 %2541 }
0x1272   :  { %v10881_v54 = vadd.f32 %v2542_v31, %v2511_v58 }
0x1273   :  { %v2436_v11 = vpop.permute.xlu0 %2435 }
0x1274   :  { %8981 = vtanh.f32 %v10881_v54  ;;  %v10893_v58 = vadd.f32 %v2436_v11, %v2404_v12 }
0x1275   :  { %8983 = vtanh.f32 %v10884_v36  ;;  %v2544_v44 = vpop.permute.xlu1 %2543 }
0x1276   :  { %v10890_v43 = vadd.f32 %v2544_v44, %v2512_v45 }
0x1277   :  { %v2430_v18 = vpop.permute.xlu0 %2429 }
0x1278   :  { %8985 = vtanh.f32 %v10890_v43  ;;  %v10899_v31 = vadd.f32 %v2430_v18, %v2401_v20 }
0x1279   :  { %v8976_v50 = vpop.eup %8975  ;;  %8987 = vtanh.f32 %v10893_v58 }
0x127a   :  { %2457 = vrot.lane.b32.xlu1 %v8976_v50, %s9671_s9  ;;  %8989 = vtanh.f32 %v10899_v31 }
0x127d   :  { %v8978_v28 = vpop.eup %8977 }
0x127e   :  { %v8980_v2 = vpop.eup %8979  ;;  %2561 = vrot.lane.b32.xlu1 %v8978_v28, %s9671_s9 }
0x127f   :  { %2563 = vrot.lane.b32.xlu0 %v8980_v2, %s9671_s9 }
0x1281   :  { %v8982_v16 = vpop.eup %8981 }
0x1282   :  { %v8984_v63 = vpop.eup %8983  ;;  %2565 = vrot.lane.b32.xlu1 %v8982_v16, %s9671_s9 }
0x1283   :  { %2455 = vrot.lane.b32.xlu0 %v8984_v63, %s9671_s9 }
0x1285   :  { %v8986_v45 = vpop.eup %8985 }
0x1286   :  { %v8988_v12 = vpop.eup %8987  ;;  %2567 = vrot.lane.b32.xlu1 %v8986_v45, %s9671_s9 }
0x1287   :  { %2459 = vrot.lane.b32.xlu0 %v8988_v12, %s9671_s9  ;;  %v8990_v44 = vpop.eup %8989 }
0x128b   :  { %2453 = vrot.lane.b32.xlu0 %v8990_v44, %s9671_s9 }
0x12ec   :  { %v2458_v11 = vpop.permute.xlu1 %2457 }
0x12ed   :  { %v10910_v28 = vmul.f32 %v10829_v29, %v2458_v11 }
0x12ef   :  { %13353 = vst [vmem:[#allocation33_spill] sm:$0xff] %v10910_v28  ;;  %v2621_v44 = vrot.slane %v10910_v28, 6 }
0x12f0   :  { %v2562_v50 = vpop.permute.xlu1 %2561 }
0x12f1   :  { %v2564_v60 = vpop.permute.xlu0 %2563  ;;  %v10923_v27 = vmul.f32 %v10833_v48, %v2562_v50 }
0x12f2   :  { %v10930_v11 = vmul.f32 %v10835_v57, %v2564_v60 }
0x12f3   :  { %v2630_v48 = vrot.slane %v10923_v27, 3 }
0x12f4   :  { %v2566_v20 = vpop.permute.xlu1 %2565  ;;  %13358 = vst [vmem:[#allocation38_spill] sm:$0xff] %v10930_v11  ;;  %v2631_v50 = vrot.slane %v10930_v11, 2 }
0x12f5   :  { %v2456_v18 = vpop.permute.xlu0 %2455  ;;  %v10919_v12 = vmul.f32 %v10840_v41, %v2566_v20 }
0x12f6   :  { %v10913_v63 = vmul.f32 %v10843_v53, %v2456_v18 }
0x12f7   :  { %13356 = vst [vmem:[#allocation36_spill] sm:$0xff] %v10919_v12  ;;  %v2633_v18 = vrot.slane %v10919_v12, 1 }
0x12f8   :  { %v2568_v16 = vpop.permute.xlu1 %2567  ;;  %13354 = vst [vmem:[#allocation34_spill] sm:$0xff] %v10913_v63 }
0x12f9   :  { %v2460_v2 = vpop.permute.xlu0 %2459  ;;  %v10927_v29 = vmul.f32 %v10848_v32, %v2568_v16 }
0x12fa   :  { %v10916_v45 = vmul.f32 %v10851_v46, %v2460_v2  ;;  %v2619_v46 = vrot.slane %v10913_v63, 7 }
0x12fb   :  { %13357 = vst [vmem:[#allocation37_spill] sm:$0xff] %v10927_v29  ;;  %v2634_v57 = vsel %vm13315_vm1, %v10927_v29, %v2633_v18 }
0x12fc   :  { %13355 = vst [vmem:[#allocation35_spill] sm:$0xff] %v10916_v45  ;;  %v2622_v33 = vrot.slane %v10916_v45, 5 }
0x12fd   :  { %v2454_v53 = vpop.permute.xlu0 %2453 }
0x12fe   :  { %v10935_v41 = vmul.f32 %v10857_v0, %v2454_v53  ;;  %v2623_v20 = vsel %vm13315_vm1, %v2622_v33, %v2621_v44  ;;  %v2632_v0 = vsel %vm1866_vm9, %v2631_v50, %v2630_v48 }
0x12ff   :  { %2626 = vrot.lane.b32.xlu1 %v2623_v20, %s9672_s10 }
0x1300   :  { %v2620_v32 = vsel %vm1866_vm9, %v2619_v46, %v10935_v41 }
0x1301   :  { %2624 = vrot.lane.b32.xlu0 %v2620_v32, %s9672_s10 }
0x1303   :  { %2637 = vrot.lane.b32.xlu1 %v2634_v57, %s9671_s9 }
0x1305   :  { %2635 = vrot.lane.b32.xlu0 %v2632_v0, %s9671_s9 }
0x1371   :  { %v2627_v33 = vpop.permute.xlu1 %2626 }
0x1373   :  { %v2625_v60 = vpop.permute.xlu0 %2624 }
0x1375   :  { %v2638_v2 = vpop.permute.xlu1 %2637 }
0x1376   :  { %v2642_v16 = vsel %vm13312_vm4, %v2627_v33, %v2638_v2 }
0x1377   :  { %v2636_v44 = vpop.permute.xlu0 %2635  ;;  %v2647_v46 = vrot.slane %v2642_v16, 6 }
0x1378   :  { %v2641_v53 = vsel %vm13312_vm4, %v2625_v60, %v2636_v44 }
0x1379   :  { %v2646_v18 = vrot.slane %v2641_v53, 6 }
0x137b   :  { %v2648_v20 = vsel %vm13318_vm11, %v2646_v18, %v2647_v46 }
0x137c   :  { %8249 = vmatmul.mubr.msk.f32.vlgmr.msra.gmra.mxu1 %vm13321_vm5, %v2648_v20 }
0x137d   :  { %8263 = vmatpush3.msra.mxu1 %v10746_v5  ;;  %8270 = vmatprep.mubr.msk.f32.mxu1 %vm13316_vm0, %v13340_v9 }
0x137e   :  { %8264 = vmatprep.subr.mxu1 %v13340_v9 }
0x137f   :  { %8265 = vmatpush3.msra.mxu1 %v10755_v34 }
0x1380   :  { %8266 = vmatprep.subr.mxu1 %v13340_v9 }
0x1381   :  { %8267 = vmatpush3.msra.mxu1 %v10762_v15 }
0x1382   :  { %8268 = vmatprep.subr.mxu1 %v13340_v9 }
0x1383   :  { %8269 = vmatpush3.msra.mxu1 %v10769_v25 }
0x1384   :  { %8284 = vmatprep.subr.mxu1 %v13340_v9 }
0x143c   :  { %v2717_v48 = vpop.f32.mrf.mxu1 }
0x143d   :  { %v2723_v32 = vrot.slane %v2717_v48, 2  ;;  %v2724_v0 = vrot.slane %v2717_v48, 3  ;;  %v2735_v33 = vadd.f32 %v10782_v13, %v2717_v48  ;;  %v2725_v2 = vrot.slane %v2717_v48, 4 }
0x143e   :  { %v8250_v57 = vpop.f32.mrf.mxu1  ;;  %v2722_v53 = vrot.slane %v2717_v48, 1 }
0x143f   :  { %v2731_v50 = vadd.f32 %v10800_v14, %v2723_v32  ;;  %v2737_v60 = vadd.f32 %v10794_v55, %v2723_v32  ;;  %v2732_v16 = vadd.f32 %v10776_v39, %v2724_v0  ;;  %v2738_v46 = vadd.f32 %v10806_v51, %v2724_v0 }
0x1440   :  { %v2733_v18 = vadd.f32 %v10812_v26, %v2725_v2  ;;  %v2736_v20 = vadd.f32 %v10788_v22, %v2722_v53  ;;  %v2730_v57 = vadd.f32 %v10819_v62, %v2722_v53 }
0x1441   :  { %8991 = vtanh.f32 %v2731_v50  ;;  %v7811_v29 = vmul.f32 -1.442695, %v2731_v50  ;;  %v7816_v28 = vmul.f32 -1.442695, %v2737_v60 }
0x1442   :  { %8993 = vtanh.f32 %v2735_v33  ;;  %v7815_v63 = vmul.f32 -1.442695, %v2736_v20 }
0x1443   :  { %8995 = vtanh.f32 %v2737_v60 }
0x1444   :  { %8997 = vtanh.f32 %v2732_v16 }
0x1445   :  { %8999 = vtanh.f32 %v2738_v46 }
0x1446   :  { %9001 = vtanh.f32 %v2733_v18 }
0x1447   :  { %9003 = vtanh.f32 %v2736_v20 }
0x1448   :  { %9005 = vtanh.f32 %v2730_v57 }
0x1449   :  { %9007 = vpow2.f32 %v7811_v29 }
0x144e   :  { %v8992_v44 = vpop.eup %8991 }
0x144f   :  { %2789 = vrot.lane.b32.xlu0 %v8992_v44, %s9669_s29  ;;  %v8994_v32 = vpop.eup %8993 }
0x1450   :  { %2895 = vrot.lane.b32.xlu1 %v8994_v32, %s9669_s29  ;;  %v8996_v48 = vpop.eup %8995  ;;  %v7814_v32 = vmul.f32 -1.442695, %v2735_v33 }
0x1451   :  { %v8998_v0 = vpop.eup %8997 }
0x1452   :  { %v9000_v44 = vpop.eup %8999  ;;  %9009 = vpow2.f32 %v7814_v32 }
0x1453   :  { %2899 = vrot.lane.b32.xlu0 %v8996_v48, %s9669_s29  ;;  %v9002_v2 = vpop.eup %9001  ;;  %v7812_v48 = vmul.f32 -1.442695, %v2732_v16  ;;  %9011 = vpow2.f32 %v7816_v28 }
0x1454   :  { %2791 = vrot.lane.b32.xlu1 %v8998_v0, %s9669_s29  ;;  %v9004_v45 = vpop.eup %9003  ;;  %v7817_v0 = vmul.f32 -1.442695, %v2738_v46 }
0x1455   :  { %v9006_v53 = vpop.eup %9005  ;;  %9013 = vpow2.f32 %v7812_v48 }
0x1456   :  { %v9008_v12 = vpop.eup %9007  ;;  %9015 = vpow2.f32 %v7817_v0 }
0x1457   :  { %2901 = vrot.lane.b32.xlu0 %v9000_v44, %s9669_s29  ;;  %v7813_v44 = vmul.f32 -1.442695, %v2733_v18  ;;  %v2752_v11 = vadd.f32 1.0, %v9008_v12 }
0x1458   :  { %2793 = vrot.lane.b32.xlu1 %v9002_v2, %s9669_s29  ;;  %v7810_v2 = vmul.f32 -1.442695, %v2730_v57 }
0x1459   :  { %9017 = vpow2.f32 %v7813_v44 }
0x145a   :  { %9019 = vrcp.f32 %v2752_v11 }
0x145b   :  { %2897 = vrot.lane.b32.xlu0 %v9004_v45, %s9669_s29  ;;  %9021 = vpow2.f32 %v7815_v63 }
0x145c   :  { %2787 = vrot.lane.b32.xlu1 %v9006_v53, %s9669_s29  ;;  %9023 = vpow2.f32 %v7810_v2 }
0x145f   :  { %v9010_v45 = vpop.eup %9009 }
0x1460   :  { %v9012_v50 = vpop.eup %9011  ;;  %v2859_v29 = vadd.f32 1.0, %v9010_v45 }
0x1461   :  { %v2861_v60 = vadd.f32 1.0, %v9012_v50 }
0x1462   :  { %v9014_v33 = vpop.eup %9013  ;;  %9025 = vrcp.f32 %v2859_v29 }
0x1463   :  { %v9016_v16 = vpop.eup %9015  ;;  %v2753_v53 = vadd.f32 1.0, %v9014_v33  ;;  %9027 = vrcp.f32 %v2861_v60 }
0x1464   :  { %v2862_v18 = vadd.f32 1.0, %v9016_v16 }
0x1465   :  { %9029 = vrcp.f32 %v2753_v53 }
0x1466   :  { %v9018_v28 = vpop.eup %9017  ;;  %9031 = vrcp.f32 %v2862_v18 }
0x1467   :  { %v10979_v46 = vpop.eup %9019  ;;  %v2754_v11 = vadd.f32 1.0, %v9018_v28 }
0x1468   :  { %v9022_v20 = vpop.eup %9021 }
0x1469   :  { %v9024_v63 = vpop.eup %9023  ;;  %v2860_v32 = vadd.f32 1.0, %v9022_v20  ;;  %9033 = vrcp.f32 %v2754_v11 }
0x146a   :  { %v2751_v48 = vadd.f32 1.0, %v9024_v63 }
0x146b   :  { %9035 = vrcp.f32 %v2860_v32 }
0x146c   :  { %9037 = vrcp.f32 %v2751_v48 }
0x146f   :  { %v10983_v0 = vpop.eup %9025 }
0x1470   :  { %v10986_v45 = vpop.eup %9027 }
0x1472   :  { %v10990_v33 = vpop.eup %9029 }
0x1473   :  { %v10994_v53 = vpop.eup %9031 }
0x14c1   :  { %v2790_v12 = vpop.permute.xlu0 %2789 }
0x14c2   :  { %v2800_v57 = vmul.f32 %v10979_v46, %v2790_v12  ;;  %v2896_v44 = vpop.permute.xlu1 %2895  ;;  %v10998_v12 = vpop.eup %9033 }
0x14c3   :  { %v2907_v2 = vmul.f32 %v10983_v0, %v2896_v44  ;;  %v11002_v11 = vpop.eup %9035 }
0x14c4   :  { %2809 = vrot.lane.b32.xlu0 %v2800_v57, %s9670_s30  ;;  %v11006_v48 = vpop.eup %9037 }
0x14c5   :  { %v2900_v50 = vpop.permute.xlu0 %2899  ;;  %2915 = vrot.lane.b32.xlu1 %v2907_v2, %s9670_s30 }
0x14c6   :  { %v2909_v29 = vmul.f32 %v10986_v45, %v2900_v50  ;;  %v2792_v60 = vpop.permute.xlu1 %2791  ;;  %v2772_v50 = vrot.slane %v10884_v36, 7 }
0x14c7   :  { %v2801_v16 = vmul.f32 %v10990_v33, %v2792_v60 }
0x14c8   :  { %2919 = vrot.lane.b32.xlu0 %v2909_v29, %s9670_s30  ;;  %v2780_v29 = vmul.f32 %v10979_v46, %v2772_v50 }
0x14c9   :  { %v2902_v28 = vpop.permute.xlu0 %2901  ;;  %2811 = vrot.lane.b32.xlu1 %v2801_v16, %s9670_s30 }
0x14ca   :  { %v2910_v18 = vmul.f32 %v10994_v53, %v2902_v28  ;;  %v2794_v20 = vpop.permute.xlu1 %2793  ;;  %v2879_v28 = vrot.slane %v10871_v40, 1 }
0x14cb   :  { %v2802_v57 = vmul.f32 %v10998_v12, %v2794_v20 }
0x14cc   :  { %2921 = vrot.lane.b32.xlu0 %v2910_v18, %s9670_s30  ;;  %v2881_v18 = vrot.slane %v10881_v54, 1  ;;  %v2887_v20 = vmul.f32 %v10983_v0, %v2879_v28 }
0x14cd   :  { %v2898_v63 = vpop.permute.xlu0 %2897  ;;  %2813 = vrot.lane.b32.xlu1 %v2802_v57, %s9670_s30 }
0x14ce   :  { %v2908_v32 = vmul.f32 %v11002_v11, %v2898_v63  ;;  %v2788_v44 = vpop.permute.xlu1 %2787  ;;  %v2773_v63 = vrot.slane %v10863_v47, 7  ;;  %v2889_v36 = vmul.f32 %v10986_v45, %v2881_v18 }
0x14cf   :  { %v2799_v2 = vmul.f32 %v11006_v48, %v2788_v44 }
0x14d0   :  { %2917 = vrot.lane.b32.xlu0 %v2908_v32, %s9670_s30  ;;  %v2781_v50 = vmul.f32 %v10990_v33, %v2773_v63 }
0x14d1   :  { %2807 = vrot.lane.b32.xlu1 %v2799_v2, %s9670_s30  ;;  %v2882_v2 = vrot.slane %v10890_v43, 1  ;;  %v2880_v43 = vrot.slane %v10874_v17, 1 }
0x14d3   :  { %v2890_v47 = vmul.f32 %v10994_v53, %v2882_v2 }
0x1536   :  { %v2810_v60 = vpop.permute.xlu0 %2809 }
0x1537   :  { %v11013_v16 = vadd.f32 %v2810_v60, %v2780_v29  ;;  %v2916_v57 = vpop.permute.xlu1 %2915  ;;  %v2774_v60 = vrot.slane %v10893_v58, 7  ;;  %v2771_v58 = vrot.slane %v10899_v31, 7 }
0x1538   :  { %v11020_v32 = vadd.f32 %v2916_v57, %v2887_v20 }
0x1539   :  { %9039 = vtanh.f32 %v11013_v16  ;;  %v2782_v20 = vmul.f32 %v10998_v12, %v2774_v60  ;;  %v2779_v17 = vmul.f32 %v11006_v48, %v2771_v58 }
0x153a   :  { %v2920_v44 = vpop.permute.xlu0 %2919  ;;  %9041 = vtanh.f32 %v11020_v32 }
0x153b   :  { %v11026_v29 = vadd.f32 %v2920_v44, %v2889_v36  ;;  %v2812_v40 = vpop.permute.xlu1 %2811  ;;  %v2888_v44 = vmul.f32 %v11002_v11, %v2880_v43 }
0x153c   :  { %v11029_v28 = vadd.f32 %v2812_v40, %v2781_v50 }
0x153d   :  { %9043 = vtanh.f32 %v11026_v29 }
0x153e   :  { %v2922_v18 = vpop.permute.xlu0 %2921  ;;  %9045 = vtanh.f32 %v11029_v28 }
0x153f   :  { %v11037_v57 = vadd.f32 %v2922_v18, %v2890_v47  ;;  %v2814_v63 = vpop.permute.xlu1 %2813 }
0x1540   :  { %v11040_v36 = vadd.f32 %v2814_v63, %v2782_v20 }
0x1541   :  { %9047 = vtanh.f32 %v11037_v57 }
0x1542   :  { %v2918_v2 = vpop.permute.xlu0 %2917  ;;  %9049 = vtanh.f32 %v11040_v36 }
0x1543   :  { %v11046_v50 = vadd.f32 %v2918_v2, %v2888_v44  ;;  %v2808_v40 = vpop.permute.xlu1 %2807 }
0x1545   :  { %9051 = vtanh.f32 %v11046_v50 }
0x1546   :  { %v9040_v54 = vpop.eup %9039 }
0x1547   :  { %2833 = vrot.lane.b32.xlu0 %v9040_v54, %s9671_s9  ;;  %v11048_v54 = vadd.f32 %v2808_v40, %v2779_v17  ;;  %v9042_v31 = vpop.eup %9041 }
0x1548   :  { %2939 = vrot.lane.b32.xlu1 %v9042_v31, %s9671_s9 }
0x1549   :  { %9053 = vtanh.f32 %v11048_v54 }
0x154a   :  { %v9044_v60 = vpop.eup %9043 }
0x154b   :  { %2943 = vrot.lane.b32.xlu0 %v9044_v60, %s9671_s9  ;;  %v9046_v47 = vpop.eup %9045 }
0x154c   :  { %2835 = vrot.lane.b32.xlu1 %v9046_v47, %s9671_s9 }
0x154e   :  { %v9048_v18 = vpop.eup %9047 }
0x154f   :  { %2945 = vrot.lane.b32.xlu0 %v9048_v18, %s9671_s9  ;;  %v9050_v43 = vpop.eup %9049 }
0x1550   :  { %2837 = vrot.lane.b32.xlu1 %v9050_v43, %s9671_s9 }
0x1552   :  { %v9052_v20 = vpop.eup %9051 }
0x1553   :  { %2941 = vrot.lane.b32.xlu0 %v9052_v20, %s9671_s9 }
0x1556   :  { %v9054_v63 = vpop.eup %9053 }
0x1557   :  { %2831 = vrot.lane.b32.xlu1 %v9054_v63, %s9671_s9 }
0x15b9   :  { %v2834_v58 = vpop.permute.xlu0 %2833 }
0x15ba   :  { %v2940_v44 = vpop.permute.xlu1 %2939  ;;  %v11063_v31 = vmul.f32 %v10979_v46, %v2834_v58 }
0x15bc   :  { %13360 = vst [vmem:[#allocation40_spill] sm:$0xff] %v11063_v31  ;;  %v2997_v19 = vrot.slane %v11063_v31, 7 }
0x15bd   :  { %v2944_v2 = vpop.permute.xlu0 %2943 }
0x15be   :  { %v2836_v17 = vpop.permute.xlu1 %2835  ;;  %v11066_v47 = vmul.f32 %v10986_v45, %v2944_v2  ;;  %v11082_v45 = vmul.f32 %v10983_v0, %v2940_v44 }
0x15bf   :  { %v11060_v40 = vmul.f32 %v10990_v33, %v2836_v17 }
0x15c0   :  { %13361 = vst [vmem:[#allocation41_spill] sm:$0xff] %v11066_v47  ;;  %v3006_v17 = vrot.slane %v11066_v47, 7  ;;  %v3005_v0 = vrot.slane %v11082_v45, 1 }
0x15c1   :  { %13359 = vst [vmem:[#allocation39_spill] sm:$0xff] %v11060_v40  ;;  %v2946_v60 = vpop.permute.xlu0 %2945  ;;  %v2998_v18 = vrot.slane %v11060_v40, 6 }
0x15c2   :  { %v2838_v43 = vpop.permute.xlu1 %2837  ;;  %v11073_v63 = vmul.f32 %v10994_v53, %v2946_v60 }
0x15c3   :  { %v11070_v20 = vmul.f32 %v10998_v12, %v2838_v43  ;;  %v2999_v12 = vsel %vm13315_vm1, %v2998_v18, %v2997_v19 }
0x15c4   :  { %13363 = vst [vmem:[#allocation43_spill] sm:$0xff] %v11073_v63  ;;  %v3008_v43 = vrot.slane %v11073_v63, 6 }
0x15c5   :  { %13362 = vst [vmem:[#allocation42_spill] sm:$0xff] %v11070_v20  ;;  %v2942_v33 = vpop.permute.xlu0 %2941  ;;  %v3000_v46 = vrot.slane %v11070_v20, 5 }
0x15c6   :  { %v11079_v58 = vmul.f32 %v11002_v11, %v2942_v33 }
0x15c7   :  { %v3001_v60 = vsel %vm13314_vm2, %v3000_v46, %v2999_v12 }
0x15c8   :  { %13364 = vst [vmem:[#allocation44_spill] sm:$0xff] %v11079_v58  ;;  %v3007_v40 = vsel %vm13315_vm1, %v3006_v17, %v11079_v58  ;;  %3002 = vrot.lane.b32.xlu1 %v3001_v60, %s9672_s10 }
0x15c9   :  { %v2832_v2 = vpop.permute.xlu1 %2831  ;;  %v3009_v11 = vsel %vm13314_vm2, %v3008_v43, %v3007_v40 }
0x15ca   :  { %v2843_v53 = vmul.f32 %v11006_v48, %v2832_v2 }
0x15cc   :  { %2959 = vrot.lane.b32.xlu0 %v2843_v53, %s9672_s10  ;;  %3012 = vrot.lane.b32.xlu1 %v3009_v11, %s9671_s9 }
0x15d0   :  { %3010 = vrot.lane.b32.xlu0 %v3005_v0, %s9671_s9 }
0x163a   :  { %v3003_v19 = vpop.permute.xlu1 %3002 }
0x163e   :  { %v2960_v48 = vpop.permute.xlu0 %2959  ;;  %v3013_v44 = vpop.permute.xlu1 %3012 }
0x163f   :  { %2972 = vst.msk [vmem:[#allocation2] sm:$0x80] %vm2971_vm12, %v2960_v48  ;;  %v3017_v33 = vsel %vm13312_vm4, %v3003_v19, %v3013_v44 }
0x1640   :  { %v3022_v46 = vrot.slane %v3017_v33, 7 }
0x1642   :  { %v3011_v18 = vpop.permute.xlu0 %3010 }
0x1643   :  { %v3016_v17 = vsel %vm13312_vm4, %v2960_v48, %v3011_v18 }
0x1644   :  { %v3021_v40 = vrot.slane %v3016_v17, 7 }
0x1646   :  { %v3023_v2 = vsel %vm13319_vm13, %v3021_v40, %v3022_v46  ;;  %vm2614_vm13 = vcmask 255105  }
0x1647   :  { %8260 = vmatmul.mubr.msk.f32.vlgmr.msra.gmra.mxu0 %vm13321_vm5, %v3023_v2 }
0x1648   :  { %8274 = vmatpush3.msra.mxu0 %v10746_v5  ;;  %8281 = vmatprep.mubr.msk.f32.mxu0 %vm13316_vm0, %v13340_v9 }
0x1649   :  { %8275 = vmatprep.subr.mxu0 %v13340_v9 }
0x164a   :  { %8276 = vmatpush3.msra.mxu0 %v10755_v34 }
0x164b   :  { %8277 = vmatprep.subr.mxu0 %v13340_v9 }
0x164c   :  { %8278 = vmatpush3.msra.mxu0 %v10762_v15 }
0x164d   :  { %8279 = vmatprep.subr.mxu0 %v13340_v9 }
0x164e   :  { %8280 = vmatpush3.msra.mxu0 %v10769_v25 }
0x164f   :  { %8295 = vmatprep.subr.mxu0 %v13340_v9 }
0x1707   :  { %v3092_v12 = vpop.f32.mrf.mxu0 }
0x1708   :  { %v3104_v5 = vadd.f32 %v10782_v13, %v3092_v12  ;;  %v3097_v43 = vrot.slane %v3092_v12, 1  ;;  %v3098_v11 = vrot.slane %v3092_v12, 2  ;;  %v3099_v0 = vrot.slane %v3092_v12, 3 }
0x1709   :  { %v8261_v53 = vpop.f32.mrf.mxu0  ;;  %v3108_v25 = vrot.slane %v3092_v12, 4 }
0x170a   :  { %9055 = vtanh.f32 %v3104_v5  ;;  %v3105_v60 = vadd.f32 %v10788_v22, %v3097_v43  ;;  %v3110_v34 = vadd.f32 %v10819_v62, %v3097_v43  ;;  %v3111_v15 = vadd.f32 %v10800_v14, %v3098_v11 }
0x170b   :  { %v3106_v19 = vadd.f32 %v10794_v55, %v3098_v11  ;;  %v3112_v44 = vadd.f32 %v10776_v39, %v3099_v0  ;;  %v3113_v13 = vadd.f32 %v10812_v26, %v3108_v25  ;;  %v3107_v22 = vadd.f32 %v10806_v51, %v3099_v0 }
0x170c   :  { %9057 = vtanh.f32 %v3105_v60  ;;  %v7819_v33 = vmul.f32 -1.442695, %v3104_v5  ;;  %v7820_v17 = vmul.f32 -1.442695, %v3105_v60  ;;  %v7823_v46 = vmul.f32 -1.442695, %v3110_v34 }
0x170d   :  { %9059 = vtanh.f32 %v3110_v34  ;;  %v7824_v40 = vmul.f32 -1.442695, %v3111_v15  ;;  %v7821_v2 = vmul.f32 -1.442695, %v3106_v19  ;;  %v7825_v43 = vmul.f32 -1.442695, %v3112_v44 }
0x170e   :  { %9061 = vtanh.f32 %v3111_v15  ;;  %v7826_v53 = vmul.f32 -1.442695, %v3113_v13  ;;  %v7822_v0 = vmul.f32 -1.442695, %v3107_v22 }
0x170f   :  { %9063 = vtanh.f32 %v3106_v19 }
0x1710   :  { %9065 = vtanh.f32 %v3112_v44 }
0x1711   :  { %9067 = vtanh.f32 %v3113_v13 }
0x1712   :  { %9069 = vtanh.f32 %v3107_v22 }
0x1713   :  { %9071 = vpow2.f32 %v7819_v33 }
0x1714   :  { %9073 = vpow2.f32 %v7820_v17 }
0x1715   :  { %9075 = vpow2.f32 %v7823_v46 }
0x1716   :  { %9077 = vpow2.f32 %v7824_v40 }
0x1717   :  { %v9056_v48 = vpop.eup %9055  ;;  %9079 = vpow2.f32 %v7821_v2 }
0x1718   :  { %3162 = vrot.lane.b32.xlu1 %v9056_v48, %s9669_s29  ;;  %9081 = vpow2.f32 %v7825_v43 }
0x1719   :  { %v9058_v62 = vpop.eup %9057  ;;  %9083 = vpow2.f32 %v7826_v53 }
0x171a   :  { %3164 = vrot.lane.b32.xlu0 %v9058_v62, %s9669_s29  ;;  %v9060_v55 = vpop.eup %9059 }
0x171b   :  { %v9062_v14 = vpop.eup %9061 }
0x171c   :  { %3270 = vrot.lane.b32.xlu1 %v9060_v55, %s9669_s29  ;;  %v9064_v39 = vpop.eup %9063 }
0x171d   :  { %v9066_v18 = vpop.eup %9065 }
0x171e   :  { %3272 = vrot.lane.b32.xlu0 %v9062_v14, %s9669_s29  ;;  %v9068_v26 = vpop.eup %9067 }
0x171f   :  { %v9070_v51 = vpop.eup %9069 }
0x1720   :  { %3166 = vrot.lane.b32.xlu1 %v9064_v39, %s9669_s29  ;;  %v9072_v12 = vpop.eup %9071 }
0x1721   :  { %v3126_v11 = vadd.f32 1.0, %v9072_v12  ;;  %v9074_v25 = vpop.eup %9073 }
0x1722   :  { %3274 = vrot.lane.b32.xlu0 %v9066_v18, %s9669_s29  ;;  %v3127_v5 = vadd.f32 1.0, %v9074_v25  ;;  %v9076_v48 = vpop.eup %9075 }
0x1723   :  { %9085 = vrcp.f32 %v3126_v11  ;;  %v9078_v60 = vpop.eup %9077  ;;  %v3234_v34 = vadd.f32 1.0, %v9076_v48 }
0x1724   :  { %3276 = vrot.lane.b32.xlu1 %v9068_v26, %s9669_s29  ;;  %9087 = vpow2.f32 %v7822_v0  ;;  %v9080_v15 = vpop.eup %9079  ;;  %v3235_v19 = vadd.f32 1.0, %v9078_v60 }
0x1725   :  { %9089 = vrcp.f32 %v3127_v5  ;;  %v9082_v62 = vpop.eup %9081  ;;  %v3128_v14 = vadd.f32 1.0, %v9080_v15 }
0x1726   :  { %3168 = vrot.lane.b32.xlu0 %v9070_v51, %s9669_s29  ;;  %v9084_v55 = vpop.eup %9083  ;;  %9091 = vrcp.f32 %v3234_v34  ;;  %v3236_v13 = vadd.f32 1.0, %v9082_v62 }
0x1727   :  { %9093 = vrcp.f32 %v3235_v19  ;;  %v3237_v26 = vadd.f32 1.0, %v9084_v55 }
0x1728   :  { %9095 = vrcp.f32 %v3128_v14 }
0x1729   :  { %9097 = vrcp.f32 %v3236_v13 }
0x172a   :  { %9099 = vrcp.f32 %v3237_v26 }
0x1730   :  { %v11127_v44 = vpop.eup %9085 }
0x1731   :  { %v9088_v39 = vpop.eup %9087 }
0x1732   :  { %v3129_v51 = vadd.f32 1.0, %v9088_v39  ;;  %v11131_v33 = vpop.eup %9089 }
0x1733   :  { %v11135_v40 = vpop.eup %9091 }
0x1734   :  { %9101 = vrcp.f32 %v3129_v51  ;;  %v11137_v12 = vpop.eup %9093  ;;  %v3147_v51 = vrot.slane %v11013_v16, 7  ;;  %v3148_v16 = vrot.slane %v11029_v28, 7 }
0x1735   :  { %v11142_v0 = vpop.eup %9095 }
0x1736   :  { %v11145_v5 = vpop.eup %9097 }
0x1737   :  { %v11150_v15 = vpop.eup %9099 }
0x1741   :  { %v11153_v62 = vpop.eup %9101 }
0x178a   :  { %v3163_v22 = vpop.permute.xlu1 %3162 }
0x178b   :  { %v3174_v18 = vmul.f32 %v11127_v44, %v3163_v22  ;;  %v3146_v22 = vrot.slane %v11048_v54, 7  ;;  %v3255_v54 = vrot.slane %v11046_v50, 1 }
0x178c   :  { %v3165_v17 = vpop.permute.xlu0 %3164 }
0x178d   :  { %3182 = vrot.lane.b32.xlu1 %v3174_v18, %s9670_s30  ;;  %v3175_v46 = vmul.f32 %v11131_v33, %v3165_v17  ;;  %v3154_v39 = vmul.f32 %v11127_v44, %v3146_v22  ;;  %v3155_v17 = vmul.f32 %v11131_v33, %v3147_v51 }
0x178e   :  { %v3271_v2 = vpop.permute.xlu1 %3270 }
0x178f   :  { %3184 = vrot.lane.b32.xlu0 %v3175_v46, %s9670_s30  ;;  %v3282_v43 = vmul.f32 %v11135_v40, %v3271_v2 }
0x1790   :  { %v3273_v53 = vpop.permute.xlu0 %3272 }
0x1791   :  { %v3283_v11 = vmul.f32 %v11137_v12, %v3273_v53  ;;  %3290 = vrot.lane.b32.xlu1 %v3282_v43, %s9670_s30  ;;  %v3254_v43 = vrot.slane %v11020_v32, 1  ;;  %v3156_v32 = vmul.f32 %v11142_v0, %v3148_v16 }
0x1792   :  { %v3167_v25 = vpop.permute.xlu1 %3166 }
0x1793   :  { %3292 = vrot.lane.b32.xlu0 %v3283_v11, %s9670_s30  ;;  %v3176_v48 = vmul.f32 %v11142_v0, %v3167_v25  ;;  %v3262_v53 = vmul.f32 %v11135_v40, %v3254_v43  ;;  %v3263_v25 = vmul.f32 %v11137_v12, %v3255_v54 }
0x1794   :  { %v3275_v60 = vpop.permute.xlu0 %3274 }
0x1795   :  { %v3284_v34 = vmul.f32 %v11145_v5, %v3275_v60  ;;  %3186 = vrot.lane.b32.xlu1 %v3176_v48, %s9670_s30 }
0x1796   :  { %v3277_v19 = vpop.permute.xlu1 %3276 }
0x1797   :  { %3294 = vrot.lane.b32.xlu0 %v3284_v34, %s9670_s30  ;;  %v3285_v55 = vmul.f32 %v11150_v15, %v3277_v19  ;;  %v3256_v34 = vrot.slane %v11026_v29, 1  ;;  %v3149_v29 = vrot.slane %v11040_v36, 7 }
0x1798   :  { %v3169_v14 = vpop.permute.xlu0 %3168 }
0x1799   :  { %v3177_v13 = vmul.f32 %v11153_v62, %v3169_v14  ;;  %3296 = vrot.lane.b32.xlu1 %v3285_v55, %s9670_s30  ;;  %v3264_v14 = vmul.f32 %v11145_v5, %v3256_v34 }
0x179b   :  { %3188 = vrot.lane.b32.xlu0 %v3177_v13, %s9670_s30  ;;  %v3257_v13 = vrot.slane %v11037_v57, 1 }
0x17ff   :  { %v3183_v18 = vpop.permute.xlu1 %3182 }
0x1800   :  { %v11161_v26 = vadd.f32 %v3183_v18, %v3154_v39  ;;  %v3265_v18 = vmul.f32 %v11150_v15, %v3257_v13 }
0x1801   :  { %v3185_v46 = vpop.permute.xlu0 %3184 }
0x1802   :  { %9103 = vtanh.f32 %v11161_v26  ;;  %v11166_v2 = vadd.f32 %v3185_v46, %v3155_v17  ;;  %v3157_v17 = vmul.f32 %v11153_v62, %v3149_v29 }
0x1803   :  { %v3291_v11 = vpop.permute.xlu1 %3290 }
0x1804   :  { %9105 = vtanh.f32 %v11166_v2  ;;  %v11174_v48 = vadd.f32 %v3291_v11, %v3262_v53 }
0x1805   :  { %v3293_v60 = vpop.permute.xlu0 %3292 }
0x1806   :  { %v11177_v19 = vadd.f32 %v3293_v60, %v3263_v25  ;;  %9107 = vtanh.f32 %v11174_v48 }
0x1807   :  { %v3187_v50 = vpop.permute.xlu1 %3186 }
0x1808   :  { %9109 = vtanh.f32 %v11177_v19  ;;  %v11184_v28 = vadd.f32 %v3187_v50, %v3156_v32 }
0x1809   :  { %v3295_v22 = vpop.permute.xlu0 %3294 }
0x180a   :  { %v11188_v39 = vadd.f32 %v3295_v22, %v3264_v14  ;;  %9111 = vtanh.f32 %v11184_v28 }
0x180b   :  { %v3297_v51 = vpop.permute.xlu1 %3296 }
0x180c   :  { %9113 = vtanh.f32 %v11188_v39  ;;  %v11194_v57 = vadd.f32 %v3297_v51, %v3265_v18 }
0x180d   :  { %v3189_v43 = vpop.permute.xlu0 %3188 }
0x180e   :  { %v11196_v54 = vadd.f32 %v3189_v43, %v3157_v17  ;;  %9115 = vtanh.f32 %v11194_v57 }
0x180f   :  { %v9104_v55 = vpop.eup %9103 }
0x1810   :  { %3206 = vrot.lane.b32.xlu1 %v9104_v55, %s9671_s9  ;;  %9117 = vtanh.f32 %v11196_v54 }
0x1811   :  { %v9106_v46 = vpop.eup %9105 }
0x1812   :  { %3208 = vrot.lane.b32.xlu0 %v9106_v46, %s9671_s9 }
0x1813   :  { %v9108_v36 = vpop.eup %9107 }
0x1814   :  { %3314 = vrot.lane.b32.xlu1 %v9108_v36, %s9671_s9 }
0x1815   :  { %v9110_v53 = vpop.eup %9109 }
0x1816   :  { %3316 = vrot.lane.b32.xlu0 %v9110_v53, %s9671_s9 }
0x1817   :  { %v9112_v11 = vpop.eup %9111 }
0x1818   :  { %3210 = vrot.lane.b32.xlu1 %v9112_v11, %s9671_s9 }
0x1819   :  { %v9114_v25 = vpop.eup %9113 }
0x181a   :  { %3318 = vrot.lane.b32.xlu0 %v9114_v25, %s9671_s9 }
0x181b   :  { %v9116_v16 = vpop.eup %9115 }
0x181c   :  { %3320 = vrot.lane.b32.xlu1 %v9116_v16, %s9671_s9 }
0x181d   :  { %v9118_v60 = vpop.eup %9117 }
0x181e   :  { %3212 = vrot.lane.b32.xlu0 %v9118_v60, %s9671_s9 }
0x1882   :  { %v3207_v34 = vpop.permute.xlu1 %3206 }
0x1883   :  { %v11232_v25 = vmul.f32 %v11127_v44, %v3207_v34 }
0x1884   :  { %v3209_v32 = vpop.permute.xlu0 %3208 }
0x1885   :  { %v11214_v22 = vmul.f32 %v11131_v33, %v3209_v32  ;;  %13371 = vst [vmem:[#allocation51_spill] sm:$0xff] %v11232_v25 }
0x1886   :  { %v3315_v55 = vpop.permute.xlu1 %3314 }
0x1887   :  { %v11211_v13 = vmul.f32 %v11135_v40, %v3315_v55  ;;  %13367 = vst [vmem:[#allocation47_spill] sm:$0xff] %v11214_v22 }
0x1888   :  { %v3317_v50 = vpop.permute.xlu0 %3316 }
0x1889   :  { %v11208_v14 = vmul.f32 %v11137_v12, %v3317_v50  ;;  %13366 = vst [vmem:[#allocation46_spill] sm:$0xff] %v11211_v13  ;;  %v3379_v43 = vrot.slane %v11211_v13, 7  ;;  %v3370_v12 = vrot.slane %v11214_v22, 7 }
0x188a   :  { %v3211_v29 = vpop.permute.xlu1 %3210 }
0x188b   :  { %13365 = vst [vmem:[#allocation45_spill] sm:$0xff] %v11208_v14  ;;  %v3380_v18 = vrot.slane %v11208_v14, 6  ;;  %v11218_v51 = vmul.f32 %v11142_v0, %v3211_v29  ;;  %v3371_v55 = vsel %vm13315_vm1, %v3370_v12, %v11232_v25  ;;  %v11275_v12 = vld [vmem:[%s13221_s1] sm:$0xff] }
0x188c   :  { %v3319_v17 = vpop.permute.xlu0 %3318 }
0x188d   :  { %13368 = vst [vmem:[#allocation48_spill] sm:$0xff] %v11218_v51  ;;  %v11221_v46 = vmul.f32 %v11145_v5, %v3319_v17  ;;  %v3372_v33 = vrot.slane %v11218_v51, 6  ;;  %v3381_v0 = vsel %vm13315_vm1, %v3380_v18, %v3379_v43  ;;  %v11252_v18 = vld [vmem:[%s13221_s1 + $0x18] sm:$0xff]  ;;  %v11261_v17 = vld [vmem:[%s13221_s1 + $0x10] sm:$0xff]  ;;  %v11268_v43 = vld [vmem:[%s13221_s1 + $0x8] sm:$0xff] }
0x188e   :  { %v3321_v36 = vpop.permute.xlu1 %3320 }
0x188f   :  { %13369 = vst [vmem:[#allocation49_spill] sm:$0xff] %v11221_v46  ;;  %v3382_v40 = vrot.slane %v11221_v46, 5  ;;  %v11228_v53 = vmul.f32 %v11150_v15, %v3321_v36  ;;  %v3373_v50 = vsel %vm13314_vm2, %v3372_v33, %v3371_v55  ;;  %v11282_v33 = vld [vmem:[%s13222_s0 + $0x18] sm:$0xff] }
0x1890   :  { %v3213_v11 = vpop.permute.xlu0 %3212 }
0x1891   :  { %13370 = vst [vmem:[#allocation50_spill] sm:$0xff] %v11228_v53  ;;  %v11235_v5 = vmul.f32 %v11153_v62, %v3213_v11  ;;  %v3383_v16 = vsel %vm13314_vm2, %v3382_v40, %v3381_v0  ;;  %v3384_v60 = vrot.slane %v11228_v53, 4 }
0x1893   :  { %13372 = vst [vmem:[#allocation52_spill] sm:$0xff] %v11235_v5  ;;  %v3374_v32 = vrot.slane %v11235_v5, 5  ;;  %v3385_v15 = vsel %vm13313_vm3, %v3384_v60, %v3383_v16 }
0x1894   :  { %3386 = vrot.lane.b32.xlu1 %v3385_v15, %s9671_s9 }
0x1895   :  { %v3375_v44 = vsel %vm13313_vm3, %v3374_v32, %v3373_v50  ;;  %v11288_v32 = vld [vmem:[%s13222_s0] sm:$0xff]  ;;  %v11294_v50 = vld [vmem:[%s13222_s0 + $0x10] sm:$0xff] }
0x1896   :  { %3376 = vrot.lane.b32.xlu0 %v3375_v44, %s9672_s10 }
0x1906   :  { %v3387_v62 = vpop.permute.xlu1 %3386 }
0x1908   :  { %v3377_v34 = vpop.permute.xlu0 %3376 }
0x1909   :  { %v3389_v29 = vsel %vm13312_vm4, %v3377_v34, %v3387_v62  ;;  %v11300_v34 = vld [vmem:[%s13222_s0 + $0x28] sm:$0xff] }
0x190a   :  { %8271 = vmatmul.mubr.msk.f32.vlgmr.msra.gmra.mxu1 %vm13321_vm5, %v3389_v29 }
0x190b   :  { %8285 = vmatpush3.msra.mxu1 %v11252_v18  ;;  %8292 = vmatprep.mubr.msk.f32.mxu1 %vm13316_vm0, %v13340_v9 }
0x190c   :  { %8286 = vmatprep.subr.mxu1 %v13340_v9 }
0x190d   :  { %8287 = vmatpush3.msra.mxu1 %v11261_v17 }
0x190e   :  { %8288 = vmatprep.subr.mxu1 %v13340_v9 }
0x190f   :  { %8289 = vmatpush3.msra.mxu1 %v11268_v43 }
0x1910   :  { %8290 = vmatprep.subr.mxu1 %v13340_v9 }
0x1911   :  { %8291 = vmatpush3.msra.mxu1 %v11275_v12 }
0x1912   :  { %8306 = vmatprep.subr.mxu1 %v13340_v9 }
0x19ca   :  { %v3459_v40 = vpop.f32.mrf.mxu1 }
0x19cb   :  { %v3472_v11 = vadd.f32 %v11282_v33, %v3459_v40  ;;  %v3466_v0 = vrot.slane %v3459_v40, 2  ;;  %v3475_v16 = vrot.slane %v3459_v40, 3  ;;  %v3465_v60 = vrot.slane %v3459_v40, 1 }
0x19cc   :  { %v8272_v36 = vpop.f32.mrf.mxu1  ;;  %v3476_v15 = vrot.slane %v3459_v40, 4  ;;  %v3464_v62 = vrot.slane %v3459_v40, 7  ;;  %v3477_v53 = vrot.slane %v3459_v40, 5 }
0x19cd   :  { %9119 = vtanh.f32 %v3472_v11  ;;  %v3481_v55 = vadd.f32 %v11288_v32, %v3466_v0  ;;  %v3482_v44 = vadd.f32 %v11294_v50, %v3475_v16  ;;  %v3473_v29 = vadd.f32 %v11300_v34, %v3465_v60  ;;  %v11306_v36 = vld [vmem:[%s13222_s0 + $0x20] sm:$0xff]  ;;  %v11312_v16 = vld [vmem:[%s13222_s0 + $0x8] sm:$0xff]  ;;  %v11318_v60 = vld [vmem:[%s13222_s0 + $0x38] sm:$0xff] }
0x19ce   :  { %v3483_v5 = vadd.f32 %v11306_v36, %v3476_v15  ;;  %v3471_v20 = vadd.f32 %v11312_v16, %v3464_v62  ;;  %v3474_v63 = vadd.f32 %v11318_v60, %v3466_v0  ;;  %v11325_v15 = vld [vmem:[%s13222_s0 + $0x30] sm:$0xff]  ;;  %v7829_v14 = vmul.f32 -1.442695, %v3472_v11 }
0x19cf   :  { %9121 = vtanh.f32 %v3481_v55  ;;  %v3484_v62 = vadd.f32 %v11325_v15, %v3477_v53  ;;  %v7833_v13 = vmul.f32 -1.442695, %v3482_v44 }
0x19d0   :  { %9123 = vtanh.f32 %v3482_v44  ;;  %v7834_v58 = vmul.f32 -1.442695, %v3483_v5 }
0x19d1   :  { %9125 = vtanh.f32 %v3473_v29 }
0x19d2   :  { %9127 = vtanh.f32 %v3483_v5 }
0x19d3   :  { %9129 = vtanh.f32 %v3471_v20 }
0x19d4   :  { %9131 = vtanh.f32 %v3474_v63 }
0x19d5   :  { %9133 = vtanh.f32 %v3484_v62 }
0x19d6   :  { %9135 = vpow2.f32 %v7829_v14 }
0x19da   :  { %v9120_v51 = vpop.eup %9119 }
0x19db   :  { %3535 = vrot.lane.b32.xlu0 %v9120_v51, %s9669_s29 }
0x19dc   :  { %v9122_v40 = vpop.eup %9121 }
0x19dd   :  { %v9124_v46 = vpop.eup %9123  ;;  %3641 = vrot.lane.b32.xlu1 %v9122_v40, %s9669_s29  ;;  %v7832_v40 = vmul.f32 -1.442695, %v3481_v55 }
0x19de   :  { %v9126_v0 = vpop.eup %9125 }
0x19df   :  { %3643 = vrot.lane.b32.xlu0 %v9124_v46, %s9669_s29  ;;  %v9128_v47 = vpop.eup %9127  ;;  %v7830_v46 = vmul.f32 -1.442695, %v3473_v29  ;;  %9137 = vpow2.f32 %v7832_v40 }
0x19e0   :  { %v9130_v51 = vpop.eup %9129  ;;  %9139 = vpow2.f32 %v7833_v13 }
0x19e1   :  { %3537 = vrot.lane.b32.xlu1 %v9126_v0, %s9669_s29  ;;  %v9132_v22 = vpop.eup %9131  ;;  %v7828_v0 = vmul.f32 -1.442695, %v3471_v20  ;;  %9141 = vpow2.f32 %v7830_v46 }
0x19e2   :  { %v9134_v53 = vpop.eup %9133  ;;  %9143 = vpow2.f32 %v7834_v58 }
0x19e3   :  { %3645 = vrot.lane.b32.xlu0 %v9128_v47, %s9669_s29  ;;  %v7831_v47 = vmul.f32 -1.442695, %v3474_v63  ;;  %v9136_v25 = vpop.eup %9135  ;;  %9145 = vpow2.f32 %v7828_v0 }
0x19e5   :  { %3533 = vrot.lane.b32.xlu1 %v9130_v51, %s9669_s29  ;;  %v7835_v51 = vmul.f32 -1.442695, %v3484_v62  ;;  %9147 = vpow2.f32 %v7831_v47 }
0x19e7   :  { %3539 = vrot.lane.b32.xlu0 %v9132_v22, %s9669_s29  ;;  %v3498_v22 = vadd.f32 1.0, %v9136_v25  ;;  %9149 = vpow2.f32 %v7835_v51 }
0x19e9   :  { %3647 = vrot.lane.b32.xlu1 %v9134_v53, %s9669_s29  ;;  %9151 = vrcp.f32 %v3498_v22 }
0x19ec   :  { %v9138_v31 = vpop.eup %9137 }
0x19ed   :  { %v9140_v11 = vpop.eup %9139  ;;  %v3605_v14 = vadd.f32 1.0, %v9138_v31 }
0x19ee   :  { %v9142_v55 = vpop.eup %9141  ;;  %v3606_v44 = vadd.f32 1.0, %v9140_v11 }
0x19ef   :  { %v9144_v29 = vpop.eup %9143  ;;  %v3499_v53 = vadd.f32 1.0, %v9142_v55  ;;  %9153 = vrcp.f32 %v3605_v14 }
0x19f0   :  { %v9146_v13 = vpop.eup %9145  ;;  %v3607_v20 = vadd.f32 1.0, %v9144_v29  ;;  %9155 = vrcp.f32 %v3606_v44 }
0x19f1   :  { %v3497_v58 = vadd.f32 1.0, %v9146_v13  ;;  %9157 = vrcp.f32 %v3499_v53 }
0x19f2   :  { %v9148_v63 = vpop.eup %9147  ;;  %9159 = vrcp.f32 %v3607_v20 }
0x19f3   :  { %v3500_v62 = vadd.f32 1.0, %v9148_v63  ;;  %9161 = vrcp.f32 %v3497_v58 }
0x19f4   :  { %v9150_v5 = vpop.eup %9149 }
0x19f5   :  { %v3608_v31 = vadd.f32 1.0, %v9150_v5  ;;  %9163 = vrcp.f32 %v3500_v62 }
0x19f6   :  { %v11335_v25 = vpop.eup %9151 }
0x19f7   :  { %9165 = vrcp.f32 %v3608_v31 }
0x19fc   :  { %v11339_v0 = vpop.eup %9153 }
0x19fd   :  { %v11341_v51 = vpop.eup %9155 }
0x19fe   :  { %v11346_v55 = vpop.eup %9157 }
0x19ff   :  { %v11349_v29 = vpop.eup %9159 }
0x1a00   :  { %v11354_v63 = vpop.eup %9161 }
0x1a02   :  { %v11357_v5 = vpop.eup %9163 }
0x1a04   :  { %v11362_v31 = vpop.eup %9165 }
0x1a4d   :  { %v3536_v40 = vpop.permute.xlu0 %3535 }
0x1a4e   :  { %v3546_v46 = vmul.f32 %v11335_v25, %v3536_v40 }
0x1a4f   :  { %v3642_v47 = vpop.permute.xlu1 %3641 }
0x1a50   :  { %3555 = vrot.lane.b32.xlu0 %v3546_v46, %s9670_s30  ;;  %v3653_v22 = vmul.f32 %v11339_v0, %v3642_v47 }
0x1a51   :  { %v3644_v11 = vpop.permute.xlu0 %3643 }
0x1a52   :  { %v3654_v14 = vmul.f32 %v11341_v51, %v3644_v11  ;;  %3661 = vrot.lane.b32.xlu1 %v3653_v22, %s9670_s30  ;;  %v3518_v11 = vrot.slane %v11166_v2, 7 }
0x1a53   :  { %v3538_v44 = vpop.permute.xlu1 %3537 }
0x1a54   :  { %3663 = vrot.lane.b32.xlu0 %v3654_v14, %s9670_s30  ;;  %v3547_v53 = vmul.f32 %v11346_v55, %v3538_v44  ;;  %v3526_v14 = vmul.f32 %v11335_v25, %v3518_v11 }
0x1a55   :  { %v3646_v13 = vpop.permute.xlu0 %3645 }
0x1a56   :  { %v3655_v20 = vmul.f32 %v11349_v29, %v3646_v13  ;;  %3557 = vrot.lane.b32.xlu1 %v3547_v53, %s9670_s30  ;;  %v3625_v13 = vrot.slane %v11174_v48, 1 }
0x1a57   :  { %v3534_v58 = vpop.permute.xlu1 %3533 }
0x1a58   :  { %3665 = vrot.lane.b32.xlu0 %v3655_v20, %s9670_s30  ;;  %v3545_v62 = vmul.f32 %v11354_v63, %v3534_v58  ;;  %v3626_v20 = vrot.slane %v11177_v19, 1  ;;  %v3633_v58 = vmul.f32 %v11339_v0, %v3625_v13 }
0x1a59   :  { %v3540_v40 = vpop.permute.xlu0 %3539 }
0x1a5a   :  { %v3548_v46 = vmul.f32 %v11357_v5, %v3540_v40  ;;  %3553 = vrot.lane.b32.xlu1 %v3545_v62, %s9670_s30  ;;  %v3634_v40 = vmul.f32 %v11341_v51, %v3626_v20  ;;  %v3520_v20 = vrot.slane %v11196_v54, 7 }
0x1a5b   :  { %v3648_v47 = vpop.permute.xlu1 %3647 }
0x1a5c   :  { %3559 = vrot.lane.b32.xlu0 %v3548_v46, %s9670_s30  ;;  %v3656_v22 = vmul.f32 %v11362_v31, %v3648_v47  ;;  %v3519_v46 = vrot.slane %v11184_v28, 7 }
0x1a5e   :  { %3667 = vrot.lane.b32.xlu1 %v3656_v22, %s9670_s30  ;;  %v3627_v22 = vrot.slane %v11188_v39, 1  ;;  %v3527_v48 = vmul.f32 %v11346_v55, %v3519_v46 }
0x1ac2   :  { %v3556_v44 = vpop.permute.xlu0 %3555 }
0x1ac3   :  { %v11369_v53 = vadd.f32 %v3556_v44, %v3526_v14  ;;  %v3635_v14 = vmul.f32 %v11349_v29, %v3627_v22  ;;  %v3517_v44 = vrot.slane %v11161_v26, 7 }
0x1ac4   :  { %v3662_v62 = vpop.permute.xlu1 %3661 }
0x1ac5   :  { %9167 = vtanh.f32 %v11369_v53  ;;  %v11377_v47 = vadd.f32 %v3662_v62, %v3633_v58  ;;  %v3525_v39 = vmul.f32 %v11354_v63, %v3517_v44 }
0x1ac6   :  { %v3664_v2 = vpop.permute.xlu0 %3663 }
0x1ac7   :  { %v11380_v11 = vadd.f32 %v3664_v2, %v3634_v40  ;;  %9169 = vtanh.f32 %v11377_v47  ;;  %v3528_v40 = vmul.f32 %v11357_v5, %v3520_v20  ;;  %v3628_v2 = vrot.slane %v11194_v57, 1 }
0x1ac8   :  { %v3558_v19 = vpop.permute.xlu1 %3557 }
0x1ac9   :  { %9171 = vtanh.f32 %v11380_v11  ;;  %v11387_v13 = vadd.f32 %v3558_v19, %v3527_v48  ;;  %v3636_v54 = vmul.f32 %v11362_v31, %v3628_v2 }
0x1aca   :  { %v3666_v28 = vpop.permute.xlu0 %3665 }
0x1acb   :  { %v11390_v58 = vadd.f32 %v3666_v28, %v3635_v14  ;;  %9173 = vtanh.f32 %v11387_v13 }
0x1acc   :  { %v3554_v62 = vpop.permute.xlu1 %3553 }
0x1acd   :  { %9175 = vtanh.f32 %v11390_v58  ;;  %v11397_v26 = vadd.f32 %v3554_v62, %v3525_v39 }
0x1ace   :  { %v3560_v22 = vpop.permute.xlu0 %3559 }
0x1acf   :  { %v11399_v48 = vadd.f32 %v3560_v22, %v3528_v40  ;;  %9177 = vtanh.f32 %v11397_v26 }
0x1ad0   :  { %v3668_v19 = vpop.permute.xlu1 %3667 }
0x1ad1   :  { %9179 = vtanh.f32 %v11399_v48  ;;  %v11405_v14 = vadd.f32 %v3668_v19, %v3636_v54 }
0x1ad2   :  { %v9168_v46 = vpop.eup %9167 }
0x1ad3   :  { %3579 = vrot.lane.b32.xlu0 %v9168_v46, %s9671_s9  ;;  %9181 = vtanh.f32 %v11405_v14 }
0x1ad4   :  { %v9170_v44 = vpop.eup %9169 }
0x1ad5   :  { %3685 = vrot.lane.b32.xlu1 %v9170_v44, %s9671_s9 }
0x1ad6   :  { %v9172_v57 = vpop.eup %9171 }
0x1ad7   :  { %3687 = vrot.lane.b32.xlu0 %v9172_v57, %s9671_s9 }
0x1ad8   :  { %v9174_v28 = vpop.eup %9173 }
0x1ad9   :  { %3581 = vrot.lane.b32.xlu1 %v9174_v28, %s9671_s9 }
0x1ada   :  { %v9176_v20 = vpop.eup %9175 }
0x1adb   :  { %3689 = vrot.lane.b32.xlu0 %v9176_v20, %s9671_s9 }
0x1adc   :  { %v9178_v39 = vpop.eup %9177 }
0x1add   :  { %3577 = vrot.lane.b32.xlu1 %v9178_v39, %s9671_s9 }
0x1ade   :  { %v9180_v62 = vpop.eup %9179 }
0x1adf   :  { %3583 = vrot.lane.b32.xlu0 %v9180_v62, %s9671_s9 }
0x1ae0   :  { %v9182_v40 = vpop.eup %9181 }
0x1ae1   :  { %3691 = vrot.lane.b32.xlu1 %v9182_v40, %s9671_s9 }
0x1b45   :  { %v3580_v46 = vpop.permute.xlu0 %3579 }
0x1b46   :  { %v11416_v19 = vmul.f32 %v11335_v25, %v3580_v46 }
0x1b47   :  { %v3686_v2 = vpop.permute.xlu1 %3685 }
0x1b48   :  { %13373 = vst [vmem:[#allocation53_spill] sm:$0xff] %v11416_v19  ;;  %v3741_v62 = vrot.slane %v11416_v19, 7  ;;  %v11429_v40 = vmul.f32 %v11339_v0, %v3686_v2 }
0x1b49   :  { %v3688_v22 = vpop.permute.xlu0 %3687 }
0x1b4a   :  { %v11419_v57 = vmul.f32 %v11341_v51, %v3688_v22  ;;  %13377 = vst [vmem:[#allocation57_spill] sm:$0xff] %v11429_v40  ;;  %v3750_v2 = vrot.slane %v11429_v40, 5 }
0x1b4b   :  { %v3582_v54 = vpop.permute.xlu1 %3581 }
0x1b4c   :  { %13374 = vst [vmem:[#allocation54_spill] sm:$0xff] %v11419_v57  ;;  %v11422_v28 = vmul.f32 %v11346_v55, %v3582_v54  ;;  %v3751_v51 = vrot.slane %v11419_v57, 4 }
0x1b4d   :  { %v3690_v44 = vpop.permute.xlu0 %3689 }
0x1b4e   :  { %13375 = vst [vmem:[#allocation55_spill] sm:$0xff] %v11422_v28  ;;  %v11425_v20 = vmul.f32 %v11349_v29, %v3690_v44  ;;  %v3743_v55 = vrot.slane %v11422_v28, 6 }
0x1b4f   :  { %v3578_v39 = vpop.permute.xlu1 %3577 }
0x1b50   :  { %13376 = vst [vmem:[#allocation56_spill] sm:$0xff] %v11425_v20  ;;  %v11432_v30 = vmul.f32 %v11354_v63, %v3578_v39  ;;  %v3753_v22 = vrot.slane %v11425_v20, 3 }
0x1b51   :  { %v3584_v25 = vpop.permute.xlu0 %3583 }
0x1b52   :  { %13378 = vst [vmem:[#allocation58_spill] sm:$0xff] %v11432_v30  ;;  %v11435_v46 = vmul.f32 %v11357_v5, %v3584_v25  ;;  %v3742_v29 = vsel %vm13314_vm2, %v3741_v62, %v11432_v30  ;;  %v3752_v62 = vsel %vm13314_vm2, %v3751_v51, %v3750_v2  ;;  %vm1856_vm2 = vcmask 257155  }
0x1b53   :  { %v3692_v0 = vpop.permute.xlu1 %3691  ;;  %v3744_v5 = vsel %vm13313_vm3, %v3743_v55, %v3742_v29  ;;  %v3754_v25 = vsel %vm13313_vm3, %v3753_v22, %v3752_v62 }
0x1b54   :  { %13379 = vst [vmem:[#allocation59_spill] sm:$0xff] %v11435_v46  ;;  %v3745_v54 = vrot.slane %v11435_v46, 5  ;;  %v11445_v63 = vmul.f32 %v11362_v31, %v3692_v0 }
0x1b56   :  { %13380 = vst [vmem:[#allocation60_spill] sm:$0xff] %v11445_v63  ;;  %v3746_v44 = vsel %vm751_vm6, %v3745_v54, %v3744_v5  ;;  %v3755_v39 = vrot.slane %v11445_v63, 2 }
0x1b57   :  { %3747 = vrot.lane.b32.xlu0 %v3746_v44, %s9672_s10 }
0x1b58   :  { %v3756_v46 = vsel %vm751_vm6, %v3755_v39, %v3754_v25 }
0x1b59   :  { %3757 = vrot.lane.b32.xlu1 %v3756_v46, %s9671_s9 }
0x1bc9   :  { %v3748_v28 = vpop.permute.xlu0 %3747 }
0x1bcb   :  { %v3758_v20 = vpop.permute.xlu1 %3757 }
0x1bcc   :  { %v3760_v31 = vsel %vm13312_vm4, %v3748_v28, %v3758_v20 }
0x1bcd   :  { %v3762_v0 = vrot.slane %v3760_v31, 1 }
0x1bcf   :  { %8282 = vmatmul.mubr.msk.f32.vlgmr.msra.gmra.mxu0 %vm13321_vm5, %v3762_v0 }
0x1bd0   :  { %8296 = vmatpush3.msra.mxu0 %v11252_v18  ;;  %8303 = vmatprep.mubr.msk.f32.mxu0 %vm13316_vm0, %v13340_v9 }
0x1bd1   :  { %8297 = vmatprep.subr.mxu0 %v13340_v9 }
0x1bd2   :  { %8298 = vmatpush3.msra.mxu0 %v11261_v17 }
0x1bd3   :  { %8299 = vmatprep.subr.mxu0 %v13340_v9 }
0x1bd4   :  { %8300 = vmatpush3.msra.mxu0 %v11268_v43 }
0x1bd5   :  { %8301 = vmatprep.subr.mxu0 %v13340_v9 }
0x1bd6   :  { %8302 = vmatpush3.msra.mxu0 %v11275_v12 }
0x1bd7   :  { %8317 = vmatprep.subr.mxu0 %v13340_v9 }
0x1c8f   :  { %v3831_v28 = vpop.f32.mrf.mxu0 }
0x1c90   :  { %v3837_v20 = vrot.slane %v3831_v28, 7  ;;  %v3845_v55 = vadd.f32 %v11300_v34, %v3831_v28  ;;  %v3847_v29 = vrot.slane %v3831_v28, 3  ;;  %v3848_v22 = vrot.slane %v3831_v28, 4 }
0x1c91   :  { %v8283_v46 = vpop.f32.mrf.mxu0  ;;  %v3836_v54 = vrot.slane %v3831_v28, 6  ;;  %v3849_v5 = vrot.slane %v3831_v28, 5  ;;  %v3838_v62 = vrot.slane %v3831_v28, 1 }
0x1c92   :  { %v3844_v51 = vadd.f32 %v11282_v33, %v3837_v20  ;;  %v3853_v2 = vadd.f32 %v11288_v32, %v3847_v29  ;;  %v3854_v44 = vadd.f32 %v11294_v50, %v3848_v22 }
0x1c93   :  { %v3843_v39 = vadd.f32 %v11312_v16, %v3836_v54  ;;  %v3855_v25 = vadd.f32 %v11306_v36, %v3849_v5  ;;  %v3856_v31 = vadd.f32 %v11325_v15, %v3836_v54  ;;  %v3846_v0 = vadd.f32 %v11318_v60, %v3838_v62 }
0x1c94   :  { %9183 = vtanh.f32 %v3844_v51  ;;  %v7841_v63 = vmul.f32 -1.442695, %v3853_v2 }
0x1c95   :  { %9185 = vtanh.f32 %v3845_v55  ;;  %v7837_v19 = vmul.f32 -1.442695, %v3843_v39  ;;  %v7840_v57 = vmul.f32 -1.442695, %v3846_v0 }
0x1c96   :  { %9187 = vtanh.f32 %v3853_v2 }
0x1c97   :  { %9189 = vtanh.f32 %v3854_v44 }
0x1c98   :  { %9191 = vtanh.f32 %v3843_v39 }
0x1c99   :  { %9193 = vtanh.f32 %v3855_v25 }
0x1c9a   :  { %9195 = vtanh.f32 %v3856_v31 }
0x1c9b   :  { %9197 = vtanh.f32 %v3846_v0 }
0x1ca1   :  { %v9184_v20 = vpop.eup %9183 }
0x1ca2   :  { %v9186_v46 = vpop.eup %9185  ;;  %3907 = vrot.lane.b32.xlu0 %v9184_v20, %s9669_s29  ;;  %v7838_v20 = vmul.f32 -1.442695, %v3844_v51 }
0x1ca3   :  { %3909 = vrot.lane.b32.xlu1 %v9186_v46, %s9669_s29  ;;  %v9188_v29 = vpop.eup %9187  ;;  %v7839_v46 = vmul.f32 -1.442695, %v3845_v55 }
0x1ca4   :  { %v9190_v22 = vpop.eup %9189  ;;  %9199 = vpow2.f32 %v7838_v20 }
0x1ca5   :  { %v9192_v28 = vpop.eup %9191  ;;  %9201 = vpow2.f32 %v7839_v46 }
0x1ca6   :  { %4015 = vrot.lane.b32.xlu0 %v9190_v22, %s9669_s29  ;;  %v9194_v54 = vpop.eup %9193  ;;  %9203 = vpow2.f32 %v7841_v63  ;;  %v7843_v22 = vmul.f32 -1.442695, %v3855_v25 }
0x1ca7   :  { %4013 = vrot.lane.b32.xlu1 %v9188_v29, %s9669_s29  ;;  %v9196_v5 = vpop.eup %9195  ;;  %v7842_v29 = vmul.f32 -1.442695, %v3854_v44 }
0x1ca8   :  { %v9198_v62 = vpop.eup %9197 }
0x1ca9   :  { %9205 = vpow2.f32 %v7842_v29 }
0x1caa   :  { %4017 = vrot.lane.b32.xlu0 %v9194_v54, %s9669_s29  ;;  %9207 = vpow2.f32 %v7837_v19 }
0x1cab   :  { %3905 = vrot.lane.b32.xlu1 %v9192_v28, %s9669_s29  ;;  %v7844_v28 = vmul.f32 -1.442695, %v3856_v31  ;;  %9209 = vpow2.f32 %v7843_v22 }
0x1cad   :  { %9211 = vpow2.f32 %v7844_v28 }
0x1cae   :  { %3911 = vrot.lane.b32.xlu0 %v9198_v62, %s9669_s29  ;;  %9213 = vpow2.f32 %v7840_v57 }
0x1caf   :  { %4019 = vrot.lane.b32.xlu1 %v9196_v5, %s9669_s29 }
0x1cb1   :  { %v9200_v54 = vpop.eup %9199 }
0x1cb2   :  { %v9202_v40 = vpop.eup %9201  ;;  %v3870_v5 = vadd.f32 1.0, %v9200_v54 }
0x1cb3   :  { %v3871_v62 = vadd.f32 1.0, %v9202_v40  ;;  %v9204_v51 = vpop.eup %9203 }
0x1cb4   :  { %9215 = vrcp.f32 %v3870_v5  ;;  %v3977_v2 = vadd.f32 1.0, %v9204_v51 }
0x1cb5   :  { %9217 = vrcp.f32 %v3871_v62 }
0x1cb6   :  { %v9206_v55 = vpop.eup %9205  ;;  %9219 = vrcp.f32 %v3977_v2 }
0x1cb7   :  { %v9208_v44 = vpop.eup %9207  ;;  %v3978_v39 = vadd.f32 1.0, %v9206_v55 }
0x1cb8   :  { %v9210_v63 = vpop.eup %9209  ;;  %v3869_v20 = vadd.f32 1.0, %v9208_v44 }
0x1cb9   :  { %v3979_v25 = vadd.f32 1.0, %v9210_v63  ;;  %9221 = vrcp.f32 %v3978_v39 }
0x1cba   :  { %v9212_v19 = vpop.eup %9211  ;;  %9223 = vrcp.f32 %v3869_v20 }
0x1cbb   :  { %v9214_v31 = vpop.eup %9213  ;;  %v3980_v0 = vadd.f32 1.0, %v9212_v19  ;;  %9225 = vrcp.f32 %v3979_v25 }
0x1cbc   :  { %v3872_v46 = vadd.f32 1.0, %v9214_v31 }
0x1cbd   :  { %9227 = vrcp.f32 %v3980_v0 }
0x1cbe   :  { %9229 = vrcp.f32 %v3872_v46 }
0x1cc1   :  { %v11483_v57 = vpop.eup %9215 }
0x1cc2   :  { %v11485_v29 = vpop.eup %9217 }
0x1cc3   :  { %v11491_v5 = vpop.eup %9219 }
0x1cc6   :  { %v11493_v51 = vpop.eup %9221 }
0x1cc7   :  { %v11498_v39 = vpop.eup %9223 }
0x1cc8   :  { %v11501_v20 = vpop.eup %9225 }
0x1cca   :  { %v11506_v0 = vpop.eup %9227 }
0x1d14   :  { %v3908_v40 = vpop.permute.xlu0 %3907 }
0x1d15   :  { %v3910_v22 = vpop.permute.xlu1 %3909  ;;  %v3918_v28 = vmul.f32 %v11483_v57, %v3908_v40  ;;  %v11509_v40 = vpop.eup %9229 }
0x1d16   :  { %v3919_v54 = vmul.f32 %v11485_v29, %v3910_v22 }
0x1d17   :  { %3927 = vrot.lane.b32.xlu0 %v3918_v28, %s9670_s30 }
0x1d18   :  { %3929 = vrot.lane.b32.xlu1 %v3919_v54, %s9670_s30  ;;  %v4016_v2 = vpop.permute.xlu0 %4015 }
0x1d19   :  { %v4014_v62 = vpop.permute.xlu1 %4013  ;;  %v4026_v44 = vmul.f32 %v11493_v51, %v4016_v2 }
0x1d1a   :  { %v4025_v55 = vmul.f32 %v11491_v5, %v4014_v62  ;;  %v3890_v62 = vrot.slane %v11369_v53, 7  ;;  %v3998_v53 = vrot.slane %v11380_v11, 1 }
0x1d1b   :  { %4035 = vrot.lane.b32.xlu0 %v4026_v44, %s9670_s30 }
0x1d1c   :  { %4033 = vrot.lane.b32.xlu1 %v4025_v55, %s9670_s30  ;;  %v4018_v25 = vpop.permute.xlu0 %4017  ;;  %v3891_v55 = vrot.slane %v11387_v13, 7  ;;  %v3898_v2 = vmul.f32 %v11483_v57, %v3890_v62 }
0x1d1d   :  { %v3906_v63 = vpop.permute.xlu1 %3905  ;;  %v4027_v31 = vmul.f32 %v11501_v20, %v4018_v25 }
0x1d1e   :  { %v3917_v19 = vmul.f32 %v11498_v39, %v3906_v63  ;;  %v3899_v44 = vmul.f32 %v11485_v29, %v3891_v55 }
0x1d1f   :  { %4037 = vrot.lane.b32.xlu0 %v4027_v31, %s9670_s30 }
0x1d20   :  { %3925 = vrot.lane.b32.xlu1 %v3917_v19, %s9670_s30  ;;  %v3912_v28 = vpop.permute.xlu0 %3911 }
0x1d21   :  { %v4020_v46 = vpop.permute.xlu1 %4019  ;;  %v3920_v54 = vmul.f32 %v11509_v40, %v3912_v28  ;;  %v4006_v28 = vmul.f32 %v11493_v51, %v3998_v53  ;;  %v3892_v53 = vrot.slane %v11399_v48, 7 }
0x1d22   :  { %v4028_v22 = vmul.f32 %v11506_v0, %v4020_v46  ;;  %v3997_v46 = vrot.slane %v11377_v47, 1 }
0x1d23   :  { %3931 = vrot.lane.b32.xlu0 %v3920_v54, %s9670_s30  ;;  %v3889_v54 = vrot.slane %v11397_v26, 7 }
0x1d24   :  { %4039 = vrot.lane.b32.xlu1 %v4028_v22, %s9670_s30  ;;  %v4005_v13 = vmul.f32 %v11491_v5, %v3997_v46 }
0x1d25   :  { %v3897_v47 = vmul.f32 %v11498_v39, %v3889_v54 }
0x1d89   :  { %v3928_v63 = vpop.permute.xlu0 %3927 }
0x1d8a   :  { %v3930_v19 = vpop.permute.xlu1 %3929  ;;  %v11519_v25 = vadd.f32 %v3928_v63, %v3898_v2  ;;  %v3999_v2 = vrot.slane %v11390_v58, 1 }
0x1d8b   :  { %v11521_v31 = vadd.f32 %v3930_v19, %v3899_v44  ;;  %v4000_v19 = vrot.slane %v11405_v14, 1 }
0x1d8c   :  { %9231 = vtanh.f32 %v11519_v25  ;;  %v4007_v63 = vmul.f32 %v11501_v20, %v3999_v2 }
0x1d8d   :  { %9233 = vtanh.f32 %v11521_v31  ;;  %v4036_v55 = vpop.permute.xlu0 %4035  ;;  %v4008_v58 = vmul.f32 %v11506_v0, %v4000_v19 }
0x1d8e   :  { %v4034_v22 = vpop.permute.xlu1 %4033  ;;  %v11533_v44 = vadd.f32 %v4036_v55, %v4006_v28  ;;  %v3900_v28 = vmul.f32 %v11509_v40, %v3892_v53 }
0x1d8f   :  { %v11530_v62 = vadd.f32 %v4034_v22, %v4005_v13 }
0x1d91   :  { %9235 = vtanh.f32 %v11530_v62  ;;  %v4038_v26 = vpop.permute.xlu0 %4037 }
0x1d92   :  { %9237 = vtanh.f32 %v11533_v44  ;;  %v3926_v11 = vpop.permute.xlu1 %3925  ;;  %v11543_v13 = vadd.f32 %v4038_v26, %v4007_v63 }
0x1d93   :  { %v11540_v46 = vadd.f32 %v3926_v11, %v3897_v47 }
0x1d95   :  { %9239 = vtanh.f32 %v11540_v46  ;;  %v3932_v14 = vpop.permute.xlu0 %3931 }
0x1d96   :  { %9241 = vtanh.f32 %v11543_v13  ;;  %v4040_v22 = vpop.permute.xlu1 %4039  ;;  %v11551_v47 = vadd.f32 %v3932_v14, %v3900_v28 }
0x1d97   :  { %v11549_v55 = vadd.f32 %v4040_v22, %v4008_v58 }
0x1d99   :  { %v9232_v54 = vpop.eup %9231  ;;  %9243 = vtanh.f32 %v11549_v55 }
0x1d9a   :  { %v9234_v2 = vpop.eup %9233  ;;  %3951 = vrot.lane.b32.xlu0 %v9232_v54, %s9671_s9  ;;  %9245 = vtanh.f32 %v11551_v47 }
0x1d9b   :  { %3953 = vrot.lane.b32.xlu1 %v9234_v2, %s9671_s9 }
0x1d9e   :  { %v9236_v48 = vpop.eup %9235 }
0x1d9f   :  { %v9238_v11 = vpop.eup %9237  ;;  %4057 = vrot.lane.b32.xlu1 %v9236_v48, %s9671_s9 }
0x1da0   :  { %4059 = vrot.lane.b32.xlu0 %v9238_v11, %s9671_s9 }
0x1da2   :  { %v9240_v63 = vpop.eup %9239 }
0x1da3   :  { %v9242_v19 = vpop.eup %9241  ;;  %3949 = vrot.lane.b32.xlu1 %v9240_v63, %s9671_s9 }
0x1da4   :  { %4061 = vrot.lane.b32.xlu0 %v9242_v19, %s9671_s9 }
0x1da6   :  { %v9244_v26 = vpop.eup %9243 }
0x1da7   :  { %v9246_v53 = vpop.eup %9245  ;;  %4063 = vrot.lane.b32.xlu1 %v9244_v26, %s9671_s9 }
0x1da8   :  { %3955 = vrot.lane.b32.xlu0 %v9246_v53, %s9671_s9 }
0x1e0c   :  { %v3952_v22 = vpop.permute.xlu0 %3951 }
0x1e0d   :  { %v3954_v58 = vpop.permute.xlu1 %3953  ;;  %v11570_v48 = vmul.f32 %v11483_v57, %v3952_v22 }
0x1e0e   :  { %v11580_v30 = vmul.f32 %v11485_v29, %v3954_v58 }
0x1e0f   :  { %13383 = vst [vmem:[#allocation63_spill] sm:$0xff] %v11570_v48 }
0x1e10   :  { %13386 = vst [vmem:[#allocation66_spill] sm:$0xff] %v11580_v30  ;;  %v4115_v58 = vrot.slane %v11580_v30, 6 }
0x1e11   :  { %v4058_v28 = vpop.permute.xlu1 %4057 }
0x1e12   :  { %v4060_v54 = vpop.permute.xlu0 %4059  ;;  %v11567_v2 = vmul.f32 %v11491_v5, %v4058_v28  ;;  %v4113_v5 = vrot.slane %v11570_v48, 7 }
0x1e13   :  { %v11564_v14 = vmul.f32 %v11493_v51, %v4060_v54 }
0x1e14   :  { %13382 = vst [vmem:[#allocation62_spill] sm:$0xff] %v11567_v2  ;;  %v4122_v51 = vrot.slane %v11567_v2, 3 }
0x1e15   :  { %13381 = vst [vmem:[#allocation61_spill] sm:$0xff] %v11564_v14  ;;  %v3950_v11 = vpop.permute.xlu1 %3949  ;;  %v4123_v63 = vrot.slane %v11564_v14, 2 }
0x1e16   :  { %v4062_v19 = vpop.permute.xlu0 %4061  ;;  %v11574_v26 = vmul.f32 %v11498_v39, %v3950_v11 }
0x1e17   :  { %v11577_v53 = vmul.f32 %v11501_v20, %v4062_v19  ;;  %v4124_v39 = vsel %vm13313_vm3, %v4123_v63, %v4122_v51 }
0x1e18   :  { %13384 = vst [vmem:[#allocation64_spill] sm:$0xff] %v11574_v26  ;;  %v4114_v20 = vsel %vm13313_vm3, %v4113_v5, %v11574_v26  ;;  %vm1465_vm3 = vcmask 125955  }
0x1e19   :  { %13385 = vst [vmem:[#allocation65_spill] sm:$0xff] %v11577_v53  ;;  %v4125_v57 = vrot.slane %v11577_v53, 1  ;;  %v4064_v22 = vpop.permute.xlu1 %4063 }
0x1e1a   :  { %v11586_v28 = vmul.f32 %v11506_v0, %v4064_v22  ;;  %v3956_v54 = vpop.permute.xlu0 %3955  ;;  %v4116_v0 = vsel %vm751_vm6, %v4115_v58, %v4114_v20 }
0x1e1b   :  { %v11592_v11 = vmul.f32 %v11509_v40, %v3956_v54  ;;  %v4126_v29 = vsel %vm751_vm6, %v4125_v57, %v4124_v39 }
0x1e1c   :  { %13387 = vst [vmem:[#allocation67_spill] sm:$0xff] %v11586_v28  ;;  %v4127_v19 = vsel %vm1126_vm7, %v11586_v28, %v4126_v29 }
0x1e1d   :  { %13388 = vst [vmem:[#allocation68_spill] sm:$0xff] %v11592_v11  ;;  %v4117_v53 = vrot.slane %v11592_v11, 5  ;;  %4128 = vrot.lane.b32.xlu1 %v4127_v19, %s9671_s9  ;;  %v11816_v11 = vld [vmem:[%s13222_s0 + $0x8] sm:$0xff] }
0x1e1f   :  { %v4118_v63 = vsel %vm1126_vm7, %v4117_v53, %v4116_v0 }
0x1e20   :  { %4119 = vrot.lane.b32.xlu0 %v4118_v63, %s9672_s10 }
0x1e8f   :  { %v4129_v51 = vpop.permute.xlu1 %4128 }
0x1e92   :  { %v4120_v40 = vpop.permute.xlu0 %4119 }
0x1e93   :  { %v4131_v5 = vsel %vm13312_vm4, %v4120_v40, %v4129_v51 }
0x1e94   :  { %v4133_v57 = vrot.slane %v4131_v5, 2 }
0x1e96   :  { %8293 = vmatmul.mubr.msk.f32.vlgmr.msra.gmra.mxu1 %vm13321_vm5, %v4133_v57 }
0x1e97   :  { %8307 = vmatpush3.msra.mxu1 %v11252_v18  ;;  %8314 = vmatprep.mubr.msk.f32.mxu1 %vm13316_vm0, %v13340_v9 }
0x1e98   :  { %8308 = vmatprep.subr.mxu1 %v13340_v9 }
0x1e99   :  { %8309 = vmatpush3.msra.mxu1 %v11261_v17 }
0x1e9a   :  { %8310 = vmatprep.subr.mxu1 %v13340_v9 }
0x1e9b   :  { %8311 = vmatpush3.msra.mxu1 %v11268_v43 }
0x1e9c   :  { %8312 = vmatprep.subr.mxu1 %v13340_v9 }
0x1e9d   :  { %8313 = vmatpush3.msra.mxu1 %v11275_v12 }
0x1e9e   :  { %8328 = vmatprep.subr.mxu1 %v13340_v9 }
0x1f56   :  { %v4202_v53 = vpop.f32.mrf.mxu1 }
0x1f57   :  { %v4208_v22 = vrot.slane %v4202_v53, 6  ;;  %v4209_v54 = vrot.slane %v4202_v53, 7  ;;  %v4217_v20 = vadd.f32 %v11318_v60, %v4202_v53  ;;  %v4218_v29 = vrot.slane %v4202_v53, 4 }
0x1f58   :  { %v8294_v18 = vpop.f32.mrf.mxu1  ;;  %v4207_v17 = vrot.slane %v4202_v53, 5 }
0x1f59   :  { %v4215_v39 = vadd.f32 %v11282_v33, %v4208_v22  ;;  %v4216_v58 = vadd.f32 %v11300_v34, %v4209_v54  ;;  %v4220_v43 = vadd.f32 %v11288_v32, %v4218_v29  ;;  %v4222_v19 = vadd.f32 %v11306_v36, %v4208_v22 }
0x1f5a   :  { %v4214_v12 = vadd.f32 %v11312_v16, %v4207_v17  ;;  %v4221_v0 = vadd.f32 %v11294_v50, %v4207_v17  ;;  %v4223_v33 = vadd.f32 %v11325_v15, %v4209_v54  ;;  %v7849_v40 = vmul.f32 -1.442695, %v4217_v20 }
0x1f5b   :  { %9247 = vtanh.f32 %v4215_v39  ;;  %v7847_v51 = vmul.f32 -1.442695, %v4215_v39  ;;  %v7848_v5 = vmul.f32 -1.442695, %v4216_v58  ;;  %v7850_v57 = vmul.f32 -1.442695, %v4220_v43 }
0x1f5c   :  { %9249 = vtanh.f32 %v4217_v20  ;;  %v7846_v53 = vmul.f32 -1.442695, %v4214_v12  ;;  %v7852_v22 = vmul.f32 -1.442695, %v4222_v19  ;;  %v7851_v18 = vmul.f32 -1.442695, %v4221_v0 }
0x1f5d   :  { %9251 = vtanh.f32 %v4216_v58  ;;  %v7853_v54 = vmul.f32 -1.442695, %v4223_v33 }
0x1f5e   :  { %9253 = vtanh.f32 %v4220_v43 }
0x1f5f   :  { %9255 = vtanh.f32 %v4214_v12 }
0x1f60   :  { %9257 = vtanh.f32 %v4222_v19 }
0x1f61   :  { %9259 = vtanh.f32 %v4221_v0 }
0x1f62   :  { %9261 = vtanh.f32 %v4223_v33 }
0x1f63   :  { %9263 = vpow2.f32 %v7847_v51 }
0x1f64   :  { %9265 = vpow2.f32 %v7849_v40 }
0x1f65   :  { %9267 = vpow2.f32 %v7848_v5 }
0x1f66   :  { %9269 = vpow2.f32 %v7850_v57 }
0x1f67   :  { %9271 = vpow2.f32 %v7846_v53 }
0x1f68   :  { %v9248_v60 = vpop.eup %9247  ;;  %9273 = vpow2.f32 %v7852_v22 }
0x1f69   :  { %4274 = vrot.lane.b32.xlu0 %v9248_v60, %s9669_s29  ;;  %v9250_v34 = vpop.eup %9249  ;;  %9275 = vpow2.f32 %v7851_v18 }
0x1f6a   :  { %4278 = vrot.lane.b32.xlu1 %v9250_v34, %s9669_s29  ;;  %v9252_v32 = vpop.eup %9251  ;;  %9277 = vpow2.f32 %v7853_v54 }
0x1f6b   :  { %v9254_v16 = vpop.eup %9253 }
0x1f6c   :  { %v9256_v36 = vpop.eup %9255 }
0x1f6d   :  { %4276 = vrot.lane.b32.xlu0 %v9252_v32, %s9669_s29  ;;  %v9258_v50 = vpop.eup %9257 }
0x1f6e   :  { %4380 = vrot.lane.b32.xlu1 %v9254_v16, %s9669_s29  ;;  %v9260_v15 = vpop.eup %9259 }
0x1f6f   :  { %v9262_v63 = vpop.eup %9261 }
0x1f70   :  { %v9264_v29 = vpop.eup %9263 }
0x1f71   :  { %4272 = vrot.lane.b32.xlu0 %v9256_v36, %s9669_s29  ;;  %v9266_v17 = vpop.eup %9265  ;;  %v4237_v60 = vadd.f32 1.0, %v9264_v29 }
0x1f72   :  { %4384 = vrot.lane.b32.xlu1 %v9258_v50, %s9669_s29  ;;  %v9268_v34 = vpop.eup %9267  ;;  %v4239_v39 = vadd.f32 1.0, %v9266_v17 }
0x1f73   :  { %v9270_v20 = vpop.eup %9269  ;;  %v4238_v32 = vadd.f32 1.0, %v9268_v34  ;;  %9279 = vrcp.f32 %v4237_v60 }
0x1f74   :  { %v9272_v58 = vpop.eup %9271  ;;  %9281 = vrcp.f32 %v4239_v39  ;;  %v4344_v43 = vadd.f32 1.0, %v9270_v20 }
0x1f75   :  { %4382 = vrot.lane.b32.xlu0 %v9260_v15, %s9669_s29  ;;  %v9274_v12 = vpop.eup %9273  ;;  %v4236_v16 = vadd.f32 1.0, %v9272_v58  ;;  %9283 = vrcp.f32 %v4238_v32 }
0x1f76   :  { %4386 = vrot.lane.b32.xlu1 %v9262_v63, %s9669_s29  ;;  %v9276_v19 = vpop.eup %9275  ;;  %v4346_v0 = vadd.f32 1.0, %v9274_v12  ;;  %9285 = vrcp.f32 %v4344_v43 }
0x1f77   :  { %v9278_v33 = vpop.eup %9277  ;;  %9287 = vrcp.f32 %v4236_v16  ;;  %v4345_v36 = vadd.f32 1.0, %v9276_v19 }
0x1f78   :  { %v4347_v50 = vadd.f32 1.0, %v9278_v33  ;;  %9289 = vrcp.f32 %v4346_v0 }
0x1f79   :  { %9291 = vrcp.f32 %v4345_v36  ;;  %v4257_v36 = vrot.slane %v11519_v25, 7  ;;  %v4364_v25 = vrot.slane %v11530_v62, 1  ;;  %v4365_v62 = vrot.slane %v11533_v44, 1 }
0x1f7a   :  { %9293 = vrcp.f32 %v4347_v50  ;;  %v4259_v50 = vrot.slane %v11551_v47, 7  ;;  %v4256_v47 = vrot.slane %v11540_v46, 7 }
0x1f80   :  { %v11631_v15 = vpop.eup %9279 }
0x1f81   :  { %v11634_v40 = vpop.eup %9281 }
0x1f82   :  { %v11638_v53 = vpop.eup %9283 }
0x1f83   :  { %v11642_v54 = vpop.eup %9285 }
0x1f84   :  { %v11645_v17 = vpop.eup %9287 }
0x1f85   :  { %v11650_v20 = vpop.eup %9289 }
0x1f86   :  { %v11653_v58 = vpop.eup %9291 }
0x1f87   :  { %v11658_v19 = vpop.eup %9293 }
0x1fdb   :  { %v4275_v63 = vpop.permute.xlu0 %4274 }
0x1fdc   :  { %v4285_v51 = vmul.f32 %v11631_v15, %v4275_v63  ;;  %v4279_v5 = vpop.permute.xlu1 %4278  ;;  %v4265_v63 = vmul.f32 %v11631_v15, %v4257_v36 }
0x1fdd   :  { %v4287_v57 = vmul.f32 %v11634_v40, %v4279_v5  ;;  %v4258_v5 = vrot.slane %v11521_v31, 7  ;;  %v4372_v31 = vmul.f32 %v11642_v54, %v4364_v25 }
0x1fde   :  { %4294 = vrot.lane.b32.xlu0 %v4285_v51, %s9670_s30 }
0x1fdf   :  { %v4277_v22 = vpop.permute.xlu0 %4276  ;;  %4298 = vrot.lane.b32.xlu1 %v4287_v57, %s9670_s30  ;;  %v4267_v57 = vmul.f32 %v11634_v40, %v4259_v50  ;;  %v4373_v50 = vmul.f32 %v11653_v58, %v4365_v62 }
0x1fe0   :  { %v4286_v18 = vmul.f32 %v11638_v53, %v4277_v22  ;;  %v4381_v29 = vpop.permute.xlu1 %4380 }
0x1fe1   :  { %v4392_v60 = vmul.f32 %v11642_v54, %v4381_v29 }
0x1fe2   :  { %4296 = vrot.lane.b32.xlu0 %v4286_v18, %s9670_s30 }
0x1fe3   :  { %v4273_v34 = vpop.permute.xlu0 %4272  ;;  %4400 = vrot.lane.b32.xlu1 %v4392_v60, %s9670_s30  ;;  %v4266_v60 = vmul.f32 %v11638_v53, %v4258_v5 }
0x1fe4   :  { %v4284_v39 = vmul.f32 %v11645_v17, %v4273_v34  ;;  %v4385_v32 = vpop.permute.xlu1 %4384 }
0x1fe5   :  { %v4394_v43 = vmul.f32 %v11650_v20, %v4385_v32 }
0x1fe6   :  { %4292 = vrot.lane.b32.xlu0 %v4284_v39, %s9670_s30 }
0x1fe7   :  { %v4383_v12 = vpop.permute.xlu0 %4382  ;;  %4404 = vrot.lane.b32.xlu1 %v4394_v43, %s9670_s30  ;;  %v4264_v43 = vmul.f32 %v11645_v17, %v4256_v47 }
0x1fe8   :  { %v4393_v16 = vmul.f32 %v11653_v58, %v4383_v12  ;;  %v4387_v0 = vpop.permute.xlu1 %4386  ;;  %v4366_v12 = vrot.slane %v11543_v13, 1 }
0x1fe9   :  { %v4395_v33 = vmul.f32 %v11658_v19, %v4387_v0 }
0x1fea   :  { %4402 = vrot.lane.b32.xlu0 %v4393_v16, %s9670_s30  ;;  %v4374_v46 = vmul.f32 %v11650_v20, %v4366_v12 }
0x1feb   :  { %4406 = vrot.lane.b32.xlu1 %v4395_v33, %s9670_s30 }
0x2050   :  { %v4295_v51 = vpop.permute.xlu0 %4294 }
0x2051   :  { %v11668_v22 = vadd.f32 %v4295_v51, %v4265_v63  ;;  %v4299_v18 = vpop.permute.xlu1 %4298  ;;  %v4367_v63 = vrot.slane %v11549_v55, 1 }
0x2052   :  { %v11670_v29 = vadd.f32 %v4299_v18, %v4267_v57 }
0x2053   :  { %9295 = vtanh.f32 %v11668_v22  ;;  %v4375_v44 = vmul.f32 %v11658_v19, %v4367_v63 }
0x2054   :  { %v4297_v34 = vpop.permute.xlu0 %4296  ;;  %9297 = vtanh.f32 %v11670_v29 }
0x2055   :  { %v11677_v39 = vadd.f32 %v4297_v34, %v4266_v60  ;;  %v4401_v32 = vpop.permute.xlu1 %4400 }
0x2056   :  { %v11683_v16 = vadd.f32 %v4401_v32, %v4372_v31 }
0x2057   :  { %9299 = vtanh.f32 %v11677_v39 }
0x2058   :  { %v4293_v0 = vpop.permute.xlu0 %4292  ;;  %9301 = vtanh.f32 %v11683_v16 }
0x2059   :  { %v11686_v33 = vadd.f32 %v4293_v0, %v4264_v43  ;;  %v4405_v36 = vpop.permute.xlu1 %4404 }
0x205a   :  { %v11693_v51 = vadd.f32 %v4405_v36, %v4374_v46 }
0x205b   :  { %9303 = vtanh.f32 %v11686_v33 }
0x205c   :  { %v4403_v13 = vpop.permute.xlu0 %4402  ;;  %9305 = vtanh.f32 %v11693_v51 }
0x205d   :  { %v11695_v5 = vadd.f32 %v4403_v13, %v4373_v50  ;;  %v4407_v57 = vpop.permute.xlu1 %4406 }
0x205e   :  { %v11700_v60 = vadd.f32 %v4407_v57, %v4375_v44 }
0x205f   :  { %9307 = vtanh.f32 %v11695_v5 }
0x2060   :  { %v9296_v18 = vpop.eup %9295  ;;  %9309 = vtanh.f32 %v11700_v60 }
0x2061   :  { %4318 = vrot.lane.b32.xlu0 %v9296_v18, %s9671_s9  ;;  %v9298_v25 = vpop.eup %9297 }
0x2062   :  { %4322 = vrot.lane.b32.xlu1 %v9298_v25, %s9671_s9 }
0x2064   :  { %v9300_v55 = vpop.eup %9299 }
0x2065   :  { %4320 = vrot.lane.b32.xlu0 %v9300_v55, %s9671_s9  ;;  %v9302_v34 = vpop.eup %9301 }
0x2066   :  { %4424 = vrot.lane.b32.xlu1 %v9302_v34, %s9671_s9 }
0x2068   :  { %v9304_v47 = vpop.eup %9303 }
0x2069   :  { %4316 = vrot.lane.b32.xlu0 %v9304_v47, %s9671_s9  ;;  %v9306_v31 = vpop.eup %9305 }
0x206a   :  { %4428 = vrot.lane.b32.xlu1 %v9306_v31, %s9671_s9 }
0x206c   :  { %v9308_v32 = vpop.eup %9307 }
0x206d   :  { %4426 = vrot.lane.b32.xlu0 %v9308_v32, %s9671_s9  ;;  %v9310_v43 = vpop.eup %9309 }
0x206e   :  { %4430 = vrot.lane.b32.xlu1 %v9310_v43, %s9671_s9 }
0x20d3   :  { %v4319_v12 = vpop.permute.xlu0 %4318 }
0x20d4   :  { %v4323_v0 = vpop.permute.xlu1 %4322  ;;  %v11712_v46 = vmul.f32 %v11631_v15, %v4319_v12 }
0x20d5   :  { %v11718_v50 = vmul.f32 %v11634_v40, %v4323_v0 }
0x20d6   :  { %13389 = vst [vmem:[#allocation69_spill] sm:$0xff] %v11712_v46  ;;  %v4480_v44 = vrot.slane %v11712_v46, 7 }
0x20d7   :  { %v4321_v62 = vpop.permute.xlu0 %4320  ;;  %13391 = vst [vmem:[#allocation71_spill] sm:$0xff] %v11718_v50  ;;  %v4484_v15 = vrot.slane %v11718_v50, 5 }
0x20d8   :  { %v11715_v36 = vmul.f32 %v11638_v53, %v4321_v62  ;;  %v4425_v63 = vpop.permute.xlu1 %4424 }
0x20d9   :  { %v11722_v57 = vmul.f32 %v11642_v54, %v4425_v63 }
0x20da   :  { %13390 = vst [vmem:[#allocation70_spill] sm:$0xff] %v11715_v36  ;;  %v4482_v25 = vrot.slane %v11715_v36, 6 }
0x20db   :  { %v4317_v13 = vpop.permute.xlu0 %4316  ;;  %13392 = vst [vmem:[#allocation72_spill] sm:$0xff] %v11722_v57  ;;  %v4489_v54 = vrot.slane %v11722_v57, 1 }
0x20dc   :  { %v11725_v18 = vmul.f32 %v11645_v17, %v4317_v13  ;;  %v4429_v55 = vpop.permute.xlu1 %4428 }
0x20dd   :  { %v11732_v40 = vmul.f32 %v11650_v20, %v4429_v55  ;;  %v11772_v55 = vld [vmem:[%s13221_s1 + $0x8] sm:$0xff] }
0x20de   :  { %13393 = vst [vmem:[#allocation73_spill] sm:$0xff] %v11725_v18  ;;  %v4481_v53 = vsel %vm751_vm6, %v4480_v44, %v11725_v18 }
0x20df   :  { %13394 = vst [vmem:[#allocation74_spill] sm:$0xff] %v11732_v40  ;;  %v4427_v34 = vpop.permute.xlu0 %4426  ;;  %v4483_v47 = vsel %vm1126_vm7, %v4482_v25, %v4481_v53  ;;  %v4491_v32 = vrot.slane %v11732_v40, 7  ;;  %v11779_v53 = vld [vmem:[%s13221_s1] sm:$0xff] }
0x20e0   :  { %v11737_v31 = vmul.f32 %v11653_v58, %v4427_v34  ;;  %v4485_v17 = vsel %vm1496_vm8, %v4484_v15, %v4483_v47  ;;  %v4431_v43 = vpop.permute.xlu1 %4430  ;;  %v11765_v15 = vld [vmem:[%s13221_s1 + $0x10] sm:$0xff] }
0x20e1   :  { %4486 = vrot.lane.b32.xlu0 %v4485_v17, %s9672_s10  ;;  %v11745_v20 = vmul.f32 %v11658_v19, %v4431_v43  ;;  %v11756_v19 = vld [vmem:[%s13221_s1 + $0x18] sm:$0xff] }
0x20e2   :  { %13395 = vst [vmem:[#allocation75_spill] sm:$0xff] %v11737_v31  ;;  %v4490_v12 = vsel %vm751_vm6, %v11737_v31, %v4489_v54  ;;  %v11785_v17 = vld [vmem:[%s13222_s0 + $0x18] sm:$0xff]  ;;  %vm741_vm6 = vcmask 260230  }
0x20e3   :  { %13396 = vst [vmem:[#allocation76_spill] sm:$0xff] %v11745_v20  ;;  %v4492_v0 = vsel %vm1126_vm7, %v4491_v32, %v4490_v12  ;;  %v4493_v62 = vrot.slane %v11745_v20, 6  ;;  %v11791_v12 = vld [vmem:[%s13222_s0] sm:$0xff] }
0x20e5   :  { %v4494_v58 = vsel %vm1496_vm8, %v4493_v62, %v4492_v0 }
0x20e6   :  { %4495 = vrot.lane.b32.xlu1 %v4494_v58, %s9671_s9  ;;  %v11797_v58 = vld [vmem:[%s13222_s0 + $0x10] sm:$0xff] }
0x2153   :  { %v4487_v63 = vpop.permute.xlu0 %4486 }
0x2158   :  { %v4496_v13 = vpop.permute.xlu1 %4495 }
0x2159   :  { %v4498_v44 = vsel %vm13312_vm4, %v4487_v63, %v4496_v13 }
0x215a   :  { %v4500_v25 = vrot.slane %v4498_v44, 3  ;;  %v11803_v44 = vld [vmem:[%s13222_s0 + $0x28] sm:$0xff] }
0x215c   :  { %8304 = vmatmul.mubr.msk.f32.vlgmr.msra.gmra.mxu0 %vm13321_vm5, %v4500_v25 }
0x215d   :  { %8318 = vmatpush3.msra.mxu0 %v11756_v19  ;;  %8325 = vmatprep.mubr.msk.f32.mxu0 %vm13316_vm0, %v13340_v9 }
0x215e   :  { %8319 = vmatprep.subr.mxu0 %v13340_v9 }
0x215f   :  { %8320 = vmatpush3.msra.mxu0 %v11765_v15 }
0x2160   :  { %8321 = vmatprep.subr.mxu0 %v13340_v9 }
0x2161   :  { %8322 = vmatpush3.msra.mxu0 %v11772_v55 }
0x2162   :  { %8323 = vmatprep.subr.mxu0 %v13340_v9 }
0x2163   :  { %8324 = vmatpush3.msra.mxu0 %v11779_v53 }
0x221c   :  { %v4569_v34 = vpop.f32.mrf.mxu0 }
0x221d   :  { %v4575_v47 = vrot.slane %v4569_v34, 5  ;;  %v4576_v43 = vrot.slane %v4569_v34, 6  ;;  %v4577_v62 = vrot.slane %v4569_v34, 7  ;;  %v4574_v13 = vrot.slane %v4569_v34, 4 }
0x221e   :  { %v8305_v54 = vpop.f32.mrf.mxu0 }
0x221f   :  { %v4583_v32 = vadd.f32 %v11785_v17, %v4575_v47  ;;  %v4587_v0 = vadd.f32 %v11791_v12, %v4575_v47  ;;  %v4588_v63 = vadd.f32 %v11797_v58, %v4576_v43  ;;  %v4584_v25 = vadd.f32 %v11803_v44, %v4576_v43  ;;  %v11809_v47 = vld [vmem:[%s13222_s0 + $0x20] sm:$0xff]  ;;  %v11822_v43 = vld [vmem:[%s13222_s0 + $0x38] sm:$0xff] }
0x2220   :  { %v4589_v54 = vadd.f32 %v11809_v47, %v4577_v62  ;;  %v4582_v20 = vadd.f32 %v11816_v11, %v4574_v13  ;;  %v4585_v28 = vadd.f32 %v11822_v43, %v4577_v62 }
0x2221   :  { %9311 = vtanh.f32 %v4583_v32  ;;  %v7856_v31 = vmul.f32 -1.442695, %v4583_v32  ;;  %v7860_v14 = vmul.f32 -1.442695, %v4588_v63 }
0x2222   :  { %9313 = vtanh.f32 %v4587_v0  ;;  %v7861_v57 = vmul.f32 -1.442695, %v4589_v54  ;;  %v7855_v2 = vmul.f32 -1.442695, %v4582_v20 }
0x2223   :  { %9315 = vtanh.f32 %v4588_v63 }
0x2224   :  { %9317 = vtanh.f32 %v4584_v25 }
0x2225   :  { %9319 = vtanh.f32 %v4589_v54 }
0x2226   :  { %9321 = vtanh.f32 %v4582_v20 }
0x2227   :  { %9323 = vtanh.f32 %v4585_v28 }
0x222e   :  { %v9312_v50 = vpop.eup %9311 }
0x222f   :  { %4641 = vrot.lane.b32.xlu0 %v9312_v50, %s9669_s29  ;;  %v11828_v50 = vld [vmem:[%s13222_s0 + $0x30] sm:$0xff]  ;;  %v9314_v13 = vpop.eup %9313 }
0x2230   :  { %v4590_v36 = vadd.f32 %v11828_v50, %v4569_v34  ;;  %v9316_v30 = vpop.eup %9315  ;;  %4747 = vrot.lane.b32.xlu1 %v9314_v13, %s9669_s29  ;;  %v7859_v13 = vmul.f32 -1.442695, %v4587_v0 }
0x2231   :  { %v9318_v40 = vpop.eup %9317 }
0x2232   :  { %9325 = vtanh.f32 %v4590_v36  ;;  %v9320_v46 = vpop.eup %9319 }
0x2233   :  { %4749 = vrot.lane.b32.xlu0 %v9316_v30, %s9669_s29  ;;  %v9322_v62 = vpop.eup %9321  ;;  %9327 = vpow2.f32 %v7856_v31  ;;  %v7857_v30 = vmul.f32 -1.442695, %v4584_v25 }
0x2234   :  { %4643 = vrot.lane.b32.xlu1 %v9318_v40, %s9669_s29  ;;  %v9324_v48 = vpop.eup %9323  ;;  %9329 = vpow2.f32 %v7859_v13 }
0x2235   :  { %9331 = vpow2.f32 %v7860_v14 }
0x2236   :  { %9333 = vpow2.f32 %v7857_v30 }
0x2237   :  { %4751 = vrot.lane.b32.xlu0 %v9320_v46, %s9669_s29  ;;  %v7858_v46 = vmul.f32 -1.442695, %v4585_v28  ;;  %9335 = vpow2.f32 %v7861_v57 }
0x2238   :  { %4639 = vrot.lane.b32.xlu1 %v9322_v62, %s9669_s29  ;;  %9337 = vpow2.f32 %v7855_v2 }
0x2239   :  { %9339 = vpow2.f32 %v7858_v46 }
0x223b   :  { %4645 = vrot.lane.b32.xlu0 %v9324_v48, %s9669_s29  ;;  %v7862_v48 = vmul.f32 -1.442695, %v4590_v36 }
0x223f   :  { %v9326_v34 = vpop.eup %9325 }
0x2240   :  { %4753 = vrot.lane.b32.xlu1 %v9326_v34, %s9669_s29  ;;  %v9328_v40 = vpop.eup %9327 }
0x2241   :  { %v4604_v18 = vadd.f32 1.0, %v9328_v40  ;;  %v9330_v62 = vpop.eup %9329 }
0x2242   :  { %v9332_v32 = vpop.eup %9331  ;;  %v4711_v31 = vadd.f32 1.0, %v9330_v62 }
0x2243   :  { %9341 = vrcp.f32 %v4604_v18  ;;  %v9334_v0 = vpop.eup %9333  ;;  %v4712_v63 = vadd.f32 1.0, %v9332_v32 }
0x2244   :  { %9343 = vpow2.f32 %v7862_v48  ;;  %v9336_v25 = vpop.eup %9335  ;;  %v4605_v14 = vadd.f32 1.0, %v9334_v0 }
0x2245   :  { %v9338_v34 = vpop.eup %9337  ;;  %9345 = vrcp.f32 %v4711_v31  ;;  %v4713_v20 = vadd.f32 1.0, %v9336_v25 }
0x2246   :  { %v9340_v54 = vpop.eup %9339  ;;  %9347 = vrcp.f32 %v4712_v63  ;;  %v4603_v36 = vadd.f32 1.0, %v9338_v34 }
0x2247   :  { %9349 = vrcp.f32 %v4605_v14  ;;  %v4606_v13 = vadd.f32 1.0, %v9340_v54 }
0x2248   :  { %9351 = vrcp.f32 %v4713_v20 }
0x2249   :  { %9353 = vrcp.f32 %v4603_v36 }
0x224a   :  { %9355 = vrcp.f32 %v4606_v13 }
0x2250   :  { %v11838_v28 = vpop.eup %9341 }
0x2251   :  { %v9344_v18 = vpop.eup %9343 }
0x2252   :  { %v4714_v30 = vadd.f32 1.0, %v9344_v18  ;;  %v11842_v40 = vpop.eup %9345 }
0x2253   :  { %v11844_v48 = vpop.eup %9347 }
0x2254   :  { %9357 = vrcp.f32 %v4714_v30  ;;  %v11849_v0 = vpop.eup %9349 }
0x2255   :  { %v11852_v25 = vpop.eup %9351 }
0x2256   :  { %v11857_v20 = vpop.eup %9353 }
0x22a1   :  { %v4642_v57 = vpop.permute.xlu0 %4641 }
0x22a2   :  { %v4652_v2 = vmul.f32 %v11838_v28, %v4642_v57  ;;  %v4748_v46 = vpop.permute.xlu1 %4747 }
0x22a3   :  { %v4759_v62 = vmul.f32 %v11842_v40, %v4748_v46 }
0x22a4   :  { %4661 = vrot.lane.b32.xlu0 %v4652_v2, %s9670_s30  ;;  %v11860_v2 = vpop.eup %9355 }
0x22a5   :  { %v4750_v32 = vpop.permute.xlu0 %4749  ;;  %4767 = vrot.lane.b32.xlu1 %v4759_v62, %s9670_s30  ;;  %v11865_v30 = vpop.eup %9357 }
0x22a6   :  { %v4760_v31 = vmul.f32 %v11844_v48, %v4750_v32  ;;  %v4644_v63 = vpop.permute.xlu1 %4643  ;;  %v4624_v32 = vrot.slane %v11668_v22, 7 }
0x22a7   :  { %v4653_v34 = vmul.f32 %v11849_v0, %v4644_v63 }
0x22a8   :  { %4769 = vrot.lane.b32.xlu0 %v4760_v31, %s9670_s30  ;;  %v4632_v31 = vmul.f32 %v11838_v28, %v4624_v32 }
0x22a9   :  { %v4752_v14 = vpop.permute.xlu0 %4751  ;;  %4663 = vrot.lane.b32.xlu1 %v4653_v34, %s9670_s30 }
0x22aa   :  { %v4761_v54 = vmul.f32 %v11852_v25, %v4752_v14  ;;  %v4640_v57 = vpop.permute.xlu1 %4639  ;;  %v4731_v14 = vrot.slane %v11683_v16, 1 }
0x22ab   :  { %v4651_v36 = vmul.f32 %v11857_v20, %v4640_v57 }
0x22ac   :  { %4771 = vrot.lane.b32.xlu0 %v4761_v54, %s9670_s30  ;;  %v4732_v54 = vrot.slane %v11695_v5, 1  ;;  %v4739_v57 = vmul.f32 %v11842_v40, %v4731_v14  ;;  %v4623_v14 = vrot.slane %v11686_v33, 7  ;;  %v4734_v33 = vrot.slane %v11700_v60, 1 }
0x22ad   :  { %v4646_v18 = vpop.permute.xlu0 %4645  ;;  %4659 = vrot.lane.b32.xlu1 %v4651_v36, %s9670_s30 }
0x22ae   :  { %v4654_v13 = vmul.f32 %v11860_v2, %v4646_v18  ;;  %v4740_v18 = vmul.f32 %v11844_v48, %v4732_v54 }
0x22b0   :  { %4665 = vrot.lane.b32.xlu0 %v4654_v13, %s9670_s30  ;;  %v4625_v13 = vrot.slane %v11677_v39, 7 }
0x22b2   :  { %v4754_v46 = vpop.permute.xlu1 %4753  ;;  %v4633_v16 = vmul.f32 %v11849_v0, %v4625_v13 }
0x22b3   :  { %v4762_v62 = vmul.f32 %v11865_v30, %v4754_v46 }
0x22b5   :  { %4773 = vrot.lane.b32.xlu1 %v4762_v62, %s9670_s30  ;;  %v4733_v62 = vrot.slane %v11693_v51, 1 }
0x2316   :  { %v4662_v63 = vpop.permute.xlu0 %4661 }
0x2317   :  { %v11872_v34 = vadd.f32 %v4662_v63, %v4632_v31  ;;  %v4768_v36 = vpop.permute.xlu1 %4767  ;;  %v4741_v31 = vmul.f32 %v11852_v25, %v4733_v62 }
0x2318   :  { %v11880_v46 = vadd.f32 %v4768_v36, %v4739_v57  ;;  %v4626_v57 = vrot.slane %v11670_v29, 7  ;;  %v4631_v36 = vmul.f32 %v11857_v20, %v4623_v14  ;;  %v4742_v29 = vmul.f32 %v11865_v30, %v4734_v33 }
0x2319   :  { %9359 = vtanh.f32 %v11872_v34 }
0x231a   :  { %v4770_v22 = vpop.permute.xlu0 %4769  ;;  %9361 = vtanh.f32 %v11880_v46  ;;  %v4634_v13 = vmul.f32 %v11860_v2, %v4626_v57 }
0x231b   :  { %v11883_v32 = vadd.f32 %v4770_v22, %v4740_v18  ;;  %v4664_v5 = vpop.permute.xlu1 %4663 }
0x231c   :  { %v11890_v39 = vadd.f32 %v4664_v5, %v4633_v16 }
0x231d   :  { %9363 = vtanh.f32 %v11883_v32 }
0x231e   :  { %v4772_v54 = vpop.permute.xlu0 %4771  ;;  %9365 = vtanh.f32 %v11890_v39 }
0x231f   :  { %v11893_v51 = vadd.f32 %v4772_v54, %v4741_v31  ;;  %v4660_v18 = vpop.permute.xlu1 %4659 }
0x2320   :  { %v11901_v22 = vadd.f32 %v4660_v18, %v4631_v36 }
0x2321   :  { %9367 = vtanh.f32 %v11893_v51 }
0x2322   :  { %v4666_v62 = vpop.permute.xlu0 %4665  ;;  %9369 = vtanh.f32 %v11901_v22 }
0x2323   :  { %v11903_v16 = vadd.f32 %v4666_v62, %v4634_v13 }
0x2325   :  { %9371 = vtanh.f32 %v11903_v16 }
0x2326   :  { %v9360_v63 = vpop.eup %9359 }
0x2327   :  { %4685 = vrot.lane.b32.xlu0 %v9360_v63, %s9671_s9  ;;  %v4774_v5 = vpop.permute.xlu1 %4773  ;;  %v9362_v63 = vpop.eup %9361 }
0x2328   :  { %v11908_v31 = vadd.f32 %v4774_v5, %v4742_v29  ;;  %4791 = vrot.lane.b32.xlu1 %v9362_v63, %s9671_s9 }
0x232a   :  { %9373 = vtanh.f32 %v11908_v31  ;;  %v9364_v14 = vpop.eup %9363 }
0x232b   :  { %4793 = vrot.lane.b32.xlu0 %v9364_v14, %s9671_s9  ;;  %v9366_v60 = vpop.eup %9365 }
0x232c   :  { %4687 = vrot.lane.b32.xlu1 %v9366_v60, %s9671_s9 }
0x232e   :  { %v9368_v54 = vpop.eup %9367 }
0x232f   :  { %4795 = vrot.lane.b32.xlu0 %v9368_v54, %s9671_s9  ;;  %v9370_v57 = vpop.eup %9369 }
0x2330   :  { %4683 = vrot.lane.b32.xlu1 %v9370_v57, %s9671_s9 }
0x2332   :  { %v9372_v36 = vpop.eup %9371 }
0x2333   :  { %4689 = vrot.lane.b32.xlu0 %v9372_v36, %s9671_s9 }
0x2337   :  { %v9374_v18 = vpop.eup %9373 }
0x2338   :  { %4797 = vrot.lane.b32.xlu1 %v9374_v18, %s9671_s9 }
0x2399   :  { %v4686_v13 = vpop.permute.xlu0 %4685 }
0x239a   :  { %v4792_v33 = vpop.permute.xlu1 %4791  ;;  %v11919_v5 = vmul.f32 %v11838_v28, %v4686_v13 }
0x239b   :  { %v11932_v18 = vmul.f32 %v11842_v40, %v4792_v33 }
0x239c   :  { %v4847_v36 = vrot.slane %v11919_v5, 7 }
0x239d   :  { %v4794_v62 = vpop.permute.xlu0 %4793  ;;  %v4856_v33 = vrot.slane %v11932_v18, 7 }
0x239e   :  { %v4688_v29 = vpop.permute.xlu1 %4687  ;;  %v11922_v14 = vmul.f32 %v11844_v48, %v4794_v62 }
0x239f   :  { %v11925_v60 = vmul.f32 %v11849_v0, %v4688_v29 }
0x23a0   :  { %v4857_v48 = vrot.slane %v11922_v14, 6 }
0x23a1   :  { %v4796_v63 = vpop.permute.xlu0 %4795  ;;  %13397 = vst [vmem:[#allocation77_spill] sm:$0xff] %v11925_v60  ;;  %v4849_v0 = vrot.slane %v11925_v60, 6 }
0x23a2   :  { %v11928_v54 = vmul.f32 %v11852_v25, %v4796_v63  ;;  %v4684_v57 = vpop.permute.xlu1 %4683 }
0x23a3   :  { %v11935_v26 = vmul.f32 %v11857_v20, %v4684_v57 }
0x23a4   :  { %13398 = vst [vmem:[#allocation78_spill] sm:$0xff] %v11928_v54  ;;  %v4859_v62 = vrot.slane %v11928_v54, 5 }
0x23a5   :  { %v4690_v28 = vpop.permute.xlu0 %4689  ;;  %v4848_v25 = vsel %vm1126_vm7, %v4847_v36, %v11935_v26  ;;  %v4858_v36 = vsel %vm1126_vm7, %v4857_v48, %v4856_v33  ;;  %vm720_vm7 = vcmask 123905  }
0x23a6   :  { %v11938_v13 = vmul.f32 %v11860_v2, %v4690_v28  ;;  %v4850_v2 = vsel %vm1496_vm8, %v4849_v0, %v4848_v25  ;;  %v4860_v28 = vsel %vm1496_vm8, %v4859_v62, %v4858_v36 }
0x23a8   :  { %13399 = vst [vmem:[#allocation79_spill] sm:$0xff] %v11938_v13  ;;  %v4851_v29 = vrot.slane %v11938_v13, 5 }
0x23aa   :  { %v4798_v40 = vpop.permute.xlu1 %4797  ;;  %v4852_v63 = vsel %vm1866_vm9, %v4851_v29, %v4850_v2 }
0x23ab   :  { %v11948_v20 = vmul.f32 %v11865_v30, %v4798_v40  ;;  %4853 = vrot.lane.b32.xlu0 %v4852_v63, %s9672_s10 }
0x23ad   :  { %13400 = vst [vmem:[#allocation80_spill] sm:$0xff] %v11948_v20  ;;  %v4861_v57 = vrot.slane %v11948_v20, 4 }
0x23af   :  { %v4862_v13 = vsel %vm1866_vm9, %v4861_v57, %v4860_v28 }
0x23b0   :  { %4863 = vrot.lane.b32.xlu1 %v4862_v13, %s9671_s9 }
0x241d   :  { %v4854_v60 = vpop.permute.xlu0 %4853 }
0x2422   :  { %v4864_v54 = vpop.permute.xlu1 %4863 }
0x2423   :  { %v4866_v30 = vsel %vm13312_vm4, %v4854_v60, %v4864_v54 }
0x2424   :  { %v4868_v40 = vrot.slane %v4866_v30, 4 }
0x2426   :  { %8315 = vmatmul.mubr.msk.f32.vlgmr.msra.gmra.mxu1 %vm13321_vm5, %v4868_v40 }
0x2427   :  { %8329 = vmatpush3.msra.mxu1 %v11756_v19  ;;  %8336 = vmatprep.mubr.msk.f32.mxu1 %vm13316_vm0, %v13340_v9  ;;  %vm2231_vm0 = vcmask 256130  }
0x2428   :  { %8330 = vmatprep.subr.mxu1 %v13340_v9 }
0x2429   :  { %8331 = vmatpush3.msra.mxu1 %v11765_v15 }
0x242a   :  { %8332 = vmatprep.subr.mxu1 %v13340_v9 }
0x242b   :  { %8333 = vmatpush3.msra.mxu1 %v11772_v55 }
0x242c   :  { %8334 = vmatprep.subr.mxu1 %v13340_v9 }
0x242d   :  { %8335 = vmatpush3.msra.mxu1 %v11779_v53 }
0x24e6   :  { %v4937_v60 = vpop.f32.mrf.mxu1 }
0x24e7   :  { %v4945_v13 = vrot.slane %v4937_v60, 6  ;;  %v4944_v48 = vrot.slane %v4937_v60, 5  ;;  %v4943_v0 = vrot.slane %v4937_v60, 4  ;;  %v4961_v25 = vadd.f32 %v11809_v47, %v4937_v60 }
0x24e8   :  { %v8316_v54 = vpop.f32.mrf.mxu1  ;;  %v4942_v62 = vrot.slane %v4937_v60, 3  ;;  %v4954_v55 = vrot.slane %v4937_v60, 7  ;;  %v4955_v53 = vrot.slane %v4937_v60, 1 }
0x24e9   :  { %v4959_v19 = vadd.f32 %v11791_v12, %v4945_v13  ;;  %v4952_v15 = vadd.f32 %v11803_v44, %v4944_v48  ;;  %v4951_v29 = vadd.f32 %v11785_v17, %v4943_v0  ;;  %v4953_v57 = vadd.f32 %v11822_v43, %v4945_v13 }
0x24ea   :  { %v4950_v33 = vadd.f32 %v11816_v11, %v4942_v62  ;;  %v4960_v2 = vadd.f32 %v11797_v58, %v4954_v55  ;;  %v4962_v63 = vadd.f32 %v11828_v50, %v4955_v53  ;;  %v7870_v62 = vmul.f32 -1.442695, %v4961_v25 }
0x24eb   :  { %9375 = vtanh.f32 %v4959_v19  ;;  %v7868_v0 = vmul.f32 -1.442695, %v4959_v19  ;;  %v7866_v55 = vmul.f32 -1.442695, %v4952_v15  ;;  %v7865_v53 = vmul.f32 -1.442695, %v4951_v29 }
0x24ec   :  { %9377 = vtanh.f32 %v4961_v25 }
0x24ed   :  { %9379 = vtanh.f32 %v4952_v15 }
0x24ee   :  { %9381 = vtanh.f32 %v4951_v29 }
0x24ef   :  { %9383 = vtanh.f32 %v4950_v33 }
0x24f0   :  { %9385 = vtanh.f32 %v4960_v2 }
0x24f1   :  { %9387 = vtanh.f32 %v4962_v63 }
0x24f2   :  { %9389 = vtanh.f32 %v4953_v57 }
0x24f3   :  { %9391 = vpow2.f32 %v7868_v0 }
0x24f4   :  { %9393 = vpow2.f32 %v7870_v62 }
0x24f5   :  { %9395 = vpow2.f32 %v7866_v55 }
0x24f6   :  { %9397 = vpow2.f32 %v7865_v53 }
0x24f8   :  { %v9376_v36 = vpop.eup %9375 }
0x24f9   :  { %5119 = vrot.lane.b32.xlu1 %v9376_v36, %s9669_s29  ;;  %v9378_v28 = vpop.eup %9377  ;;  %v7864_v36 = vmul.f32 -1.442695, %v4950_v33 }
0x24fa   :  { %5123 = vrot.lane.b32.xlu0 %v9378_v28, %s9669_s29  ;;  %v9380_v30 = vpop.eup %9379  ;;  %v7869_v28 = vmul.f32 -1.442695, %v4960_v2 }
0x24fb   :  { %v9382_v40 = vpop.eup %9381  ;;  %9399 = vpow2.f32 %v7864_v36 }
0x24fc   :  { %v9384_v60 = vpop.eup %9383  ;;  %9401 = vpow2.f32 %v7869_v28 }
0x24fd   :  { %5015 = vrot.lane.b32.xlu1 %v9380_v30, %s9669_s29  ;;  %v9386_v54 = vpop.eup %9385  ;;  %v7871_v30 = vmul.f32 -1.442695, %v4962_v63 }
0x24fe   :  { %5013 = vrot.lane.b32.xlu0 %v9382_v40, %s9669_s29  ;;  %v9388_v13 = vpop.eup %9387  ;;  %v7867_v40 = vmul.f32 -1.442695, %v4953_v57 }
0x24ff   :  { %v9390_v48 = vpop.eup %9389  ;;  %9403 = vpow2.f32 %v7871_v30 }
0x2500   :  { %9405 = vpow2.f32 %v7867_v40 }
0x2501   :  { %5011 = vrot.lane.b32.xlu1 %v9384_v60, %s9669_s29  ;;  %v9392_v60 = vpop.eup %9391 }
0x2502   :  { %5121 = vrot.lane.b32.xlu0 %v9386_v54, %s9669_s29  ;;  %v9394_v54 = vpop.eup %9393 }
0x2503   :  { %v5085_v19 = vadd.f32 1.0, %v9394_v54 }
0x2505   :  { %5125 = vrot.lane.b32.xlu1 %v9388_v13, %s9669_s29  ;;  %v5083_v13 = vadd.f32 1.0, %v9392_v60 }
0x2506   :  { %5017 = vrot.lane.b32.xlu0 %v9390_v48, %s9669_s29  ;;  %v9396_v48 = vpop.eup %9395 }
0x2507   :  { %v9398_v25 = vpop.eup %9397  ;;  %v4977_v15 = vadd.f32 1.0, %v9396_v48  ;;  %9407 = vrcp.f32 %v5083_v13 }
0x2508   :  { %v9400_v29 = vpop.eup %9399  ;;  %v4976_v0 = vadd.f32 1.0, %v9398_v25  ;;  %9409 = vrcp.f32 %v5085_v19 }
0x2509   :  { %v9402_v33 = vpop.eup %9401  ;;  %v4975_v62 = vadd.f32 1.0, %v9400_v29  ;;  %9411 = vrcp.f32 %v4977_v15 }
0x250a   :  { %9413 = vrcp.f32 %v4976_v0  ;;  %v5084_v63 = vadd.f32 1.0, %v9402_v33 }
0x250b   :  { %9415 = vrcp.f32 %v4975_v62 }
0x250c   :  { %v9404_v2 = vpop.eup %9403  ;;  %9417 = vrcp.f32 %v5084_v63 }
0x250d   :  { %v9406_v57 = vpop.eup %9405  ;;  %v5086_v55 = vadd.f32 1.0, %v9404_v2 }
0x250e   :  { %v4978_v53 = vadd.f32 1.0, %v9406_v57 }
0x250f   :  { %9419 = vrcp.f32 %v5086_v55 }
0x2510   :  { %9421 = vrcp.f32 %v4978_v53 }
0x2514   :  { %v11985_v36 = vpop.eup %9407 }
0x2515   :  { %v11988_v40 = vpop.eup %9409 }
0x2516   :  { %v11992_v13 = vpop.eup %9411 }
0x2517   :  { %v11996_v25 = vpop.eup %9413 }
0x2518   :  { %v12000_v0 = vpop.eup %9415 }
0x2519   :  { %v12004_v2 = vpop.eup %9417 }
0x251c   :  { %v12008_v55 = vpop.eup %9419 }
0x256b   :  { %v5120_v28 = vpop.permute.xlu1 %5119 }
0x256c   :  { %v5131_v30 = vmul.f32 %v11985_v36, %v5120_v28  ;;  %v5124_v60 = vpop.permute.xlu0 %5123 }
0x256d   :  { %v5133_v54 = vmul.f32 %v11988_v40, %v5124_v60 }
0x256e   :  { %5139 = vrot.lane.b32.xlu1 %v5131_v30, %s9670_s30  ;;  %v12012_v30 = vpop.eup %9421 }
0x256f   :  { %v5016_v48 = vpop.permute.xlu1 %5015  ;;  %5143 = vrot.lane.b32.xlu0 %v5133_v54, %s9670_s30 }
0x2570   :  { %v5025_v19 = vmul.f32 %v11992_v13, %v5016_v48  ;;  %v5014_v15 = vpop.permute.xlu0 %5013  ;;  %v5103_v48 = vrot.slane %v11880_v46, 1 }
0x2571   :  { %v5024_v29 = vmul.f32 %v11996_v25, %v5014_v15 }
0x2572   :  { %5035 = vrot.lane.b32.xlu1 %v5025_v19, %s9670_s30  ;;  %v5105_v19 = vrot.slane %v11893_v51, 1  ;;  %v5111_v15 = vmul.f32 %v11985_v36, %v5103_v48  ;;  %v4995_v51 = vrot.slane %v11901_v22, 7 }
0x2573   :  { %v5012_v33 = vpop.permute.xlu1 %5011  ;;  %5033 = vrot.lane.b32.xlu0 %v5024_v29, %s9670_s30 }
0x2574   :  { %v5023_v62 = vmul.f32 %v12000_v0, %v5012_v33  ;;  %v5122_v63 = vpop.permute.xlu0 %5121  ;;  %v4997_v33 = vrot.slane %v11890_v39, 7 }
0x2575   :  { %v5132_v57 = vmul.f32 %v12004_v2, %v5122_v63 }
0x2576   :  { %5031 = vrot.lane.b32.xlu1 %v5023_v62, %s9670_s30  ;;  %v5113_v62 = vmul.f32 %v11988_v40, %v5105_v19  ;;  %v5005_v46 = vmul.f32 %v11992_v13, %v4997_v33  ;;  %v5104_v19 = vrot.slane %v11883_v32, 1  ;;  %v5106_v33 = vrot.slane %v11908_v31, 1 }
0x2577   :  { %v5126_v53 = vpop.permute.xlu1 %5125  ;;  %5141 = vrot.lane.b32.xlu0 %v5132_v57, %s9670_s30 }
0x2578   :  { %v5134_v28 = vmul.f32 %v12008_v55, %v5126_v53  ;;  %v5018_v60 = vpop.permute.xlu0 %5017  ;;  %v4996_v53 = vrot.slane %v11872_v34, 7  ;;  %v5003_v34 = vmul.f32 %v12000_v0, %v4995_v51  ;;  %v5112_v22 = vmul.f32 %v12004_v2, %v5104_v19 }
0x2579   :  { %v5026_v54 = vmul.f32 %v12012_v30, %v5018_v60  ;;  %v5114_v32 = vmul.f32 %v12008_v55, %v5106_v33 }
0x257a   :  { %5145 = vrot.lane.b32.xlu1 %v5134_v28, %s9670_s30  ;;  %v5004_v39 = vmul.f32 %v11996_v25, %v4996_v53  ;;  %v4998_v53 = vrot.slane %v11903_v16, 7 }
0x257b   :  { %5037 = vrot.lane.b32.xlu0 %v5026_v54, %s9670_s30 }
0x257c   :  { %v5006_v31 = vmul.f32 %v12012_v30, %v4998_v53 }
0x25e0   :  { %v5140_v29 = vpop.permute.xlu1 %5139 }
0x25e1   :  { %v12022_v63 = vadd.f32 %v5140_v29, %v5111_v15  ;;  %v5144_v57 = vpop.permute.xlu0 %5143 }
0x25e2   :  { %v12025_v60 = vadd.f32 %v5144_v57, %v5113_v62 }
0x25e3   :  { %9423 = vtanh.f32 %v12022_v63 }
0x25e4   :  { %v5036_v28 = vpop.permute.xlu1 %5035  ;;  %9425 = vtanh.f32 %v12025_v60 }
0x25e5   :  { %v12032_v54 = vadd.f32 %v5036_v28, %v5005_v46  ;;  %v5034_v48 = vpop.permute.xlu0 %5033 }
0x25e6   :  { %v12035_v15 = vadd.f32 %v5034_v48, %v5004_v39 }
0x25e7   :  { %9427 = vtanh.f32 %v12032_v54 }
0x25e8   :  { %v5032_v29 = vpop.permute.xlu1 %5031  ;;  %9429 = vtanh.f32 %v12035_v15 }
0x25e9   :  { %v12042_v62 = vadd.f32 %v5032_v29, %v5003_v34  ;;  %v5142_v57 = vpop.permute.xlu0 %5141 }
0x25ea   :  { %v12045_v46 = vadd.f32 %v5142_v57, %v5112_v22 }
0x25eb   :  { %9431 = vtanh.f32 %v12042_v62 }
0x25ec   :  { %v5146_v28 = vpop.permute.xlu1 %5145  ;;  %9433 = vtanh.f32 %v12045_v46 }
0x25ed   :  { %v12051_v51 = vadd.f32 %v5146_v28, %v5114_v32  ;;  %v5038_v39 = vpop.permute.xlu0 %5037 }
0x25ee   :  { %v12053_v48 = vadd.f32 %v5038_v39, %v5006_v31 }
0x25ef   :  { %9435 = vtanh.f32 %v12051_v51 }
0x25f0   :  { %v9424_v19 = vpop.eup %9423  ;;  %9437 = vtanh.f32 %v12053_v48 }
0x25f1   :  { %5163 = vrot.lane.b32.xlu1 %v9424_v19, %s9671_s9  ;;  %v9426_v16 = vpop.eup %9425 }
0x25f2   :  { %5167 = vrot.lane.b32.xlu0 %v9426_v16, %s9671_s9 }
0x25f4   :  { %v9428_v34 = vpop.eup %9427 }
0x25f5   :  { %5059 = vrot.lane.b32.xlu1 %v9428_v34, %s9671_s9  ;;  %v9430_v29 = vpop.eup %9429 }
0x25f6   :  { %5057 = vrot.lane.b32.xlu0 %v9430_v29, %s9671_s9 }
0x25f8   :  { %v9432_v33 = vpop.eup %9431 }
0x25f9   :  { %5055 = vrot.lane.b32.xlu1 %v9432_v33, %s9671_s9  ;;  %v9434_v22 = vpop.eup %9433 }
0x25fa   :  { %5165 = vrot.lane.b32.xlu0 %v9434_v22, %s9671_s9 }
0x25fc   :  { %v9436_v57 = vpop.eup %9435 }
0x25fd   :  { %5169 = vrot.lane.b32.xlu1 %v9436_v57, %s9671_s9  ;;  %v9438_v53 = vpop.eup %9437 }
0x25fe   :  { %5061 = vrot.lane.b32.xlu0 %v9438_v53, %s9671_s9 }
0x2663   :  { %v5164_v32 = vpop.permute.xlu1 %5163 }
0x2664   :  { %v5168_v28 = vpop.permute.xlu0 %5167  ;;  %v12072_v29 = vmul.f32 %v11985_v36, %v5164_v32 }
0x2665   :  { %v12079_v57 = vmul.f32 %v11988_v40, %v5168_v28 }
0x2666   :  { %v5230_v32 = vrot.slane %v12072_v29, 5 }
0x2667   :  { %v5060_v31 = vpop.permute.xlu1 %5059  ;;  %v5233_v40 = vrot.slane %v12079_v57, 3 }
0x2668   :  { %v5058_v39 = vpop.permute.xlu0 %5057  ;;  %v12066_v19 = vmul.f32 %v11992_v13, %v5060_v31 }
0x2669   :  { %v12069_v16 = vmul.f32 %v11996_v25, %v5058_v39 }
0x266a   :  { %v5221_v53 = vrot.slane %v12066_v19, 6 }
0x266b   :  { %v5056_v34 = vpop.permute.xlu1 %5055  ;;  %v5219_v33 = vrot.slane %v12069_v16, 7 }
0x266c   :  { %v12076_v22 = vmul.f32 %v12000_v0, %v5056_v34  ;;  %v5166_v9 = vpop.permute.xlu0 %5165 }
0x266d   :  { %v12083_v13 = vmul.f32 %v12004_v2, %v5166_v9 }
0x266e   :  { %v5220_v25 = vsel %vm1496_vm8, %v5219_v33, %v12076_v22 }
0x266f   :  { %v5222_v36 = vsel %vm1866_vm9, %v5221_v53, %v5220_v25  ;;  %v5231_v31 = vrot.slane %v12083_v13, 4  ;;  %v5170_v28 = vpop.permute.xlu1 %5169 }
0x2670   :  { %5224 = vrot.lane.b32.xlu0 %v5222_v36, %s9672_s10  ;;  %v5062_v0 = vpop.permute.xlu0 %5061  ;;  %v12099_v33 = vmul.f32 %v12008_v55, %v5170_v28 }
0x2671   :  { %v12093_v39 = vmul.f32 %v12012_v30, %v5062_v0  ;;  %v5232_v9 = vsel %vm1496_vm8, %v5231_v31, %v5230_v32  ;;  %vm1116_vm8 = vcmask 259205  }
0x2672   :  { %v5234_v2 = vsel %vm1866_vm9, %v5233_v40, %v5232_v9  ;;  %13402 = vst [vmem:[#allocation82_spill] sm:$0xff] %v12099_v33  ;;  %v5235_v53 = vrot.slane %v12099_v33, 2 }
0x2673   :  { %13401 = vst [vmem:[#allocation81_spill] sm:$0xff] %v12093_v39  ;;  %v5223_v34 = vrot.slane %v12093_v39, 5 }
0x2674   :  { %5236 = vrot.lane.b32.xlu0 %v5234_v2, %s9671_s9 }
0x2675   :  { %5226 = vrot.lane.b32.xlu1 %v5223_v34, %s9672_s10 }
0x2679   :  { %5238 = vrot.lane.b32.xlu1 %v5235_v53, %s9671_s9 }
0x26e2   :  { %v5225_v25 = vpop.permute.xlu0 %5224 }
0x26e6   :  { %v5237_v36 = vpop.permute.xlu0 %5236 }
0x26e7   :  { %v5227_v30 = vpop.permute.xlu1 %5226  ;;  %v5242_v32 = vsel %vm13312_vm4, %v5225_v25, %v5237_v36 }
0x26e8   :  { %v5246_v0 = vrot.slane %v5242_v32, 5 }
0x26eb   :  { %v5239_v31 = vpop.permute.xlu1 %5238 }
0x26ec   :  { %v5243_v40 = vsel %vm13312_vm4, %v5227_v30, %v5239_v31 }
0x26ed   :  { %v5247_v9 = vrot.slane %v5243_v40, 5 }
0x26ef   :  { %v5248_v55 = vsel %vm13320_vm10, %v5246_v0, %v5247_v9  ;;  %vm2593_vm10 = vcmask 129030  }
0x26f0   :  { %8326 = vmatmul.mubr.msk.f32.vlgmr.msra.gmra.mxu0 %vm13321_vm5, %v5248_v55 }
0x27b0   :  { %v5317_v28 = vpop.f32.mrf.mxu0 }
0x27b1   :  { %v5324_v34 = vrot.slane %v5317_v28, 4  ;;  %v5334_v53 = vrot.slane %v5317_v28, 7  ;;  %v5335_v33 = vrot.slane %v5317_v28, 1  ;;  %v5323_v25 = vrot.slane %v5317_v28, 3 }
0x27b2   :  { %v8327_v2 = vpop.f32.mrf.mxu0  ;;  %v5340_v36 = vadd.f32 %v11797_v58, %v5317_v28  ;;  %v5322_v30 = vrot.slane %v5317_v28, 2  ;;  %v5325_v31 = vrot.slane %v5317_v28, 5 }
0x27b3   :  { %v5332_v39 = vadd.f32 %v11803_v44, %v5324_v34  ;;  %v5339_v20 = vadd.f32 %v11791_v12, %v5334_v53  ;;  %v5341_v32 = vadd.f32 %v11809_v47, %v5335_v33  ;;  %v5331_v40 = vadd.f32 %v11785_v17, %v5323_v25 }
0x27b4   :  { %v5342_v0 = vadd.f32 %v11828_v50, %v5322_v30  ;;  %v5333_v44 = vadd.f32 %v11822_v43, %v5325_v31  ;;  %v5330_v12 = vadd.f32 %v11816_v11, %v5322_v30  ;;  %v7878_v2 = vmul.f32 -1.442695, %v5340_v36 }
0x27b5   :  { %9439 = vtanh.f32 %v5332_v39  ;;  %v7875_v55 = vmul.f32 -1.442695, %v5332_v39  ;;  %v7877_v28 = vmul.f32 -1.442695, %v5339_v20  ;;  %v7879_v34 = vmul.f32 -1.442695, %v5341_v32 }
0x27b6   :  { %9441 = vtanh.f32 %v5339_v20  ;;  %v7874_v53 = vmul.f32 -1.442695, %v5331_v40  ;;  %v7880_v25 = vmul.f32 -1.442695, %v5342_v0  ;;  %v7876_v30 = vmul.f32 -1.442695, %v5333_v44 }
0x27b7   :  { %9443 = vtanh.f32 %v5340_v36 }
0x27b8   :  { %9445 = vtanh.f32 %v5341_v32 }
0x27b9   :  { %9447 = vtanh.f32 %v5331_v40 }
0x27ba   :  { %9449 = vtanh.f32 %v5342_v0 }
0x27bb   :  { %9451 = vtanh.f32 %v5333_v44 }
0x27bc   :  { %9453 = vtanh.f32 %v5330_v12 }
0x27bd   :  { %9455 = vpow2.f32 %v7875_v55 }
0x27be   :  { %9457 = vpow2.f32 %v7877_v28 }
0x27bf   :  { %9459 = vpow2.f32 %v7878_v2 }
0x27c0   :  { %9461 = vpow2.f32 %v7879_v34 }
0x27c1   :  { %9463 = vpow2.f32 %v7874_v53 }
0x27c2   :  { %v9440_v9 = vpop.eup %9439  ;;  %9465 = vpow2.f32 %v7880_v25 }
0x27c3   :  { %5395 = vrot.lane.b32.xlu1 %v9440_v9, %s9669_s29  ;;  %v9442_v58 = vpop.eup %9441  ;;  %v7873_v9 = vmul.f32 -1.442695, %v5330_v12  ;;  %9467 = vpow2.f32 %v7876_v30 }
0x27c4   :  { %v9444_v47 = vpop.eup %9443 }
0x27c5   :  { %5501 = vrot.lane.b32.xlu0 %v9444_v47, %s9669_s29  ;;  %v9446_v17 = vpop.eup %9445  ;;  %9469 = vpow2.f32 %v7873_v9 }
0x27c6   :  { %v9448_v50 = vpop.eup %9447 }
0x27c7   :  { %5499 = vrot.lane.b32.xlu1 %v9442_v58, %s9669_s29  ;;  %v9450_v43 = vpop.eup %9449 }
0x27c8   :  { %v9452_v33 = vpop.eup %9451 }
0x27c9   :  { %5393 = vrot.lane.b32.xlu0 %v9448_v50, %s9669_s29  ;;  %v9454_v11 = vpop.eup %9453 }
0x27ca   :  { %v9456_v31 = vpop.eup %9455 }
0x27cb   :  { %5503 = vrot.lane.b32.xlu1 %v9446_v17, %s9669_s29  ;;  %v5357_v58 = vadd.f32 1.0, %v9456_v31  ;;  %v9458_v47 = vpop.eup %9457 }
0x27cc   :  { %v9460_v17 = vpop.eup %9459  ;;  %v5463_v39 = vadd.f32 1.0, %v9458_v47 }
0x27cd   :  { %5397 = vrot.lane.b32.xlu0 %v9452_v33, %s9669_s29  ;;  %9471 = vrcp.f32 %v5357_v58  ;;  %v9462_v20 = vpop.eup %9461  ;;  %v5464_v36 = vadd.f32 1.0, %v9460_v17 }
0x27ce   :  { %v9464_v50 = vpop.eup %9463  ;;  %v5465_v32 = vadd.f32 1.0, %v9462_v20  ;;  %9473 = vrcp.f32 %v5463_v39 }
0x27cf   :  { %5505 = vrot.lane.b32.xlu1 %v9450_v43, %s9669_s29  ;;  %v9466_v40 = vpop.eup %9465  ;;  %v5356_v43 = vadd.f32 1.0, %v9464_v50  ;;  %9475 = vrcp.f32 %v5464_v36 }
0x27d0   :  { %v9468_v0 = vpop.eup %9467  ;;  %v5466_v44 = vadd.f32 1.0, %v9466_v40  ;;  %9477 = vrcp.f32 %v5465_v32 }
0x27d1   :  { %5391 = vrot.lane.b32.xlu0 %v9454_v11, %s9669_s29  ;;  %v5358_v33 = vadd.f32 1.0, %v9468_v0  ;;  %9479 = vrcp.f32 %v5356_v43 }
0x27d2   :  { %v9470_v12 = vpop.eup %9469  ;;  %9481 = vrcp.f32 %v5466_v44 }
0x27d3   :  { %v5355_v2 = vadd.f32 1.0, %v9470_v12  ;;  %9483 = vrcp.f32 %v5358_v33 }
0x27d5   :  { %9485 = vrcp.f32 %v5355_v2 }
0x27da   :  { %v12125_v11 = vpop.eup %9471 }
0x27db   :  { %v12129_v34 = vpop.eup %9473 }
0x27dc   :  { %v12131_v25 = vpop.eup %9475 }
0x27dd   :  { %v12136_v58 = vpop.eup %9477 }
0x27de   :  { %v12139_v17 = vpop.eup %9479 }
0x27df   :  { %v12144_v50 = vpop.eup %9481 }
0x27e0   :  { %v12147_v40 = vpop.eup %9483 }
0x27e2   :  { %v12153_v33 = vpop.eup %9485 }
0x2835   :  { %v5396_v55 = vpop.permute.xlu1 %5395 }
0x2836   :  { %v5405_v28 = vmul.f32 %v12125_v11, %v5396_v55 }
0x2837   :  { %v5502_v30 = vpop.permute.xlu0 %5501 }
0x2838   :  { %5415 = vrot.lane.b32.xlu1 %v5405_v28, %s9670_s30  ;;  %v5512_v9 = vmul.f32 %v12131_v25, %v5502_v30  ;;  %v5377_v28 = vrot.slane %v12032_v54, 7 }
0x2839   :  { %v5500_v53 = vpop.permute.xlu1 %5499 }
0x283a   :  { %v5511_v31 = vmul.f32 %v12129_v34, %v5500_v53  ;;  %5521 = vrot.lane.b32.xlu0 %v5512_v9, %s9670_s30  ;;  %v5385_v2 = vmul.f32 %v12125_v11, %v5377_v28  ;;  %v5484_v9 = vrot.slane %v12045_v46, 1  ;;  %v5378_v28 = vrot.slane %v12053_v48, 7 }
0x283b   :  { %v5394_v39 = vpop.permute.xlu0 %5393 }
0x283c   :  { %5519 = vrot.lane.b32.xlu1 %v5511_v31, %s9670_s30  ;;  %v5404_v36 = vmul.f32 %v12139_v17, %v5394_v39  ;;  %v5483_v31 = vrot.slane %v12022_v63, 1  ;;  %v5492_v39 = vmul.f32 %v12131_v25, %v5484_v9 }
0x283d   :  { %v5504_v47 = vpop.permute.xlu1 %5503 }
0x283e   :  { %v5513_v20 = vmul.f32 %v12136_v58, %v5504_v47  ;;  %5413 = vrot.lane.b32.xlu0 %v5404_v36, %s9670_s30  ;;  %v5491_v47 = vmul.f32 %v12129_v34, %v5483_v31  ;;  %v5485_v36 = vrot.slane %v12025_v60, 1 }
0x283f   :  { %v5398_v43 = vpop.permute.xlu0 %5397 }
0x2840   :  { %5523 = vrot.lane.b32.xlu1 %v5513_v20, %s9670_s30  ;;  %v5406_v44 = vmul.f32 %v12147_v40, %v5398_v43  ;;  %v5376_v43 = vrot.slane %v12035_v15, 7  ;;  %v5493_v63 = vmul.f32 %v12136_v58, %v5485_v36 }
0x2841   :  { %v5506_v32 = vpop.permute.xlu1 %5505 }
0x2842   :  { %v5514_v0 = vmul.f32 %v12144_v50, %v5506_v32  ;;  %5417 = vrot.lane.b32.xlu0 %v5406_v44, %s9670_s30  ;;  %v5384_v46 = vmul.f32 %v12139_v17, %v5376_v43 }
0x2843   :  { %v5392_v12 = vpop.permute.xlu0 %5391 }
0x2844   :  { %5525 = vrot.lane.b32.xlu1 %v5514_v0, %s9670_s30  ;;  %v5403_v55 = vmul.f32 %v12153_v33, %v5392_v12  ;;  %v5486_v12 = vrot.slane %v12051_v51, 1 }
0x2846   :  { %5411 = vrot.lane.b32.xlu0 %v5403_v55, %s9670_s30  ;;  %v5494_v15 = vmul.f32 %v12144_v50, %v5486_v12 }
0x28aa   :  { %v5416_v53 = vpop.permute.xlu1 %5415 }
0x28ab   :  { %v12159_v30 = vadd.f32 %v5416_v53, %v5385_v2  ;;  %v5386_v53 = vmul.f32 %v12147_v40, %v5378_v28 }
0x28ac   :  { %v5522_v32 = vpop.permute.xlu0 %5521 }
0x28ad   :  { %9487 = vtanh.f32 %v12159_v30  ;;  %v12170_v0 = vadd.f32 %v5522_v32, %v5492_v39  ;;  %v5375_v39 = vrot.slane %v12042_v62, 7 }
0x28ae   :  { %v5520_v20 = vpop.permute.xlu1 %5519 }
0x28af   :  { %v12167_v54 = vadd.f32 %v5520_v20, %v5491_v47  ;;  %v5383_v48 = vmul.f32 %v12153_v33, %v5375_v39 }
0x28b0   :  { %v5414_v55 = vpop.permute.xlu0 %5413 }
0x28b1   :  { %9489 = vtanh.f32 %v12167_v54  ;;  %v12180_v2 = vadd.f32 %v5414_v55, %v5384_v46 }
0x28b2   :  { %9491 = vtanh.f32 %v12170_v0  ;;  %v5524_v44 = vpop.permute.xlu1 %5523 }
0x28b3   :  { %v12177_v60 = vadd.f32 %v5524_v44, %v5493_v63 }
0x28b4   :  { %v5418_v9 = vpop.permute.xlu0 %5417 }
0x28b5   :  { %9493 = vtanh.f32 %v12177_v60  ;;  %v12189_v20 = vadd.f32 %v5418_v9, %v5386_v53 }
0x28b6   :  { %9495 = vtanh.f32 %v12180_v2  ;;  %v5526_v31 = vpop.permute.xlu1 %5525 }
0x28b7   :  { %v12186_v47 = vadd.f32 %v5526_v31, %v5494_v15 }
0x28b8   :  { %v5412_v36 = vpop.permute.xlu0 %5411 }
0x28b9   :  { %9497 = vtanh.f32 %v12186_v47  ;;  %v12195_v32 = vadd.f32 %v5412_v36, %v5383_v48 }
0x28ba   :  { %v9488_v51 = vpop.eup %9487  ;;  %9499 = vtanh.f32 %v12189_v20 }
0x28bb   :  { %5439 = vrot.lane.b32.xlu1 %v9488_v51, %s9671_s9  ;;  %9501 = vtanh.f32 %v12195_v32 }
0x28be   :  { %v9490_v43 = vpop.eup %9489 }
0x28bf   :  { %v9492_v63 = vpop.eup %9491  ;;  %5543 = vrot.lane.b32.xlu1 %v9490_v43, %s9671_s9 }
0x28c0   :  { %5545 = vrot.lane.b32.xlu0 %v9492_v63, %s9671_s9 }
0x28c2   :  { %v9494_v62 = vpop.eup %9493 }
0x28c3   :  { %v9496_v46 = vpop.eup %9495  ;;  %5547 = vrot.lane.b32.xlu1 %v9494_v62, %s9671_s9 }
0x28c4   :  { %5437 = vrot.lane.b32.xlu0 %v9496_v46, %s9671_s9 }
0x28c6   :  { %v9498_v44 = vpop.eup %9497 }
0x28c7   :  { %v9500_v12 = vpop.eup %9499  ;;  %5549 = vrot.lane.b32.xlu1 %v9498_v44, %s9671_s9 }
0x28c8   :  { %5441 = vrot.lane.b32.xlu0 %v9500_v12, %s9671_s9  ;;  %v9502_v55 = vpop.eup %9501 }
0x28cc   :  { %5435 = vrot.lane.b32.xlu0 %v9502_v55, %s9671_s9 }
0x292d   :  { %v5440_v28 = vpop.permute.xlu1 %5439 }
0x292e   :  { %v12206_v51 = vmul.f32 %v12125_v11, %v5440_v28 }
0x2930   :  { %v5601_v62 = vrot.slane %v12206_v51, 6 }
0x2931   :  { %v5544_v15 = vpop.permute.xlu1 %5543 }
0x2932   :  { %v5546_v53 = vpop.permute.xlu0 %5545  ;;  %v5555_v46 = vmul.f32 %v12129_v34, %v5544_v15 }
0x2933   :  { %v12224_v12 = vmul.f32 %v12131_v25, %v5546_v53 }
0x2934   :  { %v5610_v34 = vrot.slane %v5555_v46, 3 }
0x2935   :  { %v5548_v31 = vpop.permute.xlu1 %5547  ;;  %v5611_v25 = vrot.slane %v12224_v12, 2 }
0x2936   :  { %v5438_v9 = vpop.permute.xlu0 %5437  ;;  %v12215_v63 = vmul.f32 %v12136_v58, %v5548_v31 }
0x2937   :  { %v12209_v36 = vmul.f32 %v12139_v17, %v5438_v9  ;;  %v5612_v53 = vsel %vm1866_vm9, %v5611_v25, %v5610_v34 }
0x2939   :  { %v5550_v48 = vpop.permute.xlu1 %5549  ;;  %v5599_v55 = vrot.slane %v12209_v36, 7 }
0x293a   :  { %v5442_v39 = vpop.permute.xlu0 %5441  ;;  %v12221_v11 = vmul.f32 %v12144_v50, %v5550_v48 }
0x293b   :  { %v12212_v43 = vmul.f32 %v12147_v40, %v5442_v39  ;;  %v5613_v40 = vrot.slane %v12215_v63, 1 }
0x293d   :  { %v5602_v44 = vrot.slane %v12212_v43, 5  ;;  %v5614_v50 = vsel %vm13315_vm1, %v12221_v11, %v5613_v40 }
0x293e   :  { %v5436_v17 = vpop.permute.xlu0 %5435 }
0x293f   :  { %v5447_v58 = vmul.f32 %v12153_v33, %v5436_v17  ;;  %v5603_v28 = vsel %vm13315_vm1, %v5602_v44, %v5601_v62  ;;  %vm1835_vm1 = vcmask 126980  }
0x2940   :  { %5606 = vrot.lane.b32.xlu1 %v5603_v28, %s9672_s10 }
0x2941   :  { %v5600_v15 = vsel %vm1866_vm9, %v5599_v55, %v5447_v58  ;;  %vm1095_vm9 = vcmask 124930  }
0x2942   :  { %5604 = vrot.lane.b32.xlu0 %v5600_v15, %s9672_s10 }
0x2944   :  { %5617 = vrot.lane.b32.xlu1 %v5614_v50, %s9671_s9 }
0x2946   :  { %5615 = vrot.lane.b32.xlu0 %v5612_v53, %s9671_s9 }
0x2948   :  { %352 = vrot.lane.b32.xlu1 %v9906_v24, %s9671_s9  ;;  %v13404_v24 = vld [vmem:[#allocation19_spill] sm:$0xff] }
0x294a   :  { %331 = vrot.lane.b32.xlu0 %v9919_v7, %s9672_s10  ;;  %v13406_v7 = vld [vmem:[#allocation22_spill] sm:$0xff] }
0x294c   :  { %729 = vrot.lane.b32.xlu1 %v10061_v35, %s9671_s9  ;;  %v13409_v35 = vld [vmem:[#allocation40_spill] sm:$0xff] }
0x294e   :  { %708 = vrot.lane.b32.xlu0 %v10064_v49, %s9672_s10  ;;  %v13410_v49 = vld [vmem:[#allocation38_spill] sm:$0xff] }
0x2950   :  { %1104 = vrot.lane.b32.xlu1 %v10199_v1, %s9671_s9  ;;  %v13412_v1 = vld [vmem:[#allocation44_spill] sm:$0xff] }
0x2952   :  { %1083 = vrot.lane.b32.xlu0 %v10206_v8, %s9672_s10  ;;  %v13414_v8 = vld [vmem:[#allocation46_spill] sm:$0xff] }
0x2954   :  { %1474 = vrot.lane.b32.xlu1 %v10414_v10, %s9671_s9  ;;  %v13417_v10 = vld [vmem:[#allocation73_spill] sm:$0xff] }
0x2956   :  { %1453 = vrot.lane.b32.xlu0 %v10417_v6, %s9672_s10  ;;  %v13418_v6 = vld [vmem:[#allocation62_spill] sm:$0xff] }
0x2958   :  { %1844 = vrot.lane.b32.xlu1 %v10565_v52, %s9671_s9 }
0x295a   :  { %1823 = vrot.lane.b32.xlu0 %v10568_v3, %s9672_s10  ;;  %v13415_v3 = vld [vmem:[#allocation64_spill] sm:$0xff] }
0x295c   :  { %2219 = vrot.lane.b32.xlu1 %v10706_v38, %s9671_s9 }
0x295e   :  { %2198 = vrot.lane.b32.xlu0 %v10710_v4, %s9672_s10 }
0x2960   :  { %2602 = vrot.lane.b32.xlu1 %v10923_v27, %s9671_s9  ;;  %v13419_v27 = vld [vmem:[#allocation72_spill] sm:$0xff] }
0x2962   :  { %2581 = vrot.lane.b32.xlu0 %v10935_v41, %s9672_s10 }
0x2964   :  { %333 = vrot.lane.b32.xlu1 %v9900_v21, %s9672_s10  ;;  %v13403_v21 = vld [vmem:[#allocation21_spill] sm:$0xff] }
0x2966   :  { %2980 = vrot.lane.b32.xlu0 %v11082_v45, %s9671_s9 }
0x2968   :  { %710 = vrot.lane.b32.xlu1 %v10048_v37, %s9672_s10  ;;  %v13407_v37 = vld [vmem:[#allocation34_spill] sm:$0xff] }
0x296a   :  { %354 = vrot.lane.b32.xlu0 %v9903_v23, %s9671_s9  ;;  %v13405_v23 = vld [vmem:[#allocation28_spill] sm:$0xff] }
0x296c   :  { %1085 = vrot.lane.b32.xlu1 %v10202_v59, %s9672_s10  ;;  %v13413_v59 = vld [vmem:[#allocation58_spill] sm:$0xff] }
0x296e   :  { %731 = vrot.lane.b32.xlu0 %v10051_v42, %s9671_s9  ;;  %v13408_v42 = vld [vmem:[#allocation30_spill] sm:$0xff] }
0x2970   :  { %1455 = vrot.lane.b32.xlu1 %v10404_v61, %s9672_s10  ;;  %v13416_v61 = vld [vmem:[#allocation57_spill] sm:$0xff] }
0x2972   :  { %1106 = vrot.lane.b32.xlu0 %v10196_v56, %s9671_s9  ;;  %v13411_v56 = vld [vmem:[#allocation51_spill] sm:$0xff] }
0x2974   :  { %1825 = vrot.lane.b32.xlu1 %v13403_v21, %s9672_s10 }
0x2976   :  { %1476 = vrot.lane.b32.xlu0 %v13404_v24, %s9671_s9 }
0x2978   :  { %2200 = vrot.lane.b32.xlu1 %v13405_v23, %s9672_s10 }
0x297a   :  { %1846 = vrot.lane.b32.xlu0 %v13406_v7, %s9671_s9 }
0x297c   :  { %2583 = vrot.lane.b32.xlu1 %v13407_v37, %s9672_s10 }
0x297e   :  { %2221 = vrot.lane.b32.xlu0 %v13408_v42, %s9671_s9 }
0x2980   :  { %2961 = vrot.lane.b32.xlu1 %v13409_v35, %s9672_s10 }
0x2982   :  { %2604 = vrot.lane.b32.xlu0 %v13410_v49, %s9671_s9 }
0x2984   :  { %3334 = vrot.lane.b32.xlu1 %v13411_v56, %s9672_s10 }
0x2986   :  { %2982 = vrot.lane.b32.xlu0 %v13412_v1, %s9671_s9 }
0x2988   :  { %3705 = vrot.lane.b32.xlu1 %v13413_v59, %s9672_s10 }
0x298a   :  { %3354 = vrot.lane.b32.xlu0 %v13414_v8, %s9671_s9 }
0x298c   :  { %4077 = vrot.lane.b32.xlu1 %v13415_v3, %s9672_s10 }
0x298e   :  { %3725 = vrot.lane.b32.xlu0 %v13416_v61, %s9671_s9 }
0x2990   :  { %4444 = vrot.lane.b32.xlu1 %v13417_v10, %s9672_s10 }
0x2992   :  { %4097 = vrot.lane.b32.xlu0 %v13418_v6, %s9671_s9 }
0x2994   :  { %4811 = vrot.lane.b32.xlu1 %v11935_v26, %s9672_s10 }
0x2996   :  { %4464 = vrot.lane.b32.xlu0 %v13419_v27, %s9671_s9 }
0x2998   :  { %5183 = vrot.lane.b32.xlu1 %v12076_v22, %s9672_s10 }
0x299a   :  { %4831 = vrot.lane.b32.xlu0 %v11932_v18, %s9671_s9 }
0x299c   :  { %5563 = vrot.lane.b32.xlu1 %v5447_v58, %s9672_s10 }
0x299e   :  { %5203 = vrot.lane.b32.xlu0 %v12072_v29, %s9671_s9 }
0x29a2   :  { %5583 = vrot.lane.b32.xlu0 %v5555_v46, %s9671_s9 }
0x29b2   :  { %v5607_v52 = vpop.permute.xlu1 %5606 }
0x29b4   :  { %v5605_v38 = vpop.permute.xlu0 %5604 }
0x29b6   :  { %v5618_v4 = vpop.permute.xlu1 %5617 }
0x29b7   :  { %v5622_v41 = vsel %vm13312_vm4, %v5607_v52, %v5618_v4 }
0x29b8   :  { %v5616_v45 = vpop.permute.xlu0 %5615  ;;  %v5626_v22 = vrot.slane %v5622_v41, 6 }
0x29b9   :  { %v5621_v26 = vsel %vm13312_vm4, %v5605_v38, %v5616_v45  ;;  %vm1486_vm4 = vcmask 258180  }
0x29ba   :  { %v5625_v33 = vrot.slane %v5621_v26, 6  ;;  %v353_v31 = vpop.permute.xlu1 %352 }
0x29bb   :  { %365 = vst.msk [vmem:[#allocation2 + $0x8] sm:$0x80] %vm364_vm14, %v353_v31 }
0x29bc   :  { %v332_v18 = vpop.permute.xlu0 %331  ;;  %v5627_v29 = vsel %vm13318_vm11, %v5625_v33, %v5626_v22  ;;  %vm2210_vm11 = vcmask 128005  }
0x29bd   :  { %344 = vst.msk [vmem:[#allocation2] sm:$0x1] %vm343_vm15, %v332_v18  ;;  %8337 = vmatmul.mubr.msk.f32.vlgmr.msra.gmra.mxu1 %vm13321_vm5, %v5627_v29  ;;  %vm2992_vm5 = vcmask 254080  }
0x29be   :  { %v730_v9 = vpop.permute.xlu1 %729 }
0x29bf   :  { %742 = vst.msk [vmem:[#allocation2 + $0x8] sm:$0x40] %vm741_vm6, %v730_v9 }
0x29c0   :  { %v709_v39 = vpop.permute.xlu0 %708 }
0x29c1   :  { %721 = vst.msk [vmem:[#allocation2] sm:$0x2] %vm720_vm7, %v709_v39 }
0x29c2   :  { %v1105_v48 = vpop.permute.xlu1 %1104 }
0x29c3   :  { %1117 = vst.msk [vmem:[#allocation2 + $0x8] sm:$0x20] %vm1116_vm8, %v1105_v48 }
0x29c4   :  { %v1084_v62 = vpop.permute.xlu0 %1083 }
0x29c5   :  { %1096 = vst.msk [vmem:[#allocation2] sm:$0x4] %vm1095_vm9, %v1084_v62  ;;  %v9659_v62 = vld [vmem:[%s13222_s0 + $0x8] sm:$0xff] }
0x29c6   :  { %v1475_v46 = vpop.permute.xlu1 %1474 }
0x29c7   :  { %1487 = vst.msk [vmem:[#allocation2 + $0x8] sm:$0x10] %vm1486_vm4, %v1475_v46 }
0x29c8   :  { %v1454_v44 = vpop.permute.xlu0 %1453 }
0x29c9   :  { %1466 = vst.msk [vmem:[#allocation2] sm:$0x8] %vm1465_vm3, %v1454_v44 }
0x29ca   :  { %v1845_v17 = vpop.permute.xlu1 %1844 }
0x29cb   :  { %1857 = vst.msk [vmem:[#allocation2 + $0x8] sm:$0x8] %vm1856_vm2, %v1845_v17  ;;  %v9660_v17 = vld [vmem:[%s13222_s0 + $0x18] sm:$0xff] }
0x29cc   :  { %v1824_v55 = vpop.permute.xlu0 %1823 }
0x29cd   :  { %1836 = vst.msk [vmem:[#allocation2] sm:$0x10] %vm1835_vm1, %v1824_v55 }
0x29ce   :  { %v2220_v40 = vpop.permute.xlu1 %2219 }
0x29cf   :  { %2232 = vst.msk [vmem:[#allocation2 + $0x8] sm:$0x4] %vm2231_vm0, %v2220_v40 }
0x29d0   :  { %v2199_v58 = vpop.permute.xlu0 %2198 }
0x29d1   :  { %2211 = vst.msk [vmem:[#allocation2] sm:$0x20] %vm2210_vm11, %v2199_v58  ;;  %v9661_v58 = vld [vmem:[%s13222_s0 + $0x28] sm:$0xff] }
0x29d2   :  { %v2603_v28 = vpop.permute.xlu1 %2602 }
0x29d3   :  { %2615 = vst.msk [vmem:[#allocation2 + $0x8] sm:$0x2] %vm2614_vm13, %v2603_v28 }
0x29d4   :  { %v2582_v34 = vpop.permute.xlu0 %2581 }
0x29d5   :  { %2594 = vst.msk [vmem:[#allocation2] sm:$0x40] %vm2593_vm10, %v2582_v34  ;;  %v9662_v34 = vld [vmem:[%s13222_s0 + $0x38] sm:$0xff] }
0x29d6   :  { %v334_v15 = vpop.permute.xlu1 %333 }
0x29d7   :  { %345 = vst.msk [vmem:[#allocation2 + $0x10] sm:$0x1] %vm343_vm15, %v334_v15 }
0x29d8   :  { %v2981_v50 = vpop.permute.xlu0 %2980 }
0x29d9   :  { %2993 = vst.msk [vmem:[#allocation2 + $0x8] sm:$0x1] %vm2992_vm5, %v2981_v50  ;;  %v9663_v50 = vld [vmem:[%s13222_s0] sm:$0xff] }
0x29da   :  { %v711_v25 = vpop.permute.xlu1 %710 }
0x29db   :  { %722 = vst.msk [vmem:[#allocation2 + $0x10] sm:$0x2] %vm720_vm7, %v711_v25 }
0x29dc   :  { %v355_v53 = vpop.permute.xlu0 %354 }
0x29dd   :  { %366 = vst.msk [vmem:[#allocation2 + $0x18] sm:$0x80] %vm364_vm14, %v355_v53  ;;  %v9664_v53 = vld [vmem:[%s13222_s0 + $0x10] sm:$0xff] }
0x29de   :  { %v1086_v21 = vpop.permute.xlu1 %1085 }
0x29df   :  { %1097 = vst.msk [vmem:[#allocation2 + $0x10] sm:$0x4] %vm1095_vm9, %v1086_v21 }
0x29e0   :  { %v732_v24 = vpop.permute.xlu0 %731 }
0x29e1   :  { %743 = vst.msk [vmem:[#allocation2 + $0x18] sm:$0x40] %vm741_vm6, %v732_v24 }
0x29e2   :  { %v1456_v23 = vpop.permute.xlu1 %1455 }
0x29e3   :  { %1467 = vst.msk [vmem:[#allocation2 + $0x10] sm:$0x8] %vm1465_vm3, %v1456_v23  ;;  %v9665_v23 = vld [vmem:[%s13222_s0 + $0x20] sm:$0xff] }
0x29e4   :  { %v1107_v7 = vpop.permute.xlu0 %1106 }
0x29e5   :  { %1118 = vst.msk [vmem:[#allocation2 + $0x18] sm:$0x20] %vm1116_vm8, %v1107_v7 }
0x29e6   :  { %v1826_v37 = vpop.permute.xlu1 %1825 }
0x29e7   :  { %1837 = vst.msk [vmem:[#allocation2 + $0x10] sm:$0x10] %vm1835_vm1, %v1826_v37 }
0x29e8   :  { %v1477_v42 = vpop.permute.xlu0 %1476 }
0x29e9   :  { %1488 = vst.msk [vmem:[#allocation2 + $0x18] sm:$0x10] %vm1486_vm4, %v1477_v42  ;;  %v9666_v42 = vld [vmem:[%s13222_s0 + $0x30] sm:$0xff] }
0x29ea   :  { %v2201_v35 = vpop.permute.xlu1 %2200 }
0x29eb   :  { %2212 = vst.msk [vmem:[#allocation2 + $0x10] sm:$0x20] %vm2210_vm11, %v2201_v35 }
0x29ec   :  { %v1847_v49 = vpop.permute.xlu0 %1846 }
0x29ed   :  { %1858 = vst.msk [vmem:[#allocation2 + $0x18] sm:$0x8] %vm1856_vm2, %v1847_v49 }
0x29ee   :  { %v2584_v56 = vpop.permute.xlu1 %2583 }
0x29ef   :  { %2595 = vst.msk [vmem:[#allocation2 + $0x10] sm:$0x40] %vm2593_vm10, %v2584_v56 }
0x29f0   :  { %v2222_v1 = vpop.permute.xlu0 %2221 }
0x29f1   :  { %2233 = vst.msk [vmem:[#allocation2 + $0x18] sm:$0x4] %vm2231_vm0, %v2222_v1 }
0x29f2   :  { %v2962_v59 = vpop.permute.xlu1 %2961 }
0x29f3   :  { %2973 = vst.msk [vmem:[#allocation2 + $0x10] sm:$0x80] %vm2971_vm12, %v2962_v59 }
0x29f4   :  { %v2605_v8 = vpop.permute.xlu0 %2604 }
0x29f5   :  { %2616 = vst.msk [vmem:[#allocation2 + $0x18] sm:$0x2] %vm2614_vm13, %v2605_v8  ;;  %v13420_v8 = vld [vmem:[#allocation45_spill] sm:$0xff] }
0x29f6   :  { %v3335_v3 = vpop.permute.xlu1 %3334 }
0x29f7   :  { %3346 = vst.msk [vmem:[#allocation2 + $0x8] sm:$0x1] %vm343_vm15, %v3335_v3 }
0x29f8   :  { %v2983_v61 = vpop.permute.xlu0 %2982 }
0x29f9   :  { %2994 = vst.msk [vmem:[#allocation2 + $0x18] sm:$0x1] %vm2992_vm5, %v2983_v61  ;;  %v13421_v61 = vld [vmem:[#allocation54_spill] sm:$0xff] }
0x29fa   :  { %v3706_v10 = vpop.permute.xlu1 %3705 }
0x29fb   :  { %3717 = vst.msk [vmem:[#allocation2 + $0x8] sm:$0x2] %vm720_vm7, %v3706_v10 }
0x29fc   :  { %v3355_v6 = vpop.permute.xlu0 %3354 }
0x29fd   :  { %3366 = vst.msk [vmem:[#allocation2] sm:$0x80] %vm364_vm14, %v3355_v6  ;;  %v13422_v6 = vld [vmem:[#allocation61_spill] sm:$0xff] }
0x29fe   :  { %v4078_v27 = vpop.permute.xlu1 %4077 }
0x29ff   :  { %4089 = vst.msk [vmem:[#allocation2 + $0x8] sm:$0x4] %vm1095_vm9, %v4078_v27  ;;  %v13423_v27 = vld [vmem:[#allocation47_spill] sm:$0xff] }
0x2a00   :  { %v3726_v52 = vpop.permute.xlu0 %3725 }
0x2a01   :  { %3737 = vst.msk [vmem:[#allocation2] sm:$0x40] %vm741_vm6, %v3726_v52  ;;  %v13424_v52 = vld [vmem:[#allocation75_spill] sm:$0xff] }
0x2a02   :  { %v4445_v38 = vpop.permute.xlu1 %4444 }
0x2a03   :  { %4456 = vst.msk [vmem:[#allocation2 + $0x8] sm:$0x8] %vm1465_vm3, %v4445_v38  ;;  %v13425_v38 = vld [vmem:[#allocation53_spill] sm:$0xff] }
0x2a04   :  { %v4098_v4 = vpop.permute.xlu0 %4097 }
0x2a05   :  { %4109 = vst.msk [vmem:[#allocation2] sm:$0x20] %vm1116_vm8, %v4098_v4  ;;  %v13426_v4 = vld [vmem:[#allocation63_spill] sm:$0xff] }
0x2a06   :  { %v4812_v41 = vpop.permute.xlu1 %4811 }
0x2a07   :  { %4823 = vst.msk [vmem:[#allocation2 + $0x8] sm:$0x10] %vm1835_vm1, %v4812_v41  ;;  %v13427_v41 = vld [vmem:[#allocation69_spill] sm:$0xff] }
0x2a08   :  { %v4465_v45 = vpop.permute.xlu0 %4464 }
0x2a09   :  { %4476 = vst.msk [vmem:[#allocation2] sm:$0x10] %vm1486_vm4, %v4465_v45  ;;  %v13428_v45 = vld [vmem:[#allocation4_spill] sm:$0xff] }
0x2a0a   :  { %v5184_v26 = vpop.permute.xlu1 %5183 }
0x2a0b   :  { %5195 = vst.msk [vmem:[#allocation2 + $0x8] sm:$0x20] %vm2210_vm11, %v5184_v26  ;;  %v13433_v26 = vld [vmem:[#allocation8_spill] sm:$0xff] }
0x2a0c   :  { %v4832_v22 = vpop.permute.xlu0 %4831 }
0x2a0d   :  { %4843 = vst.msk [vmem:[#allocation2] sm:$0x8] %vm1856_vm2, %v4832_v22  ;;  %v13435_v22 = vld [vmem:[#allocation16_spill] sm:$0xff] }
0x2a0e   :  { %v5564_v33 = vpop.permute.xlu1 %5563 }
0x2a0f   :  { %5575 = vst.msk [vmem:[#allocation2 + $0x8] sm:$0x40] %vm2593_vm10, %v5564_v33 }
0x2a10   :  { %v5204_v31 = vpop.permute.xlu0 %5203 }
0x2a11   :  { %5215 = vst.msk [vmem:[#allocation2] sm:$0x4] %vm2231_vm0, %v5204_v31 }
0x2a14   :  { %v5584_v18 = vpop.permute.xlu0 %5583 }
0x2a15   :  { %5595 = vst.msk [vmem:[#allocation2] sm:$0x2] %vm2614_vm13, %v5584_v18 }
0x2a7d   :  { %v5696_v29 = vpop.f32.mrf.mxu1 }
0x2a7e   :  { %v5701_v9 = vrot.slane %v5696_v29, 1  ;;  %v5702_v39 = vrot.slane %v5696_v29, 2  ;;  %v5703_v44 = vrot.slane %v5696_v29, 3  ;;  %v5704_v40 = vrot.slane %v5696_v29, 4 }
0x2a7f   :  { %v8338_v48 = vpop.f32.mrf.mxu1  ;;  %v5714_v25 = vadd.f32 %v9663_v50, %v5696_v29 }
0x2a80   :  { %v5709_v46 = vadd.f32 %v9659_v62, %v5701_v9  ;;  %v5710_v55 = vadd.f32 %v9660_v17, %v5702_v39  ;;  %v5711_v28 = vadd.f32 %v9661_v58, %v5703_v44  ;;  %v5712_v15 = vadd.f32 %v9662_v34, %v5704_v40 }
0x2a81   :  { %v5715_v21 = vadd.f32 %v9664_v53, %v5701_v9  ;;  %v5716_v7 = vadd.f32 %v9665_v23, %v5702_v39  ;;  %v5717_v35 = vadd.f32 %v9666_v42, %v5703_v44  ;;  %v7886_v29 = vmul.f32 -1.442695, %v5714_v25 }
0x2a82   :  { %9503 = vtanh.f32 %v5709_v46  ;;  %v7882_v33 = vmul.f32 -1.442695, %v5709_v46  ;;  %v7884_v31 = vmul.f32 -1.442695, %v5711_v28  ;;  %v7885_v18 = vmul.f32 -1.442695, %v5712_v15 }
0x2a83   :  { %9505 = vtanh.f32 %v5710_v55  ;;  %v7887_v9 = vmul.f32 -1.442695, %v5715_v21  ;;  %v7888_v48 = vmul.f32 -1.442695, %v5716_v7  ;;  %v7889_v17 = vmul.f32 -1.442695, %v5717_v35 }
0x2a84   :  { %9507 = vtanh.f32 %v5711_v28 }
0x2a85   :  { %9509 = vtanh.f32 %v5712_v15 }
0x2a86   :  { %9511 = vtanh.f32 %v5714_v25 }
0x2a87   :  { %9513 = vtanh.f32 %v5715_v21 }
0x2a88   :  { %9515 = vtanh.f32 %v5716_v7 }
0x2a89   :  { %9517 = vtanh.f32 %v5717_v35 }
0x2a8a   :  { %9519 = vpow2.f32 %v7882_v33 }
0x2a8f   :  { %v9504_v24 = vpop.eup %9503 }
0x2a90   :  { %5766 = vrot.lane.b32.xlu0 %v9504_v24, %s9669_s29  ;;  %v9506_v37 = vpop.eup %9505 }
0x2a91   :  { %v9508_v49 = vpop.eup %9507 }
0x2a92   :  { %v9510_v56 = vpop.eup %9509 }
0x2a93   :  { %v9512_v1 = vpop.eup %9511 }
0x2a94   :  { %5768 = vrot.lane.b32.xlu0 %v9506_v37, %s9669_s29  ;;  %5874 = vrot.lane.b32.xlu1 %v9512_v1, %s9669_s29  ;;  %v9514_v59 = vpop.eup %9513 }
0x2a95   :  { %v9516_v3 = vpop.eup %9515 }
0x2a96   :  { %v9518_v10 = vpop.eup %9517 }
0x2a97   :  { %v9520_v39 = vpop.eup %9519 }
0x2a98   :  { %5770 = vrot.lane.b32.xlu0 %v9508_v49, %s9669_s29  ;;  %5876 = vrot.lane.b32.xlu1 %v9514_v59, %s9669_s29  ;;  %v5730_v62 = vadd.f32 1.0, %v9520_v39  ;;  %v13439_v39 = vld [vmem:[#allocation23_spill] sm:$0xff] }
0x2a9c   :  { %5772 = vrot.lane.b32.xlu0 %v9510_v56, %s9669_s29  ;;  %5878 = vrot.lane.b32.xlu1 %v9516_v3, %s9669_s29 }
0x2aa0   :  { %3356 = vrot.lane.b32.xlu0 %v13420_v8, %s9671_s9  ;;  %5880 = vrot.lane.b32.xlu1 %v9518_v10, %s9669_s29 }
0x2aa4   :  { %3727 = vrot.lane.b32.xlu0 %v13421_v61, %s9671_s9  ;;  %3336 = vrot.lane.b32.xlu1 %v13423_v27, %s9672_s10 }
0x2aa8   :  { %4099 = vrot.lane.b32.xlu0 %v13422_v6, %s9671_s9  ;;  %3707 = vrot.lane.b32.xlu1 %v13425_v38, %s9672_s10 }
0x2aac   :  { %4466 = vrot.lane.b32.xlu0 %v13424_v52, %s9671_s9  ;;  %4079 = vrot.lane.b32.xlu1 %v13426_v4, %s9672_s10 }
0x2ab0   :  { %4833 = vrot.lane.b32.xlu0 %v11922_v14, %s9671_s9  ;;  %4446 = vrot.lane.b32.xlu1 %v13427_v41, %s9672_s10  ;;  %v13429_v14 = vld [vmem:[#allocation9_spill] sm:$0xff] }
0x2ab4   :  { %5205 = vrot.lane.b32.xlu0 %v12083_v13, %s9671_s9  ;;  %4813 = vrot.lane.b32.xlu1 %v11919_v5, %s9672_s10  ;;  %v13430_v13 = vld [vmem:[#allocation12_spill] sm:$0xff]  ;;  %v13432_v5 = vld [vmem:[#allocation18_spill] sm:$0xff] }
0x2ab8   :  { %5585 = vrot.lane.b32.xlu0 %v12224_v12, %s9671_s9  ;;  %5185 = vrot.lane.b32.xlu1 %v12069_v16, %s9672_s10  ;;  %v13431_v12 = vld [vmem:[#allocation5_spill] sm:$0xff] }
0x2ab9   :  { %v13434_v16 = vld [vmem:[#allocation13_spill] sm:$0xff] }
0x2abc   :  { %356 = vrot.lane.b32.xlu0 %v13428_v45, %s9671_s9  ;;  %5565 = vrot.lane.b32.xlu1 %v12209_v36, %s9672_s10  ;;  %v7883_v36 = vmul.f32 -1.442695, %v5710_v55 }
0x2abe   :  { %9521 = vpow2.f32 %v7883_v36 }
0x2abf   :  { %9523 = vpow2.f32 %v7884_v31 }
0x2ac0   :  { %733 = vrot.lane.b32.xlu0 %v13429_v14, %s9671_s9  ;;  %335 = vrot.lane.b32.xlu1 %v13431_v12, %s9672_s10  ;;  %9525 = vpow2.f32 %v7885_v18  ;;  %v13436_v14 = vld [vmem:[#allocation24_spill] sm:$0xff] }
0x2ac1   :  { %9527 = vpow2.f32 %v7886_v29  ;;  %v13438_v18 = vld [vmem:[#allocation36_spill] sm:$0xff] }
0x2ac2   :  { %9529 = vpow2.f32 %v7887_v9 }
0x2ac3   :  { %9531 = vpow2.f32 %v7888_v48  ;;  %v13440_v48 = vld [vmem:[#allocation41_spill] sm:$0xff] }
0x2ac4   :  { %1108 = vrot.lane.b32.xlu0 %v13430_v13, %s9671_s9  ;;  %712 = vrot.lane.b32.xlu1 %v13433_v26, %s9672_s10  ;;  %9533 = vrcp.f32 %v5730_v62 }
0x2ac5   :  { %9535 = vpow2.f32 %v7889_v17  ;;  %v13441_v17 = vld [vmem:[#allocation27_spill] sm:$0xff] }
0x2ac8   :  { %1478 = vrot.lane.b32.xlu0 %v13432_v5, %s9671_s9  ;;  %1087 = vrot.lane.b32.xlu1 %v13434_v16, %s9672_s10  ;;  %v13437_v16 = vld [vmem:[#allocation29_spill] sm:$0xff] }
0x2acb   :  { %v9522_v44 = vpop.eup %9521 }
0x2acc   :  { %1457 = vrot.lane.b32.xlu1 %v13435_v22, %s9672_s10  ;;  %v5731_v40 = vadd.f32 1.0, %v9522_v44  ;;  %v9524_v46 = vpop.eup %9523 }
0x2acd   :  { %v9526_v55 = vpop.eup %9525  ;;  %v5732_v58 = vadd.f32 1.0, %v9524_v46 }
0x2ace   :  { %9537 = vrcp.f32 %v5731_v40  ;;  %v9528_v28 = vpop.eup %9527  ;;  %v5733_v34 = vadd.f32 1.0, %v9526_v55  ;;  %v13442_v40 = vld [vmem:[#allocation49_spill] sm:$0xff] }
0x2acf   :  { %9539 = vrcp.f32 %v5732_v58  ;;  %v5838_v15 = vadd.f32 1.0, %v9528_v28  ;;  %v9530_v50 = vpop.eup %9529  ;;  %v13443_v58 = vld [vmem:[#allocation33_spill] sm:$0xff]  ;;  %v13444_v28 = vld [vmem:[#allocation56_spill] sm:$0xff] }
0x2ad0   :  { %9541 = vrcp.f32 %v5733_v34  ;;  %v9532_v25 = vpop.eup %9531  ;;  %v5839_v53 = vadd.f32 1.0, %v9530_v50  ;;  %v13445_v50 = vld [vmem:[#allocation39_spill] sm:$0xff] }
0x2ad1   :  { %9543 = vrcp.f32 %v5838_v15  ;;  %v12452_v21 = vpop.eup %9533  ;;  %v5840_v37 = vadd.f32 1.0, %v9532_v25  ;;  %v13446_v25 = vld [vmem:[#allocation65_spill] sm:$0xff] }
0x2ad2   :  { %v9536_v7 = vpop.eup %9535  ;;  %9545 = vrcp.f32 %v5839_v53 }
0x2ad3   :  { %v5841_v56 = vadd.f32 1.0, %v9536_v7  ;;  %9547 = vrcp.f32 %v5840_v37  ;;  %v13448_v7 = vld [vmem:[#allocation74_spill] sm:$0xff] }
0x2ad5   :  { %9549 = vrcp.f32 %v5841_v56  ;;  %v13450_v56 = vld [vmem:[#allocation78_spill] sm:$0xff] }
0x2adb   :  { %v12456_v42 = vpop.eup %9537 }
0x2adc   :  { %v12460_v1 = vpop.eup %9539 }
0x2add   :  { %v12463_v3 = vpop.eup %9541 }
0x2ade   :  { %v12466_v61 = vpop.eup %9543 }
0x2adf   :  { %v12472_v38 = vpop.eup %9545 }
0x2ae0   :  { %v12479_v13 = vpop.eup %9547 }
0x2ae2   :  { %v12486_v22 = vpop.eup %9549 }
0x2b02   :  { %v5767_v24 = vpop.permute.xlu0 %5766 }
0x2b03   :  { %v5778_v23 = vmul.f32 %v12452_v21, %v5767_v24 }
0x2b05   :  { %5786 = vrot.lane.b32.xlu0 %v5778_v23, %s9670_s30  ;;  %v13447_v23 = vld [vmem:[#allocation48_spill] sm:$0xff] }
0x2b06   :  { %v5769_v35 = vpop.permute.xlu0 %5768  ;;  %v5875_v10 = vpop.permute.xlu1 %5874 }
0x2b07   :  { %v5779_v49 = vmul.f32 %v12456_v42, %v5769_v35  ;;  %v5886_v27 = vmul.f32 %v12466_v61, %v5875_v10  ;;  %v13451_v10 = vld [vmem:[#allocation66_spill] sm:$0xff] }
0x2b09   :  { %5788 = vrot.lane.b32.xlu0 %v5779_v49, %s9670_s30  ;;  %5894 = vrot.lane.b32.xlu1 %v5886_v27, %s9670_s30  ;;  %v13449_v49 = vld [vmem:[#allocation55_spill] sm:$0xff] }
0x2b0a   :  { %v5771_v59 = vpop.permute.xlu0 %5770  ;;  %v5877_v4 = vpop.permute.xlu1 %5876 }
0x2b0b   :  { %v5780_v8 = vmul.f32 %v12460_v1, %v5771_v59  ;;  %v5887_v45 = vmul.f32 %v12472_v38, %v5877_v4 }
0x2b0d   :  { %5790 = vrot.lane.b32.xlu0 %v5780_v8, %s9670_s30  ;;  %5896 = vrot.lane.b32.xlu1 %v5887_v45, %s9670_s30 }
0x2b0e   :  { %v5773_v6 = vpop.permute.xlu0 %5772  ;;  %v5879_v12 = vpop.permute.xlu1 %5878 }
0x2b0f   :  { %v5781_v52 = vmul.f32 %v12463_v3, %v5773_v6  ;;  %v5888_v26 = vmul.f32 %v12479_v13, %v5879_v12 }
0x2b11   :  { %5792 = vrot.lane.b32.xlu0 %v5781_v52, %s9670_s30  ;;  %5898 = vrot.lane.b32.xlu1 %v5888_v26, %s9670_s30  ;;  %v13452_v52 = vld [vmem:[#allocation70_spill] sm:$0xff]  ;;  %v13458_v26 = vld [vmem:[#allocation20_spill] sm:$0xff] }
0x2b12   :  { %v3357_v41 = vpop.permute.xlu0 %3356  ;;  %v5881_v33 = vpop.permute.xlu1 %5880 }
0x2b13   :  { %3367 = vst.msk [vmem:[#allocation2 + $0x10] sm:$0x80] %vm364_vm14, %v3357_v41  ;;  %v5889_v31 = vmul.f32 %v12486_v22, %v5881_v33  ;;  %v13453_v41 = vld [vmem:[#allocation77_spill] sm:$0xff] }
0x2b14   :  { %v13461_v33 = vld [vmem:[#allocation17_spill] sm:$0xff] }
0x2b15   :  { %1848 = vrot.lane.b32.xlu0 %v13436_v14, %s9671_s9  ;;  %5900 = vrot.lane.b32.xlu1 %v5889_v31, %s9670_s30  ;;  %v13455_v14 = vld [vmem:[#allocation11_spill] sm:$0xff] }
0x2b16   :  { %v3728_v5 = vpop.permute.xlu0 %3727  ;;  %v3337_v29 = vpop.permute.xlu1 %3336 }
0x2b17   :  { %3738 = vst.msk [vmem:[#allocation2 + $0x10] sm:$0x40] %vm741_vm6, %v3728_v5  ;;  %v13457_v5 = vld [vmem:[#allocation6_spill] sm:$0xff] }
0x2b18   :  { %3347 = vst.msk [vmem:[#allocation2 + $0x18] sm:$0x1] %vm343_vm15, %v3337_v29 }
0x2b19   :  { %2223 = vrot.lane.b32.xlu0 %v13437_v16, %s9671_s9  ;;  %1827 = vrot.lane.b32.xlu1 %v13439_v39, %s9672_s10  ;;  %v13460_v16 = vld [vmem:[#allocation15_spill] sm:$0xff] }
0x2b1a   :  { %v4100_v36 = vpop.permute.xlu0 %4099  ;;  %v3708_v62 = vpop.permute.xlu1 %3707 }
0x2b1b   :  { %4110 = vst.msk [vmem:[#allocation2 + $0x10] sm:$0x20] %vm1116_vm8, %v4100_v36 }
0x2b1c   :  { %3718 = vst.msk [vmem:[#allocation2 + $0x18] sm:$0x2] %vm720_vm7, %v3708_v62 }
0x2b1d   :  { %2606 = vrot.lane.b32.xlu0 %v13438_v18, %s9671_s9  ;;  %2202 = vrot.lane.b32.xlu1 %v13441_v17, %s9672_s10  ;;  %v5751_v18 = vrot.slane %v12180_v2, 7 }
0x2b1e   :  { %v4467_v9 = vpop.permute.xlu0 %4466  ;;  %v4080_v46 = vpop.permute.xlu1 %4079 }
0x2b1f   :  { %4477 = vst.msk [vmem:[#allocation2 + $0x10] sm:$0x10] %vm1486_vm4, %v4467_v9  ;;  %v5759_v9 = vmul.f32 %v12456_v42, %v5751_v18  ;;  %v13466_v18 = vld [vmem:[#allocation43_spill] sm:$0xff] }
0x2b20   :  { %4090 = vst.msk [vmem:[#allocation2 + $0x18] sm:$0x4] %vm1095_vm9, %v4080_v46 }
0x2b21   :  { %2984 = vrot.lane.b32.xlu0 %v13440_v48, %s9671_s9  ;;  %2585 = vrot.lane.b32.xlu1 %v13443_v58, %s9672_s10  ;;  %v5752_v48 = vrot.slane %v12159_v30, 7 }
0x2b22   :  { %v4834_v44 = vpop.permute.xlu0 %4833  ;;  %v4447_v34 = vpop.permute.xlu1 %4446 }
0x2b23   :  { %4844 = vst.msk [vmem:[#allocation2 + $0x10] sm:$0x8] %vm1856_vm2, %v4834_v44  ;;  %v5760_v44 = vmul.f32 %v12460_v1, %v5752_v48  ;;  %v13468_v48 = vld [vmem:[#allocation50_spill] sm:$0xff] }
0x2b24   :  { %4457 = vst.msk [vmem:[#allocation2 + $0x18] sm:$0x8] %vm1465_vm3, %v4447_v34  ;;  %v5859_v34 = vrot.slane %v12170_v0, 1 }
0x2b25   :  { %3358 = vrot.lane.b32.xlu0 %v13442_v40, %s9671_s9  ;;  %2963 = vrot.lane.b32.xlu1 %v13445_v50, %s9672_s10  ;;  %v5858_v40 = vrot.slane %v12167_v54, 1 }
0x2b26   :  { %v5206_v55 = vpop.permute.xlu0 %5205  ;;  %v4814_v53 = vpop.permute.xlu1 %4813  ;;  %v5867_v50 = vmul.f32 %v12472_v38, %v5859_v34  ;;  %v13473_v34 = vld [vmem:[#allocation52_spill] sm:$0xff] }
0x2b27   :  { %5216 = vst.msk [vmem:[#allocation2 + $0x10] sm:$0x4] %vm2231_vm0, %v5206_v55  ;;  %v5866_v55 = vmul.f32 %v12466_v61, %v5858_v40  ;;  %v13470_v40 = vld [vmem:[#allocation60_spill] sm:$0xff] }
0x2b28   :  { %4824 = vst.msk [vmem:[#allocation2 + $0x18] sm:$0x10] %vm1835_vm1, %v4814_v53 }
0x2b29   :  { %3729 = vrot.lane.b32.xlu0 %v13444_v28, %s9671_s9  ;;  %3338 = vrot.lane.b32.xlu1 %v13447_v23, %s9672_s10 }
0x2b2a   :  { %v5586_v15 = vpop.permute.xlu0 %5585  ;;  %v5186_v37 = vpop.permute.xlu1 %5185 }
0x2b2b   :  { %5596 = vst.msk [vmem:[#allocation2 + $0x10] sm:$0x2] %vm2614_vm13, %v5586_v15 }
0x2b2c   :  { %5196 = vst.msk [vmem:[#allocation2 + $0x18] sm:$0x20] %vm2210_vm11, %v5186_v37 }
0x2b2d   :  { %4101 = vrot.lane.b32.xlu0 %v13446_v25, %s9671_s9  ;;  %3709 = vrot.lane.b32.xlu1 %v13449_v49, %s9672_s10 }
0x2b2e   :  { %v357_v24 = vpop.permute.xlu0 %356  ;;  %v5566_v59 = vpop.permute.xlu1 %5565 }
0x2b2f   :  { %367 = vst.msk [vmem:[#allocation2 + $0x28] sm:$0x80] %vm364_vm14, %v357_v24 }
0x2b30   :  { %5576 = vst.msk [vmem:[#allocation2 + $0x18] sm:$0x40] %vm2593_vm10, %v5566_v59 }
0x2b31   :  { %4468 = vrot.lane.b32.xlu0 %v13448_v7, %s9671_s9  ;;  %4081 = vrot.lane.b32.xlu1 %v13451_v10, %s9672_s10 }
0x2b32   :  { %v734_v35 = vpop.permute.xlu0 %733  ;;  %v336_v6 = vpop.permute.xlu1 %335 }
0x2b33   :  { %744 = vst.msk [vmem:[#allocation2 + $0x28] sm:$0x40] %vm741_vm6, %v734_v35  ;;  %v5861_v35 = vrot.slane %v12186_v47, 1 }
0x2b34   :  { %346 = vst.msk [vmem:[#allocation2 + $0x20] sm:$0x1] %vm343_vm15, %v336_v6 }
0x2b35   :  { %4835 = vrot.lane.b32.xlu0 %v13450_v56, %s9671_s9  ;;  %4448 = vrot.lane.b32.xlu1 %v13452_v52, %s9672_s10 }
0x2b36   :  { %v1109_v8 = vpop.permute.xlu0 %1108  ;;  %v713_v4 = vpop.permute.xlu1 %712 }
0x2b37   :  { %1119 = vst.msk [vmem:[#allocation2 + $0x28] sm:$0x20] %vm1116_vm8, %v1109_v8 }
0x2b38   :  { %723 = vst.msk [vmem:[#allocation2 + $0x20] sm:$0x2] %vm720_vm7, %v713_v4 }
0x2b39   :  { %5207 = vrot.lane.b32.xlu0 %v12079_v57, %s9671_s9  ;;  %4815 = vrot.lane.b32.xlu1 %v13453_v41, %s9672_s10  ;;  %v13454_v57 = vld [vmem:[#allocation7_spill] sm:$0xff] }
0x2b3a   :  { %v1479_v27 = vpop.permute.xlu0 %1478  ;;  %v1088_v45 = vpop.permute.xlu1 %1087 }
0x2b3b   :  { %1489 = vst.msk [vmem:[#allocation2 + $0x28] sm:$0x10] %vm1486_vm4, %v1479_v27 }
0x2b3c   :  { %1098 = vst.msk [vmem:[#allocation2 + $0x20] sm:$0x4] %vm1095_vm9, %v1088_v45  ;;  %v13462_v45 = vld [vmem:[#allocation26_spill] sm:$0xff] }
0x2b3d   :  { %5587 = vrot.lane.b32.xlu0 %v12215_v63, %s9671_s9  ;;  %5187 = vrot.lane.b32.xlu1 %v12066_v19, %s9672_s10  ;;  %v13456_v63 = vld [vmem:[#allocation14_spill] sm:$0xff] }
0x2b3e   :  { %v1458_v12 = vpop.permute.xlu1 %1457  ;;  %v13459_v19 = vld [vmem:[#allocation10_spill] sm:$0xff] }
0x2b3f   :  { %1468 = vst.msk [vmem:[#allocation2 + $0x20] sm:$0x8] %vm1465_vm3, %v1458_v12 }
0x2b41   :  { %358 = vrot.lane.b32.xlu0 %v13454_v57, %s9671_s9  ;;  %5567 = vrot.lane.b32.xlu1 %v12206_v51, %s9672_s10  ;;  %v5750_v51 = vrot.slane %v12195_v32, 7  ;;  %v5753_v32 = vrot.slane %v12189_v20, 7  ;;  %v5860_v20 = vrot.slane %v12177_v60, 1  ;;  %v5869_v60 = vmul.f32 %v12486_v22, %v5861_v35 }
0x2b43   :  { %v5758_v36 = vmul.f32 %v12452_v21, %v5750_v51  ;;  %v5761_v2 = vmul.f32 %v12463_v3, %v5753_v32  ;;  %v5868_v23 = vmul.f32 %v12479_v13, %v5860_v20 }
0x2b45   :  { %735 = vrot.lane.b32.xlu0 %v13455_v14, %s9671_s9  ;;  %337 = vrot.lane.b32.xlu1 %v13457_v5, %s9672_s10  ;;  %v13463_v5 = vld [vmem:[#allocation32_spill] sm:$0xff] }
0x2b49   :  { %1110 = vrot.lane.b32.xlu0 %v13456_v63, %s9671_s9  ;;  %714 = vrot.lane.b32.xlu1 %v13459_v19, %s9672_s10 }
0x2b4d   :  { %1480 = vrot.lane.b32.xlu0 %v13458_v26, %s9671_s9  ;;  %1089 = vrot.lane.b32.xlu1 %v13460_v16, %s9672_s10 }
0x2b51   :  { %1459 = vrot.lane.b32.xlu1 %v13461_v33, %s9672_s10  ;;  %v13464_v33 = vld [vmem:[#allocation37_spill] sm:$0xff] }
0x2b77   :  { %v5787_v31 = vpop.permute.xlu0 %5786 }
0x2b78   :  { %v5798_v29 = vadd.f32 %v5787_v31, %v5758_v36  ;;  %v13465_v31 = vld [vmem:[#allocation25_spill] sm:$0xff] }
0x2b7a   :  { %9551 = vtanh.f32 %v5798_v29 }
0x2b7b   :  { %v5789_v39 = vpop.permute.xlu0 %5788  ;;  %v5895_v58 = vpop.permute.xlu1 %5894 }
0x2b7c   :  { %v5799_v62 = vadd.f32 %v5789_v39, %v5759_v9  ;;  %v5906_v30 = vadd.f32 %v5895_v58, %v5866_v55  ;;  %v13467_v39 = vld [vmem:[#allocation31_spill] sm:$0xff]  ;;  %v13471_v55 = vld [vmem:[#allocation42_spill] sm:$0xff] }
0x2b7e   :  { %9553 = vtanh.f32 %v5799_v62 }
0x2b7f   :  { %v5791_v17 = vpop.permute.xlu0 %5790  ;;  %v5897_v53 = vpop.permute.xlu1 %5896 }
0x2b80   :  { %v5800_v46 = vadd.f32 %v5791_v17, %v5760_v44  ;;  %v5907_v24 = vadd.f32 %v5897_v53, %v5867_v50  ;;  %v13469_v17 = vld [vmem:[#allocation35_spill] sm:$0xff]  ;;  %v13476_v53 = vld [vmem:[#allocation80_spill] sm:$0xff] }
0x2b82   :  { %9555 = vtanh.f32 %v5800_v46 }
0x2b83   :  { %v5793_v28 = vpop.permute.xlu0 %5792  ;;  %9557 = vtanh.f32 %v5906_v30  ;;  %v5899_v7 = vpop.permute.xlu1 %5898  ;;  %v13474_v30 = vld [vmem:[#allocation76_spill] sm:$0xff] }
0x2b84   :  { %v5801_v15 = vadd.f32 %v5793_v28, %v5761_v2  ;;  %v5908_v49 = vadd.f32 %v5899_v7, %v5868_v23  ;;  %v13472_v2 = vld [vmem:[#allocation67_spill] sm:$0xff]  ;;  %v13478_v23 = vld [vmem:[#allocation82_spill] sm:$0xff] }
0x2b86   :  { %9559 = vtanh.f32 %v5801_v15 }
0x2b87   :  { %v9552_v25 = vpop.eup %9551  ;;  %v1849_v54 = vpop.permute.xlu0 %1848  ;;  %9561 = vtanh.f32 %v5907_v24  ;;  %v13477_v24 = vld [vmem:[#allocation68_spill] sm:$0xff] }
0x2b88   :  { %1859 = vst.msk [vmem:[#allocation2 + $0x28] sm:$0x8] %vm1856_vm2, %v1849_v54  ;;  %5810 = vrot.lane.b32.xlu0 %v9552_v25, %s9671_s9  ;;  %9563 = vtanh.f32 %v5908_v49  ;;  %v5901_v59 = vpop.permute.xlu1 %5900  ;;  %v13475_v25 = vld [vmem:[#allocation59_spill] sm:$0xff] }
0x2b89   :  { %v5909_v10 = vadd.f32 %v5901_v59, %v5869_v60  ;;  %v13480_v49 = vld [vmem:[#allocation79_spill] sm:$0xff] }
0x2b8b   :  { %v9554_v0 = vpop.eup %9553  ;;  %v2224_v37 = vpop.permute.xlu0 %2223  ;;  %9565 = vtanh.f32 %v5909_v10 }
0x2b8c   :  { %2234 = vst.msk [vmem:[#allocation2 + $0x28] sm:$0x4] %vm2231_vm0, %v2224_v37  ;;  %5812 = vrot.lane.b32.xlu0 %v9554_v0, %s9671_s9  ;;  %v1828_v27 = vpop.permute.xlu1 %1827  ;;  %v13479_v37 = vld [vmem:[#allocation71_spill] sm:$0xff] }
0x2b8d   :  { %1838 = vst.msk [vmem:[#allocation2 + $0x20] sm:$0x10] %vm1835_vm1, %v1828_v27 }
0x2b8f   :  { %v9556_v56 = vpop.eup %9555  ;;  %v2607_v8 = vpop.permute.xlu0 %2606 }
0x2b90   :  { %2617 = vst.msk [vmem:[#allocation2 + $0x28] sm:$0x2] %vm2614_vm13, %v2607_v8  ;;  %5814 = vrot.lane.b32.xlu0 %v9556_v56, %s9671_s9  ;;  %v9558_v6 = vpop.eup %9557  ;;  %v2203_v41 = vpop.permute.xlu1 %2202  ;;  %v13481_v56 = vld [vmem:[#allocation81_spill] sm:$0xff] }
0x2b91   :  { %5918 = vrot.lane.b32.xlu1 %v9558_v6, %s9671_s9  ;;  %2213 = vst.msk [vmem:[#allocation2 + $0x20] sm:$0x20] %vm2210_vm11, %v2203_v41 }
0x2b93   :  { %v2985_v47 = vpop.permute.xlu0 %2984  ;;  %v9560_v52 = vpop.eup %9559 }
0x2b94   :  { %2995 = vst.msk [vmem:[#allocation2 + $0x28] sm:$0x1] %vm2992_vm5, %v2985_v47  ;;  %5816 = vrot.lane.b32.xlu0 %v9560_v52, %s9671_s9  ;;  %v9562_v4 = vpop.eup %9561  ;;  %v2586_v12 = vpop.permute.xlu1 %2585 }
0x2b95   :  { %5920 = vrot.lane.b32.xlu1 %v9562_v4, %s9671_s9  ;;  %v9564_v14 = vpop.eup %9563  ;;  %2596 = vst.msk [vmem:[#allocation2 + $0x20] sm:$0x40] %vm2593_vm10, %v2586_v12 }
0x2b97   :  { %v3359_v57 = vpop.permute.xlu0 %3358 }
0x2b98   :  { %1850 = vrot.lane.b32.xlu0 %v13462_v45, %s9671_s9  ;;  %v9566_v26 = vpop.eup %9565  ;;  %v2964_v19 = vpop.permute.xlu1 %2963 }
0x2b99   :  { %5922 = vrot.lane.b32.xlu1 %v9564_v14, %s9671_s9  ;;  %2974 = vst.msk [vmem:[#allocation2 + $0x20] sm:$0x80] %vm2971_vm12, %v2964_v19 }
0x2b9a   :  { %3368 = vst.msk [vmem:[#allocation2 + $0x20] sm:$0x80] %vm364_vm14, %v3359_v57 }
0x2b9b   :  { %v3730_v63 = vpop.permute.xlu0 %3729 }
0x2b9c   :  { %3739 = vst.msk [vmem:[#allocation2 + $0x20] sm:$0x40] %vm741_vm6, %v3730_v63  ;;  %2225 = vrot.lane.b32.xlu0 %v13463_v5, %s9671_s9  ;;  %v3339_v51 = vpop.permute.xlu1 %3338 }
0x2b9d   :  { %5924 = vrot.lane.b32.xlu1 %v9566_v26, %s9671_s9  ;;  %3348 = vst.msk [vmem:[#allocation2 + $0x28] sm:$0x1] %vm343_vm15, %v3339_v51 }
0x2b9f   :  { %v4102_v16 = vpop.permute.xlu0 %4101 }
0x2ba0   :  { %4111 = vst.msk [vmem:[#allocation2 + $0x20] sm:$0x20] %vm1116_vm8, %v4102_v16  ;;  %2608 = vrot.lane.b32.xlu0 %v13464_v33, %s9671_s9  ;;  %v3710_v29 = vpop.permute.xlu1 %3709 }
0x2ba1   :  { %1829 = vrot.lane.b32.xlu1 %v13465_v31, %s9672_s10  ;;  %3719 = vst.msk [vmem:[#allocation2 + $0x28] sm:$0x2] %vm720_vm7, %v3710_v29 }
0x2ba3   :  { %v4469_v36 = vpop.permute.xlu0 %4468 }
0x2ba4   :  { %4478 = vst.msk [vmem:[#allocation2 + $0x20] sm:$0x10] %vm1486_vm4, %v4469_v36  ;;  %2986 = vrot.lane.b32.xlu0 %v13466_v18, %s9671_s9  ;;  %v4082_v62 = vpop.permute.xlu1 %4081 }
0x2ba5   :  { %2204 = vrot.lane.b32.xlu1 %v13467_v39, %s9672_s10  ;;  %4091 = vst.msk [vmem:[#allocation2 + $0x28] sm:$0x4] %vm1095_vm9, %v4082_v62 }
0x2ba7   :  { %v4836_v9 = vpop.permute.xlu0 %4835 }
0x2ba8   :  { %4845 = vst.msk [vmem:[#allocation2 + $0x20] sm:$0x8] %vm1856_vm2, %v4836_v9  ;;  %3360 = vrot.lane.b32.xlu0 %v13468_v48, %s9671_s9  ;;  %v4449_v32 = vpop.permute.xlu1 %4448 }
0x2ba9   :  { %2587 = vrot.lane.b32.xlu1 %v13469_v17, %s9672_s10  ;;  %4458 = vst.msk [vmem:[#allocation2 + $0x28] sm:$0x8] %vm1465_vm3, %v4449_v32 }
0x2bab   :  { %v5208_v44 = vpop.permute.xlu0 %5207 }
0x2bac   :  { %5217 = vst.msk [vmem:[#allocation2 + $0x20] sm:$0x4] %vm2231_vm0, %v5208_v44  ;;  %3731 = vrot.lane.b32.xlu0 %v13470_v40, %s9671_s9  ;;  %v4816_v58 = vpop.permute.xlu1 %4815 }
0x2bad   :  { %2965 = vrot.lane.b32.xlu1 %v13471_v55, %s9672_s10  ;;  %4825 = vst.msk [vmem:[#allocation2 + $0x28] sm:$0x10] %vm1835_vm1, %v4816_v58 }
0x2baf   :  { %v5588_v46 = vpop.permute.xlu0 %5587 }
0x2bb0   :  { %5597 = vst.msk [vmem:[#allocation2 + $0x20] sm:$0x2] %vm2614_vm13, %v5588_v46  ;;  %4103 = vrot.lane.b32.xlu0 %v13472_v2, %s9671_s9  ;;  %v5188_v15 = vpop.permute.xlu1 %5187 }
0x2bb1   :  { %3340 = vrot.lane.b32.xlu1 %v13473_v34, %s9672_s10  ;;  %5197 = vst.msk [vmem:[#allocation2 + $0x28] sm:$0x20] %vm2210_vm11, %v5188_v15 }
0x2bb3   :  { %v359_v28 = vpop.permute.xlu0 %358 }
0x2bb4   :  { %368 = vst.msk [vmem:[#allocation2 + $0x38] sm:$0x80] %vm364_vm14, %v359_v28  ;;  %4470 = vrot.lane.b32.xlu0 %v13474_v30, %s9671_s9  ;;  %v5568_v54 = vpop.permute.xlu1 %5567 }
0x2bb5   :  { %3711 = vrot.lane.b32.xlu1 %v13475_v25, %s9672_s10  ;;  %5577 = vst.msk [vmem:[#allocation2 + $0x28] sm:$0x40] %vm2593_vm10, %v5568_v54  ;;  %v7890_v25 = vld [vmem:[%s13223_s2] ss:$0 sm:$0xff] }
0x2bb7   :  { %v736_v50 = vpop.permute.xlu0 %735 }
0x2bb8   :  { %745 = vst.msk [vmem:[#allocation2 + $0x38] sm:$0x40] %vm741_vm6, %v736_v50  ;;  %4837 = vrot.lane.b32.xlu0 %v13476_v53, %s9671_s9  ;;  %v338_v0 = vpop.permute.xlu1 %337 }
0x2bb9   :  { %4083 = vrot.lane.b32.xlu1 %v13477_v24, %s9672_s10  ;;  %347 = vst.msk [vmem:[#allocation2 + $0x30] sm:$0x1] %vm343_vm15, %v338_v0 }
0x2bbb   :  { %v1111_v20 = vpop.permute.xlu0 %1110 }
0x2bbc   :  { %1120 = vst.msk [vmem:[#allocation2 + $0x38] sm:$0x20] %vm1116_vm8, %v1111_v20  ;;  %5209 = vrot.lane.b32.xlu0 %v13478_v23, %s9671_s9  ;;  %v715_v35 = vpop.permute.xlu1 %714 }
0x2bbd   :  { %4450 = vrot.lane.b32.xlu1 %v13479_v37, %s9672_s10  ;;  %724 = vst.msk [vmem:[#allocation2 + $0x30] sm:$0x2] %vm720_vm7, %v715_v35 }
0x2bbf   :  { %v1481_v7 = vpop.permute.xlu0 %1480 }
0x2bc0   :  { %1490 = vst.msk [vmem:[#allocation2 + $0x38] sm:$0x10] %vm1486_vm4, %v1481_v7  ;;  %5589 = vrot.lane.b32.xlu0 %v12221_v11, %s9671_s9  ;;  %v1090_v60 = vpop.permute.xlu1 %1089 }
0x2bc1   :  { %4817 = vrot.lane.b32.xlu1 %v13480_v49, %s9672_s10  ;;  %1099 = vst.msk [vmem:[#allocation2 + $0x30] sm:$0x4] %vm1095_vm9, %v1090_v60 }
0x2bc4   :  { %v1460_v59 = vpop.permute.xlu1 %1459 }
0x2bc5   :  { %5189 = vrot.lane.b32.xlu1 %v13481_v56, %s9672_s10  ;;  %1469 = vst.msk [vmem:[#allocation2 + $0x30] sm:$0x8] %vm1465_vm3, %v1460_v59 }
0x2bc9   :  { %5569 = vrot.lane.b32.xlu1 %v12212_v43, %s9672_s10 }
0x2bfa   :  { %v5811_v8 = vpop.permute.xlu0 %5810 }
0x2bfb   :  { %v5822_v11 = vmul.f32 %v12452_v21, %v5811_v8 }
0x2bfd   :  { %5938 = vrot.lane.b32.xlu1 %v5822_v11, %s9672_s10 }
0x2bfe   :  { %v5813_v10 = vpop.permute.xlu0 %5812 }
0x2bff   :  { %v5823_v6 = vmul.f32 %v12456_v42, %v5813_v10 }
0x2c01   :  { %5940 = vrot.lane.b32.xlu1 %v5823_v6, %s9672_s10 }
0x2c02   :  { %v5815_v27 = vpop.permute.xlu0 %5814 }
0x2c03   :  { %v5824_v47 = vmul.f32 %v12460_v1, %v5815_v27  ;;  %v5919_v52 = vpop.permute.xlu1 %5918 }
0x2c04   :  { %v5930_v4 = vmul.f32 %v12466_v61, %v5919_v52 }
0x2c05   :  { %5942 = vrot.lane.b32.xlu1 %v5824_v47, %s9672_s10 }
0x2c06   :  { %v5817_v41 = vpop.permute.xlu0 %5816  ;;  %5958 = vrot.lane.b32.xlu0 %v5930_v4, %s9671_s9 }
0x2c07   :  { %v5825_v43 = vmul.f32 %v12463_v3, %v5817_v41  ;;  %v5921_v21 = vpop.permute.xlu1 %5920 }
0x2c08   :  { %v5931_v42 = vmul.f32 %v12472_v38, %v5921_v21 }
0x2c09   :  { %5944 = vrot.lane.b32.xlu1 %v5825_v43, %s9672_s10 }
0x2c0a   :  { %v1851_v57 = vpop.permute.xlu0 %1850  ;;  %5960 = vrot.lane.b32.xlu0 %v5931_v42, %s9671_s9 }
0x2c0b   :  { %1860 = vst.msk [vmem:[#allocation2 + $0x38] sm:$0x8] %vm1856_vm2, %v1851_v57  ;;  %v5923_v1 = vpop.permute.xlu1 %5922 }
0x2c0c   :  { %v5932_v45 = vmul.f32 %v12479_v13, %v5923_v1 }
0x2c0e   :  { %v2226_v14 = vpop.permute.xlu0 %2225  ;;  %5962 = vrot.lane.b32.xlu0 %v5932_v45, %s9671_s9 }
0x2c0f   :  { %2235 = vst.msk [vmem:[#allocation2 + $0x38] sm:$0x4] %vm2231_vm0, %v2226_v14  ;;  %v5925_v3 = vpop.permute.xlu1 %5924  ;;  %v6096_v14 = vld [vmem:[%s13224_s3 + $0x18] sm:$0xff] }
0x2c10   :  { %v5933_v61 = vmul.f32 %v12486_v22, %v5925_v3  ;;  %8359 = vmatprep.subr.mxu1 %v6096_v14  ;;  %v6095_v3 = vld [vmem:[%s13224_s3 + $0x10] sm:$0xff] }
0x2c11   :  { %8360 = vmatpush3.msra.mxu1 %v6096_v14 }
0x2c12   :  { %v2609_v12 = vpop.permute.xlu0 %2608  ;;  %5964 = vrot.lane.b32.xlu0 %v5933_v61, %s9671_s9  ;;  %8361 = vmatprep.subr.mxu1 %v6095_v3  ;;  %v6094_v61 = vld [vmem:[%s13224_s3 + $0x8] sm:$0xff] }
0x2c13   :  { %2618 = vst.msk [vmem:[#allocation2 + $0x38] sm:$0x2] %vm2614_vm13, %v2609_v12  ;;  %v1830_v38 = vpop.permute.xlu1 %1829  ;;  %8362 = vmatpush3.msra.mxu1 %v6095_v3  ;;  %v6100_v12 = vld [vmem:[%s13224_s3 + $0x38] sm:$0xff] }
0x2c14   :  { %1839 = vst.msk [vmem:[#allocation2 + $0x30] sm:$0x10] %vm1835_vm1, %v1830_v38  ;;  %8363 = vmatprep.subr.mxu1 %v6094_v61  ;;  %v6093_v38 = vld [vmem:[%s13224_s3] sm:$0xff]  ;;  %8339 = vmatprep.subr.mxu0 %v6100_v12 }
0x2c15   :  { %8364 = vmatpush3.msra.mxu1 %v6094_v61  ;;  %8340 = vmatpush3.msra.mxu0 %v6100_v12 }
0x2c16   :  { %v2987_v63 = vpop.permute.xlu0 %2986  ;;  %8365 = vmatprep.subr.mxu1 %v6093_v38 }
0x2c17   :  { %2996 = vst.msk [vmem:[#allocation2 + $0x38] sm:$0x1] %vm2992_vm5, %v2987_v63  ;;  %v2205_v13 = vpop.permute.xlu1 %2204  ;;  %v6099_v63 = vld [vmem:[%s13224_s3 + $0x30] sm:$0xff]  ;;  %8366 = vmatpush3.msra.mxu1 %v6093_v38 }
0x2c18   :  { %2214 = vst.msk [vmem:[#allocation2 + $0x30] sm:$0x20] %vm2210_vm11, %v2205_v13  ;;  %8341 = vmatprep.subr.mxu0 %v6099_v63  ;;  %v6098_v13 = vld [vmem:[%s13224_s3 + $0x28] sm:$0xff] }
0x2c19   :  { %8342 = vmatpush3.msra.mxu0 %v6099_v63 }
0x2c1a   :  { %v3361_v5 = vpop.permute.xlu0 %3360  ;;  %8343 = vmatprep.subr.mxu0 %v6098_v13 }
0x2c1b   :  { %v2588_v26 = vpop.permute.xlu1 %2587  ;;  %8344 = vmatpush3.msra.mxu0 %v6098_v13 }
0x2c1c   :  { %2597 = vst.msk [vmem:[#allocation2 + $0x30] sm:$0x40] %vm2593_vm10, %v2588_v26  ;;  %v12772_v26 = vld [vmem:[%s13224_s3 + $0x58] sm:$0xff] }
0x2c1e   :  { %v3732_v19 = vpop.permute.xlu0 %3731 }
0x2c1f   :  { %3740 = vst.msk [vmem:[#allocation2 + $0x30] sm:$0x40] %vm741_vm6, %v3732_v19  ;;  %v2966_v22 = vpop.permute.xlu1 %2965  ;;  %v12777_v19 = vld [vmem:[%s13224_s3 + $0x78] sm:$0xff] }
0x2c20   :  { %2975 = vst.msk [vmem:[#allocation2 + $0x30] sm:$0x80] %vm2971_vm12, %v2966_v22  ;;  %8399 = vmatprep.subr.mxu1 %v12777_v19 }
0x2c21   :  { %3369 = vst.msk [vmem:[#allocation2 + $0x30] sm:$0x80] %vm364_vm14, %v3361_v5  ;;  %v6097_v5 = vld [vmem:[%s13224_s3 + $0x20] sm:$0xff] }
0x2c22   :  { %v4104_v16 = vpop.permute.xlu0 %4103  ;;  %8345 = vmatprep.subr.mxu0 %v6097_v5 }
0x2c23   :  { %4112 = vst.msk [vmem:[#allocation2 + $0x30] sm:$0x20] %vm1116_vm8, %v4104_v16  ;;  %v3341_v33 = vpop.permute.xlu1 %3340  ;;  %8346 = vmatpush3.msra.mxu0 %v6097_v5 }
0x2c24   :  { %3349 = vst.msk [vmem:[#allocation2 + $0x38] sm:$0x1] %vm343_vm15, %v3341_v33  ;;  %8379 = vmatprep.subr.mxu0 %v12772_v26 }
0x2c26   :  { %v4471_v51 = vpop.permute.xlu0 %4470 }
0x2c27   :  { %4479 = vst.msk [vmem:[#allocation2 + $0x30] sm:$0x10] %vm1486_vm4, %v4471_v51  ;;  %v3712_v36 = vpop.permute.xlu1 %3711 }
0x2c28   :  { %3720 = vst.msk [vmem:[#allocation2 + $0x38] sm:$0x2] %vm720_vm7, %v3712_v36 }
0x2c2a   :  { %v4838_v31 = vpop.permute.xlu0 %4837 }
0x2c2b   :  { %4846 = vst.msk [vmem:[#allocation2 + $0x30] sm:$0x8] %vm1856_vm2, %v4838_v31  ;;  %v4084_v18 = vpop.permute.xlu1 %4083 }
0x2c2c   :  { %4092 = vst.msk [vmem:[#allocation2 + $0x38] sm:$0x4] %vm1095_vm9, %v4084_v18 }
0x2c2e   :  { %v5210_v29 = vpop.permute.xlu0 %5209 }
0x2c2f   :  { %5218 = vst.msk [vmem:[#allocation2 + $0x30] sm:$0x4] %vm2231_vm0, %v5210_v29  ;;  %v4451_v9 = vpop.permute.xlu1 %4450  ;;  %vm13482_vm0 = vcmask 261120  }
0x2c30   :  { %4459 = vst.msk [vmem:[#allocation2 + $0x38] sm:$0x8] %vm1465_vm3, %v4451_v9  ;;  %vm13484_vm2 = vmmov %vm13482_vm0 }
0x2c31   :  { %vm13485_vm3 = vmmov %vm13482_vm0 }
0x2c32   :  { %v5590_v39 = vpop.permute.xlu0 %5589  ;;  %vm13486_vm4 = vmmov %vm13482_vm0 }
0x2c33   :  { %5598 = vst.msk [vmem:[#allocation2 + $0x30] sm:$0x2] %vm2614_vm13, %v5590_v39  ;;  %v4818_v48 = vpop.permute.xlu1 %4817  ;;  %vm13490_vm13 = vmmov %vm13482_vm0 }
0x2c34   :  { %4826 = vst.msk [vmem:[#allocation2 + $0x38] sm:$0x10] %vm1835_vm1, %v4818_v48  ;;  %vm13483_vm1 = vmmov %vm13482_vm0 }
0x2c35   :  { %vm13491_vm14 = vmmov %vm13482_vm0 }
0x2c36   :  { %vm13492_vm15 = vmmov %vm13482_vm0 }
0x2c37   :  { %v5190_v62 = vpop.permute.xlu1 %5189  ;;  %vm13493_vm6 = vmmov %vm13482_vm0 }
0x2c38   :  { %5198 = vst.msk [vmem:[#allocation2 + $0x38] sm:$0x20] %vm2210_vm11, %v5190_v62  ;;  %vm13489_vm11 = vmmov %vm13482_vm0 }
0x2c39   :  { %vm13494_vm7 = vmmov %vm13482_vm0 }
0x2c3a   :  { %vm13495_vm8 = vmmov %vm13482_vm0 }
0x2c3b   :  { %v5570_v44 = vpop.permute.xlu1 %5569  ;;  %vm13496_vm9 = vmmov %vm13482_vm0 }
0x2c3c   :  { %5578 = vst.msk [vmem:[#allocation2 + $0x38] sm:$0x40] %vm2593_vm10, %v5570_v44  ;;  %vm13488_vm10 = vmmov %vm13482_vm0 }
0x2c6f   :  { %v5939_v17 = vpop.permute.xlu1 %5938 }
0x2c70   :  { %5950 = vst.msk [vmem:[#allocation2 + $0x8] sm:$0x80] %vm2971_vm12, %v5939_v17 }
0x2c73   :  { %v5941_v40 = vpop.permute.xlu1 %5940 }
0x2c74   :  { %5951 = vst.msk [vmem:[#allocation2 + $0x18] sm:$0x80] %vm2971_vm12, %v5941_v40 }
0x2c77   :  { %v5943_v32 = vpop.permute.xlu1 %5942  ;;  %v12704_v46 = vld [vmem:[#allocation2 + $0x8] sm:$0xff] }
0x2c78   :  { %5952 = vst.msk [vmem:[#allocation2 + $0x28] sm:$0x80] %vm2971_vm12, %v5943_v32  ;;  %9567 = vtanh.f32 %v12704_v46  ;;  %v5959_v55 = vpop.permute.xlu0 %5958 }
0x2c79   :  { %5970 = vst.msk [vmem:[#allocation2] sm:$0x1] %vm2992_vm5, %v5959_v55 }
0x2c7b   :  { %v5945_v2 = vpop.permute.xlu1 %5944  ;;  %v12710_v28 = vld [vmem:[#allocation2 + $0x18] sm:$0xff] }
0x2c7c   :  { %5953 = vst.msk [vmem:[#allocation2 + $0x38] sm:$0x80] %vm2971_vm12, %v5945_v2  ;;  %v5961_v58 = vpop.permute.xlu0 %5960  ;;  %9569 = vtanh.f32 %v12710_v28  ;;  %vm6137_vm12 = vcmask 1046528  }
0x2c7d   :  { %5971 = vst.msk [vmem:[#allocation2 + $0x10] sm:$0x1] %vm2992_vm5, %v5961_v58 }
0x2c7f   :  { %v12716_v15 = vld [vmem:[#allocation2 + $0x28] sm:$0xff] }
0x2c80   :  { %v5963_v34 = vpop.permute.xlu0 %5962  ;;  %v12714_v30 = vld [vmem:[#allocation2] sm:$0xff] }
0x2c81   :  { %5972 = vst.msk [vmem:[#allocation2 + $0x20] sm:$0x1] %vm2992_vm5, %v5963_v34  ;;  %9571 = vtanh.f32 %v12714_v30 }
0x2c82   :  { %9573 = vtanh.f32 %v12716_v15 }
0x2c83   :  { %v12726_v24 = vld [vmem:[#allocation2 + $0x38] sm:$0xff] }
0x2c84   :  { %v5965_v54 = vpop.permute.xlu0 %5964  ;;  %v12724_v20 = vld [vmem:[#allocation2 + $0x10] sm:$0xff] }
0x2c85   :  { %v9568_v50 = vpop.eup %9567  ;;  %5973 = vst.msk [vmem:[#allocation2 + $0x30] sm:$0x1] %vm2992_vm5, %v5965_v54  ;;  %9575 = vtanh.f32 %v12724_v20  ;;  %vm13487_vm5 = vmmov %vm13482_vm0 }
0x2c86   :  { %v5998_v53 = vmul.f32 %v9568_v50, %v7890_v25  ;;  %9577 = vtanh.f32 %v12726_v24 }
0x2c88   :  { %v6008_v23 = vsel %vm13482_vm0, %v5998_v53, 0.0  ;;  %v12732_v0 = vld [vmem:[#allocation2 + $0x20] sm:$0xff] }
0x2c89   :  { %6009 = vadd.xlane.f32.xlu0 %v6008_v23  ;;  %9579 = vtanh.f32 %v12732_v0  ;;  %v9570_v7 = vpop.eup %9569 }
0x2c8a   :  { %v6000_v60 = vmul.f32 %v9570_v7, %v7890_v25 }
0x2c8c   :  { %v12735_v37 = vld [vmem:[#allocation2 + $0x30] sm:$0xff]  ;;  %v6014_v11 = vsel %vm13484_vm2, %v6000_v60, 0.0  ;;  %vm13498_vm2 = vmmov %vm13482_vm0 }
0x2c8d   :  { %9581 = vtanh.f32 %v12735_v37 }
0x2c8e   :  { %v9572_v35 = vpop.eup %9571 }
0x2c8f   :  { %v5997_v49 = vmul.f32 %v9572_v35, %v7890_v25  ;;  %v9574_v56 = vpop.eup %9573 }
0x2c90   :  { %v6002_v6 = vmul.f32 %v9574_v56, %v7890_v25 }
0x2c91   :  { %v6005_v59 = vsel %vm13483_vm1, %v5997_v49, 0.0  ;;  %vm13497_vm1 = vmmov %vm13482_vm0 }
0x2c92   :  { %v9576_v8 = vpop.eup %9575  ;;  %6006 = vadd.xlane.f32.xlu1 %v6005_v59  ;;  %v6020_v4 = vsel %vm13486_vm4, %v6002_v6, 0.0  ;;  %vm13499_vm4 = vmmov %vm13482_vm0 }
0x2c93   :  { %v5999_v10 = vmul.f32 %v9576_v8, %v7890_v25  ;;  %v9578_v27 = vpop.eup %9577 }
0x2c94   :  { %v6004_v43 = vmul.f32 %v9578_v27, %v7890_v25 }
0x2c95   :  { %v6011_v47 = vsel %vm13485_vm3, %v5999_v10, 0.0  ;;  %vm6544_vm3 = vcmask 1044480  }
0x2c96   :  { %v9580_v52 = vpop.eup %9579  ;;  %6015 = vadd.xlane.f32.xlu1 %v6014_v11  ;;  %6012 = vadd.xlane.f32.xlu0 %v6011_v47  ;;  %v6026_v57 = vsel %vm13488_vm10, %v6004_v43, 0.0  ;;  %vm13502_vm10 = vmmov %vm13482_vm0 }
0x2c97   :  { %v6001_v41 = vmul.f32 %v9580_v52, %v7890_v25 }
0x2c99   :  { %v6017_v21 = vsel %vm13487_vm5, %v6001_v41, 0.0  ;;  %vm13500_vm5 = vmmov %vm13482_vm0 }
0x2c9a   :  { %v9582_v42 = vpop.eup %9581  ;;  %6021 = vadd.xlane.f32.xlu1 %v6020_v4  ;;  %6018 = vadd.xlane.f32.xlu0 %v6017_v21 }
0x2c9b   :  { %v6003_v1 = vmul.f32 %v9582_v42, %v7890_v25 }
0x2c9d   :  { %v6023_v45 = vsel %vm13489_vm11, %v6003_v1, 0.0  ;;  %vm13503_vm11 = vmmov %vm13482_vm0 }
0x2c9e   :  { %6027 = vadd.xlane.f32.xlu1 %v6026_v57  ;;  %6024 = vadd.xlane.f32.xlu0 %v6023_v45 }
0x2d12   :  { %v6010_v22 = vpop.xlane.xlu0 %6009 }
0x2d13   :  { %v6031_v16 = vmul.f32 1.442695, %v6010_v22 }
0x2d15   :  { %9583 = vpow2.f32 %v6031_v16 }
0x2d1b   :  { %v6007_v33 = vpop.xlane.xlu1 %6006 }
0x2d1c   :  { %v6029_v51 = vmul.f32 1.442695, %v6007_v33 }
0x2d1e   :  { %9585 = vpow2.f32 %v6029_v51 }
0x2d1f   :  { %v6016_v36 = vpop.xlane.xlu1 %6015  ;;  %v6013_v31 = vpop.xlane.xlu0 %6012 }
0x2d20   :  { %v6035_v18 = vmul.f32 1.442695, %v6016_v36  ;;  %v6033_v29 = vmul.f32 1.442695, %v6013_v31 }
0x2d22   :  { %9587 = vpow2.f32 %v6035_v18  ;;  %v9584_v55 = vpop.eup %9583  ;;  %v6107_v18 = vld [vmem:[%s13224_s3 + $0x70] sm:$0xff] }
0x2d23   :  { %9589 = vpow2.f32 %v6033_v29  ;;  %v6022_v9 = vpop.xlane.xlu1 %6021  ;;  %v6019_v39 = vpop.xlane.xlu0 %6018 }
0x2d24   :  { %v6039_v48 = vmul.f32 1.442695, %v6022_v9  ;;  %v6037_v62 = vmul.f32 1.442695, %v6019_v39 }
0x2d26   :  { %9591 = vpow2.f32 %v6039_v48 }
0x2d27   :  { %9593 = vpow2.f32 %v6037_v62  ;;  %v6028_v44 = vpop.xlane.xlu1 %6027  ;;  %v6025_v17 = vpop.xlane.xlu0 %6024 }
0x2d28   :  { %v6043_v40 = vmul.f32 1.442695, %v6028_v44  ;;  %v6041_v32 = vmul.f32 1.442695, %v6025_v17 }
0x2d2a   :  { %9595 = vpow2.f32 %v6043_v40 }
0x2d2b   :  { %v9586_v2 = vpop.eup %9585  ;;  %9597 = vpow2.f32 %v6041_v32 }
0x2d2c   :  { %v6045_v58 = vadd.f32 %v9586_v2, %v9584_v55 }
0x2d2e   :  { %v6046_v34 = vrot.slane %v6045_v58, 4 }
0x2d2f   :  { %v9588_v50 = vpop.eup %9587 }
0x2d30   :  { %v9590_v25 = vpop.eup %9589  ;;  %v6047_v53 = vadd.f32 %v6046_v34, %v6045_v58  ;;  %v6103_v58 = vld [vmem:[%s13224_s3 + $0x50] sm:$0xff] }
0x2d31   :  { %v6052_v54 = vadd.f32 %v9590_v25, %v9588_v50 }
0x2d32   :  { %v6048_v23 = vrot.slane %v6047_v53, 2 }
0x2d33   :  { %v9592_v7 = vpop.eup %9591  ;;  %v6053_v35 = vrot.slane %v6052_v54, 4 }
0x2d34   :  { %v9594_v49 = vpop.eup %9593  ;;  %v6049_v60 = vadd.f32 %v6048_v23, %v6047_v53  ;;  %v6102_v53 = vld [vmem:[%s13224_s3 + $0x48] sm:$0xff] }
0x2d35   :  { %v6054_v56 = vadd.f32 %v6053_v35, %v6052_v54  ;;  %v6059_v59 = vadd.f32 %v9594_v49, %v9592_v7 }
0x2d36   :  { %v6050_v8 = vrot.slane %v6049_v60, 1 }
0x2d37   :  { %v12781_v11 = vpop.eup %9595  ;;  %v6055_v10 = vrot.slane %v6054_v56, 2  ;;  %v6060_v6 = vrot.slane %v6059_v59, 4 }
0x2d38   :  { %v9598_v27 = vpop.eup %9597  ;;  %v6051_v47 = vadd.f32 %v6050_v8, %v6049_v60 }
0x2d39   :  { %v6056_v52 = vadd.f32 %v6055_v10, %v6054_v56  ;;  %v6061_v4 = vadd.f32 %v6060_v6, %v6059_v59  ;;  %v6066_v41 = vadd.f32 %v9598_v27, %v12781_v11  ;;  %v13501_v59 = vmov 0.0  }
0x2d3a   :  { %9599 = vrcp.f32 %v6051_v47  ;;  %v6153_v8 = vrot.slane %v13501_v59, 1  ;;  %v6112_v47 = vld [vmem:[%s13224_s3 + $0x98] sm:$0xff] }
0x2d3b   :  { %v6057_v43 = vrot.slane %v6056_v52, 1  ;;  %v6062_v21 = vrot.slane %v6061_v4, 2  ;;  %v6067_v42 = vrot.slane %v6066_v41, 4 }
0x2d3d   :  { %v6058_v57 = vadd.f32 %v6057_v43, %v6056_v52  ;;  %v6063_v1 = vadd.f32 %v6062_v21, %v6061_v4  ;;  %v6068_v45 = vadd.f32 %v6067_v42, %v6066_v41  ;;  %v6116_v52 = vld [vmem:[%s13224_s3 + $0xb8] sm:$0xff] }
0x2d3f   :  { %9601 = vrcp.f32 %v6058_v57  ;;  %v6064_v14 = vrot.slane %v6063_v1, 1  ;;  %v6069_v3 = vrot.slane %v6068_v45, 2 }
0x2d41   :  { %v6065_v61 = vadd.f32 %v6064_v14, %v6063_v1  ;;  %v6070_v12 = vadd.f32 %v6069_v3, %v6068_v45  ;;  %v6115_v14 = vld [vmem:[%s13224_s3 + $0xb0] sm:$0xff] }
0x2d43   :  { %9603 = vrcp.f32 %v6065_v61  ;;  %v6071_v38 = vrot.slane %v6070_v12, 1 }
0x2d45   :  { %v6072_v63 = vadd.f32 %v6071_v38, %v6070_v12 }
0x2d47   :  { %v9600_v13 = vpop.eup %9599  ;;  %9605 = vrcp.f32 %v6072_v63 }
0x2d48   :  { %v6078_v5 = vmul.f32 %v9600_v13, %v9584_v55  ;;  %v6077_v22 = vmul.f32 %v9600_v13, %v9586_v2 }
0x2d4a   :  { %v12785_v16 = vmul.f32 %v6078_v5, %v12704_v46  ;;  %v12788_v33 = vmul.f32 %v6077_v22, %v12714_v30  ;;  %v6106_v30 = vld [vmem:[%s13224_s3 + $0x68] sm:$0xff]  ;;  %v6111_v22 = vld [vmem:[%s13224_s3 + $0x90] sm:$0xff] }
0x2d4c   :  { %v9602_v51 = vpop.eup %9601  ;;  %8367 = vmatprep.mubr.msk.f32.mxu1 %vm13490_vm13, %v12788_v33  ;;  %v6138_v36 = vrot.slane %v12788_v33, 1  ;;  %v6139_v31 = vrot.slane %v12785_v16, 1  ;;  %v6545_v54 = vrot.slane %v12788_v33, 3  ;;  %v6546_v35 = vrot.slane %v12785_v16, 3  ;;  %vm13504_vm13 = vmmov %vm13482_vm0 }
0x2d4d   :  { %v6079_v29 = vmul.f32 %v9602_v51, %v9590_v25  ;;  %v6080_v9 = vmul.f32 %v9602_v51, %v9588_v50  ;;  %8368 = vmatmul.mubr.msk.f32.vlgmr.msra.gmra.mxu1 %vm13491_vm14, %v12785_v16  ;;  %v6398_v4 = vrot.slane %v12788_v33, 2  ;;  %v6399_v41 = vrot.slane %v12785_v16, 2  ;;  %vm13505_vm14 = vmmov %vm13482_vm0 }
0x2d4e   :  { %v6140_v46 = vsel %vm6137_vm12, %v6138_v36, %v6139_v31  ;;  %8400 = vmatpush3.msra.mxu1 %v12777_v19 }
0x2d4f   :  { %v12805_v39 = vmul.f32 %v6079_v29, %v12724_v20  ;;  %v12808_v48 = vmul.f32 %v6080_v9, %v12710_v28  ;;  %8347 = vmatprep.mubr.msk.f32.mxu0 %vm13492_vm15, %v6140_v46  ;;  %8401 = vmatprep.subr.mxu1 %v6107_v18  ;;  %v6105_v28 = vld [vmem:[%s13224_s3 + $0x60] sm:$0xff]  ;;  %vm6397_vm15 = vcmask 1045504   ;;  %v6560_v29 = vrot.slane %v13501_v59, 3  ;;  %v6114_v9 = vld [vmem:[%s13224_s3 + $0xa8] sm:$0xff] }
0x2d50   :  { %v9604_v62 = vpop.eup %9603  ;;  %8402 = vmatpush3.msra.mxu1 %v6107_v18  ;;  %v6400_v3 = vsel %vm6397_vm15, %v6398_v4, %v6399_v41  ;;  %v6838_v46 = vrot.slane %v12788_v33, 5 }
0x2d51   :  { %v6081_v44 = vmul.f32 %v9604_v62, %v9594_v49  ;;  %v6082_v17 = vmul.f32 %v9604_v62, %v9592_v7  ;;  %8370 = vmatprep.mubr.msk.f32.mxu1 %vm13493_vm6, %v12805_v39  ;;  %v6141_v19 = vrot.slane %v12805_v39, 1  ;;  %v6143_v40 = vrot.slane %v12808_v48, 1  ;;  %8403 = vmatprep.subr.mxu1 %v6106_v30  ;;  %vm13506_vm6 = vmmov %vm13482_vm0 }
0x2d52   :  { %8371 = vmatmul.mubr.msk.f32.gmra.mxu1 %vm13494_vm7, %v12808_v48  ;;  %v6548_v56 = vrot.slane %v12805_v39, 3  ;;  %v6401_v45 = vrot.slane %v12805_v39, 2  ;;  %vm13507_vm7 = vmmov %vm13482_vm0  ;;  %v6403_v61 = vrot.slane %v12808_v48, 2 }
0x2d53   :  { %v12821_v20 = vmul.f32 %v6081_v44, %v12732_v0  ;;  %v12824_v32 = vmul.f32 %v6082_v17, %v12716_v15  ;;  %v6142_v55 = vsel %vm6137_vm12, %v6139_v31, %v6141_v19  ;;  %v6144_v2 = vsel %vm6137_vm12, %v6141_v19, %v6143_v40  ;;  %8404 = vmatpush3.msra.mxu1 %v6106_v30  ;;  %v6110_v44 = vld [vmem:[%s13224_s3 + $0x88] sm:$0xff] }
0x2d54   :  { %v9606_v34 = vpop.eup %9605  ;;  %8348 = vmatmul.mubr.msk.f32.vlgmr.msra.gmra.mxu0 %vm13495_vm8, %v6142_v55  ;;  %8405 = vmatprep.subr.mxu1 %v6105_v28  ;;  %v6549_v43 = vsel %vm6544_vm3, %v6546_v35, %v6548_v56  ;;  %vm13508_vm8 = vmmov %vm13482_vm0  ;;  %v6402_v13 = vsel %vm6397_vm15, %v6399_v41, %v6401_v45  ;;  %v6404_v36 = vsel %vm6397_vm15, %v6401_v45, %v6403_v61  ;;  %v6839_v17 = vrot.slane %v12785_v16, 5  ;;  %v6123_v45 = vld [vmem:[%s13224_s3 + $0xf0] sm:$0xff] }
0x2d55   :  { %v6083_v50 = vmul.f32 %v9606_v34, %v9598_v27  ;;  %v6084_v0 = vmul.f32 %v9606_v34, %v12781_v11  ;;  %8380 = vmatpush3.msra.mxu0 %v12772_v26  ;;  %8350 = vmatprep.mubr.msk.f32.mxu0 %vm13496_vm9, %v6144_v2  ;;  %v6145_v15 = vrot.slane %v12821_v20, 1  ;;  %v6147_v25 = vrot.slane %v12824_v32, 1  ;;  %vm13509_vm9 = vmmov %vm13482_vm0  ;;  %v6113_v2 = vld [vmem:[%s13224_s3 + $0xa0] sm:$0xff] }
0x2d56   :  { %8373 = vmatprep.mubr.msk.f32.mxu1 %vm13482_vm0, %v12821_v20  ;;  %8381 = vmatprep.subr.mxu0 %v6103_v58  ;;  %v6547_v11 = vsel %vm6544_vm3, %v6545_v54, %v6546_v35  ;;  %v6550_v27 = vrot.slane %v12808_v48, 3  ;;  %v6552_v21 = vrot.slane %v12821_v20, 3  ;;  %v6554_v1 = vrot.slane %v12824_v32, 3 }
0x2d57   :  { %v12844_v23 = vmul.f32 %v6083_v50, %v12735_v37  ;;  %v12847_v26 = vmul.f32 %v6084_v0, %v12726_v24  ;;  %8374 = vmatmul.mubr.msk.f32.gmra.mxu1 %vm13497_vm1, %v12824_v32  ;;  %v6146_v7 = vsel %vm6137_vm12, %v6143_v40, %v6145_v15  ;;  %8382 = vmatpush3.msra.mxu0 %v6103_v58  ;;  %v6101_v37 = vld [vmem:[%s13224_s3 + $0x40] sm:$0xff]  ;;  %v6405_v51 = vrot.slane %v12821_v20, 2  ;;  %vm13511_vm1 = vmmov %vm13482_vm0 }
0x2d58   :  { %8351 = vmatmul.mubr.msk.f32.gmra.mxu0 %vm13498_vm2, %v6146_v7  ;;  %v6148_v49 = vsel %vm6137_vm12, %v6145_v15, %v6147_v25  ;;  %8383 = vmatprep.subr.mxu0 %v6102_v53  ;;  %v6551_v42 = vsel %vm6544_vm3, %v6548_v56, %v6550_v27  ;;  %v6553_v12 = vsel %vm6544_vm3, %v6550_v27, %v6552_v21  ;;  %v6407_v31 = vrot.slane %v12824_v32, 2  ;;  %vm13512_vm2 = vmmov %vm13482_vm0  ;;  %v6109_v0 = vld [vmem:[%s13224_s3 + $0x80] sm:$0xff] }
0x2d59   :  { %8353 = vmatprep.mubr.msk.f32.mxu0 %vm13499_vm4, %v6148_v49  ;;  %8376 = vmatprep.mubr.msk.f32.mxu1 %vm13500_vm5, %v12844_v23  ;;  %v6149_v24 = vrot.slane %v12844_v23, 1  ;;  %v6151_v60 = vrot.slane %v12847_v26, 1  ;;  %v6556_v38 = vrot.slane %v12844_v23, 3  ;;  %v6555_v63 = vsel %vm6544_vm3, %v6552_v21, %v6554_v1  ;;  %vm13513_vm4 = vmmov %vm13482_vm0 }
0x2d5a   :  { %8384 = vmatpush3.msra.mxu0 %v6102_v53  ;;  %8406 = vmatpush3.msra.mxu1 %v6105_v28  ;;  %v6558_v5 = vrot.slane %v12847_v26, 3  ;;  %v6406_v62 = vsel %vm6397_vm15, %v6403_v61, %v6405_v51  ;;  %v6409_v19 = vrot.slane %v12844_v23, 2  ;;  %vm13514_vm5 = vmmov %vm13482_vm0  ;;  %v6408_v40 = vsel %vm6397_vm15, %v6405_v51, %v6407_v31 }
0x2d5b   :  { %8377 = vmatmul.mubr.msk.f32.gmra.mxu1 %vm13502_vm10, %v12847_v26  ;;  %v6150_v10 = vsel %vm6137_vm12, %v6147_v25, %v6149_v24  ;;  %v6152_v6 = vsel %vm6137_vm12, %v6149_v24, %v6151_v60  ;;  %8385 = vmatprep.subr.mxu0 %v6101_v37  ;;  %v6154_v57 = vsel %vm6137_vm12, %v6151_v60, %v6153_v8  ;;  %vm13510_vm12 = vmmov %vm13482_vm0  ;;  %v6411_v28 = vrot.slane %v12847_v26, 2 }
0x2d5c   :  { %8407 = vmatprep.mubr.msk.f32.mxu1 %vm13503_vm11, %v6547_v11  ;;  %8354 = vmatmul.mubr.msk.f32.gmra.mxu0 %vm13504_vm13, %v6150_v10  ;;  %v6557_v18 = vsel %vm6544_vm3, %v6554_v1, %v6556_v38  ;;  %v6559_v30 = vsel %vm6544_vm3, %v6556_v38, %v6558_v5  ;;  %vm13515_vm10 = vmmov %vm13482_vm0  ;;  %v6561_v55 = vsel %vm6544_vm3, %v6558_v5, %v6560_v29  ;;  %v6841_v58 = vrot.slane %v12805_v39, 5  ;;  %v6124_v11 = vld [vmem:[%s13224_s3 + $0xf8] sm:$0xff]  ;;  %v6122_v5 = vld [vmem:[%s13224_s3 + $0xe8] sm:$0xff] }
0x2d5d   :  { %8356 = vmatprep.mubr.msk.f32.mxu0 %vm13505_vm14, %v6152_v6  ;;  %8386 = vmatpush3.msra.mxu0 %v6101_v37  ;;  %vm13516_vm11 = vmmov %vm13482_vm0  ;;  %vm13518_vm14 = vcmask 1042432   ;;  %v6410_v50 = vsel %vm6397_vm15, %v6407_v31, %v6409_v19  ;;  %v6843_v15 = vrot.slane %v12808_v48, 5  ;;  %v6413_v25 = vrot.slane %v13501_v59, 2  ;;  %v6120_v37 = vld [vmem:[%s13224_s3 + $0xd8] sm:$0xff]  ;;  %v6121_v31 = vld [vmem:[%s13224_s3 + $0xe0] sm:$0xff] }
0x2d5e   :  { %8419 = vmatprep.subr.mxu0 %v6112_v47  ;;  %8439 = vmatprep.subr.mxu1 %v6116_v52  ;;  %vm13517_vm13 = vmmov %vm13482_vm0  ;;  %v6840_v34 = vsel %vm13518_vm14, %v6838_v46, %v6839_v17  ;;  %v6412_v53 = vsel %vm6397_vm15, %v6409_v19, %v6411_v28  ;;  %v6692_v54 = vrot.slane %v12788_v33, 4  ;;  %v6693_v7 = vrot.slane %v12785_v16, 4  ;;  %v6117_v46 = vld [vmem:[%s13224_s3 + $0xc0] sm:$0xff] }
0x2d5f   :  { %8408 = vmatmul.mubr.msk.f32.vlgmr.msra.gmra.mxu1 %vm13506_vm6, %v6549_v43  ;;  %vm13519_vm3 = vmmov %vm13482_vm0  ;;  %v6845_v49 = vrot.slane %v12821_v20, 5  ;;  %v6414_v60 = vsel %vm6397_vm15, %v6411_v28, %v6413_v25  ;;  %v6847_v56 = vrot.slane %v12824_v32, 5  ;;  %v6695_v8 = vrot.slane %v12805_v39, 4  ;;  %v6119_v43 = vld [vmem:[%s13224_s3 + $0xd0] sm:$0xff] }
0x2d60   :  { %8410 = vmatprep.mubr.msk.f32.mxu1 %vm13507_vm7, %v6551_v42  ;;  %8357 = vmatmul.mubr.msk.f32.gmra.mxu0 %vm13508_vm8, %v6154_v57  ;;  %vm13520_vm6 = vmmov %vm13482_vm0  ;;  %vm6691_vm8 = vcmask 1043456   ;;  %v6697_v6 = vrot.slane %v12808_v48, 4  ;;  %v6851_v41 = vrot.slane %v12847_v26, 5  ;;  %v6699_v21 = vrot.slane %v12821_v20, 4 }
0x2d61   :  { %8387 = vmatprep.mubr.msk.f32.mxu0 %vm13509_vm9, %v6400_v3  ;;  %8440 = vmatpush3.msra.mxu1 %v6116_v52  ;;  %vm13521_vm7 = vmmov %vm13482_vm0  ;;  %v6694_v10 = vsel %vm6691_vm8, %v6692_v54, %v6693_v7  ;;  %v6696_v4 = vsel %vm6691_vm8, %v6693_v7, %v6695_v8  ;;  %v6701_v57 = vrot.slane %v12824_v32, 4  ;;  %v7130_v38 = vrot.slane %v12788_v33, 7 }
0x2d62   :  { %8441 = vmatprep.subr.mxu1 %v6115_v14  ;;  %vm13522_vm9 = vmmov %vm13518_vm14  ;;  %v6698_v42 = vsel %vm6691_vm8, %v6695_v8, %v6697_v6  ;;  %v6700_v61 = vsel %vm6691_vm8, %v6697_v6, %v6699_v21  ;;  %v6705_v51 = vrot.slane %v12847_v26, 4  ;;  %v7133_v29 = vrot.slane %v12805_v39, 7  ;;  %v6126_v8 = vld [vmem:[%s13224_s3 + $0x108] sm:$0xff] }
0x2d63   :  { %8411 = vmatmul.mubr.msk.f32.gmra.mxu1 %vm13510_vm12, %v6553_v12  ;;  %v6842_v35 = vsel %vm13522_vm9, %v6839_v17, %v6841_v58  ;;  %vm13523_vm12 = vmmov %vm13482_vm0  ;;  %v6118_v12 = vld [vmem:[%s13224_s3 + $0xc8] sm:$0xff]  ;;  %v6984_v17 = vrot.slane %v12788_v33, 6  ;;  %v6985_v19 = vrot.slane %v12785_v16, 6  ;;  %v7137_v28 = vrot.slane %v12821_v20, 7 }
0x2d64   :  { %8413 = vmatprep.mubr.msk.f32.mxu1 %vm13482_vm0, %v6555_v63  ;;  %8388 = vmatmul.mubr.msk.f32.vlgmr.msra.gmra.mxu0 %vm13511_vm1, %v6402_v13  ;;  %vm13524_vm0 = vmmov %vm13522_vm9  ;;  %v7131_v63 = vrot.slane %v12785_v16, 7  ;;  %v6702_v13 = vsel %vm6691_vm8, %v6699_v21, %v6701_v57  ;;  %v7141_v25 = vrot.slane %v12844_v23, 7  ;;  %v7143_v7 = vrot.slane %v12847_v26, 7 }
0x2d65   :  { %8420 = vmatpush3.msra.mxu0 %v6112_v47  ;;  %8390 = vmatprep.mubr.msk.f32.mxu0 %vm13512_vm2, %v6404_v36  ;;  %v6844_v24 = vsel %vm13524_vm0, %v6841_v58, %v6843_v15  ;;  %vm13525_vm2 = vmmov %vm13511_vm1  ;;  %v6849_v47 = vrot.slane %v12844_v23, 5  ;;  %v7139_v58 = vrot.slane %v12824_v32, 7  ;;  %v6995_v6 = vrot.slane %v12844_v23, 6 }
0x2d66   :  { %8421 = vmatprep.subr.mxu0 %v6111_v22  ;;  %8442 = vmatpush3.msra.mxu1 %v6115_v14  ;;  %vm13527_vm15 = vmmov %vm13524_vm0  ;;  %v6853_v14 = vrot.slane %v13501_v59, 5 }
0x2d67   :  { %8414 = vmatmul.mubr.msk.f32.gmra.mxu1 %vm13513_vm4, %v6557_v18  ;;  %8422 = vmatpush3.msra.mxu0 %v6111_v22  ;;  %vm13526_vm4 = vmmov %vm13511_vm1  ;;  %v6846_v27 = vsel %vm13527_vm15, %v6843_v15, %v6845_v49  ;;  %v6703_v22 = vrot.slane %v12844_v23, 4 }
0x2d68   :  { %8416 = vmatprep.mubr.msk.f32.mxu1 %vm13514_vm5, %v6559_v30  ;;  %8391 = vmatmul.mubr.msk.f32.gmra.mxu0 %vm13515_vm10, %v6406_v62  ;;  %vm13528_vm5 = vmmov %vm13511_vm1  ;;  %v7135_v30 = vrot.slane %v12808_v48, 7  ;;  %v6707_v62 = vrot.slane %v13501_v59, 4 }
0x2d69   :  { %8393 = vmatprep.mubr.msk.f32.mxu0 %vm13516_vm11, %v6408_v40  ;;  %8443 = vmatprep.subr.mxu1 %v6114_v9  ;;  %vm13529_vm10 = vmmov %vm13524_vm0 }
0x2d6a   :  { %8423 = vmatprep.subr.mxu0 %v6110_v44  ;;  %8444 = vmatpush3.msra.mxu1 %v6114_v9  ;;  %v6848_v52 = vsel %vm13529_vm10, %v6845_v49, %v6847_v56  ;;  %vm13530_vm11 = vmmov %vm13511_vm1  ;;  %v6704_v9 = vsel %vm6691_vm8, %v6701_v57, %v6703_v22  ;;  %v6708_v33 = vsel %vm6691_vm8, %v6705_v51, %v6707_v62  ;;  %v6991_v49 = vrot.slane %v12821_v20, 6 }
0x2d6b   :  { %8417 = vmatmul.mubr.msk.f32.gmra.mxu1 %vm13517_vm13, %v6561_v55  ;;  %8424 = vmatpush3.msra.mxu0 %v6110_v44  ;;  %vm13531_vm13 = vmmov %vm13511_vm1  ;;  %v6706_v44 = vsel %vm6691_vm8, %v6703_v22, %v6705_v51  ;;  %v6128_v55 = vld [vmem:[%s13224_s3 + $0x118] sm:$0xff] }
0x2d6c   :  { %8447 = vmatprep.mubr.msk.f32.mxu1 %vm13519_vm3, %v6840_v34  ;;  %8394 = vmatmul.mubr.msk.f32.gmra.mxu0 %vm13520_vm6, %v6410_v50  ;;  %vm13532_vm14 = vmmov %vm13511_vm1  ;;  %v6987_v34 = vrot.slane %v12805_v39, 6 }
0x2d6d   :  { %8445 = vmatprep.subr.mxu1 %v6113_v2  ;;  %8396 = vmatprep.mubr.msk.f32.mxu0 %vm13521_vm7, %v6412_v53  ;;  %vm13533_vm3 = vmmov %vm13524_vm0 }
0x2d6e   :  { %8446 = vmatpush3.msra.mxu1 %v6113_v2  ;;  %8425 = vmatprep.subr.mxu0 %v6109_v0  ;;  %v6850_v1 = vsel %vm13533_vm3, %v6847_v56, %v6849_v47  ;;  %vm13534_vm6 = vmmov %vm13511_vm1  ;;  %v7145_v56 = vrot.slane %v13501_v59, 7 }
0x2d6f   :  { %8448 = vmatmul.mubr.msk.f32.vlgmr.msra.gmra.mxu1 %vm13523_vm12, %v6842_v35  ;;  %8426 = vmatpush3.msra.mxu0 %v6109_v0  ;;  %vm13535_vm7 = vmmov %vm13524_vm0  ;;  %v6989_v0 = vrot.slane %v12808_v48, 6  ;;  %v6127_v35 = vld [vmem:[%s13224_s3 + $0x110] sm:$0xff] }
0x2d70   :  { %8450 = vmatprep.mubr.msk.f32.mxu1 %vm13511_vm1, %v6844_v24  ;;  %8397 = vmatmul.mubr.msk.f32.gmra.mxu0 %vm13525_vm2, %v6414_v60  ;;  %v6852_v3 = vsel %vm13535_vm7, %v6849_v47, %v6851_v41  ;;  %vm13536_vm9 = vmmov %vm13511_vm1  ;;  %vm13550_vm7 = vcmask 1041408   ;;  %v6993_v24 = vrot.slane %v12824_v32, 6  ;;  %v6997_v47 = vrot.slane %v12847_v26, 6 }
0x2d71   :  { %8427 = vmatprep.mubr.msk.f32.mxu0 %vm13526_vm4, %v6694_v10  ;;  %8459 = vmatprep.subr.mxu0 %v6120_v37  ;;  %vm13537_vm12 = vmmov %vm13511_vm1  ;;  %vm13541_vm4 = vcmask 1040384   ;;  %v6986_v50 = vsel %vm13550_vm7, %v6984_v17, %v6985_v19 }
0x2d72   :  { %8479 = vmatprep.subr.mxu1 %v6124_v11  ;;  %vm13538_vm0 = vmmov %vm13511_vm1  ;;  %v7132_v18 = vsel %vm13541_vm4, %v7130_v38, %v7131_v63 }
0x2d73   :  { %8451 = vmatmul.mubr.msk.f32.gmra.mxu1 %vm13528_vm5, %v6846_v27  ;;  %vm13539_vm1 = vmmov %vm13533_vm3 }
0x2d74   :  { %8453 = vmatprep.mubr.msk.f32.mxu1 %vm13530_vm11, %v6848_v52  ;;  %8428 = vmatmul.mubr.msk.f32.vlgmr.msra.gmra.mxu0 %vm13531_vm13, %v6696_v4  ;;  %v6854_v36 = vsel %vm13539_vm1, %v6851_v41, %v6853_v14  ;;  %vm13540_vm2 = vmmov %vm13538_vm0  ;;  %v6125_v52 = vld [vmem:[%s13224_s3 + $0x100] sm:$0xff] }
0x2d75   :  { %8460 = vmatpush3.msra.mxu0 %v6120_v37  ;;  %8430 = vmatprep.mubr.msk.f32.mxu0 %vm13532_vm14, %v6698_v42  ;;  %vm13542_vm15 = vmmov %vm13538_vm0 }
0x2d76   :  { %8461 = vmatprep.subr.mxu0 %v6119_v43  ;;  %8480 = vmatpush3.msra.mxu1 %v6124_v11  ;;  %vm13543_vm5 = vmmov %vm13538_vm0 }
0x2d77   :  { %8454 = vmatmul.mubr.msk.f32.gmra.mxu1 %vm13534_vm6, %v6850_v1  ;;  %8462 = vmatpush3.msra.mxu0 %v6119_v43  ;;  %vm13544_vm10 = vmmov %vm13538_vm0  ;;  %v6999_v43 = vrot.slane %v13501_v59, 6 }
0x2d78   :  { %8456 = vmatprep.mubr.msk.f32.mxu1 %vm13536_vm9, %v6852_v3  ;;  %8431 = vmatmul.mubr.msk.f32.gmra.mxu0 %vm13537_vm12, %v6700_v61  ;;  %vm13545_vm11 = vmmov %vm13541_vm4 }
0x2d79   :  { %8481 = vmatprep.subr.mxu1 %v6123_v45  ;;  %8433 = vmatprep.mubr.msk.f32.mxu0 %vm13538_vm0, %v6702_v13  ;;  %v7134_v40 = vsel %vm13545_vm11, %v7131_v63, %v7133_v29  ;;  %vm13546_vm13 = vmmov %vm13538_vm0 }
0x2d7a   :  { %8482 = vmatpush3.msra.mxu1 %v6123_v45  ;;  %8463 = vmatprep.subr.mxu0 %v6118_v12  ;;  %vm13547_vm14 = vmmov %vm13541_vm4 }
0x2d7b   :  { %8457 = vmatmul.mubr.msk.f32.gmra.mxu1 %vm13540_vm2, %v6854_v36  ;;  %8483 = vmatprep.subr.mxu1 %v6122_v5  ;;  %v7136_v2 = vsel %vm13547_vm14, %v7133_v29, %v7135_v30  ;;  %vm13548_vm3 = vmmov %vm13538_vm0 }
0x2d7c   :  { %8484 = vmatpush3.msra.mxu1 %v6122_v5  ;;  %8487 = vmatprep.mubr.msk.f32.mxu1 %vm13542_vm15, %v7132_v18  ;;  %vm13549_vm6 = vmmov %vm13538_vm0 }
0x2d7d   :  { %8434 = vmatmul.mubr.msk.f32.gmra.mxu0 %vm13543_vm5, %v6704_v9  ;;  %8485 = vmatprep.subr.mxu1 %v6121_v31  ;;  %vm13551_vm9 = vmmov %vm13538_vm0 }
0x2d7e   :  { %8464 = vmatpush3.msra.mxu0 %v6118_v12  ;;  %8436 = vmatprep.mubr.msk.f32.mxu0 %vm13544_vm10, %v6706_v44  ;;  %vm13552_vm12 = vmmov %vm13541_vm4 }
0x2d7f   :  { %8486 = vmatpush3.msra.mxu1 %v6121_v31  ;;  %8465 = vmatprep.subr.mxu0 %v6117_v46  ;;  %v7138_v15 = vsel %vm13552_vm12, %v7135_v30, %v7137_v28  ;;  %vm13553_vm8 = vmmov %vm13538_vm0 }
0x2d80   :  { %8488 = vmatmul.mubr.msk.f32.vlgmr.msra.gmra.mxu1 %vm13546_vm13, %v7134_v40  ;;  %8466 = vmatpush3.msra.mxu0 %v6117_v46  ;;  %vm13554_vm0 = vmmov %vm13541_vm4 }
0x2d81   :  { %8490 = vmatprep.mubr.msk.f32.mxu1 %vm13548_vm3, %v7136_v2  ;;  %8437 = vmatmul.mubr.msk.f32.gmra.mxu0 %vm13549_vm6, %v6708_v33  ;;  %v7140_v53 = vsel %vm13554_vm0, %v7137_v28, %v7139_v58  ;;  %vm13555_vm1 = vmmov %vm13550_vm7 }
0x2d82   :  { %8467 = vmatprep.mubr.msk.f32.mxu0 %vm13551_vm9, %v6986_v50  ;;  %8499 = vmatprep.subr.mxu0 %v6128_v55  ;;  %v6988_v54 = vsel %vm13555_vm1, %v6985_v19, %v6987_v34  ;;  %vm13556_vm4 = vmmov %vm13540_vm2 }
0x2d83   :  { %8519 = vmatprep.subr.mxu1 %v13501_v59  ;;  %vm13557_vm15 = vmmov %vm13555_vm1 }
0x2d84   :  { %8491 = vmatmul.mubr.msk.f32.gmra.mxu1 %vm13553_vm8, %v7138_v15  ;;  %v6990_v37 = vsel %vm13557_vm15, %v6987_v34, %v6989_v0  ;;  %vm13558_vm5 = vmmov %vm13540_vm2 }
0x2d85   :  { %8493 = vmatprep.mubr.msk.f32.mxu1 %vm13540_vm2, %v7140_v53  ;;  %8468 = vmatmul.mubr.msk.f32.vlgmr.msra.gmra.mxu0 %vm13556_vm4, %v6988_v54  ;;  %vm13559_vm10 = vmmov %vm13554_vm0  ;;  %vm13572_vm4 = vmmov 0  }
0x2d86   :  { %8500 = vmatpush3.msra.mxu0 %v6128_v55  ;;  %8470 = vmatprep.mubr.msk.f32.mxu0 %vm13558_vm5, %v6990_v37  ;;  %v7142_v60 = vsel %vm13559_vm10, %v7139_v58, %v7141_v25  ;;  %vm13560_vm11 = vmmov %vm13540_vm2 }
0x2d87   :  { %8501 = vmatprep.subr.mxu0 %v6127_v35  ;;  %vm13561_vm13 = vmmov %vm13554_vm0 }
0x2d88   :  { %8494 = vmatmul.mubr.msk.f32.gmra.mxu1 %vm13560_vm11, %v7142_v60  ;;  %v7144_v11 = vsel %vm13561_vm13, %v7141_v25, %v7143_v7  ;;  %vm13562_vm14 = vmmov %vm13555_vm1  ;;  %8502 = vmatpush3.msra.mxu0 %v6127_v35 }
0x2d89   :  { %v6992_v10 = vsel %vm13562_vm14, %v6989_v0, %v6991_v49  ;;  %vm13563_vm3 = vmmov %vm13540_vm2  ;;  %8503 = vmatprep.subr.mxu0 %v6126_v8 }
0x2d8a   :  { %8496 = vmatprep.mubr.msk.f32.mxu1 %vm13563_vm3, %v7144_v11  ;;  %vm13564_vm6 = vmmov %vm13540_vm2  ;;  %8504 = vmatpush3.msra.mxu0 %v6126_v8 }
0x2d8b   :  { %8471 = vmatmul.mubr.msk.f32.gmra.mxu0 %vm13564_vm6, %v6992_v10  ;;  %vm13565_vm7 = vmmov %vm13555_vm1  ;;  %8505 = vmatprep.subr.mxu0 %v6125_v52 }
0x2d8c   :  { %v6994_v27 = vsel %vm13565_vm7, %v6991_v49, %v6993_v24  ;;  %vm13566_vm9 = vmmov %vm13540_vm2  ;;  %8506 = vmatpush3.msra.mxu0 %v6125_v52 }
0x2d8d   :  { %8473 = vmatprep.mubr.msk.f32.mxu0 %vm13566_vm9, %v6994_v27  ;;  %vm13567_vm12 = vmmov %vm13554_vm0 }
0x2d8e   :  { %v7146_v4 = vsel %vm13567_vm12, %v7143_v7, %v7145_v56  ;;  %vm13568_vm8 = vmmov %vm13540_vm2  ;;  %vm7391_vm12 = vcmask 62464  }
0x2d8f   :  { %8497 = vmatmul.mubr.msk.f32.gmra.mxu1 %vm13568_vm8, %v7146_v4  ;;  %vm13569_vm0 = vmmov %vm13555_vm1  ;;  %vm7429_vm8 = vcmask 126016  }
0x2d90   :  { %v6996_v41 = vsel %vm13569_vm0, %v6993_v24, %v6995_v6  ;;  %vm13570_vm1 = vmmov %vm13540_vm2  ;;  %8527 = vmatprep.mubr.msk.f32.mxu1 %vm13572_vm4, %v13501_v59 }
0x2d91   :  { %8474 = vmatmul.mubr.msk.f32.gmra.mxu0 %vm13570_vm1, %v6996_v41  ;;  %vm13571_vm2 = vmmov %vm13569_vm0 }
0x2d92   :  { %v6998_v21 = vsel %vm13571_vm2, %v6995_v6, %v6997_v47  ;;  %vm13573_vm15 = vmmov %vm13570_vm1  ;;  %vm7427_vm2 = vcmask 130112  }
0x2d93   :  { %8476 = vmatprep.mubr.msk.f32.mxu0 %vm13573_vm15, %v6998_v21  ;;  %vm13574_vm5 = vmmov %vm13569_vm0  ;;  %vm7467_vm0 = vcmask 189568   ;;  %vm7465_vm15 = vcmask 195712  }
0x2d94   :  { %v7000_v42 = vsel %vm13574_vm5, %v6997_v47, %v6999_v43  ;;  %vm13575_vm10 = vmmov %vm13570_vm1  ;;  %vm7503_vm5 = vcmask 261312  }
0x2d95   :  { %8477 = vmatmul.mubr.msk.f32.gmra.mxu0 %vm13575_vm10, %v7000_v42  ;;  %vm13576_vm11 = vmmov %vm13570_vm1  ;;  %vm13585_vm10 = vcmask 1041409  }
0x2d96   :  { %8507 = vmatprep.mubr.msk.f32.mxu0 %vm13576_vm11, %v12785_v16  ;;  %vm13577_vm13 = vmmov %vm13570_vm1  ;;  %v7571_v16 = vld [vmem:[%s13225_s4 + $0x18] sm:$0xff]  ;;  %vm13586_vm11 = vcmask 1042434  }
0x2d97   :  { %vm13578_vm14 = vmmov %vm13570_vm1  ;;  %8520 = vmatpush3.msra.mxu1 %v7571_v16 }
0x2d98   :  { %vm13579_vm3 = vmmov %vm13570_vm1  ;;  %8521 = vmatprep.subr.mxu1 %v13501_v59 }
0x2d99   :  { %8508 = vmatmul.mubr.msk.f32.vlgmr.msra.gmra.mxu0 %vm13577_vm13, %v12805_v39  ;;  %vm13580_vm6 = vmmov %vm13570_vm1  ;;  %v7570_v39 = vld [vmem:[%s13225_s4 + $0x10] sm:$0xff] }
0x2d9a   :  { %8510 = vmatprep.mubr.msk.f32.mxu0 %vm13578_vm14, %v12808_v48  ;;  %vm13581_vm7 = vmmov %vm13570_vm1  ;;  %v7569_v48 = vld [vmem:[%s13225_s4 + $0x8] sm:$0xff]  ;;  %8522 = vmatpush3.msra.mxu1 %v7570_v39 }
0x2d9b   :  { %vm13582_vm9 = vmmov %vm13570_vm1  ;;  %8523 = vmatprep.subr.mxu1 %v13501_v59  ;;  %vm7389_vm1 = vcmask 64512  }
0x2d9c   :  { %8524 = vmatpush3.msra.mxu1 %v7569_v48  ;;  %vm13587_vm13 = vmmov %vm13585_vm10 }
0x2d9d   :  { %8511 = vmatmul.mubr.msk.f32.gmra.mxu0 %vm13579_vm3, %v12821_v20  ;;  %v7568_v20 = vld [vmem:[%s13225_s4] sm:$0xff]  ;;  %8525 = vmatprep.subr.mxu1 %v13501_v59  ;;  %vm13588_vm14 = vmmov %vm13585_vm10  ;;  %vm13589_vm3 = vcmask 1043459  }
0x2d9e   :  { %8513 = vmatprep.mubr.msk.f32.mxu0 %vm13580_vm6, %v12824_v32  ;;  %8526 = vmatpush3.msra.mxu1 %v7568_v20  ;;  %vm13590_vm6 = vmmov %vm13586_vm11 }
0x2d9f   :  { %8530 = vmatprep.subr.mxu1 %v13501_v59 }
0x2da1   :  { %8514 = vmatmul.mubr.msk.f32.gmra.mxu0 %vm13581_vm7, %v12844_v23  ;;  %vm13591_vm7 = vmmov %vm13590_vm6 }
0x2da2   :  { %8516 = vmatprep.mubr.msk.f32.mxu0 %vm13582_vm9, %v12847_v26  ;;  %vm13592_vm9 = vmmov %vm13589_vm3 }
0x2da5   :  { %8517 = vmatmul.mubr.f32.gmra.mxu0 %v13501_v59 }
0x2e0d   :  { %v8369_v32 = vpop.f32.mrf.mxu1 }
0x2e0f   :  { %v6358_v23 = vpop.f32.mrf.mxu1 }
0x2e12   :  { %v8372_v26 = vpop.f32.mrf.mxu1 }
0x2e14   :  { %v8349_v57 = vpop.f32.mrf.mxu0  ;;  %v6368_v1 = vpop.f32.mrf.mxu1 }
0x2e15   :  { %v6364_v60 = vadd.f32 %v8369_v32, %v8349_v57 }
0x2e16   :  { %v6237_v45 = vpop.f32.mrf.mxu0 }
0x2e17   :  { %v8375_v14 = vpop.f32.mrf.mxu1  ;;  %v6359_v11 = vadd.f32 %v6358_v23, %v6237_v45 }
0x2e18   :  { %v8352_v3 = vpop.f32.mrf.mxu0 }
0x2e19   :  { %v6378_v61 = vpop.f32.mrf.mxu1  ;;  %v6374_v27 = vadd.f32 %v8372_v26, %v8352_v3 }
0x2e1a   :  { %v6247_v12 = vpop.f32.mrf.mxu0 }
0x2e1b   :  { %v8378_v38 = vpop.f32.mrf.mxu1  ;;  %v6369_v52 = vadd.f32 %v6368_v1, %v6247_v12 }
0x2e1c   :  { %v8355_v63 = vpop.f32.mrf.mxu0 }
0x2e1d   :  { %v13114_v13 = vpop.f32.mrf.mxu1  ;;  %v6384_v20 = vadd.f32 %v8375_v14, %v8355_v63 }
0x2e1e   :  { %v6257_v5 = vpop.f32.mrf.mxu0 }
0x2e1f   :  { %v8409_v22 = vpop.f32.mrf.mxu1  ;;  %v6379_v32 = vadd.f32 %v6378_v61, %v6257_v5 }
0x2e20   :  { %v8358_v51 = vpop.f32.mrf.mxu0 }
0x2e21   :  { %v6644_v36 = vpop.f32.mrf.mxu1 }
0x2e22   :  { %v6267_v31 = vpop.f32.mrf.mxu0 }
0x2e23   :  { %v8412_v18 = vpop.f32.mrf.mxu1 }
0x2e24   :  { %v8389_v29 = vpop.f32.mrf.mxu0 }
0x2e25   :  { %v6654_v9 = vpop.f32.mrf.mxu1  ;;  %v6537_v10 = vadd.f32 %v8389_v29, %v6364_v60 }
0x2e26   :  { %v6497_v46 = vpop.f32.mrf.mxu0 }
0x2e27   :  { %v8415_v30 = vpop.f32.mrf.mxu1  ;;  %v6536_v47 = vadd.f32 %v6497_v46, %v6359_v11  ;;  %v6684_v21 = vadd.f32 %v8409_v22, %v6537_v10 }
0x2e28   :  { %v8392_v62 = vpop.f32.mrf.mxu0 }
0x2e29   :  { %v6664_v44 = vpop.f32.mrf.mxu1  ;;  %v6539_v43 = vadd.f32 %v8392_v62, %v6374_v27  ;;  %v6683_v48 = vadd.f32 %v6644_v36, %v6536_v47  ;;  %v6389_v36 = vadd.f32 %v13114_v13, %v6267_v31 }
0x2e2a   :  { %v6507_v17 = vpop.f32.mrf.mxu0 }
0x2e2b   :  { %v8418_v19 = vpop.f32.mrf.mxu1  ;;  %v6538_v42 = vadd.f32 %v6507_v17, %v6369_v52  ;;  %v6686_v45 = vadd.f32 %v8412_v18, %v6539_v43 }
0x2e2c   :  { %v8395_v40 = vpop.f32.mrf.mxu0 }
0x2e2d   :  { %v13116_v28 = vpop.f32.mrf.mxu1  ;;  %v6541_v29 = vadd.f32 %v8395_v40, %v6384_v20  ;;  %v6685_v3 = vadd.f32 %v6654_v9, %v6538_v42 }
0x2e2e   :  { %v6517_v55 = vpop.f32.mrf.mxu0 }
0x2e2f   :  { %v8449_v2 = vpop.f32.mrf.mxu1  ;;  %v6540_v26 = vadd.f32 %v6517_v55, %v6379_v32  ;;  %v6688_v63 = vadd.f32 %v8415_v30, %v6541_v29 }
0x2e30   :  { %v8398_v33 = vpop.f32.mrf.mxu0 }
0x2e31   :  { %v6937_v58 = vpop.f32.mrf.mxu1  ;;  %v6687_v5 = vadd.f32 %v6664_v44, %v6540_v26 }
0x2e32   :  { %v6527_v34 = vpop.f32.mrf.mxu0 }
0x2e33   :  { %v8452_v50 = vpop.f32.mrf.mxu1 }
0x2e34   :  { %v8429_v0 = vpop.f32.mrf.mxu0 }
0x2e35   :  { %v6947_v25 = vpop.f32.mrf.mxu1  ;;  %v6831_v39 = vadd.f32 %v8429_v0, %v6684_v21 }
0x2e36   :  { %v6791_v15 = vpop.f32.mrf.mxu0 }
0x2e37   :  { %v13118_v7 = vpop.f32.mrf.mxu1  ;;  %v6830_v23 = vadd.f32 %v6791_v15, %v6683_v48  ;;  %v6977_v60 = vadd.f32 %v8449_v2, %v6831_v39 }
0x2e38   :  { %v8432_v53 = vpop.f32.mrf.mxu0 }
0x2e39   :  { %v13120_v49 = vpop.f32.mrf.mxu1  ;;  %v6833_v46 = vadd.f32 %v8432_v53, %v6686_v45  ;;  %v6976_v61 = vadd.f32 %v6937_v58, %v6830_v23 }
0x2e3a   :  { %v6801_v54 = vpop.f32.mrf.mxu0 }
0x2e3b   :  { %v13122_v56 = vpop.f32.mrf.mxu1  ;;  %v6832_v62 = vadd.f32 %v6801_v54, %v6685_v3  ;;  %v6979_v9 = vadd.f32 %v8452_v50, %v6833_v46 }
0x2e3c   :  { %13583 = vst [vmem:[#allocation21_spill] sm:$0xff] %v13122_v56  ;;  %v6394_v56 = vadd.f32 %v8378_v38, %v8358_v51  ;;  %v6542_v51 = vadd.f32 %v6527_v34, %v6389_v36 }
0x2e3d   :  { %v8435_v35 = vpop.f32.mrf.mxu0  ;;  %v13126_v4 = vpop.f32.mrf.mxu1  ;;  %v6978_v2 = vadd.f32 %v6947_v25, %v6832_v62 }
0x2e3e   :  { %v6543_v12 = vadd.f32 %v8398_v33, %v6394_v56  ;;  %v6835_v55 = vadd.f32 %v8435_v35, %v6688_v63  ;;  %v6689_v30 = vadd.f32 %v13116_v28, %v6542_v51 }
0x2e3f   :  { %v6811_v37 = vpop.f32.mrf.mxu0 }
0x2e40   :  { %v8489_v57 = vpop.f32.mrf.mxu1  ;;  %v6690_v18 = vadd.f32 %v8418_v19, %v6543_v12  ;;  %v6834_v33 = vadd.f32 %v6811_v37, %v6687_v5  ;;  %v6981_v34 = vadd.f32 %v13118_v7, %v6835_v55 }
0x2e41   :  { %v8438_v24 = vpop.f32.mrf.mxu0 }
0x2e42   :  { %v7229_v22 = vpop.f32.mrf.mxu1  ;;  %v6837_v53 = vadd.f32 %v8438_v24, %v6690_v18  ;;  %v6980_v50 = vadd.f32 %v13120_v49, %v6834_v33 }
0x2e43   :  { %v13124_v8 = vpop.f32.mrf.mxu0 }
0x2e44   :  { %v8492_v0 = vpop.f32.mrf.mxu1  ;;  %v6836_v35 = vadd.f32 %v13124_v8, %v6689_v30 }
0x2e45   :  { %v8469_v6 = vpop.f32.mrf.mxu0 }
0x2e46   :  { %v7123_v14 = vadd.f32 %v8469_v6, %v6977_v60  ;;  %v7239_v58 = vpop.f32.mrf.mxu1  ;;  %v6982_v20 = vadd.f32 %v13126_v4, %v6836_v35 }
0x2e47   :  { %v7083_v41 = vpop.f32.mrf.mxu0 }
0x2e48   :  { %v7122_v40 = vadd.f32 %v7083_v41, %v6976_v61  ;;  %v7269_v56 = vadd.f32 %v8489_v57, %v7123_v14  ;;  %v8495_v41 = vpop.f32.mrf.mxu1 }
0x2e4a   :  { %v7268_v19 = vadd.f32 %v7229_v22, %v7122_v40  ;;  %v7249_v62 = vpop.f32.mrf.mxu1 }
0x2e4b   :  { %v8472_v16 = vpop.f32.mrf.mxu0 }
0x2e4c   :  { %v7125_v54 = vadd.f32 %v8472_v16, %v6979_v9 }
0x2e4d   :  { %v7093_v59 = vpop.f32.mrf.mxu0 }
0x2e4e   :  { %v7124_v13 = vadd.f32 %v7093_v59, %v6978_v2  ;;  %v13584_v59 = vld [vmem:[#allocation21_spill] sm:$0xff]  ;;  %v7271_v11 = vadd.f32 %v8492_v0, %v7125_v54 }
0x2e4f   :  { %v6983_v37 = vadd.f32 %v13584_v59, %v6837_v53  ;;  %v8498_v54 = vpop.f32.mrf.mxu1 }
0x2e50   :  { %v7270_v47 = vadd.f32 %v7239_v58, %v7124_v13 }
0x2e51   :  { %v8475_v1 = vpop.f32.mrf.mxu0 }
0x2e52   :  { %v7127_v48 = vadd.f32 %v8475_v1, %v6981_v34 }
0x2e53   :  { %v13128_v17 = vpop.f32.mrf.mxu0 }
0x2e55   :  { %v13131_v38 = vpop.f32.mrf.mxu0 }
0x2e56   :  { %v7129_v13 = vadd.f32 %v13131_v38, %v6983_v37 }
0x2e57   :  { %v13133_v15 = vpop.f32.mrf.mxu0 }
0x2e59   :  { %v8509_v31 = vpop.f32.mrf.mxu0 }
0x2e5a   :  { %v7382_v44 = vadd.f32 %v8509_v31, %v7269_v56  ;;  %v7126_v56 = vadd.f32 %v13128_v17, %v6980_v50  ;;  %v7259_v17 = vpop.f32.mrf.mxu1 }
0x2e5b   :  { %v7342_v25 = vpop.f32.mrf.mxu0 }
0x2e5c   :  { %v7381_v24 = vadd.f32 %v7342_v25, %v7268_v19  ;;  %v7392_v10 = vsel %vm7391_vm12, %v7382_v44, -inf  ;;  %v7430_v28 = vsel %vm7429_vm8, %v7382_v44, -inf  ;;  %v7468_v6 = vsel %vm7467_vm0, %v7382_v44, -inf }
0x2e5d   :  { %v8512_v27 = vpop.f32.mrf.mxu0  ;;  %v7128_v19 = vadd.f32 %v13133_v15, %v6982_v20  ;;  %v7272_v50 = vadd.f32 %v7249_v62, %v7126_v56 }
0x2e5e   :  { %v7390_v7 = vsel %vm7389_vm1, %v7381_v24, -inf  ;;  %v7428_v49 = vsel %vm7427_vm2, %v7381_v24, -inf  ;;  %v7466_v52 = vsel %vm7465_vm15, %v7381_v24, -inf  ;;  %v7504_v8 = vsel %vm7503_vm5, %v7381_v24, -inf }
0x2e5f   :  { %v7393_v43 = vmax.f32 %v7390_v7, %v7392_v10  ;;  %v7431_v21 = vmax.f32 %v7428_v49, %v7430_v28  ;;  %v7469_v42 = vmax.f32 %v7466_v52, %v7468_v6  ;;  %v7505_v16 = vrot.slane %v7504_v8, 4  ;;  %v7352_v39 = vpop.f32.mrf.mxu0 }
0x2e60   :  { %v7384_v32 = vadd.f32 %v8512_v27, %v7271_v11  ;;  %v7383_v57 = vadd.f32 %v7352_v39, %v7270_v47  ;;  %v7273_v11 = vadd.f32 %v8495_v41, %v7127_v48  ;;  %v7275_v7 = vadd.f32 %v8498_v54, %v7129_v13 }
0x2e61   :  { %v7394_v23 = vrot.slane %v7393_v43, 4  ;;  %v7432_v45 = vrot.slane %v7431_v21, 4  ;;  %v7470_v29 = vrot.slane %v7469_v42, 4  ;;  %v7506_v26 = vmax.f32 %v7504_v8, %v7505_v16  ;;  %v8515_v4 = vpop.f32.mrf.mxu0 }
0x2e62   :  { %v7401_v3 = vsel %vm7391_vm12, %v7384_v32, -inf  ;;  %v7439_v12 = vsel %vm7429_vm8, %v7384_v32, -inf  ;;  %v7477_v46 = vsel %vm7467_vm0, %v7384_v32, -inf  ;;  %v7400_v60 = vsel %vm7389_vm1, %v7383_v57, -inf }
0x2e63   :  { %v7395_v22 = vmax.f32 %v7393_v43, %v7394_v23  ;;  %v7433_v36 = vmax.f32 %v7431_v21, %v7432_v45  ;;  %v7471_v1 = vmax.f32 %v7469_v42, %v7470_v29  ;;  %v7507_v14 = vrot.slane %v7506_v26, 2  ;;  %v7362_v44 = vpop.f32.mrf.mxu0 }
0x2e64   :  { %v7402_v61 = vmax.f32 %v7400_v60, %v7401_v3  ;;  %v7438_v63 = vsel %vm7427_vm2, %v7383_v57, -inf  ;;  %v7476_v5 = vsel %vm7465_vm15, %v7383_v57, -inf  ;;  %v7511_v51 = vsel %vm7503_vm5, %v7383_v57, -inf }
0x2e65   :  { %v7396_v18 = vrot.slane %v7395_v22, 2  ;;  %v7434_v40 = vrot.slane %v7433_v36, 2  ;;  %v7472_v9 = vrot.slane %v7471_v1, 2  ;;  %v7508_v55 = vmax.f32 %v7506_v26, %v7507_v14  ;;  %v8518_v38 = vpop.f32.mrf.mxu0 }
0x2e66   :  { %v7403_v33 = vrot.slane %v7402_v61, 4  ;;  %v7440_v0 = vmax.f32 %v7438_v63, %v7439_v12  ;;  %v7478_v2 = vmax.f32 %v7476_v5, %v7477_v46  ;;  %v7512_v53 = vrot.slane %v7511_v51, 4 }
0x2e67   :  { %v7397_v31 = vmax.f32 %v7395_v22, %v7396_v18  ;;  %v7435_v30 = vmax.f32 %v7433_v36, %v7434_v40  ;;  %v13158_v35 = vmax.f32 %v7471_v1, %v7472_v9  ;;  %v7509_v59 = vrot.slane %v7508_v55, 1  ;;  %v7372_v57 = vpop.f32.mrf.mxu0 }
0x2e68   :  { %v7404_v58 = vmax.f32 %v7402_v61, %v7403_v33  ;;  %v7441_v34 = vrot.slane %v7440_v0, 4  ;;  %v7479_v25 = vrot.slane %v7478_v2, 4  ;;  %v7513_v24 = vmax.f32 %v7511_v51, %v7512_v53 }
0x2e69   :  { %v7398_v10 = vrot.slane %v7397_v31, 1  ;;  %v7436_v28 = vrot.slane %v7435_v30, 1  ;;  %v7386_v47 = vadd.f32 %v8515_v4, %v7273_v11  ;;  %v7274_v49 = vadd.f32 %v7259_v17, %v7128_v19 }
0x2e6a   :  { %v7405_v6 = vrot.slane %v7404_v58, 2  ;;  %v7442_v27 = vmax.f32 %v7440_v0, %v7441_v34  ;;  %v7480_v37 = vmax.f32 %v7478_v2, %v7479_v25  ;;  %v7474_v15 = vrot.slane %v13158_v35, 1 }
0x2e6b   :  { %v13161_v52 = vmax.f32 %v7508_v55, %v7509_v59  ;;  %v7514_v8 = vrot.slane %v7513_v24, 2  ;;  %v7385_v43 = vadd.f32 %v7362_v44, %v7272_v50  ;;  %v13163_v21 = vmax.f32 %v7397_v31, %v7398_v10 }
0x2e6c   :  { %v13165_v41 = vmax.f32 %v7435_v30, %v7436_v28  ;;  %v7406_v42 = vmax.f32 %v7404_v58, %v7405_v6  ;;  %v7443_v16 = vrot.slane %v7442_v27, 2  ;;  %v7481_v23 = vrot.slane %v7480_v37, 2 }
0x2e6d   :  { %v7409_v39 = vsel %vm7389_vm1, %v7385_v43, -inf  ;;  %v7447_v48 = vsel %vm7427_vm2, %v7385_v43, -inf  ;;  %v7485_v20 = vsel %vm7465_vm15, %v7385_v43, -inf  ;;  %v7518_v32 = vsel %vm7503_vm5, %v7385_v43, -inf }
0x2e6e   :  { %v7410_v45 = vsel %vm7391_vm12, %v7386_v47, -inf  ;;  %v7448_v29 = vsel %vm7429_vm8, %v7386_v47, -inf  ;;  %v7486_v26 = vsel %vm7467_vm0, %v7386_v47, -inf  ;;  %v7519_v60 = vrot.slane %v7518_v32, 4 }
0x2e6f   :  { %v7411_v3 = vmax.f32 %v7409_v39, %v7410_v45  ;;  %v7449_v12 = vmax.f32 %v7447_v48, %v7448_v29  ;;  %v7487_v46 = vmax.f32 %v7485_v20, %v7486_v26  ;;  %v7444_v62 = vmax.f32 %v7442_v27, %v7443_v16 }
0x2e70   :  { %v7515_v22 = vmax.f32 %v7513_v24, %v7514_v8  ;;  %v7388_v36 = vadd.f32 %v8518_v38, %v7275_v7  ;;  %v7387_v1 = vadd.f32 %v7372_v57, %v7274_v49  ;;  %v7520_v63 = vmax.f32 %v7518_v32, %v7519_v60 }
0x2e71   :  { %v7412_v14 = vrot.slane %v7411_v3, 4  ;;  %v7450_v4 = vrot.slane %v7449_v12, 4  ;;  %v7488_v61 = vrot.slane %v7487_v46, 4  ;;  %v7482_v5 = vmax.f32 %v7480_v37, %v7481_v23 }
0x2e72   :  { %v7419_v51 = vsel %vm7391_vm12, %v7388_v36, -inf  ;;  %v7457_v18 = vsel %vm7429_vm8, %v7388_v36, -inf  ;;  %v7418_v40 = vsel %vm7389_vm1, %v7387_v1, -inf  ;;  %v7495_v0 = vsel %vm7467_vm0, %v7388_v36, -inf  ;;  %vm13593_vm12 = vmmov %vm13589_vm3 }
0x2e73   :  { %v7413_v9 = vmax.f32 %v7411_v3, %v7412_v14  ;;  %v7451_v55 = vmax.f32 %v7449_v12, %v7450_v4  ;;  %v7489_v33 = vmax.f32 %v7487_v46, %v7488_v61  ;;  %v7420_v2 = vmax.f32 %v7418_v40, %v7419_v51  ;;  %vm13594_vm8 = vmmov %vm13585_vm10 }
0x2e74   :  { %v7456_v53 = vsel %vm7427_vm2, %v7387_v1, -inf  ;;  %v7494_v54 = vsel %vm7465_vm15, %v7387_v1, -inf  ;;  %v7525_v56 = vsel %vm7503_vm5, %v7387_v1, -inf  ;;  %v7521_v44 = vrot.slane %v7520_v63, 2  ;;  %vm13595_vm2 = vmmov %vm13590_vm6 }
0x2e75   :  { %v7414_v13 = vrot.slane %v7413_v9, 2  ;;  %v7452_v31 = vrot.slane %v7451_v55, 2  ;;  %v7490_v30 = vrot.slane %v7489_v33, 2  ;;  %v7421_v19 = vrot.slane %v7420_v2, 4  ;;  %vm13596_vm15 = vmmov %vm13589_vm3 }
0x2e76   :  { %v7458_v58 = vmax.f32 %v7456_v53, %v7457_v18  ;;  %v7496_v34 = vmax.f32 %v7494_v54, %v7495_v0  ;;  %v7526_v25 = vrot.slane %v7525_v56, 4  ;;  %v7407_v59 = vrot.slane %v7406_v42, 1 }
0x2e77   :  { %v7415_v24 = vmax.f32 %v7413_v9, %v7414_v13  ;;  %v7453_v11 = vmax.f32 %v7451_v55, %v7452_v31  ;;  %v7491_v10 = vmax.f32 %v7489_v33, %v7490_v30  ;;  %v7422_v28 = vmax.f32 %v7420_v2, %v7421_v19  ;;  %v7654_v19 = vld [vmem:[%s13226_s6 + $0x8] sm:$0xff] }
0x2e78   :  { %v7459_v6 = vrot.slane %v7458_v58, 4  ;;  %v7497_v27 = vrot.slane %v7496_v34, 4  ;;  %v7527_v17 = vmax.f32 %v7525_v56, %v7526_v25  ;;  %v7445_v50 = vrot.slane %v7444_v62, 1 }
0x2e79   :  { %v7483_v38 = vrot.slane %v7482_v5, 1  ;;  %v7416_v37 = vrot.slane %v7415_v24, 1  ;;  %v7522_v47 = vmax.f32 %v7520_v63, %v7521_v44  ;;  %v7423_v7 = vrot.slane %v7422_v28, 2 }
0x2e7a   :  { %v7460_v49 = vmax.f32 %v7458_v58, %v7459_v6  ;;  %v7498_v8 = vmax.f32 %v7496_v34, %v7497_v27  ;;  %v7528_v43 = vrot.slane %v7527_v17, 2  ;;  %v7408_v16 = vmax.f32 %v7406_v42, %v7407_v59  ;;  %v7962_v34 = vld [vmem:[%s13228_s5] ss:$0 sm:$0xff] }
0x2e7b   :  { %v7516_v39 = vrot.slane %v7515_v22, 1  ;;  %v7454_v48 = vrot.slane %v7453_v11, 1  ;;  %v7492_v20 = vrot.slane %v7491_v10, 1  ;;  %v7424_v32 = vmax.f32 %v7422_v28, %v7423_v7 }
0x2e7c   :  { %v7461_v57 = vrot.slane %v7460_v49, 2  ;;  %v7499_v23 = vrot.slane %v7498_v8, 2  ;;  %v7529_v45 = vmax.f32 %v7527_v17, %v7528_v43  ;;  %v7446_v29 = vmax.f32 %v7444_v62, %v7445_v50 }
0x2e7d   :  { %v7484_v26 = vmax.f32 %v7482_v5, %v7483_v38  ;;  %v7417_v3 = vmax.f32 %v7415_v24, %v7416_v37  ;;  %v7523_v12 = vrot.slane %v7522_v47, 1  ;;  %v7425_v46 = vrot.slane %v7424_v32, 1 }
0x2e7e   :  { %v7462_v60 = vmax.f32 %v7460_v49, %v7461_v57  ;;  %v7500_v36 = vmax.f32 %v7498_v8, %v7499_v23  ;;  %v7530_v1 = vrot.slane %v7529_v45, 1  ;;  %v7475_v14 = vmax.f32 %v13158_v35, %v7474_v15 }
0x2e7f   :  { %v7517_v42 = vmax.f32 %v7515_v22, %v7516_v39  ;;  %v7455_v4 = vmax.f32 %v7453_v11, %v7454_v48  ;;  %v7493_v61 = vmax.f32 %v7491_v10, %v7492_v20  ;;  %v7426_v63 = vmax.f32 %v7424_v32, %v7425_v46 }
0x2e80   :  { %v7463_v51 = vrot.slane %v7462_v60, 1  ;;  %v7501_v18 = vrot.slane %v7500_v36, 1  ;;  %v7536_v62 = vsel %vm13585_vm10, %v7408_v16, %v13163_v21  ;;  %v7524_v5 = vmax.f32 %v7522_v47, %v7523_v12 }
0x2e81   :  { %v7537_v40 = vsel %vm13586_vm11, %v7417_v3, %v7536_v62  ;;  %v7544_v9 = vsel %vm13587_vm13, %v7446_v29, %v13165_v41  ;;  %v7552_v55 = vsel %vm13588_vm14, %v7484_v26, %v7475_v14  ;;  %v7531_v35 = vmax.f32 %v7529_v45, %v7530_v1 }
0x2e82   :  { %v7464_v33 = vmax.f32 %v7462_v60, %v7463_v51  ;;  %v7502_v0 = vmax.f32 %v7500_v36, %v7501_v18  ;;  %v7538_v15 = vsel %vm13589_vm3, %v7426_v63, %v7537_v40  ;;  %v7545_v22 = vsel %vm13590_vm6, %v7455_v4, %v7544_v9 }
0x2e83   :  { %v7553_v2 = vsel %vm13591_vm7, %v7493_v61, %v7552_v55  ;;  %v7560_v54 = vsel %vm13594_vm8, %v7517_v42, %v13161_v52  ;;  %vm7566_vm0 = vcmask 195584   ;;  %vm13597_vm5 = vcmask 130048   ;;  %v7653_v52 = vld [vmem:[%s13226_s6] sm:$0xff] }
0x2e84   :  { %v7546_v53 = vsel %vm13592_vm9, %v7464_v33, %v7545_v22  ;;  %v7554_v21 = vsel %vm13593_vm12, %v7502_v0, %v7553_v2  ;;  %v7561_v41 = vsel %vm13595_vm2, %v7524_v5, %v7560_v54  ;;  %vm13598_vm10 = vcmask 261120  }
0x2e85   :  { %v7564_v56 = vsel %vm7389_vm1, %v7538_v15, %v7546_v53  ;;  %v7562_v13 = vsel %vm13596_vm15, %v7531_v35, %v7561_v41  ;;  %v13599_v44 = vmov 0.0   ;;  %v13_v58 = vstv %s13227_s7 }
0x2e86   :  { %v7565_v31 = vsel %vm13597_vm5, %v7564_v56, %v7554_v21  ;;  %14 = vst [vmem:[#allocation3] sm:$0x1] %v13_v58  ;;  %vm7741_vm1 = vcmask 3072  }
0x2e87   :  { %v7567_v30 = vsel %vm7566_vm0, %v7565_v31, %v7562_v13 }
0x2e88   :  { %8528 = vmatmul.mubr.msk.f32.vlgmr.msra.gmra.mxu1 %vm13598_vm10, %v7567_v30 }
0x2e89   :  { %8534 = vmatprep.mubr.msk.f32.mxu1 %vm13572_vm4, %v13599_v44  ;;  %8531 = vmatpush3.msra.mxu1 %v7654_v19  ;;  %vm13600_vm4 = vmmov %vm13597_vm5 }
0x2e8a   :  { %8532 = vmatprep.subr.mxu1 %v13599_v44 }
0x2e8b   :  { %8533 = vmatpush3.msra.mxu1 %v7653_v52 }
0x2e8d   :  { %v7964_v10 = vld [vmem:[#allocation3] ss:$0 sm:$0xff] }
0x2f48   :  { %v7648_v25 = vpop.f32.mrf.mxu1 }
0x2f49   :  { %v7649_v59 = vadd.f32 %v7962_v34, %v7648_v25 }
0x2f4a   :  { %v8529_v24 = vpop.f32.mrf.mxu1 }
0x2f4b   :  { %v7652_v11 = vmax.f32 %v7649_v59, 0.0 }
0x2f4d   :  { %8535 = vmatmul.mubr.msk.f32.vlgmr.msra.gmra.mxu1 %vm13600_vm4, %v7652_v11 }
0x300d   :  { %v7731_v28 = vpop.f32.mrf.mxu1 }
0x300e   :  { %v7732_v6 = vadd.f32 %v7964_v10, %v7731_v28 }
0x300f   :  { %v8536_v27 = vpop.f32.mrf.mxu1 }
0x3010   :  { %v7966_v17 = vmul.f32 -1.442695, %v7732_v6 }
0x3012   :  { %9607 = vpow2.f32 %v7966_v17 }
0x301f   :  { %v9608_v50 = vpop.eup %9607 }
0x3020   :  { %v7738_v38 = vadd.f32 1.0, %v9608_v50 }
0x3022   :  { %9609 = vrcp.f32 %v7738_v38 }
0x302f   :  { %v9610_v37 = vpop.eup %9609 }
0x3030   :  { %7742 = vst.msk [vmem:[%s13229_s8] sm:$0xf] %vm7741_vm1, %v9610_v37 }

</bundles_post_ra>
